<compile_context>
chip_gen: v7x
topology: tpu7x:2x2x1
jax: 0.10.0
libtpu: 0.0.40
codegen_flags: <defaults>
</compile_context>

<pallas_src>
import functools
import math

import jax
import jax.numpy as jnp
from jax.experimental import pallas as pl
from jax.experimental.pallas import tpu as pltpu


def _round_up(x, m):
    return (x + m - 1) // m * m


def _pick_batch_block(n, hw, max_rows=1024):
    """Largest divisor of n whose row block (nb*hw) stays VMEM-friendly."""
    nb = 1
    for d in range(1, n + 1):
        if n % d == 0 and d * hw <= max_rows:
            nb = d
    return nb


# ----------------------------------------------------------------------------
# Fused Bottleneck kernel (Nb images per grid step, everything in VMEM)
# ----------------------------------------------------------------------------
def _bottleneck_kernel(x_ref, w1_ref, w2_ref, w3_ref,
                       s1_ref, b1_ref, s2_ref, b2_ref, s3_ref, b3_ref,
                       o_ref, pad_ref, *, H, W):
    R = x_ref.shape[0]            # Nb * H * W rows in this block
    HW = H * W
    chp = pad_ref.shape[1]

    # ---- conv1 (1x1) + bn1 + relu ------------------------------------------
    acc1 = jnp.dot(x_ref[...], w1_ref[...], preferred_element_type=jnp.float32)
    y1 = jnp.maximum(acc1 * s1_ref[...] + b1_ref[...], 0.0)      # (R, Chp) f32

    # ---- stage y1 into the zero-bordered flat-spatial VMEM scratch ----------
    # rows: [0, 2W) zeros | [2W, 2W + R) = y1 (all images packed) | 2W zeros
    # Only the borders need (re)zeroing; the interior is fully overwritten.
    zero_border = jnp.zeros((2 * W, chp), pad_ref.dtype)
    pad_ref[pl.ds(0, 2 * W), :] = zero_border
    pad_ref[pl.ds(2 * W + R, 2 * W), :] = zero_border
    pad_ref[pl.ds(2 * W, R), :] = y1.astype(pad_ref.dtype)

    # Masks for the shifted views (images are packed back-to-back, so both the
    # horizontal wrap and the cross-image vertical bleed must be zeroed).
    r = jax.lax.broadcasted_iota(jnp.int32, (R, chp), 0)
    col = r % W                       # column within the image row
    q = r % HW                        # flat position within the image
    left_ok = col > 0                 # tap column j-1 exists
    right_ok = col < (W - 1)          # tap column j+1 exists
    top_ok = q >= W                   # tap row i-1 exists (same image)
    bot_ok = q < (HW - W)             # tap row i+1 exists (same image)

    # ---- conv2 (3x3, padding=1) via 9 shifted views + MXU matmuls -----------
    acc2 = None
    for a in range(3):                # vertical tap offset   (a - 1)
        for b in range(3):            # horizontal tap offset (b - 1)
            start = (a + 1) * W + (b - 1)        # offset into padded scratch
            tap = pad_ref[pl.ds(start, R), :]    # (R, Chp) bf16
            m = None
            if a == 0:
                m = top_ok
            elif a == 2:
                m = bot_ok
            if b == 0:
                m = left_ok if m is None else jnp.logical_and(m, left_ok)
            elif b == 2:
                m = right_ok if m is None else jnp.logical_and(m, right_ok)
            if m is not None:
                tap = jnp.where(m, tap, jnp.zeros_like(tap))
            contrib = jnp.dot(tap, w2_ref[3 * a + b],
                              preferred_element_type=jnp.float32)
            acc2 = contrib if acc2 is None else acc2 + contrib

    # ---- bn2 + residual (identity = y1) + relu -------------------------------
    y2 = jnp.maximum(acc2 * s2_ref[...] + b2_ref[...] + y1, 0.0)

    # ---- conv3 (1x1) + bn3 + relu --------------------------------------------
    acc3 = jnp.dot(y2.astype(jnp.bfloat16), w3_ref[...],
                   preferred_element_type=jnp.float32)
    y3 = jnp.maximum(acc3 * s3_ref[...] + b3_ref[...], 0.0)
    o_ref[...] = y3.astype(o_ref.dtype)


def bottleneck_forward(x_nhwc, params, *, max_block_rows=1024):
    """Fused Bottleneck forward.  x_nhwc: (N, H, W, Cin) f32 -> (N, H, W, Cout)."""
    N, H, W, Cin = x_nhwc.shape
    Chid = params['w1'].shape[1]
    Cout = params['w3'].shape[1]
    HW = H * W
    Cinp = _round_up(Cin, 128)
    Chp = _round_up(Chid, 128)
    Coutp = _round_up(Cout, 128)

    Nb = _pick_batch_block(N, HW, max_block_rows)   # images per grid step
    R = Nb * HW                                     # rows per grid step

    # Pad channels to lane width ONCE at the boundary; bf16 MXU operands.
    x = jnp.pad(x_nhwc.reshape(N * HW, Cin),
                ((0, 0), (0, Cinp - Cin))).astype(jnp.bfloat16)
    w1 = jnp.pad(params['w1'],
                 ((0, Cinp - Cin), (0, Chp - Chid))).astype(jnp.bfloat16)
    w2 = jnp.pad(params['w2'].reshape(9, Chid, Chid),
                 ((0, 0), (0, Chp - Chid), (0, Chp - Chid))).astype(jnp.bfloat16)
    w3 = jnp.pad(params['w3'],
                 ((0, Chp - Chid), (0, Coutp - Cout))).astype(jnp.bfloat16)

    def padvec(v, cp):
        return jnp.pad(v, (0, cp - v.shape[0])).reshape(1, cp).astype(jnp.float32)

    s1, b1 = padvec(params['s1'], Chp), padvec(params['b1'], Chp)
    s2, b2 = padvec(params['s2'], Chp), padvec(params['b2'], Chp)
    s3, b3 = padvec(params['s3'], Coutp), padvec(params['b3'], Coutp)

    kernel = functools.partial(_bottleneck_kernel, H=H, W=W)

    out = pl.pallas_call(
        kernel,
        out_shape=jax.ShapeDtypeStruct((N * HW, Coutp), jnp.float32),
        grid_spec=pltpu.PrefetchScalarGridSpec(
            num_scalar_prefetch=0,
            grid=(N // Nb,),
            in_specs=[
                pl.BlockSpec((R, Cinp), lambda g: (g, 0)),         # x rows
                pl.BlockSpec((Cinp, Chp), lambda g: (0, 0)),       # w1
                pl.BlockSpec((9, Chp, Chp), lambda g: (0, 0, 0)),  # w2 taps
                pl.BlockSpec((Chp, Coutp), lambda g: (0, 0)),      # w3
                pl.BlockSpec((1, Chp), lambda g: (0, 0)),          # s1
                pl.BlockSpec((1, Chp), lambda g: (0, 0)),          # b1
                pl.BlockSpec((1, Chp), lambda g: (0, 0)),          # s2
                pl.BlockSpec((1, Chp), lambda g: (0, 0)),          # b2
                pl.BlockSpec((1, Coutp), lambda g: (0, 0)),        # s3
                pl.BlockSpec((1, Coutp), lambda g: (0, 0)),        # b3
            ],
            out_specs=pl.BlockSpec((R, Coutp), lambda g: (g, 0)),
            scratch_shapes=[pltpu.VMEM((R + 4 * W, Chp), jnp.bfloat16)],
        ),
        compiler_params=pltpu.CompilerParams(
            dimension_semantics=("parallel",)),
    )(x, w1, w2, w3, s1, b1, s2, b2, s3, b3)

    return out[:, :Cout].reshape(N, H, W, Cout)


# ----------------------------------------------------------------------------
# Pure-JAX reference (same bf16 operand / f32 accumulation convention)
# ----------------------------------------------------------------------------
def bottleneck_reference(x, p):
    N, H, W, _ = x.shape
    bf = jnp.bfloat16

    def mm(t, w):  # (N,H,W,Ci) x (Ci,Co) -> (N,H,W,Co), bf16 operands, f32 acc
        return jax.lax.dot_general(t.astype(bf), w.astype(bf),
                                   (((t.ndim - 1,), (0,)), ((), ())),
                                   preferred_element_type=jnp.float32)

    y1 = jnp.maximum(mm(x, p['w1']) * p['s1'] + p['b1'], 0.0)
    y1p = jnp.pad(y1, ((0, 0), (1, 1), (1, 1), (0, 0)))
    acc = jnp.zeros(y1.shape[:3] + (p['w2'].shape[-1],), jnp.float32)
    for a in range(3):
        for b in range(3):
            acc = acc + mm(y1p[:, a:a + H, b:b + W, :], p['w2'][a, b])
    y2 = jnp.maximum(acc * p['s2'] + p['b2'] + y1, 0.0)
    y3 = jnp.maximum(mm(y2, p['w3']) * p['s3'] + p['b3'], 0.0)
    return y3


# ----------------------------------------------------------------------------
# Deterministic synthetic parameters (conv weights + folded BatchNorm affine)
# ----------------------------------------------------------------------------
def init_bottleneck_params(key, cin, chid, cout):
    ks = jax.random.split(key, 6)
    w1 = jax.random.normal(ks[0], (cin, chid), jnp.float32) * math.sqrt(2.0 / cin)
    w2 = jax.random.normal(ks[1], (3, 3, chid, chid), jnp.float32) * math.sqrt(2.0 / (9 * chid))
    w3 = jax.random.normal(ks[2], (chid, cout), jnp.float32) * math.sqrt(2.0 / chid)

    def bn(k, c):
        k1, k2, k3, k4 = jax.random.split(k, 4)
        gamma = 1.0 + 0.05 * jax.random.normal(k1, (c,), jnp.float32)
        beta = 0.05 * jax.random.normal(k2, (c,), jnp.float32)
        mean = 0.05 * jax.random.normal(k3, (c,), jnp.float32)
        var = jax.random.uniform(k4, (c,), jnp.float32, minval=0.5, maxval=1.5)
        scale = gamma / jnp.sqrt(var + 1e-5)
        shift = beta - mean * scale
        return scale, shift

    s1, b1 = bn(ks[3], chid)
    s2, b2 = bn(ks[4], chid)
    s3, b3 = bn(ks[5], cout)
    return dict(w1=w1, w2=w2, w3=w3, s1=s1, b1=b1, s2=s2, b2=b2, s3=s3, b3=b3)


# ----------------------------------------------------------------------------
if __name__ == "__main__":
    key = jax.random.PRNGKey(0)
    k_x, k_p = jax.random.split(key)

    N, H, W = 2, 16, 16
    in_features, hidden_features, out_features = 16, 8, 32

    # NHWC input (PyTorch NCHW equivalent: (2, 16, 16, 16))
    x = jax.random.normal(k_x, (N, H, W, in_features), jnp.float32)
    params = init_bottleneck_params(k_p, in_features, hidden_features, out_features)

    fwd = jax.jit(bottleneck_forward)
    out = jax.block_until_ready(fwd(x, params))

    assert out.shape == (N, H, W, out_features), out.shape
    assert bool(jnp.all(jnp.isfinite(out)))

    ref = bottleneck_reference(x, params)
    max_err = float(jnp.max(jnp.abs(out - ref)))
    assert max_err < 2e-2, f"max abs error vs reference: {max_err}"

    print("KERNEL_OK")
</pallas_src>

<mosaic_0001>
module attributes {stable_mosaic.version = 11 : i64} {
  func.func @_bottleneck_kernel(%arg0: i32, %arg1: memref<512x128xbf16, #tpu.memory_space<vmem>>, %arg2: memref<128x128xbf16, #tpu.memory_space<vmem>>, %arg3: memref<9x128x128xbf16, #tpu.memory_space<vmem>>, %arg4: memref<128x128xbf16, #tpu.memory_space<vmem>>, %arg5: memref<1x128xf32, #tpu.memory_space<vmem>>, %arg6: memref<1x128xf32, #tpu.memory_space<vmem>>, %arg7: memref<1x128xf32, #tpu.memory_space<vmem>>, %arg8: memref<1x128xf32, #tpu.memory_space<vmem>>, %arg9: memref<1x128xf32, #tpu.memory_space<vmem>>, %arg10: memref<1x128xf32, #tpu.memory_space<vmem>>, %arg11: memref<512x128xf32, #tpu.memory_space<vmem>>, %arg12: memref<576x128xbf16, #tpu.memory_space<vmem>>) attributes {dimension_semantics = [#tpu.dimension_semantics<parallel>], iteration_bounds = array<i64: 1>, scalar_prefetch = 0 : i64, scratch_operands = 1 : i64, tpu.core_type = #tpu.core_type<tc>, window_params = [{transform_indices = @transform_0, window_bounds = array<i64: 512, 128>}, {pipeline_mode = #tpu.pipeline_mode<synchronous>, transform_indices = @transform_1, window_bounds = array<i64: 128, 128>}, {pipeline_mode = #tpu.pipeline_mode<synchronous>, transform_indices = @transform_2, window_bounds = array<i64: 9, 128, 128>}, {pipeline_mode = #tpu.pipeline_mode<synchronous>, transform_indices = @transform_3, window_bounds = array<i64: 128, 128>}, {pipeline_mode = #tpu.pipeline_mode<synchronous>, transform_indices = @transform_4, window_bounds = array<i64: 1, 128>}, {pipeline_mode = #tpu.pipeline_mode<synchronous>, transform_indices = @transform_5, window_bounds = array<i64: 1, 128>}, {pipeline_mode = #tpu.pipeline_mode<synchronous>, transform_indices = @transform_6, window_bounds = array<i64: 1, 128>}, {pipeline_mode = #tpu.pipeline_mode<synchronous>, transform_indices = @transform_7, window_bounds = array<i64: 1, 128>}, {pipeline_mode = #tpu.pipeline_mode<synchronous>, transform_indices = @transform_8, window_bounds = array<i64: 1, 128>}, {pipeline_mode = #tpu.pipeline_mode<synchronous>, transform_indices = @transform_9, window_bounds = array<i64: 1, 128>}, {transform_indices = @transform_10, window_bounds = array<i64: 512, 128>}]} {
    %c0 = arith.constant 0 : index
    %c0_0 = arith.constant 0 : index
    %0 = vector.load %arg1[%c0, %c0_0] : memref<512x128xbf16, #tpu.memory_space<vmem>>, vector<512x128xbf16>
    %c0_1 = arith.constant 0 : index
    %c0_2 = arith.constant 0 : index
    %1 = vector.load %arg2[%c0_1, %c0_2] : memref<128x128xbf16, #tpu.memory_space<vmem>>, vector<128x128xbf16>
    %cst = arith.constant dense<0.000000e+00> : vector<512x128xf32>
    %2 = tpu.matmul %0, %1, %cst {dimension_numbers = #tpu.dot_dimension_numbers<[1], [0], [0], [1], [0, 0, 1, 1], [], []>} : vector<512x128xbf16>, vector<128x128xbf16>, vector<512x128xf32> -> vector<512x128xf32>
    %c0_3 = arith.constant 0 : index
    %c0_4 = arith.constant 0 : index
    %3 = vector.load %arg5[%c0_3, %c0_4] : memref<1x128xf32, #tpu.memory_space<vmem>>, vector<1x128xf32>
    %4 = vector.broadcast %3 : vector<1x128xf32> to vector<512x128xf32>
    %5 = arith.mulf %2, %4 : vector<512x128xf32>
    %c0_5 = arith.constant 0 : index
    %c0_6 = arith.constant 0 : index
    %6 = vector.load %arg6[%c0_5, %c0_6] : memref<1x128xf32, #tpu.memory_space<vmem>>, vector<1x128xf32>
    %7 = vector.broadcast %6 : vector<1x128xf32> to vector<512x128xf32>
    %8 = arith.addf %5, %7 : vector<512x128xf32>
    %cst_7 = arith.constant 0.000000e+00 : f32
    %9 = vector.broadcast %cst_7 : f32 to vector<512x128xf32>
    %10 = arith.maximumf %8, %9 : vector<512x128xf32>
    %cst_8 = arith.constant 0.000000e+00 : bf16
    %11 = vector.broadcast %cst_8 : bf16 to vector<32x128xbf16>
    %c0_9 = arith.constant 0 : index
    %c0_10 = arith.constant 0 : index
    %12 = vector.load %arg12[%c0_9, %c0_10] : memref<576x128xbf16, #tpu.memory_space<vmem>>, vector<32x128xbf16>
    tpu.vector_store %arg12[%c0_9, %c0_10], %11 {strides = array<i32>} : memref<576x128xbf16, #tpu.memory_space<vmem>>, vector<32x128xbf16>,
    %c544 = arith.constant 544 : index
    %c0_11 = arith.constant 0 : index
    %13 = vector.load %arg12[%c544, %c0_11] : memref<576x128xbf16, #tpu.memory_space<vmem>>, vector<32x128xbf16>
    tpu.vector_store %arg12[%c544, %c0_11], %11 {strides = array<i32>} : memref<576x128xbf16, #tpu.memory_space<vmem>>, vector<32x128xbf16>,
    %14 = arith.truncf %10 : vector<512x128xf32> to vector<512x128xbf16>
    %c32 = arith.constant 32 : index
    %c0_12 = arith.constant 0 : index
    %15 = vector.load %arg12[%c32, %c0_12] : memref<576x128xbf16, #tpu.memory_space<vmem>>, vector<512x128xbf16>
    tpu.vector_store %arg12[%c32, %c0_12], %14 {strides = array<i32>} : memref<576x128xbf16, #tpu.memory_space<vmem>>, vector<512x128xbf16>,
    %16 = tpu.iota {dimensions = array<i32: 0>} : vector<512x128xi32>
    %c16_i32 = arith.constant 16 : i32
    %c0_i32 = arith.constant 0 : i32
    %17 = arith.cmpi eq, %c16_i32, %c0_i32 : i32
    %c1_i32 = arith.constant 1 : i32
    %18 = arith.select %17, %c1_i32, %c16_i32 : i32
    %19 = vector.broadcast %18 : i32 to vector<512x128xi32>
    %20 = arith.remsi %16, %19 : vector<512x128xi32>
    %c0_i32_13 = arith.constant 0 : i32
    %21 = vector.broadcast %c0_i32_13 : i32 to vector<512x128xi32>
    %22 = arith.cmpi ne, %20, %21 : vector<512x128xi32>
    %c0_i32_14 = arith.constant 0 : i32
    %23 = vector.broadcast %c0_i32_14 : i32 to vector<512x128xi32>
    %24 = arith.cmpi slt, %20, %23 : vector<512x128xi32>
    %c0_i32_15 = arith.constant 0 : i32
    %25 = arith.cmpi slt, %18, %c0_i32_15 : i32
    %26 = vector.broadcast %25 : i1 to vector<512x128xi1>
    %27 = vector.broadcast %26 : vector<512x128xi1> to vector<512x128xi1>
    %28 = arith.xori %24, %27 : vector<512x128xi1>
    %29 = arith.andi %28, %22 : vector<512x128xi1>
    %30 = vector.broadcast %18 : i32 to vector<512x128xi32>
    %31 = arith.addi %20, %30 : vector<512x128xi32>
    %32 = arith.select %29, %31, %20 : vector<512x128xi1>, vector<512x128xi32>
    %c256_i32 = arith.constant 256 : i32
    %c0_i32_16 = arith.constant 0 : i32
    %33 = arith.cmpi eq, %c256_i32, %c0_i32_16 : i32
    %c1_i32_17 = arith.constant 1 : i32
    %34 = arith.select %33, %c1_i32_17, %c256_i32 : i32
    %35 = vector.broadcast %34 : i32 to vector<512x128xi32>
    %36 = arith.remsi %16, %35 : vector<512x128xi32>
    %c0_i32_18 = arith.constant 0 : i32
    %37 = vector.broadcast %c0_i32_18 : i32 to vector<512x128xi32>
    %38 = arith.cmpi ne, %36, %37 : vector<512x128xi32>
    %c0_i32_19 = arith.constant 0 : i32
    %39 = vector.broadcast %c0_i32_19 : i32 to vector<512x128xi32>
    %40 = arith.cmpi slt, %36, %39 : vector<512x128xi32>
    %c0_i32_20 = arith.constant 0 : i32
    %41 = arith.cmpi slt, %34, %c0_i32_20 : i32
    %42 = vector.broadcast %41 : i1 to vector<512x128xi1>
    %43 = vector.broadcast %42 : vector<512x128xi1> to vector<512x128xi1>
    %44 = arith.xori %40, %43 : vector<512x128xi1>
    %45 = arith.andi %44, %38 : vector<512x128xi1>
    %46 = vector.broadcast %34 : i32 to vector<512x128xi32>
    %47 = arith.addi %36, %46 : vector<512x128xi32>
    %48 = arith.select %45, %47, %36 : vector<512x128xi1>, vector<512x128xi32>
    %c0_i32_21 = arith.constant 0 : i32
    %49 = vector.broadcast %c0_i32_21 : i32 to vector<512x128xi32>
    %50 = arith.cmpi sgt, %32, %49 : vector<512x128xi32>
    %c15_i32 = arith.constant 15 : i32
    %51 = vector.broadcast %c15_i32 : i32 to vector<512x128xi32>
    %52 = arith.cmpi slt, %32, %51 : vector<512x128xi32>
    %c16_i32_22 = arith.constant 16 : i32
    %53 = vector.broadcast %c16_i32_22 : i32 to vector<512x128xi32>
    %54 = arith.cmpi sge, %48, %53 : vector<512x128xi32>
    %c240_i32 = arith.constant 240 : i32
    %55 = vector.broadcast %c240_i32 : i32 to vector<512x128xi32>
    %56 = arith.cmpi slt, %48, %55 : vector<512x128xi32>
    %c15 = arith.constant 15 : index
    %c0_23 = arith.constant 0 : index
    %57 = vector.load %arg12[%c15, %c0_23] : memref<576x128xbf16, #tpu.memory_space<vmem>>, vector<512x128xbf16>
    %58 = arith.andi %54, %50 : vector<512x128xi1>
    %cst_24 = arith.constant 0.000000e+00 : bf16
    %59 = vector.broadcast %cst_24 : bf16 to vector<512x128xbf16>
    %60 = arith.select %58, %57, %59 : vector<512x128xi1>, vector<512x128xbf16>
    %c0_25 = arith.constant 0 : index
    %c0_26 = arith.constant 0 : index
    %c0_27 = arith.constant 0 : index
    %61 = vector.load %arg3[%c0_25, %c0_26, %c0_27] : memref<9x128x128xbf16, #tpu.memory_space<vmem>>, vector<1x128x128xbf16>
    %62 = vector.shape_cast %61 : vector<1x128x128xbf16> to vector<128x128xbf16>
    %cst_28 = arith.constant dense<0.000000e+00> : vector<512x128xf32>
    %63 = tpu.matmul %60, %62, %cst_28 {dimension_numbers = #tpu.dot_dimension_numbers<[1], [0], [0], [1], [0, 0, 1, 1], [], []>} : vector<512x128xbf16>, vector<128x128xbf16>, vector<512x128xf32> -> vector<512x128xf32>
    %c16 = arith.constant 16 : index
    %c0_29 = arith.constant 0 : index
    %64 = vector.load %arg12[%c16, %c0_29] : memref<576x128xbf16, #tpu.memory_space<vmem>>, vector<512x128xbf16>
    %cst_30 = arith.constant 0.000000e+00 : bf16
    %65 = vector.broadcast %cst_30 : bf16 to vector<512x128xbf16>
    %66 = arith.select %54, %64, %65 : vector<512x128xi1>, vector<512x128xbf16>
    %c1 = arith.constant 1 : index
    %c0_31 = arith.constant 0 : index
    %c0_32 = arith.constant 0 : index
    %67 = vector.load %arg3[%c1, %c0_31, %c0_32] : memref<9x128x128xbf16, #tpu.memory_space<vmem>>, vector<1x128x128xbf16>
    %68 = vector.shape_cast %67 : vector<1x128x128xbf16> to vector<128x128xbf16>
    %cst_33 = arith.constant dense<0.000000e+00> : vector<512x128xf32>
    %69 = tpu.matmul %66, %68, %cst_33 {dimension_numbers = #tpu.dot_dimension_numbers<[1], [0], [0], [1], [0, 0, 1, 1], [], []>} : vector<512x128xbf16>, vector<128x128xbf16>, vector<512x128xf32> -> vector<512x128xf32>
    %70 = arith.addf %63, %69 : vector<512x128xf32>
    %c17 = arith.constant 17 : index
    %c0_34 = arith.constant 0 : index
    %71 = vector.load %arg12[%c17, %c0_34] : memref<576x128xbf16, #tpu.memory_space<vmem>>, vector<512x128xbf16>
    %72 = arith.andi %54, %52 : vector<512x128xi1>
    %cst_35 = arith.constant 0.000000e+00 : bf16
    %73 = vector.broadcast %cst_35 : bf16 to vector<512x128xbf16>
    %74 = arith.select %72, %71, %73 : vector<512x128xi1>, vector<512x128xbf16>
    %c2 = arith.constant 2 : index
    %c0_36 = arith.constant 0 : index
    %c0_37 = arith.constant 0 : index
    %75 = vector.load %arg3[%c2, %c0_36, %c0_37] : memref<9x128x128xbf16, #tpu.memory_space<vmem>>, vector<1x128x128xbf16>
    %76 = vector.shape_cast %75 : vector<1x128x128xbf16> to vector<128x128xbf16>
    %cst_38 = arith.constant dense<0.000000e+00> : vector<512x128xf32>
    %77 = tpu.matmul %74, %76, %cst_38 {dimension_numbers = #tpu.dot_dimension_numbers<[1], [0], [0], [1], [0, 0, 1, 1], [], []>} : vector<512x128xbf16>, vector<128x128xbf16>, vector<512x128xf32> -> vector<512x128xf32>
    %78 = arith.addf %70, %77 : vector<512x128xf32>
    %c31 = arith.constant 31 : index
    %c0_39 = arith.constant 0 : index
    %79 = vector.load %arg12[%c31, %c0_39] : memref<576x128xbf16, #tpu.memory_space<vmem>>, vector<512x128xbf16>
    %cst_40 = arith.constant 0.000000e+00 : bf16
    %80 = vector.broadcast %cst_40 : bf16 to vector<512x128xbf16>
    %81 = arith.select %50, %79, %80 : vector<512x128xi1>, vector<512x128xbf16>
    %c3 = arith.constant 3 : index
    %c0_41 = arith.constant 0 : index
    %c0_42 = arith.constant 0 : index
    %82 = vector.load %arg3[%c3, %c0_41, %c0_42] : memref<9x128x128xbf16, #tpu.memory_space<vmem>>, vector<1x128x128xbf16>
    %83 = vector.shape_cast %82 : vector<1x128x128xbf16> to vector<128x128xbf16>
    %cst_43 = arith.constant dense<0.000000e+00> : vector<512x128xf32>
    %84 = tpu.matmul %81, %83, %cst_43 {dimension_numbers = #tpu.dot_dimension_numbers<[1], [0], [0], [1], [0, 0, 1, 1], [], []>} : vector<512x128xbf16>, vector<128x128xbf16>, vector<512x128xf32> -> vector<512x128xf32>
    %85 = arith.addf %78, %84 : vector<512x128xf32>
    %c32_44 = arith.constant 32 : index
    %c0_45 = arith.constant 0 : index
    %86 = vector.load %arg12[%c32_44, %c0_45] : memref<576x128xbf16, #tpu.memory_space<vmem>>, vector<512x128xbf16>
    %c4 = arith.constant 4 : index
    %c0_46 = arith.constant 0 : index
    %c0_47 = arith.constant 0 : index
    %87 = vector.load %arg3[%c4, %c0_46, %c0_47] : memref<9x128x128xbf16, #tpu.memory_space<vmem>>, vector<1x128x128xbf16>
    %88 = vector.shape_cast %87 : vector<1x128x128xbf16> to vector<128x128xbf16>
    %cst_48 = arith.constant dense<0.000000e+00> : vector<512x128xf32>
    %89 = tpu.matmul %86, %88, %cst_48 {dimension_numbers = #tpu.dot_dimension_numbers<[1], [0], [0], [1], [0, 0, 1, 1], [], []>} : vector<512x128xbf16>, vector<128x128xbf16>, vector<512x128xf32> -> vector<512x128xf32>
    %90 = arith.addf %85, %89 : vector<512x128xf32>
    %c33 = arith.constant 33 : index
    %c0_49 = arith.constant 0 : index
    %91 = vector.load %arg12[%c33, %c0_49] : memref<576x128xbf16, #tpu.memory_space<vmem>>, vector<512x128xbf16>
    %cst_50 = arith.constant 0.000000e+00 : bf16
    %92 = vector.broadcast %cst_50 : bf16 to vector<512x128xbf16>
    %93 = arith.select %52, %91, %92 : vector<512x128xi1>, vector<512x128xbf16>
    %c5 = arith.constant 5 : index
    %c0_51 = arith.constant 0 : index
    %c0_52 = arith.constant 0 : index
    %94 = vector.load %arg3[%c5, %c0_51, %c0_52] : memref<9x128x128xbf16, #tpu.memory_space<vmem>>, vector<1x128x128xbf16>
    %95 = vector.shape_cast %94 : vector<1x128x128xbf16> to vector<128x128xbf16>
    %cst_53 = arith.constant dense<0.000000e+00> : vector<512x128xf32>
    %96 = tpu.matmul %93, %95, %cst_53 {dimension_numbers = #tpu.dot_dimension_numbers<[1], [0], [0], [1], [0, 0, 1, 1], [], []>} : vector<512x128xbf16>, vector<128x128xbf16>, vector<512x128xf32> -> vector<512x128xf32>
    %97 = arith.addf %90, %96 : vector<512x128xf32>
    %c47 = arith.constant 47 : index
    %c0_54 = arith.constant 0 : index
    %98 = vector.load %arg12[%c47, %c0_54] : memref<576x128xbf16, #tpu.memory_space<vmem>>, vector<512x128xbf16>
    %99 = arith.andi %56, %50 : vector<512x128xi1>
    %cst_55 = arith.constant 0.000000e+00 : bf16
    %100 = vector.broadcast %cst_55 : bf16 to vector<512x128xbf16>
    %101 = arith.select %99, %98, %100 : vector<512x128xi1>, vector<512x128xbf16>
    %c6 = arith.constant 6 : index
    %c0_56 = arith.constant 0 : index
    %c0_57 = arith.constant 0 : index
    %102 = vector.load %arg3[%c6, %c0_56, %c0_57] : memref<9x128x128xbf16, #tpu.memory_space<vmem>>, vector<1x128x128xbf16>
    %103 = vector.shape_cast %102 : vector<1x128x128xbf16> to vector<128x128xbf16>
    %cst_58 = arith.constant dense<0.000000e+00> : vector<512x128xf32>
    %104 = tpu.matmul %101, %103, %cst_58 {dimension_numbers = #tpu.dot_dimension_numbers<[1], [0], [0], [1], [0, 0, 1, 1], [], []>} : vector<512x128xbf16>, vector<128x128xbf16>, vector<512x128xf32> -> vector<512x128xf32>
    %105 = arith.addf %97, %104 : vector<512x128xf32>
    %c48 = arith.constant 48 : index
    %c0_59 = arith.constant 0 : index
    %106 = vector.load %arg12[%c48, %c0_59] : memref<576x128xbf16, #tpu.memory_space<vmem>>, vector<512x128xbf16>
    %cst_60 = arith.constant 0.000000e+00 : bf16
    %107 = vector.broadcast %cst_60 : bf16 to vector<512x128xbf16>
    %108 = arith.select %56, %106, %107 : vector<512x128xi1>, vector<512x128xbf16>
    %c7 = arith.constant 7 : index
    %c0_61 = arith.constant 0 : index
    %c0_62 = arith.constant 0 : index
    %109 = vector.load %arg3[%c7, %c0_61, %c0_62] : memref<9x128x128xbf16, #tpu.memory_space<vmem>>, vector<1x128x128xbf16>
    %110 = vector.shape_cast %109 : vector<1x128x128xbf16> to vector<128x128xbf16>
    %cst_63 = arith.constant dense<0.000000e+00> : vector<512x128xf32>
    %111 = tpu.matmul %108, %110, %cst_63 {dimension_numbers = #tpu.dot_dimension_numbers<[1], [0], [0], [1], [0, 0, 1, 1], [], []>} : vector<512x128xbf16>, vector<128x128xbf16>, vector<512x128xf32> -> vector<512x128xf32>
    %112 = arith.addf %105, %111 : vector<512x128xf32>
    %c49 = arith.constant 49 : index
    %c0_64 = arith.constant 0 : index
    %113 = vector.load %arg12[%c49, %c0_64] : memref<576x128xbf16, #tpu.memory_space<vmem>>, vector<512x128xbf16>
    %114 = arith.andi %56, %52 : vector<512x128xi1>
    %cst_65 = arith.constant 0.000000e+00 : bf16
    %115 = vector.broadcast %cst_65 : bf16 to vector<512x128xbf16>
    %116 = arith.select %114, %113, %115 : vector<512x128xi1>, vector<512x128xbf16>
    %c8 = arith.constant 8 : index
    %c0_66 = arith.constant 0 : index
    %c0_67 = arith.constant 0 : index
    %117 = vector.load %arg3[%c8, %c0_66, %c0_67] : memref<9x128x128xbf16, #tpu.memory_space<vmem>>, vector<1x128x128xbf16>
    %118 = vector.shape_cast %117 : vector<1x128x128xbf16> to vector<128x128xbf16>
    %cst_68 = arith.constant dense<0.000000e+00> : vector<512x128xf32>
    %119 = tpu.matmul %116, %118, %cst_68 {dimension_numbers = #tpu.dot_dimension_numbers<[1], [0], [0], [1], [0, 0, 1, 1], [], []>} : vector<512x128xbf16>, vector<128x128xbf16>, vector<512x128xf32> -> vector<512x128xf32>
    %120 = arith.addf %112, %119 : vector<512x128xf32>
    %c0_69 = arith.constant 0 : index
    %c0_70 = arith.constant 0 : index
    %121 = vector.load %arg7[%c0_69, %c0_70] : memref<1x128xf32, #tpu.memory_space<vmem>>, vector<1x128xf32>
    %122 = vector.broadcast %121 : vector<1x128xf32> to vector<512x128xf32>
    %123 = arith.mulf %120, %122 : vector<512x128xf32>
    %c0_71 = arith.constant 0 : index
    %c0_72 = arith.constant 0 : index
    %124 = vector.load %arg8[%c0_71, %c0_72] : memref<1x128xf32, #tpu.memory_space<vmem>>, vector<1x128xf32>
    %125 = vector.broadcast %124 : vector<1x128xf32> to vector<512x128xf32>
    %126 = arith.addf %123, %125 : vector<512x128xf32>
    %127 = arith.addf %126, %10 : vector<512x128xf32>
    %cst_73 = arith.constant 0.000000e+00 : f32
    %128 = vector.broadcast %cst_73 : f32 to vector<512x128xf32>
    %129 = arith.maximumf %127, %128 : vector<512x128xf32>
    %130 = arith.truncf %129 : vector<512x128xf32> to vector<512x128xbf16>
    %c0_74 = arith.constant 0 : index
    %c0_75 = arith.constant 0 : index
    %131 = vector.load %arg4[%c0_74, %c0_75] : memref<128x128xbf16, #tpu.memory_space<vmem>>, vector<128x128xbf16>
    %cst_76 = arith.constant dense<0.000000e+00> : vector<512x128xf32>
    %132 = tpu.matmul %130, %131, %cst_76 {dimension_numbers = #tpu.dot_dimension_numbers<[1], [0], [0], [1], [0, 0, 1, 1], [], []>} : vector<512x128xbf16>, vector<128x128xbf16>, vector<512x128xf32> -> vector<512x128xf32>
    %c0_77 = arith.constant 0 : index
    %c0_78 = arith.constant 0 : index
    %133 = vector.load %arg9[%c0_77, %c0_78] : memref<1x128xf32, #tpu.memory_space<vmem>>, vector<1x128xf32>
    %134 = vector.broadcast %133 : vector<1x128xf32> to vector<512x128xf32>
    %135 = arith.mulf %132, %134 : vector<512x128xf32>
    %c0_79 = arith.constant 0 : index
    %c0_80 = arith.constant 0 : index
    %136 = vector.load %arg10[%c0_79, %c0_80] : memref<1x128xf32, #tpu.memory_space<vmem>>, vector<1x128xf32>
    %137 = vector.broadcast %136 : vector<1x128xf32> to vector<512x128xf32>
    %138 = arith.addf %135, %137 : vector<512x128xf32>
    %cst_81 = arith.constant 0.000000e+00 : f32
    %139 = vector.broadcast %cst_81 : f32 to vector<512x128xf32>
    %140 = arith.maximumf %138, %139 : vector<512x128xf32>
    %c0_82 = arith.constant 0 : index
    %c0_83 = arith.constant 0 : index
    %141 = vector.load %arg11[%c0_82, %c0_83] : memref<512x128xf32, #tpu.memory_space<vmem>>, vector<512x128xf32>
    tpu.vector_store %arg11[%c0_82, %c0_83], %140 {strides = array<i32>} : memref<512x128xf32, #tpu.memory_space<vmem>>, vector<512x128xf32>,
    return
  }
  func.func @transform_0(%arg0: i32) -> (i32, i32) {
    %c0_i32 = arith.constant 0 : i32
    %c0_i32_0 = arith.constant 0 : i32
    return %arg0, %c0_i32 : i32, i32
  }
  func.func @transform_1(%arg0: i32) -> (i32, i32) {
    %c0_i32 = arith.constant 0 : i32
    %c0_i32_0 = arith.constant 0 : i32
    %c0_i32_1 = arith.constant 0 : i32
    return %c0_i32, %c0_i32_0 : i32, i32
  }
  func.func @transform_2(%arg0: i32) -> (i32, i32, i32) {
    %c0_i32 = arith.constant 0 : i32
    %c0_i32_0 = arith.constant 0 : i32
    %c0_i32_1 = arith.constant 0 : i32
    %c0_i32_2 = arith.constant 0 : i32
    return %c0_i32, %c0_i32_0, %c0_i32_1 : i32, i32, i32
  }
  func.func @transform_3(%arg0: i32) -> (i32, i32) {
    %c0_i32 = arith.constant 0 : i32
    %c0_i32_0 = arith.constant 0 : i32
    %c0_i32_1 = arith.constant 0 : i32
    return %c0_i32, %c0_i32_0 : i32, i32
  }
  func.func @transform_4(%arg0: i32) -> (i32, i32) {
    %c0_i32 = arith.constant 0 : i32
    %c0_i32_0 = arith.constant 0 : i32
    %c0_i32_1 = arith.constant 0 : i32
    return %c0_i32, %c0_i32_0 : i32, i32
  }
  func.func @transform_5(%arg0: i32) -> (i32, i32) {
    %c0_i32 = arith.constant 0 : i32
    %c0_i32_0 = arith.constant 0 : i32
    %c0_i32_1 = arith.constant 0 : i32
    return %c0_i32, %c0_i32_0 : i32, i32
  }
  func.func @transform_6(%arg0: i32) -> (i32, i32) {
    %c0_i32 = arith.constant 0 : i32
    %c0_i32_0 = arith.constant 0 : i32
    %c0_i32_1 = arith.constant 0 : i32
    return %c0_i32, %c0_i32_0 : i32, i32
  }
  func.func @transform_7(%arg0: i32) -> (i32, i32) {
    %c0_i32 = arith.constant 0 : i32
    %c0_i32_0 = arith.constant 0 : i32
    %c0_i32_1 = arith.constant 0 : i32
    return %c0_i32, %c0_i32_0 : i32, i32
  }
  func.func @transform_8(%arg0: i32) -> (i32, i32) {
    %c0_i32 = arith.constant 0 : i32
    %c0_i32_0 = arith.constant 0 : i32
    %c0_i32_1 = arith.constant 0 : i32
    return %c0_i32, %c0_i32_0 : i32, i32
  }
  func.func @transform_9(%arg0: i32) -> (i32, i32) {
    %c0_i32 = arith.constant 0 : i32
    %c0_i32_0 = arith.constant 0 : i32
    %c0_i32_1 = arith.constant 0 : i32
    return %c0_i32, %c0_i32_0 : i32, i32
  }
  func.func @transform_10(%arg0: i32) -> (i32, i32) {
    %c0_i32 = arith.constant 0 : i32
    %c0_i32_0 = arith.constant 0 : i32
    return %arg0, %c0_i32 : i32, i32
  }
}

</mosaic_0001>

<bundles_post_ra>
// kernel: bottleneck_forward.1
= control target key start
LH: loop header
LB: loop body
LE: loop exit
PB: predicated region body
PF: predicated region fallthrough
CT: control target
= control target key end

     0   :  { %s21151_s0 = inlined_call_operand.vmem [shape: bf16[512,128], index: 0, kind: input, shape index: {}]   ;;  %s21152_s1 = inlined_call_operand.vmem [shape: bf16[128,128], index: 1, kind: input, shape index: {}]   ;;  %s21153_s2 = inlined_call_operand.vmem [shape: bf16[9,128,128], index: 2, kind: input, shape index: {}]   ;;  %s21154_s3 = inlined_call_operand.vmem [shape: bf16[128,128], index: 3, kind: input, shape index: {}]   ;;  %s21155_s4 = inlined_call_operand.vmem [shape: f32[1,128], index: 4, kind: input, shape index: {}]   ;;  %s21156_s5 = inlined_call_operand.vmem [shape: f32[1,128], index: 5, kind: input, shape index: {}]   ;;  %s21157_s6 = inlined_call_operand.vmem [shape: f32[1,128], index: 6, kind: input, shape index: {}]   ;;  %s21158_s7 = inlined_call_operand.vmem [shape: f32[1,128], index: 7, kind: input, shape index: {}]   ;;  %s21159_s8 = inlined_call_operand.vmem [shape: f32[1,128], index: 8, kind: input, shape index: {}]   ;;  %s21160_s9 = inlined_call_operand.vmem [shape: f32[1,128], index: 9, kind: input, shape index: {}]   ;;  %s21161_s10 = inlined_call_operand.hbm [shape: f32[512,128], index: 10, kind: output, shape index: {}]  }
   0x1   :  { %v15773_v0 = vld [vmem:[%s21152_s1] sm:$0xff]   ;;  %v15774_v1 = vld [vmem:[%s21152_s1 + $0x8] sm:$0xff]   ;;  %v15775_v2 = vld [vmem:[%s21152_s1 + $0x10] sm:$0xff]  }
   0x2   :  { %14359 = vmatprep.subr.bf16.mxu0 %v15773_v0  ;;  %v15776_v3 = vld [vmem:[%s21152_s1 + $0x18] sm:$0xff]   ;;  %v15781_v4 = vld [vmem:[%s21151_s0] sm:$0xff]   ;;  %v15778_v6 = vld [vmem:[%s21152_s1 + $0x28] sm:$0xff]  }
   0x3   :  { %14360 = vmatpush3.bf16.msra.mxu0 %v15773_v0  ;;  %14375 = vmatprep.mubr.bf16.mxu0 %v15781_v4  ;;  %v15777_v5 = vld [vmem:[%s21152_s1 + $0x20] sm:$0xff]   ;;  %v15779_v7 = vld [vmem:[%s21152_s1 + $0x30] sm:$0xff]   ;;  %v15780_v8 = vld [vmem:[%s21152_s1 + $0x38] sm:$0xff]  }
   0x4   :  { %14361 = vmatprep.subr.bf16.mxu0 %v15774_v1  ;;  %v15782_v9 = vld [vmem:[%s21151_s0 + $0x8] sm:$0xff]   ;;  %v15783_v10 = vld [vmem:[%s21151_s0 + $0x10] sm:$0xff]   ;;  %v15784_v11 = vld [vmem:[%s21151_s0 + $0x18] sm:$0xff]  }
   0x5   :  { %v15785_v12 = vld [vmem:[%s21151_s0 + $0x20] sm:$0xff]   ;;  %v15814_v14 = vld [vmem:[%s21153_s2 + $0x48] sm:$0xff]   ;;  %v15815_v15 = vld [vmem:[%s21153_s2 + $0x50] sm:$0xff]  }
   0x6   :  { %v15813_v13 = vld [vmem:[%s21153_s2 + $0x40] sm:$0xff]   ;;  %v15786_v16 = vld [vmem:[%s21151_s0 + $0x28] sm:$0xff]   ;;  %v15787_v17 = vld [vmem:[%s21151_s0 + $0x30] sm:$0xff]  }
   0x7   :  { %14362 = vmatpush3.bf16.msra.mxu0 %v15774_v1  ;;  %v15788_v18 = vld [vmem:[%s21151_s0 + $0x38] sm:$0xff]   ;;  %v15789_v19 = vld [vmem:[%s21151_s0 + $0x40] sm:$0xff]   ;;  %v15790_v20 = vld [vmem:[%s21151_s0 + $0x48] sm:$0xff]  }
   0x8   :  { %14363 = vmatprep.subr.bf16.mxu0 %v15775_v2  ;;  %v15791_v21 = vld [vmem:[%s21151_s0 + $0x50] sm:$0xff]   ;;  %v15792_v22 = vld [vmem:[%s21151_s0 + $0x58] sm:$0xff]   ;;  %v15793_v23 = vld [vmem:[%s21151_s0 + $0x60] sm:$0xff]  }
   0x9   :  { %v15794_v24 = vld [vmem:[%s21151_s0 + $0x68] sm:$0xff]   ;;  %v15795_v25 = vld [vmem:[%s21151_s0 + $0x70] sm:$0xff]   ;;  %v15796_v26 = vld [vmem:[%s21151_s0 + $0x78] sm:$0xff]  }
   0xa   :  { %v15797_v27 = vld [vmem:[%s21151_s0 + $0x80] sm:$0xff]   ;;  %v15798_v28 = vld [vmem:[%s21151_s0 + $0x88] sm:$0xff]  }
   0xb   :  { %14364 = vmatpush3.bf16.msra.mxu0 %v15775_v2 }
   0xc   :  { %14365 = vmatprep.subr.bf16.mxu0 %v15776_v3 }
   0xf   :  { %14366 = vmatpush3.bf16.msra.mxu0 %v15776_v3 }
  0x10   :  { %14367 = vmatprep.subr.bf16.mxu0 %v15777_v5 }
  0x13   :  { %14368 = vmatpush3.bf16.msra.mxu0 %v15777_v5 }
  0x14   :  { %14369 = vmatprep.subr.bf16.mxu0 %v15778_v6 }
  0x17   :  { %14370 = vmatpush3.bf16.msra.mxu0 %v15778_v6 }
  0x18   :  { %14371 = vmatprep.subr.bf16.mxu0 %v15779_v7 }
  0x1b   :  { %14372 = vmatpush3.bf16.msra.mxu0 %v15779_v7 }
  0x1c   :  { %14373 = vmatprep.subr.bf16.mxu0 %v15780_v8 }
  0x1f   :  { %14374 = vmatpush3.bf16.msra.mxu0 %v15780_v8 }
  0x20   :  { %14439 = vmatprep.subr.bf16.mxu0 %v15813_v13 }
  0x22   :  { %14376 = vmatmul.mubr.bf16.vlgmr.msra.gmra.mrb[0].mxu0 %v15782_v9 }
  0x23   :  { %14379 = vmatprep.mubr.bf16.mxu0 %v15783_v10  ;;  %14440 = vmatpush3.bf16.msra.mxu0 %v15813_v13 }
  0x24   :  { %14441 = vmatprep.subr.bf16.mxu0 %v15814_v14 }
  0x27   :  { %14442 = vmatpush3.bf16.msra.mxu0 %v15814_v14 }
  0x28   :  { %14443 = vmatprep.subr.bf16.mxu0 %v15815_v15 }
  0x2a   :  { %14380 = vmatmul.mubr.bf16.gmra.mrb[4].mxu0 %v15784_v11 }
  0x2b   :  { %14383 = vmatprep.mubr.bf16.mxu0 %v15785_v12  ;;  %14444 = vmatpush3.bf16.msra.mxu0 %v15815_v15 }
  0x32   :  { %14384 = vmatmul.mubr.bf16.gmra.mrb[8].mxu0 %v15786_v16 }
  0x33   :  { %14387 = vmatprep.mubr.bf16.mxu0 %v15787_v17 }
  0x3a   :  { %14388 = vmatmul.mubr.bf16.gmra.mrb[12].mxu0 %v15788_v18 }
  0x3b   :  { %14391 = vmatprep.mubr.bf16.mxu0 %v15789_v19 }
  0x42   :  { %14392 = vmatmul.mubr.bf16.gmra.mrb[16].mxu0 %v15790_v20 }
  0x43   :  { %14395 = vmatprep.mubr.bf16.mxu0 %v15791_v21 }
  0x4a   :  { %14396 = vmatmul.mubr.bf16.gmra.mrb[20].mxu0 %v15792_v22 }
  0x4b   :  { %14399 = vmatprep.mubr.bf16.mxu0 %v15793_v23 }
  0x52   :  { %14400 = vmatmul.mubr.bf16.gmra.mrb[24].mxu0 %v15794_v24 }
  0x53   :  { %14403 = vmatprep.mubr.bf16.mxu0 %v15795_v25 }
  0x5a   :  { %14404 = vmatmul.mubr.bf16.gmra.mrb[28].mxu0 %v15796_v26 }
  0x5b   :  { %14407 = vmatprep.mubr.bf16.mxu0 %v15797_v27 }
  0x5c   :  { %15 = vsyncpa [#allocation4], 0  ;;  %v15799_v29 = vld [vmem:[%s21151_s0 + $0x90] sm:$0xff]   ;;  %v15800_v30 = vld [vmem:[%s21151_s0 + $0x98] sm:$0xff]   ;;  %v21166_v37 = vmov 0   ;;  %vm16004_vm0 = vmmov 0   ;;  %v922_v52 = vlaneseq }
  0x5d   :  { %v15801_v31 = vld [vmem:[%s21151_s0 + $0xa0] sm:$0xff]   ;;  %v15816_v32 = vld [vmem:[%s21153_s2 + $0x58] sm:$0xff]   ;;  %v15802_v33 = vld [vmem:[%s21151_s0 + $0xa8] sm:$0xff]   ;;  %855 = vst [vmem:[#allocation2 + $0x8] sm:$0xff] %v21166_v37  ;;  %vm16005_vm4 = vmmov 1  }
  0x5e   :  { %14445 = vmatprep.subr.bf16.mxu0 %v15816_v32  ;;  %v15803_v34 = vld [vmem:[%s21151_s0 + $0xb0] sm:$0xff]   ;;  %v15817_v35 = vld [vmem:[%s21153_s2 + $0x60] sm:$0xff]   ;;  %v15818_v36 = vld [vmem:[%s21153_s2 + $0x68] sm:$0xff]   ;;  %854 = vst [vmem:[#allocation2] sm:$0xff] %v21166_v37  ;;  %v16225_v54 = vshrl.u32 %v922_v52, 7 }
  0x5f   :  { %14446 = vmatpush3.bf16.msra.mxu0 %v15816_v32  ;;  %856 = vst [vmem:[#allocation2 + $0x110] sm:$0xff] %v21166_v37  ;;  %857 = vst [vmem:[#allocation2 + $0x118] sm:$0xff] %v21166_v37  ;;  %v15804_v38 = vld [vmem:[%s21151_s0 + $0xb8] sm:$0xff]   ;;  %v15805_v39 = vld [vmem:[%s21151_s0 + $0xc0] sm:$0xff]   ;;  %vm21324_vm13 = vsmask.f32 7424 }
  0x60   :  { %14447 = vmatprep.subr.bf16.mxu0 %v15817_v35  ;;  %v15819_v40 = vld [vmem:[%s21153_s2 + $0x70] sm:$0xff]   ;;  %v15820_v41 = vld [vmem:[%s21153_s2 + $0x78] sm:$0xff]   ;;  %v15806_v42 = vld [vmem:[%s21151_s0 + $0xc8] sm:$0xff]   ;;  %21512 = vst [vmem:[#allocation7_spill] sm:$0xff] %v16225_v54  ;;  %v925_v56 = vadd.s32 16, %v16225_v54  ;;  %v927_v57 = vadd.s32 32, %v16225_v54 }
  0x61   :  { %v15807_v43 = vld [vmem:[%s21151_s0 + $0xd0] sm:$0xff]   ;;  %v15808_v44 = vld [vmem:[%s21151_s0 + $0xd8] sm:$0xff]   ;;  %v15809_v45 = vld [vmem:[%s21151_s0 + $0xe0] sm:$0xff]   ;;  %v929_v61 = vadd.s32 48, %v16225_v54  ;;  %v931_v4 = vadd.s32 64, %v16225_v54  ;;  %v933_v10 = vadd.s32 80, %v16225_v54 }
  0x62   :  { %14408 = vmatmul.mubr.bf16.gmra.mrb[32].mxu0 %v15798_v28  ;;  %v15810_v46 = vld [vmem:[%s21151_s0 + $0xe8] sm:$0xff]   ;;  %v15811_v47 = vld [vmem:[%s21151_s0 + $0xf0] sm:$0xff]   ;;  %vm2876_vm1 = vmpackc.low %vm16004_vm0, %vm16004_vm0  ;;  %v1005_v59 = vand.u32 15, %v925_v56  ;;  %v1019_v60 = vand.u32 15, %v927_v57  ;;  %v935_v14 = vadd.s32 96, %v16225_v54  ;;  %v937_v18 = vadd.s32 112, %v16225_v54 }
  0x63   :  { %14411 = vmatprep.mubr.bf16.mxu0 %v15799_v29  ;;  %14448 = vmatpush3.bf16.msra.mxu0 %v15817_v35  ;;  %v2940_v48 = vsel %vm2876_vm1, 65537, %v21166_v37  ;;  %v15812_v49 = vld [vmem:[%s21151_s0 + $0xf8] sm:$0xff]   ;;  %v15821_v51 = vld [vmem:[%s21153_s2 + $0xc0] sm:$0xff]   ;;  %v15822_v53 = vld [vmem:[%s21153_s2 + $0xc8] sm:$0xff]   ;;  %v1033_v63 = vand.u32 15, %v929_v61  ;;  %v1047_v9 = vand.u32 15, %v931_v4 }
  0x64   :  { %14449 = vmatprep.subr.bf16.mxu0 %v15818_v36  ;;  %v16213_v50 = vcombine.low %v2940_v48, %v2940_v48  ;;  %15239 = vmatprep.subr.bf16.mxu1 %v15821_v51  ;;  %v15823_v55 = vld [vmem:[%s21153_s2 + $0xd0] sm:$0xff]   ;;  %v15824_v58 = vld [vmem:[%s21153_s2 + $0xd8] sm:$0xff]   ;;  %v15825_v62 = vld [vmem:[%s21153_s2 + $0xe0] sm:$0xff]   ;;  %vm2525_vm3 = vcmp.gt.s32.totalorder %v1005_v59, 0  ;;  %vm2527_vm6 = vcmp.gt.s32.totalorder %v1019_v60, 0  ;;  %v1061_v20 = vand.u32 15, %v933_v10 }
  0x65   :  { %15247 = vmatpush3.bf16.msra.mxu1 %v15821_v51  ;;  %vm2879_vm5 = vmpackc.low %vm16005_vm4, %vm16005_vm4  ;;  %v15826_v0 = vld [vmem:[%s21153_s2 + $0xe8] sm:$0xff]   ;;  %vm16246_vm9 = vcmp.gt.s32.totalorder %v1033_v63, 0  ;;  %v15827_v6 = vld [vmem:[%s21153_s2 + $0xf0] sm:$0xff]   ;;  %vm16273_vm11 = vcmp.gt.s32.totalorder %v1047_v9, 0  ;;  %v1075_v24 = vand.u32 15, %v935_v14  ;;  %v939_v25 = vadd.s32 128, %v16225_v54 }
  0x66   :  { %21511 = vst [vmem:[#allocation6_spill] sm:$0xff] %v16213_v50  ;;  %vm21279_vm2 = vcmp.ne.s16.totalorder %v16213_v50, 0  ;;  %15240 = vmatprep.subr.bf16.mxu1 %v15822_v53  ;;  %vm2878_vm7 = vmpackc.low %vm2525_vm3, %vm2525_vm3  ;;  %v16244_v2 = vsel %vm2879_vm5, 65537, %v21166_v37  ;;  %v3102_v5 = vshll.u32 %v16213_v50, 16  ;;  %v3105_v12 = vshrl.u32 %v16213_v50, 16  ;;  %v15828_v15 = vld [vmem:[%s21153_s2 + $0xf8] sm:$0xff]  }
  0x67   :  { %14450 = vmatpush3.bf16.msra.mxu0 %v15818_v36  ;;  %vm2880_vm8 = vmpackc.low %vm2527_vm6, %vm2527_vm6  ;;  %v2942_v1 = vsel %vm2878_vm7, 65537, %v21166_v37  ;;  %21513 = vst [vmem:[#allocation8_spill] sm:$0xff] %v16244_v2  ;;  %v1089_v28 = vand.u32 15, %v937_v18  ;;  %vm16289_vm14 = vcmp.gt.s32.totalorder %v1061_v20, 0  ;;  %vm16295_vm15 = vcmp.gt.s32.totalorder %v1075_v24, 0 }
  0x68   :  { %14451 = vmatprep.subr.bf16.mxu0 %v15819_v40  ;;  %v2944_v7 = vsel %vm2880_vm8, 65537, %v21166_v37  ;;  %v13388_v8 = vcombine.low %v2942_v1, %v16244_v2  ;;  %vm2882_vm10 = vmpackc.low %vm16246_vm9, %vm16246_vm9  ;;  %v16263_v11 = vrot.slane %v3102_v5, 1  ;;  %v1103_v36 = vand.u32 15, %v939_v25 }
  0x69   :  { %15248 = vmatpush3.bf16.msra.mxu1 %v15822_v53  ;;  %v13389_v13 = vcombine.low %v2944_v7, %v16244_v2  ;;  %v2946_v16 = vsel %vm2882_vm10, 65537, %v21166_v37  ;;  %vm2884_vm12 = vmpackc.low %vm16273_vm11, %vm16273_vm11  ;;  %vm16304_vm1 = vcmp.gt.s32.totalorder %v1089_v28, 0  ;;  %v16323_v48 = vrot.slane %v3105_v12, 7 }
  0x6a   :  { %14412 = vmatmul.mubr.bf16.gmra.mrb[36].mxu0 %v15800_v30  ;;  %15241 = vmatprep.subr.bf16.mxu1 %v15823_v55  ;;  %21516 = vst [vmem:[#allocation9_spill] sm:$0xff] %v16263_v11  ;;  %v3109_v17 = vshll.u32 %v13388_v8, 16  ;;  %v16278_v21 = vor.u32 %v3105_v12, %v16263_v11  ;;  %v16281_v23 = vcombine.low %v2946_v16, %v16244_v2  ;;  %v3113_v29 = vshrl.u32 %v13388_v8, 16  ;;  %vm2886_vm0 = vmpackc.low %vm16289_vm14, %vm16289_vm14 }
  0x6b   :  { %14415 = vmatprep.mubr.bf16.mxu0 %v15801_v31  ;;  %14452 = vmatpush3.bf16.msra.mxu0 %v15819_v40  ;;  %v3117_v22 = vshll.u32 %v13389_v13, 16  ;;  %v3121_v27 = vshrl.u32 %v13389_v13, 16  ;;  %v926_v31 = vadd.s32 24, %v16225_v54  ;;  %v2948_v35 = vsel %vm2884_vm12, 65537, %v21166_v37  ;;  %vm2888_vm3 = vmpackc.low %vm16295_vm15, %vm16295_vm15  ;;  %21528 = vst [vmem:[#allocation11_spill] sm:$0xff] %v16323_v48 }
  0x6c   :  { %14453 = vmatprep.subr.bf16.mxu0 %v15820_v41  ;;  %21519 = vst [vmem:[#allocation10_spill] sm:$0xff] %v16278_v21  ;;  %v16284_v26 = vrot.slane %v3109_v17, 1  ;;  %vm2890_vm4 = vmpackc.low %vm16304_vm1, %vm16304_vm1  ;;  %vm16319_vm5 = vcmp.gt.s32.totalorder %v1103_v36, 0  ;;  %v2952_v51 = vsel %vm2888_vm3, 65537, %v21166_v37  ;;  %v13420_v53 = vcombine.low %v16244_v2, %v16244_v2 }
  0x6d   :  { %15249 = vmatpush3.bf16.msra.mxu1 %v15823_v55  ;;  %v3119_v32 = vrot.slane %v3117_v22, 1  ;;  %v947_v55 = vadd.s32 192, %v16225_v54  ;;  %v2954_v59 = vsel %vm2890_vm4, 65537, %v21166_v37  ;;  %vm2892_vm7 = vmpackc.low %vm16319_vm5, %vm16319_vm5  ;;  %v945_v3 = vadd.s32 176, %v16225_v54 }
  0x6e   :  { %15242 = vmatprep.subr.bf16.mxu1 %v15824_v58  ;;  %v3115_v40 = vor.u32 %v3113_v29, %v16284_v26  ;;  %v991_v4 = vand.u32 15, %v16225_v54  ;;  %v2956_v7 = vsel %vm2892_vm7, 65537, %v21166_v37  ;;  %v949_v9 = vadd.s32 208, %v16225_v54 }
  0x6f   :  { %14454 = vmatpush3.bf16.msra.mxu0 %v15820_v41  ;;  %v1012_v41 = vand.u32 15, %v926_v31  ;;  %v1159_v8 = vand.u32 15, %v947_v55  ;;  %v3129_v10 = vshrl.u32 %v16281_v23, 16  ;;  %v928_v14 = vadd.s32 40, %v16225_v54 }
  0x70   :  { %v16328_v52 = vsel %vm21324_vm13, %v3115_v40, %v3119_v32  ;;  %v951_v17 = vadd.s32 224, %v16225_v54  ;;  %v13395_v20 = vcombine.low %v2956_v7, %v16244_v2  ;;  %v1145_v22 = vand.u32 15, %v945_v3 }
  0x71   :  { %15250 = vmatpush3.bf16.msra.mxu1 %v15824_v58  ;;  %21529 = vst [vmem:[#allocation12_spill] sm:$0xff] %v16328_v52  ;;  %vm16333_vm6 = vcmp.lt.s32.totalorder %v1012_v41, 15  ;;  %vm16382_vm12 = vcmp.gt.s32.totalorder %v991_v4, 0  ;;  %vm16391_vm15 = vcmp.gt.s32.totalorder %v1159_v8, 0  ;;  %v1173_v28 = vand.u32 15, %v949_v9 }
  0x72   :  { %14416 = vmatmul.mubr.bf16.gmra.mrb[40].mxu0 %v15802_v33  ;;  %15243 = vmatprep.subr.bf16.mxu1 %v15825_v62  ;;  %v3125_v33 = vshll.u32 %v16281_v23, 16  ;;  %vm4810_vm9 = vmpackc.low %vm16333_vm6, %vm16333_vm6  ;;  %v16396_v29 = vrot.slane %v21166_v37, 7  ;;  %v1187_v36 = vand.u32 15, %v951_v17  ;;  %vm16406_vm1 = vcmp.gt.s32.totalorder %v1145_v22, 0 }
  0x73   :  { %14419 = vmatprep.mubr.bf16.mxu0 %v15803_v34  ;;  %v4874_v18 = vsel %vm4810_vm9, 65537, %v21166_v37  ;;  %vm2900_vm3 = vmpackc.low %vm16391_vm15, %vm16391_vm15  ;;  %vm16413_vm4 = vcmp.gt.s32.totalorder %v1173_v28, 0  ;;  %vm21440_vm9 = vsmask.f32 256  ;;  %v930_v63 = vadd.s32 56, %v16225_v54 }
  0x74   :  { %v13516_v31 = vcombine.low %v16244_v2, %v4874_v18  ;;  %vm2898_vm6 = vmpackc.low %vm16406_vm1, %vm16406_vm1  ;;  %vm16430_vm7 = vcmp.gt.s32.totalorder %v1187_v36, 0 }
  0x75   :  { %15251 = vmatpush3.bf16.msra.mxu1 %v15825_v62  ;;  %v13393_v62 = vcombine.low %v2952_v51, %v16244_v2  ;;  %v2962_v8 = vsel %vm2898_vm6, 65537, %v21166_v37  ;;  %v1040_v18 = vand.u32 15, %v930_v63 }
  0x76   :  { %15244 = vmatprep.subr.bf16.mxu1 %v15826_v0  ;;  %v5042_v4 = vshll.u32 %v13516_v31, 16 }
  0x77   :  { %v3149_v16 = vshll.u32 %v13393_v62, 16 }
  0x79   :  { %15252 = vmatpush3.bf16.msra.mxu1 %v15826_v0  ;;  %v16354_v0 = vor.u32 %v16323_v48, %v3102_v5  ;;  %v15829_v5 = vld [vmem:[%s21153_s2 + $0x100] sm:$0xff]   ;;  %v3151_v34 = vrot.slane %v3149_v16, 1 }
  0x7a   :  { %14420 = vmatmul.mubr.bf16.gmra.mrb[44].mxu0 %v15804_v38  ;;  %15245 = vmatprep.subr.bf16.mxu1 %v15827_v6  ;;  %v941_v38 = vadd.s32 144, %v16225_v54 }
  0x7b   :  { %14423 = vmatprep.mubr.bf16.mxu0 %v15805_v39  ;;  %21535 = vst [vmem:[#allocation14_spill] sm:$0xff] %v16354_v0 }
  0x7d   :  { %15253 = vmatpush3.bf16.msra.mxu1 %v15827_v6  ;;  %v16363_v6 = vcombine.low %v2954_v59, %v16244_v2 }
  0x7e   :  { %15246 = vmatprep.subr.bf16.mxu1 %v15828_v15 }
  0x7f   :  { %v3157_v24 = vshll.u32 %v16363_v6, 16  ;;  %v3161_v3 = vshrl.u32 %v16363_v6, 16 }
  0x81   :  { %15254 = vmatpush3.bf16.msra.mxu1 %v15828_v15 }
  0x82   :  { %14424 = vmatmul.mubr.bf16.gmra.mrb[48].mxu0 %v15806_v42  ;;  %v3123_v42 = vor.u32 %v3121_v27, %v3119_v32  ;;  %14759 = vmatprep.subr.bf16.mxu1 %v15829_v5  ;;  %v1026_v32 = vand.u32 15, %v928_v14 }
  0x83   :  { %14427 = vmatprep.mubr.bf16.mxu0 %v15807_v43  ;;  %v3127_v43 = vrot.slane %v3125_v33, 1 }
  0x84   :  { %vm16419_vm5 = vcmp.lt.s32.totalorder %v1026_v32, 15  ;;  %v957_v32 = vadd.s32 272, %v16225_v54 }
  0x85   :  { %v16338_v57 = vsel %vm21324_vm13, %v3123_v42, %v3127_v43  ;;  %v3131_v30 = vor.u32 %v3129_v10, %v3127_v43 }
  0x86   :  { %21532 = vst [vmem:[#allocation13_spill] sm:$0xff] %v16338_v57  ;;  %v1229_v51 = vand.u32 15, %v957_v32 }
  0x88   :  { %vm16548_vm1 = vcmp.gt.s32.totalorder %v1229_v51, 0 }
  0x8a   :  { %14428 = vmatmul.mubr.bf16.gmra.mrb[52].mxu0 %v15808_v44  ;;  %v16313_v44 = vcombine.low %v2948_v35, %v16244_v2  ;;  %v3153_v35 = vshrl.u32 %v13393_v62, 16 }
  0x8b   :  { %14431 = vmatprep.mubr.bf16.mxu0 %v15809_v45  ;;  %v943_v45 = vadd.s32 160, %v16225_v54 }
  0x8c   :  { %v3133_v58 = vshll.u32 %v16313_v44, 16  ;;  %v3137_v1 = vshrl.u32 %v16313_v44, 16  ;;  %v3159_v44 = vrot.slane %v3157_v24, 1  ;;  %v3155_v55 = vor.u32 %v3153_v35, %v3151_v34 }
  0x8d   :  { %v1131_v60 = vand.u32 15, %v943_v45  ;;  %v955_v35 = vadd.s32 256, %v16225_v54 }
  0x8e   :  { %v3135_v12 = vrot.slane %v3133_v58, 1  ;;  %v2964_v58 = vsel %vm2900_vm3, 65537, %v21166_v37  ;;  %v16461_v13 = vsel %vm21324_vm13, %v3155_v55, %v3159_v44  ;;  %v3163_v24 = vor.u32 %v3161_v3, %v3159_v44  ;;  %v16534_v3 = vld [vmem:[%s21153_s2] sm:$0xff]  }
  0x8f   :  { %vm16374_vm11 = vcmp.gt.s32.totalorder %v1131_v60, 0  ;;  %v13399_v9 = vcombine.low %v2964_v58, %v16244_v2  ;;  %21553 = vst [vmem:[#allocation18_spill] sm:$0xff] %v16461_v13  ;;  %v1215_v59 = vand.u32 15, %v955_v35  ;;  %14519 = vmatprep.subr.bf16.mxu0 %v16534_v3 }
  0x90   :  { %vm2896_vm14 = vmpackc.low %vm16374_vm11, %vm16374_vm11  ;;  %v3139_v42 = vor.u32 %v3137_v1, %v3135_v12  ;;  %v16440_v1 = vsel %vm21324_vm13, %v3131_v30, %v3135_v12 }
  0x91   :  { %v2960_v40 = vsel %vm2896_vm14, 65537, %v21166_v37  ;;  %21550 = vst [vmem:[#allocation15_spill] sm:$0xff] %v16440_v1  ;;  %vm2904_vm11 = vmpackc.low %vm16430_vm7, %vm16430_vm7  ;;  %vm16498_vm14 = vcmp.lt.s32.totalorder %v1040_v18, 15  ;;  %vm16557_vm3 = vcmp.gt.s32.totalorder %v1215_v59, 0 }
  0x92   :  { %14432 = vmatmul.mubr.bf16.gmra.mrb[56].mxu0 %v15810_v46  ;;  %v953_v46 = vadd.s32 240, %v16225_v54  ;;  %v16424_v56 = vcombine.low %v2960_v40, %v16244_v2  ;;  %vm6096_vm7 = vmpackc.low %vm16557_vm3, %vm16557_vm3 }
  0x93   :  { %14435 = vmatprep.mubr.bf16.mxu0 %v15811_v47  ;;  %v1117_v47 = vand.u32 15, %v941_v38  ;;  %v3165_v38 = vshll.u32 %v13395_v20, 16 }
  0x94   :  { %v1201_v5 = vand.u32 15, %v953_v46  ;;  %v3181_v14 = vshll.u32 %v16424_v56, 16  ;;  %v3185_v41 = vshrl.u32 %v16424_v56, 16  ;;  %v3201_v46 = vshrl.u32 %v13399_v9, 16 }
  0x95   :  { %vm16347_vm8 = vcmp.gt.s32.totalorder %v1117_v47, 0  ;;  %v5039_v47 = vshrl.u32 %v13516_v31, 16  ;;  %v3167_v60 = vrot.slane %v3165_v38, 1  ;;  %v21569_v38 = vmov 0 }
  0x96   :  { %vm2894_vm10 = vmpackc.low %vm16347_vm8, %vm16347_vm8  ;;  %v3183_v30 = vrot.slane %v3181_v14, 1  ;;  %v16543_v14 = vld [vmem:[%s21155_s4] ss:$0 sm:$0xff] }
  0x97   :  { %v2958_v25 = vsel %vm2894_vm10, 65537, %v21166_v37  ;;  %vm2902_vm8 = vmpackc.low %vm16413_vm4, %vm16413_vm4  ;;  %v16452_v10 = vrot.slane %v5039_v47, 7  ;;  %v932_v47 = vadd.s32 72, %v16225_v54  ;;  %vm16585_vm4 = vcmp.ne.s16.totalorder %v13420_v53, 0 }
  0x98   :  { %v16403_v39 = vcombine.low %v2958_v25, %v16244_v2  ;;  %vm4812_vm10 = vmpackc.low %vm16419_vm5, %vm16419_vm5  ;;  %v2966_v17 = vsel %vm2902_vm8, 65537, %v21166_v37  ;;  %v3197_v25 = vshll.u32 %v13399_v9, 16  ;;  %v21570_v38 = vsel %vm16585_vm4, 4294967295, %v21569_v38 }
  0x99   :  { %v4876_v23 = vsel %vm4812_vm10, 65537, %v21166_v37  ;;  %v16485_v28 = vor.u32 %v5042_v4, %v16452_v10  ;;  %v16488_v31 = vcombine.low %v2966_v17, %v16244_v2  ;;  %21571 = vst [vmem:[#allocation26_spill] sm:$0xff] %v21570_v38  ;;  %vm2910_vm5 = vmpackc.low %vm16548_vm1, %vm16548_vm1  ;;  %vm21308_vm10 = vcmp.ne.s16.totalorder %v16338_v57, 0 }
  0x9a   :  { %14436 = vmatmul.mubr.bf16.gmra.mrb[60].mxu0 %v15812_v49  ;;  %v2950_v49 = vsel %vm2886_vm0, 65537, %v21166_v37  ;;  %vm6064_vm0 = vmpackc.low %vm16382_vm12, %vm16382_vm12  ;;  %v3173_v62 = vshll.u32 %v16403_v39, 16  ;;  %vm16480_vm12 = vcmp.gt.s32.totalorder %v1201_v5, 0  ;;  %v16496_v36 = vcombine.low %v16244_v2, %v4876_v23 }
  0x9b   :  { %14455 = vmatprep.mubr.msk.bf16.mxu0 %vm21279_vm2, %v21166_v37  ;;  %v13392_v61 = vcombine.low %v2950_v49, %v16244_v2  ;;  %v6128_v49 = vsel %vm6064_vm0, 65537, %v21166_v37  ;;  %21556 = vst [vmem:[#allocation19_spill] sm:$0xff] %v16485_v28  ;;  %v3177_v40 = vshrl.u32 %v16403_v39, 16  ;;  %vm2906_vm15 = vmpackc.low %vm16480_vm12, %vm16480_vm12  ;;  %v16513_v45 = vrot.slane %v3197_v25, 1  ;;  %v16566_v25 = vld [vmem:[%s21156_s5] ss:$0 sm:$0xff] }
  0x9c   :  { %v13571_v7 = vcombine.low %v6128_v49, %v16244_v2  ;;  %v3175_v16 = vrot.slane %v3173_v62, 1  ;;  %v16517_v39 = vsel %vm21324_vm13, %v3163_v24, %v3167_v60  ;;  %v3205_v49 = vshll.u32 %v16488_v31, 16  ;;  %vm4814_vm0 = vmpackc.low %vm16498_vm14, %vm16498_vm14 }
  0x9d   :  { %v3141_v15 = vshll.u32 %v13392_v61, 16  ;;  %v3145_v19 = vshrl.u32 %v13392_v61, 16  ;;  %v3169_v61 = vshrl.u32 %v13395_v20, 16  ;;  %v2968_v20 = vsel %vm2904_vm11, 65537, %v21166_v37  ;;  %21561 = vst [vmem:[#allocation22_spill] sm:$0xff] %v16517_v39 }
  0x9e   :  { %v6289_v22 = vshll.u32 %v13571_v7, 16  ;;  %v16523_v55 = vsel %vm21440_vm9, %v16323_v48, %v16485_v28  ;;  %v2970_v58 = vsel %vm2906_vm15, 65537, %v21166_v37  ;;  %v3187_v62 = vor.u32 %v3185_v41, %v3183_v30 }
  0x9f   :  { %v3143_v33 = vrot.slane %v3141_v15, 1  ;;  %v3171_v15 = vor.u32 %v3169_v61, %v3167_v60  ;;  %v5047_v60 = vshrl.u32 %v16496_v36, 16  ;;  %v3179_v61 = vor.u32 %v3177_v40, %v3175_v16 }
  0xa0   :  { %v4878_v9 = vsel %vm4814_vm0, 65537, %v21166_v37  ;;  %v1054_v5 = vand.u32 15, %v932_v47  ;;  %v5050_v18 = vshll.u32 %v16496_v36, 16  ;;  %v3209_v53 = vshrl.u32 %v16488_v31, 16 }
  0xa1   :  { %v3147_v43 = vor.u32 %v3145_v19, %v3143_v33  ;;  %v16455_v6 = vsel %vm21324_vm13, %v3139_v42, %v3143_v33  ;;  %v16471_v19 = vcombine.low %v2962_v8, %v16244_v2  ;;  %v6292_v33 = vshrl.u32 %v13571_v7, 16 }
  0xa2   :  { %21551 = vst [vmem:[#allocation16_spill] sm:$0xff] %v16455_v6  ;;  %v16511_v44 = vsel %vm21324_vm13, %v3171_v15, %v3175_v16  ;;  %v3203_v8 = vor.u32 %v3201_v46, %v16513_v45  ;;  %v3207_v15 = vrot.slane %v3205_v49, 1  ;;  %v16546_v16 = vcombine.low %v2970_v58, %v16244_v2 }
  0xa3   :  { %v16458_v12 = vsel %vm21324_vm13, %v3147_v43, %v3151_v34  ;;  %v16492_v34 = vcombine.low %v2968_v20, %v16244_v2  ;;  %v3189_v42 = vshll.u32 %v16471_v19, 16  ;;  %v16508_v43 = vrot.slane %v6289_v22, 1  ;;  %21560 = vst [vmem:[#allocation21_spill] sm:$0xff] %v16511_v44 }
  0xa4   :  { %21552 = vst [vmem:[#allocation17_spill] sm:$0xff] %v16458_v12  ;;  %v3193_v7 = vshrl.u32 %v16471_v19, 16  ;;  %v16561_v23 = vrot.slane %v5047_v60, 7  ;;  %v16569_v27 = vsel %vm21324_vm13, %v3179_v61, %v3183_v30  ;;  %vm16593_vm6 = vcmp.lt.s32.totalorder %v1054_v5, 15 }
  0xa5   :  { %21559 = vst [vmem:[#allocation20_spill] sm:$0xff] %v16508_v43  ;;  %v3213_v56 = vshll.u32 %v16492_v34, 16  ;;  %v3191_v63 = vrot.slane %v3189_v42, 1  ;;  %v6294_v4 = vor.u32 %v6292_v33, %v16508_v43  ;;  %v3217_v20 = vshrl.u32 %v16492_v34, 16  ;;  %21566 = vst [vmem:[#allocation23_spill] sm:$0xff] %v16569_v27 }
  0xa6   :  { %v16579_v34 = vcombine.low %v16244_v2, %v4878_v9  ;;  %v16599_v46 = vsel %vm21324_vm13, %v3203_v8, %v3207_v15  ;;  %v3221_v47 = vshll.u32 %v16546_v16, 16  ;;  %v5052_v59 = vor.u32 %v5050_v18, %v16561_v23  ;;  %vm4816_vm8 = vmpackc.low %vm16593_vm6, %vm16593_vm6 }
  0xa7   :  { %v16554_v19 = vrot.slane %v3213_v56, 1  ;;  %v16572_v32 = vsel %vm21324_vm13, %v3187_v62, %v3191_v63  ;;  %v16576_v33 = vsel %vm21324_vm13, %v6294_v4, %v16284_v26  ;;  %v3195_v30 = vor.u32 %v3193_v7, %v3191_v63  ;;  %21574 = vst [vmem:[#allocation27_spill] sm:$0xff] %v16599_v46 }
  0xa8   :  { %21567 = vst [vmem:[#allocation24_spill] sm:$0xff] %v16572_v32  ;;  %21568 = vst [vmem:[#allocation25_spill] sm:$0xff] %v16576_v33  ;;  %v959_v26 = vadd.s32 288, %v16225_v54  ;;  %v2974_v61 = vsel %vm2910_vm5, 65537, %v21166_v37  ;;  %v5055_v62 = vshrl.u32 %v16579_v34, 16  ;;  %v961_v7 = vadd.s32 304, %v16225_v54 }
  0xa9   :  { %v16611_v58 = vor.u32 %v3217_v20, %v16554_v19  ;;  %v6160_v8 = vsel %vm6096_vm7, 65537, %v21166_v37  ;;  %v3211_v5 = vor.u32 %v3209_v53, %v3207_v15  ;;  %v3223_v17 = vrot.slane %v3221_v47, 1 }
  0xaa   :  { %v1243_v4 = vand.u32 15, %v959_v26  ;;  %v5058_v18 = vshll.u32 %v16579_v34, 16  ;;  %v16649_v15 = vrot.slane %v5055_v62, 7  ;;  %vm21281_vm11 = vcmp.ne.s16.totalorder %v16328_v52, 0 }
  0xab   :  { %21576 = vst [vmem:[#allocation29_spill] sm:$0xff] %v16611_v58  ;;  %v3225_v62 = vshrl.u32 %v16546_v16, 16  ;;  %vm21344_vm1 = vcmp.ne.s16.totalorder %v16440_v1, 0 }
  0xac   :  { %vm16657_vm12 = vcmp.gt.s32.totalorder %v1243_v4, 0 }
  0xad   :  { %vm2912_vm14 = vmpackc.low %vm16657_vm12, %vm16657_vm12 }
  0xf5   :  { %v14377_v24 = vpop.f32.mrb[0].mxu0 }
  0xf6   :  { %v657_v35 = vmul.f32 %v14377_v24, %v16543_v14  ;;  %v393_v36 = vpop.f32.mrb[1].mxu0  ;;  %v16641_v24 = vcombine.low %v2974_v61, %v16244_v2 }
  0xf7   :  { %v655_v41 = vmul.f32 %v16543_v14, %v393_v36  ;;  %v14378_v42 = vpop.f32.mrb[2].mxu0 }
  0xf8   :  { %v16607_v49 = vadd.f32 %v16566_v25, %v657_v35  ;;  %v658_v51 = vmul.f32 %v14378_v42, %v16543_v14  ;;  %v396_v56 = vpop.f32.mrb[3].mxu0  ;;  %v4880_v35 = vsel %vm4816_vm8, 65537, %v21166_v37  ;;  %v3237_v16 = vshll.u32 %v16641_v24, 16 }
  0xf9   :  { %v16615_v60 = vadd.f32 %v16566_v25, %v655_v41  ;;  %v656_v31 = vmul.f32 %v16543_v14, %v396_v56  ;;  %v16647_v41 = vcombine.low %v6160_v8, %v16244_v2  ;;  %v15834_v8 = vld [vmem:[%s21153_s2 + $0x8] sm:$0xff]   ;;  %v16673_v4 = vcombine.low %v16244_v2, %v4880_v35 }
  0xfa   :  { %21575 = vst [vmem:[#allocation28_spill] sm:$0xff] %v16607_v49  ;;  %v16629_v63 = vadd.f32 %v16566_v25, %v658_v51  ;;  %v21165_v20 = vmax.f32 %v16607_v49, 0.0  ;;  %v1257_v51 = vand.u32 15, %v961_v7 }
  0xfb   :  { %21577 = vst [vmem:[#allocation30_spill] sm:$0xff] %v16615_v60  ;;  %v16635_v9 = vadd.f32 %v16566_v25, %v656_v31  ;;  %v21164_v36 = vmax.f32 %v16615_v60, 0.0 }
  0xfc   :  { %21578 = vst [vmem:[#allocation31_spill] sm:$0xff] %v16629_v63  ;;  %v21163_v22 = vmax.f32 %v16629_v63, 0.0  ;;  %vm16712_vm15 = vcmp.gt.s32.totalorder %v1257_v51, 0 }
  0xfd   :  { %21579 = vst [vmem:[#allocation32_spill] sm:$0xff] %v16635_v9  ;;  %v21162_v26 = vmax.f32 %v16635_v9, 0.0  ;;  %v14381_v40 = vpop.f32.mrb[4].mxu0  ;;  %vm2914_vm0 = vmpackc.low %vm16712_vm15, %vm16712_vm15 }
  0xfe   :  { %v859_v34 = vpack.c.bf16 %v21163_v22, %v21165_v20  ;;  %v661_v42 = vmul.f32 %v14381_v40, %v16543_v14  ;;  %v409_v53 = vpop.f32.mrb[5].mxu0 }
  0xff   :  { %v16665_v56 = vpack.c.bf16 %v21162_v26, %v21164_v36  ;;  %v659_v31 = vmul.f32 %v16543_v14, %v409_v53  ;;  %v14382_v61 = vpop.f32.mrb[6].mxu0  ;;  %v16681_v53 = vsel %vm21324_vm13, %v3195_v30, %v16513_v45  ;;  %v16701_v45 = vsel %vm21440_vm9, %v16452_v10, %v5052_v59 }
 0x100   :  { %891 = vst [vmem:[#allocation2 + $0x18] sm:$0xff] %v859_v34  ;;  %v16676_v7 = vadd.f32 %v16566_v25, %v661_v42  ;;  %v662_v40 = vmul.f32 %v14382_v61, %v16543_v14  ;;  %v412_v26 = vpop.f32.mrb[7].mxu0  ;;  %21583 = vst [vmem:[#allocation34_spill] sm:$0xff] %v16681_v53  ;;  %v16694_v42 = vsel %vm21324_vm13, %v16611_v58, %v3223_v17  ;;  %v16740_v20 = vsel %vm21308_vm10, %v859_v34, 0 }
 0x101   :  { %890 = vst [vmem:[#allocation2 + $0x10] sm:$0xff] %v16665_v56  ;;  %v16686_v22 = vadd.f32 %v16566_v25, %v659_v31  ;;  %v660_v35 = vmul.f32 %v16543_v14, %v412_v26  ;;  %14456 = vmatmul.mubr.msk.bf16.vlgmr.msra.gmra.mrb[64].mxu0 %vm16585_vm4, %v16665_v56  ;;  %21585 = vst [vmem:[#allocation36_spill] sm:$0xff] %v16694_v42  ;;  %v16710_v26 = vsel %vm21324_vm13, %v3211_v5, %v16554_v19  ;;  %v15835_v19 = vld [vmem:[%s21153_s2 + $0x10] sm:$0xff]  }
 0x102   :  { %21582 = vst [vmem:[#allocation33_spill] sm:$0xff] %v16676_v7  ;;  %21586 = vst [vmem:[#allocation37_spill] sm:$0xff] %v16701_v45  ;;  %v16704_v30 = vadd.f32 %v16566_v25, %v662_v40  ;;  %14459 = vmatprep.mubr.msk.bf16.mxu0 %vm16585_vm4, %v859_v34  ;;  %14520 = vmatpush3.bf16.msra.mxu0 %v16534_v3  ;;  %v5060_v61 = vor.u32 %v5058_v18, %v16649_v15  ;;  %v6416_v40 = vshll.u32 %v16647_v41, 16 }
 0x103   :  { %21584 = vst [vmem:[#allocation35_spill] sm:$0xff] %v16686_v22  ;;  %21588 = vst [vmem:[#allocation39_spill] sm:$0xff] %v16710_v26  ;;  %v16719_v10 = vadd.f32 %v16566_v25, %v660_v35  ;;  %v3227_v59 = vor.u32 %v3225_v62, %v3223_v17  ;;  %14521 = vmatprep.subr.bf16.mxu0 %v15834_v8  ;;  %v5063_v5 = vshrl.u32 %v16673_v4, 16  ;;  %v21174_v51 = vmax.f32 %v16676_v7, 0.0 }
 0x104   :  { %21587 = vst [vmem:[#allocation38_spill] sm:$0xff] %v16704_v30  ;;  %v21173_v36 = vmax.f32 %v16704_v30, 0.0  ;;  %v16728_v3 = vrot.slane %v3237_v16, 1  ;;  %v2976_v17 = vsel %vm2912_vm14, 65537, %v21166_v37  ;;  %v963_v16 = vadd.s32 320, %v16225_v54 }
 0x105   :  { %21591 = vst [vmem:[#allocation40_spill] sm:$0xff] %v16719_v10  ;;  %v14385_v35 = vpop.f32.mrb[8].mxu0  ;;  %v16753_v62 = vsel %vm21440_vm9, %v16561_v23, %v5060_v61  ;;  %v21593_v9 = vmax.f32 %v16686_v22, 0.0  ;;  %v21594_v63 = vmax.f32 %v16719_v10, 0.0  ;;  %v15837_v23 = vld [vmem:[%s21153_s2 + $0x18] sm:$0xff]   ;;  %v4102_v61 = vshrl.u32 %v16740_v20, 16 }
 0x106   :  { %v861_v47 = vpack.c.bf16 %v21173_v36, %v21174_v51  ;;  %v665_v37 = vmul.f32 %v14385_v35, %v16543_v14  ;;  %v425_v18 = vpop.f32.mrb[9].mxu0  ;;  %14522 = vmatpush3.bf16.msra.mxu0 %v15834_v8  ;;  %21592 = vst [vmem:[#allocation41_spill] sm:$0xff] %v16753_v62  ;;  %v16764_v36 = vcombine.low %v2976_v17, %v16244_v2  ;;  %v16766_v35 = vrot.slane %v6416_v40, 1 }
 0x107   :  { %v16760_v60 = vpack.c.bf16 %v21594_v63, %v21593_v9  ;;  %v663_v7 = vmul.f32 %v16543_v14, %v425_v18  ;;  %v14386_v30 = vpop.f32.mrb[10].mxu0  ;;  %14523 = vmatprep.subr.bf16.mxu0 %v15835_v19  ;;  %v21597_v18 = vmov 0   ;;  %v1271_v51 = vand.u32 15, %v963_v16 }
 0x108   :  { %21595 = vst [vmem:[#allocation42_spill] sm:$0xff] %v16766_v35  ;;  %893 = vst [vmem:[#allocation2 + $0x28] sm:$0xff] %v861_v47  ;;  %v16772_v8 = vadd.f32 %v16566_v25, %v665_v37  ;;  %v666_v63 = vmul.f32 %v14386_v30, %v16543_v14  ;;  %v428_v9 = vpop.f32.mrb[11].mxu0  ;;  %v2978_v40 = vsel %vm2914_vm0, 65537, %v21597_v18  ;;  %v16790_v30 = vsel %vm21281_vm11, %v16665_v56, 0 }
 0x109   :  { %892 = vst [vmem:[#allocation2 + $0x20] sm:$0xff] %v16760_v60  ;;  %v16784_v17 = vadd.f32 %v16566_v25, %v663_v7  ;;  %v664_v37 = vmul.f32 %v16543_v14, %v428_v9  ;;  %14460 = vmatmul.mubr.msk.bf16.gmra.mrb[68].mxu0 %vm16585_vm4, %v16760_v60  ;;  %v16804_v7 = vsel %vm21324_vm13, %v16278_v21, %v16728_v3  ;;  %v16806_v56 = vrot.slane %v5063_v5, 7 }
 0x10a   :  { %21596 = vst [vmem:[#allocation43_spill] sm:$0xff] %v16772_v8  ;;  %v16796_v31 = vadd.f32 %v16566_v25, %v666_v63  ;;  %14463 = vmatprep.mubr.msk.bf16.mxu0 %vm16585_vm4, %v861_v47  ;;  %21600 = vst [vmem:[#allocation46_spill] sm:$0xff] %v16804_v7  ;;  %14524 = vmatpush3.bf16.msra.mxu0 %v15835_v19  ;;  %v934_v9 = vadd.s32 88, %v16225_v54  ;;  %v16814_v63 = vsel %vm21324_vm13, %v3227_v59, %v16263_v11  ;;  %v15838_v19 = vld [vmem:[%s21153_s2 + $0x20] sm:$0xff]  }
 0x10b   :  { %21598 = vst [vmem:[#allocation44_spill] sm:$0xff] %v16784_v17  ;;  %v16810_v16 = vadd.f32 %v16566_v25, %v664_v37  ;;  %21602 = vst [vmem:[#allocation48_spill] sm:$0xff] %v16814_v63  ;;  %v3245_v34 = vshll.u32 %v16764_v36, 16  ;;  %v16818_v47 = vcombine.low %v2978_v40, %v16244_v2  ;;  %14525 = vmatprep.subr.bf16.mxu0 %v15837_v23  ;;  %v21193_v5 = vmax.f32 %v16772_v8, 0.0 }
 0x10c   :  { %21599 = vst [vmem:[#allocation45_spill] sm:$0xff] %v16796_v31  ;;  %v21192_v10 = vmax.f32 %v16796_v31, 0.0  ;;  %v4094_v37 = vshrl.u32 %v16790_v30, 16  ;;  %v16826_v22 = vrot.slane %v4102_v61, 7  ;;  %vm16830_vm3 = vcmp.gt.s32.totalorder %v1271_v51, 0 }
 0x10d   :  { %21601 = vst [vmem:[#allocation47_spill] sm:$0xff] %v16810_v16  ;;  %v14389_v58 = vpop.f32.mrb[12].mxu0  ;;  %v16836_v43 = vsel %vm21324_vm13, %v3227_v59, %v16766_v35  ;;  %v4105_v61 = vshll.u32 %v16740_v20, 16  ;;  %v1068_v21 = vand.u32 15, %v934_v9  ;;  %v21605_v51 = vmax.f32 %v16784_v17, 0.0  ;;  %vm2916_vm5 = vmpackc.low %vm16830_vm3, %vm16830_vm3 }
 0x10e   :  { %v863_v48 = vpack.c.bf16 %v21192_v10, %v21193_v5  ;;  %v669_v49 = vmul.f32 %v14389_v58, %v16543_v14  ;;  %v441_v28 = vpop.f32.mrb[13].mxu0  ;;  %14526 = vmatpush3.bf16.msra.mxu0 %v15837_v23  ;;  %v21606_v0 = vmax.f32 %v16810_v16, 0.0  ;;  %v3241_v8 = vshrl.u32 %v16641_v24, 16  ;;  %v15840_v58 = vld [vmem:[%s21153_s2 + $0x28] sm:$0xff]  }
 0x10f   :  { %v667_v59 = vmul.f32 %v16543_v14, %v441_v28  ;;  %v14390_v62 = vpop.f32.mrb[14].mxu0  ;;  %v965_v31 = vadd.s32 336, %v16225_v54  ;;  %14527 = vmatprep.subr.bf16.mxu0 %v15838_v19  ;;  %v16854_v20 = vrot.slane %v4094_v37, 7  ;;  %v4107_v28 = vor.u32 %v4105_v61, %v16826_v22 }
 0x110   :  { %v862_v52 = vpack.c.bf16 %v21606_v0, %v21605_v51  ;;  %895 = vst [vmem:[#allocation2 + $0x38] sm:$0xff] %v863_v48  ;;  %v16857_v23 = vadd.f32 %v16566_v25, %v669_v49  ;;  %v670_v0 = vmul.f32 %v14390_v62, %v16543_v14  ;;  %v444_v9 = vpop.f32.mrb[15].mxu0  ;;  %v3247_v49 = vrot.slane %v3245_v34, 1 }
 0x111   :  { %v16865_v24 = vadd.f32 %v16566_v25, %v667_v59  ;;  %v668_v51 = vmul.f32 %v16543_v14, %v444_v9  ;;  %v21609_v62 = vshll.u32 %v16673_v4, 16  ;;  %v3249_v61 = vshrl.u32 %v16764_v36, 16  ;;  %v15841_v36 = vld [vmem:[%s21153_s2 + $0x30] sm:$0xff]  }
 0x112   :  { %21607 = vst [vmem:[#allocation49_spill] sm:$0xff] %v16857_v23  ;;  %894 = vst [vmem:[#allocation2 + $0x30] sm:$0xff] %v862_v52  ;;  %14464 = vmatmul.mubr.msk.bf16.gmra.mrb[72].mxu0 %vm16585_vm4, %v862_v52  ;;  %v16874_v10 = vadd.f32 %v16566_v25, %v670_v0  ;;  %v3253_v59 = vshll.u32 %v16818_v47, 16  ;;  %v6420_v9 = vshrl.u32 %v16647_v41, 16  ;;  %v3243_v34 = vor.u32 %v3241_v8, %v16728_v3 }
 0x113   :  { %21608 = vst [vmem:[#allocation50_spill] sm:$0xff] %v16865_v24  ;;  %v5068_v37 = vor.u32 %v21609_v62, %v16806_v56  ;;  %14467 = vmatprep.mubr.msk.bf16.mxu0 %vm16585_vm4, %v863_v48  ;;  %14528 = vmatpush3.bf16.msra.mxu0 %v15838_v19  ;;  %v16882_v52 = vadd.f32 %v16566_v25, %v668_v51  ;;  %v2980_v4 = vsel %vm2916_vm5, 65537, %v21597_v18  ;;  %v1285_v48 = vand.u32 15, %v965_v31 }
 0x114   :  { %21610 = vst [vmem:[#allocation51_spill] sm:$0xff] %v16874_v10  ;;  %14529 = vmatprep.subr.bf16.mxu0 %v15840_v58  ;;  %v21200_v41 = vmax.f32 %v16857_v23, 0.0  ;;  %v21199_v19 = vmax.f32 %v16874_v10, 0.0  ;;  %v16898_v8 = vsel %vm21440_vm9, %v16854_v20, %v4107_v28  ;;  %vm16900_vm6 = vcmp.lt.s32.totalorder %v1068_v21, 15  ;;  %v17008_v10 = vld [vmem:[#allocation2 + $0x8] sm:$0xff] }
 0x115   :  { %21611 = vst [vmem:[#allocation52_spill] sm:$0xff] %v16882_v52  ;;  %21612 = vst [vmem:[#allocation53_spill] sm:$0xff] %v16898_v8  ;;  %v16909_v51 = vsel %vm21344_vm1, %v16760_v60, 0  ;;  %v14393_v62 = vpop.f32.mrb[16].mxu0  ;;  %v967_v5 = vadd.s32 352, %v16225_v54  ;;  %v3251_v17 = vor.u32 %v3249_v61, %v3247_v49  ;;  %v16917_v40 = vrot.slane %v3253_v59, 1 }
 0x116   :  { %v865_v21 = vpack.c.bf16 %v21199_v19, %v21200_v41  ;;  %v673_v28 = vmul.f32 %v14393_v62, %v16543_v14  ;;  %v457_v16 = vpop.f32.mrb[17].mxu0  ;;  %v21615_v31 = vmax.f32 %v16865_v24, 0.0  ;;  %v21616_v60 = vmax.f32 %v16882_v52, 0.0  ;;  %v15843_v62 = vld [vmem:[%s21153_s2 + $0x38] sm:$0xff]   ;;  %vm4818_vm7 = vmpackc.low %vm16900_vm6, %vm16900_vm6 }
 0x117   :  { %14530 = vmatpush3.bf16.msra.mxu0 %v15840_v58  ;;  %v671_v8 = vmul.f32 %v16543_v14, %v457_v16  ;;  %v14394_v7 = vpop.f32.mrb[18].mxu0  ;;  %v6422_v23 = vor.u32 %v6420_v9, %v16766_v35  ;;  %v16930_v61 = vsel %vm21440_vm9, %v16649_v15, %v5068_v37  ;;  %v4110_v58 = vshrl.u32 %v16909_v51, 16 }
 0x118   :  { %v864_v45 = vpack.c.bf16 %v21616_v60, %v21615_v31  ;;  %14531 = vmatprep.subr.bf16.mxu0 %v15841_v36  ;;  %21617 = vst [vmem:[#allocation54_spill] sm:$0xff] %v16930_v61  ;;  %897 = vst [vmem:[#allocation2 + $0x48] sm:$0xff] %v865_v21  ;;  %v16934_v59 = vadd.f32 %v16566_v25, %v673_v28  ;;  %v674_v16 = vmul.f32 %v14394_v7, %v16543_v14  ;;  %v460_v31 = vpop.f32.mrb[19].mxu0 }
 0x119   :  { %v16938_v9 = vcombine.low %v2980_v4, %v16244_v2  ;;  %v16944_v15 = vadd.f32 %v16566_v25, %v671_v8  ;;  %v672_v37 = vmul.f32 %v16543_v14, %v460_v31  ;;  %vm16949_vm8 = vcmp.gt.s32.totalorder %v1285_v48, 0 }
 0x11a   :  { %21618 = vst [vmem:[#allocation55_spill] sm:$0xff] %v16934_v59  ;;  %896 = vst [vmem:[#allocation2 + $0x40] sm:$0xff] %v864_v45  ;;  %14468 = vmatmul.mubr.msk.bf16.gmra.mrb[76].mxu0 %vm16585_vm4, %v864_v45  ;;  %v1299_v7 = vand.u32 15, %v967_v5  ;;  %v16954_v4 = vadd.f32 %v16566_v25, %v674_v16  ;;  %v16959_v60 = vsel %vm21324_vm13, %v3243_v34, %v3247_v49  ;;  %v969_v48 = vadd.s32 368, %v16225_v54 }
 0x11b   :  { %21619 = vst [vmem:[#allocation56_spill] sm:$0xff] %v16944_v15  ;;  %14471 = vmatprep.mubr.msk.bf16.mxu0 %vm16585_vm4, %v865_v21  ;;  %21623 = vst [vmem:[#allocation58_spill] sm:$0xff] %v16959_v60  ;;  %v16963_v8 = vsel %vm21324_vm13, %v3251_v17, %v16917_v40  ;;  %14532 = vmatpush3.bf16.msra.mxu0 %v15841_v36  ;;  %v16966_v45 = vadd.f32 %v16566_v25, %v672_v37  ;;  %v4882_v49 = vsel %vm4818_vm7, 65537, %v21597_v18 }
 0x11c   :  { %21622 = vst [vmem:[#allocation57_spill] sm:$0xff] %v16954_v4  ;;  %21624 = vst [vmem:[#allocation59_spill] sm:$0xff] %v16963_v8  ;;  %v16970_v5 = vsel %vm21324_vm13, %v6422_v23, %v16728_v3  ;;  %14533 = vmatprep.subr.bf16.mxu0 %v15843_v62  ;;  %v16979_v17 = vrot.slane %v4110_v58, 7  ;;  %v21206_v34 = vmax.f32 %v16934_v59, 0.0  ;;  %v21203_v36 = vmax.f32 %v16954_v4, 0.0 }
 0x11d   :  { %21625 = vst [vmem:[#allocation60_spill] sm:$0xff] %v16966_v45  ;;  %21626 = vst [vmem:[#allocation61_spill] sm:$0xff] %v16970_v5  ;;  %v3261_v21 = vshll.u32 %v16938_v9, 16  ;;  %v21205_v3 = vmax.f32 %v16944_v15, 0.0  ;;  %v21204_v23 = vmax.f32 %v16966_v45, 0.0  ;;  %v14397_v16 = vpop.f32.mrb[20].mxu0  ;;  %v17001_v41 = vcombine.low %v16244_v2, %v4882_v49 }
 0x11e   :  { %21627 = vst [vmem:[#allocation62_spill] sm:$0xff] %v16979_v17  ;;  %vm2918_vm12 = vmpackc.low %vm16949_vm8, %vm16949_vm8  ;;  %vm16989_vm14 = vcmp.gt.s32.totalorder %v1299_v7, 0  ;;  %v971_v18 = vadd.s32 384, %v16225_v54  ;;  %v4113_v58 = vshll.u32 %v16909_v51, 16  ;;  %v867_v31 = vpack.c.bf16 %v21203_v36, %v21206_v34  ;;  %v473_v19 = vpop.f32.mrb[21].mxu0 }
 0x11f   :  { %v677_v37 = vmul.f32 %v14397_v16, %v16543_v14  ;;  %14534 = vmatpush3.bf16.msra.mxu0 %v15843_v62  ;;  %v866_v7 = vpack.c.bf16 %v21204_v23, %v21205_v3  ;;  %v675_v52 = vmul.f32 %v16543_v14, %v473_v19  ;;  %v14398_v51 = vpop.f32.mrb[22].mxu0  ;;  %v2982_v62 = vsel %vm2918_vm12, 65537, %v17008_v10  ;;  %vm2920_vm15 = vmpackc.low %vm16989_vm14, %vm16989_vm14 }
 0x120   :  { %v1313_v16 = vand.u32 15, %v969_v48  ;;  %899 = vst [vmem:[#allocation2 + $0x58] sm:$0xff] %v867_v31  ;;  %v678_v36 = vmul.f32 %v14398_v51, %v16543_v14  ;;  %v476_v23 = vpop.f32.mrb[23].mxu0  ;;  %v3257_v19 = vshrl.u32 %v16818_v47, 16  ;;  %v4115_v3 = vor.u32 %v4113_v58, %v16979_v17 }
 0x121   :  { %v17017_v49 = vadd.f32 %v16566_v25, %v677_v37  ;;  %898 = vst [vmem:[#allocation2 + $0x50] sm:$0xff] %v866_v7  ;;  %v17026_v28 = vadd.f32 %v16566_v25, %v675_v52  ;;  %v676_v48 = vmul.f32 %v16543_v14, %v476_v23  ;;  %v3263_v37 = vrot.slane %v3261_v21, 1 }
 0x122   :  { %14472 = vmatmul.mubr.msk.bf16.gmra.mrb[80].mxu0 %vm16585_vm4, %v866_v7  ;;  %v1327_v51 = vand.u32 15, %v971_v18  ;;  %v17032_v34 = vadd.f32 %v16566_v25, %v678_v36  ;;  %v17037_v47 = vcombine.low %v2982_v62, %v16244_v2  ;;  %v973_v0 = vadd.s32 400, %v16225_v54 }
 0x123   :  { %21630 = vst [vmem:[#allocation63_spill] sm:$0xff] %v17017_v49  ;;  %21631 = vst [vmem:[#allocation64_spill] sm:$0xff] %v17026_v28  ;;  %14475 = vmatprep.mubr.msk.bf16.mxu0 %vm16585_vm4, %v867_v31  ;;  %v5071_v52 = vshrl.u32 %v17001_v41, 16  ;;  %v17042_v23 = vadd.f32 %v16566_v25, %v676_v48  ;;  %v2984_v58 = vsel %vm2920_vm15, 65537, %v17008_v10  ;;  %vm17045_vm0 = vcmp.gt.s32.totalorder %v1313_v16, 0 }
 0x124   :  { %21632 = vst [vmem:[#allocation65_spill] sm:$0xff] %v17032_v34  ;;  %v5074_v36 = vshll.u32 %v17001_v41, 16  ;;  %v21213_v18 = vmax.f32 %v17017_v49, 0.0  ;;  %v21212_v31 = vmax.f32 %v17032_v34, 0.0  ;;  %v975_v7 = vadd.s32 416, %v16225_v54  ;;  %vm2922_vm5 = vmpackc.low %vm17045_vm0, %vm17045_vm0 }
 0x125   :  { %21633 = vst [vmem:[#allocation66_spill] sm:$0xff] %v17042_v23  ;;  %v17055_v62 = vsel %vm21440_vm9, %v16826_v22, %v4115_v3  ;;  %v21214_v48 = vmax.f32 %v17026_v28, 0.0  ;;  %v14401_v16 = vpop.f32.mrb[24].mxu0  ;;  %v3259_v4 = vor.u32 %v3257_v19, %v16917_v40  ;;  %vm17060_vm3 = vcmp.gt.s32.totalorder %v1327_v51, 0 }
 0x126   :  { %21636 = vst [vmem:[#allocation67_spill] sm:$0xff] %v17055_v62  ;;  %v869_v41 = vpack.c.bf16 %v21212_v31, %v21213_v18  ;;  %v681_v59 = vmul.f32 %v14401_v16, %v16543_v14  ;;  %v489_v22 = vpop.f32.mrb[25].mxu0  ;;  %v3265_v3 = vshrl.u32 %v16938_v9, 16  ;;  %v1341_v45 = vand.u32 15, %v973_v0  ;;  %vm2924_vm6 = vmpackc.low %vm17060_vm3, %vm17060_vm3 }
 0x127   :  { %v21639_v40 = vmax.f32 %v17042_v23, 0.0  ;;  %v679_v51 = vmul.f32 %v16543_v14, %v489_v22  ;;  %v14402_v49 = vpop.f32.mrb[26].mxu0  ;;  %v3269_v31 = vshll.u32 %v17037_v47, 16  ;;  %v17080_v16 = vcombine.low %v2984_v58, %v16244_v2 }
 0x128   :  { %901 = vst [vmem:[#allocation2 + $0x68] sm:$0xff] %v869_v41  ;;  %v17083_v9 = vadd.f32 %v16566_v25, %v681_v59  ;;  %v682_v18 = vmul.f32 %v14402_v49, %v16543_v14  ;;  %v492_v0 = vpop.f32.mrb[27].mxu0  ;;  %v2986_v59 = vsel %vm2922_vm5, 65537, %v17008_v10  ;;  %v977_v49 = vadd.s32 432, %v16225_v54 }
 0x129   :  { %v868_v19 = vpack.c.bf16 %v21639_v40, %v21214_v48  ;;  %v1355_v40 = vand.u32 15, %v975_v7  ;;  %v17089_v48 = vrot.slane %v5071_v52, 7  ;;  %v17092_v22 = vadd.f32 %v16566_v25, %v679_v51 }
 0x12a   :  { %21640 = vst [vmem:[#allocation68_spill] sm:$0xff] %v17083_v9  ;;  %v680_v58 = vmul.f32 %v16543_v14, %v492_v0  ;;  %v17105_v52 = vadd.f32 %v16566_v25, %v682_v18  ;;  %v17110_v7 = vsel %vm21324_vm13, %v3259_v4, %v3263_v37  ;;  %v3267_v51 = vor.u32 %v3265_v3, %v3263_v37 }
 0x12b   :  { %21641 = vst [vmem:[#allocation69_spill] sm:$0xff] %v17089_v48  ;;  %900 = vst [vmem:[#allocation2 + $0x60] sm:$0xff] %v868_v19  ;;  %14476 = vmatmul.mubr.msk.bf16.gmra.mrb[84].mxu0 %vm16585_vm4, %v868_v19  ;;  %vm17112_vm7 = vcmp.gt.s32.totalorder %v1341_v45, 0  ;;  %v3271_v0 = vrot.slane %v3269_v31, 1  ;;  %v3277_v23 = vshll.u32 %v17080_v16, 16  ;;  %v2988_v18 = vsel %vm2924_vm6, 65537, %v17008_v10 }
 0x12c   :  { %21642 = vst [vmem:[#allocation70_spill] sm:$0xff] %v17092_v22  ;;  %21643 = vst [vmem:[#allocation71_spill] sm:$0xff] %v17105_v52  ;;  %14479 = vmatprep.mubr.msk.bf16.mxu0 %vm16585_vm4, %v869_v41  ;;  %v17117_v21 = vadd.f32 %v16566_v25, %v680_v58  ;;  %v17129_v37 = vcombine.low %v2986_v59, %v16244_v2  ;;  %vm17131_vm8 = vcmp.gt.s32.totalorder %v1355_v40, 0  ;;  %v1369_v15 = vand.u32 15, %v977_v49 }
 0x12d   :  { %21644 = vst [vmem:[#allocation72_spill] sm:$0xff] %v17110_v7  ;;  %v14405_v58 = vpop.f32.mrb[28].mxu0  ;;  %vm2926_vm12 = vmpackc.low %vm17112_vm7, %vm17112_vm7  ;;  %v5076_v4 = vor.u32 %v5074_v36, %v17089_v48  ;;  %v21650_v45 = vmax.f32 %v17083_v9, 0.0  ;;  %v21651_v59 = vmax.f32 %v17105_v52, 0.0  ;;  %v3273_v31 = vshrl.u32 %v17037_v47, 16 }
 0x12e   :  { %21647 = vst [vmem:[#allocation73_spill] sm:$0xff] %v17117_v21  ;;  %v685_v34 = vmul.f32 %v14405_v58, %v16543_v14  ;;  %v505_v28 = vpop.f32.mrb[29].mxu0  ;;  %v17150_v3 = vcombine.low %v2988_v18, %v16244_v2  ;;  %v21653_v24 = vmax.f32 %v17092_v22, 0.0  ;;  %v21654_v49 = vmax.f32 %v17117_v21, 0.0  ;;  %vm2928_vm14 = vmpackc.low %vm17131_vm8, %vm17131_vm8 }
 0x12f   :  { %v17145_v40 = vpack.c.bf16 %v21651_v59, %v21650_v45  ;;  %v683_v36 = vmul.f32 %v16543_v14, %v505_v28  ;;  %v14406_v9 = vpop.f32.mrb[30].mxu0  ;;  %v3279_v52 = vrot.slane %v3277_v23, 1  ;;  %v3281_v45 = vshrl.u32 %v17080_v16, 16 }
 0x130   :  { %v17156_v35 = vpack.c.bf16 %v21654_v49, %v21653_v24  ;;  %v17165_v47 = vadd.f32 %v16566_v25, %v685_v34  ;;  %v686_v18 = vmul.f32 %v14406_v9, %v16543_v14  ;;  %v508_v58 = vpop.f32.mrb[31].mxu0  ;;  %v3285_v24 = vshll.u32 %v17129_v37, 16 }
 0x131   :  { %21652 = vst [vmem:[#allocation74_spill] sm:$0xff] %v17145_v40  ;;  %903 = vst [vmem:[#allocation2 + $0x78] sm:$0xff] %v17145_v40  ;;  %v2990_v28 = vsel %vm2926_vm12, 65537, %v17008_v10  ;;  %v17177_v23 = vadd.f32 %v16566_v25, %v683_v36  ;;  %v684_v34 = vmul.f32 %v16543_v14, %v508_v58  ;;  %vm17183_vm15 = vcmp.gt.s32.totalorder %v1369_v15, 0 }
 0x132   :  { %21655 = vst [vmem:[#allocation75_spill] sm:$0xff] %v17156_v35  ;;  %21656 = vst [vmem:[#allocation76_spill] sm:$0xff] %v17165_v47  ;;  %v979_v9 = vadd.s32 448, %v16225_v54  ;;  %v17189_v19 = vadd.f32 %v16566_v25, %v686_v18  ;;  %v17195_v59 = vsel %vm21324_vm13, %v3267_v51, %v3271_v0  ;;  %v3293_v49 = vshll.u32 %v17150_v3, 16 }
 0x133   :  { %902 = vst [vmem:[#allocation2 + $0x70] sm:$0xff] %v17156_v35  ;;  %21657 = vst [vmem:[#allocation77_spill] sm:$0xff] %v17177_v23  ;;  %14480 = vmatmul.mubr.msk.bf16.gmra.mrb[88].mxu0 %vm16585_vm4, %v17156_v35  ;;  %v2992_v15 = vsel %vm2928_vm14, 65537, %v17008_v10  ;;  %v17205_v36 = vadd.f32 %v16566_v25, %v684_v34  ;;  %v3275_v18 = vor.u32 %v3273_v31, %v3271_v0  ;;  %v21228_v51 = vmax.f32 %v17165_v47, 0.0 }
 0x134   :  { %21660 = vst [vmem:[#allocation78_spill] sm:$0xff] %v17189_v19  ;;  %14483 = vmatprep.mubr.msk.bf16.mxu0 %vm16585_vm4, %v17145_v40  ;;  %21661 = vst [vmem:[#allocation79_spill] sm:$0xff] %v17195_v59  ;;  %v3283_v58 = vor.u32 %v3281_v45, %v3279_v52  ;;  %v17209_v21 = vsel %vm21440_vm9, %v16806_v56, %v5076_v4  ;;  %v21227_v22 = vmax.f32 %v17189_v19, 0.0  ;;  %v3287_v61 = vrot.slane %v3285_v24, 1 }
 0x135   :  { %21662 = vst [vmem:[#allocation80_spill] sm:$0xff] %v17205_v36  ;;  %21663 = vst [vmem:[#allocation81_spill] sm:$0xff] %v17209_v21  ;;  %v13412_v48 = vcombine.low %v2990_v28, %v16244_v2  ;;  %v21230_v41 = vmax.f32 %v17177_v23, 0.0  ;;  %v21229_v0 = vmax.f32 %v17205_v36, 0.0  ;;  %v14409_v31 = vpop.f32.mrb[32].mxu0  ;;  %v17220_v45 = vcombine.low %v2992_v15, %v16244_v2 }
 0x136   :  { %vm2930_vm0 = vmpackc.low %vm17183_vm15, %vm17183_vm15  ;;  %v1383_v56 = vand.u32 15, %v979_v9  ;;  %v17226_v4 = vpack.c.bf16 %v21227_v22, %v21228_v51  ;;  %v689_v24 = vmul.f32 %v14409_v31, %v16543_v14  ;;  %v521_v28 = vpop.f32.mrb[33].mxu0  ;;  %vm21330_vm3 = vcmp.ne.s16.totalorder %v16959_v60, 0 }
 0x137   :  { %v3289_v34 = vshrl.u32 %v17129_v37, 16  ;;  %v3295_v16 = vrot.slane %v3293_v49, 1  ;;  %v17235_v15 = vpack.c.bf16 %v21229_v0, %v21230_v41  ;;  %v687_v9 = vmul.f32 %v16543_v14, %v521_v28  ;;  %v14410_v47 = vpop.f32.mrb[34].mxu0 }
 0x138   :  { %21664 = vst [vmem:[#allocation82_spill] sm:$0xff] %v17226_v4  ;;  %v2994_v22 = vsel %vm2930_vm0, 65537, %v17008_v10  ;;  %v981_v51 = vadd.s32 464, %v16225_v54  ;;  %905 = vst [vmem:[#allocation2 + $0x88] sm:$0xff] %v17226_v4  ;;  %v17242_v31 = vadd.f32 %v16566_v25, %v689_v24  ;;  %v690_v37 = vmul.f32 %v14410_v47, %v16543_v14  ;;  %v524_v49 = vpop.f32.mrb[35].mxu0 }
 0x139   :  { %21665 = vst [vmem:[#allocation83_spill] sm:$0xff] %v17235_v15  ;;  %vm6559_vm5 = vcmp.ne.s16.totalorder %v16836_v43, 0  ;;  %v3297_v0 = vshrl.u32 %v17150_v3, 16  ;;  %v3301_v41 = vshll.u32 %v13412_v48, 16  ;;  %904 = vst [vmem:[#allocation2 + $0x80] sm:$0xff] %v17235_v15  ;;  %v17249_v28 = vadd.f32 %v16566_v25, %v687_v9 }
 0x13a   :  { %21666 = vst [vmem:[#allocation84_spill] sm:$0xff] %v17242_v31  ;;  %v688_v36 = vmul.f32 %v16543_v14, %v524_v49  ;;  %vm21280_vm6 = vcmp.ne.s16.totalorder %v16970_v5, 0  ;;  %v3309_v47 = vshll.u32 %v17220_v45, 16  ;;  %vm17257_vm7 = vcmp.gt.s32.totalorder %v1383_v56, 0 }
 0x13b   :  { %21667 = vst [vmem:[#allocation85_spill] sm:$0xff] %v17249_v28  ;;  %14484 = vmatmul.mubr.msk.bf16.gmra.mrb[92].mxu0 %vm16585_vm4, %v17235_v15  ;;  %v17262_v3 = vadd.f32 %v16566_v25, %v690_v37  ;;  %v17268_v9 = vsel %vm21324_vm13, %v3275_v18, %v3279_v52  ;;  %v3305_v49 = vshrl.u32 %v13412_v48, 16  ;;  %v17271_v19 = vcombine.low %v2994_v22, %v16244_v2  ;;  %vm2932_vm8 = vmpackc.low %vm17257_vm7, %vm17257_vm7 }
 0x13c   :  { %14487 = vmatprep.mubr.msk.bf16.mxu0 %vm21279_vm2, %v17226_v4  ;;  %21671 = vst [vmem:[#allocation87_spill] sm:$0xff] %v17268_v9  ;;  %v17274_v23 = vadd.f32 %v16566_v25, %v688_v36  ;;  %v17277_v56 = vsel %vm21324_vm13, %v3283_v58, %v3287_v61  ;;  %v3291_v21 = vor.u32 %v3289_v34, %v3287_v61  ;;  %v1397_v37 = vand.u32 15, %v981_v51 }
 0x13d   :  { %21670 = vst [vmem:[#allocation86_spill] sm:$0xff] %v17262_v3  ;;  %21673 = vst [vmem:[#allocation89_spill] sm:$0xff] %v17277_v56  ;;  %v21240_v62 = vmax.f32 %v17242_v31, 0.0  ;;  %v21239_v50 = vmax.f32 %v17262_v3, 0.0  ;;  %v3299_v15 = vor.u32 %v3297_v0, %v3295_v16  ;;  %v3303_v17 = vrot.slane %v3301_v41, 1  ;;  %v14413_v52 = vpop.f32.mrb[36].mxu0 }
 0x13e   :  { %21672 = vst [vmem:[#allocation88_spill] sm:$0xff] %v17274_v23  ;;  %v21242_v48 = vmax.f32 %v17249_v28, 0.0  ;;  %v21241_v22 = vmax.f32 %v17274_v23, 0.0  ;;  %v3311_v36 = vrot.slane %v3309_v47, 1  ;;  %v3313_v18 = vshrl.u32 %v17220_v45, 16  ;;  %v537_v51 = vpop.f32.mrb[37].mxu0 }
 0x13f   :  { %v17291_v61 = vpack.c.bf16 %v21239_v50, %v21240_v62  ;;  %v693_v58 = vmul.f32 %v14413_v52, %v16543_v14  ;;  %v3307_v41 = vor.u32 %v3305_v49, %v3303_v17  ;;  %v3317_v0 = vshll.u32 %v17271_v19, 16  ;;  %v14414_v47 = vpop.f32.mrb[38].mxu0 }
 0x140   :  { %v17299_v34 = vpack.c.bf16 %v21241_v22, %v21242_v48  ;;  %v691_v45 = vmul.f32 %v16543_v14, %v537_v51  ;;  %v2996_v24 = vsel %vm2932_vm8, 65537, %v17008_v10  ;;  %vm17303_vm12 = vcmp.gt.s32.totalorder %v1397_v37, 0  ;;  %v540_v62 = vpop.f32.mrb[39].mxu0 }
 0x141   :  { %21674 = vst [vmem:[#allocation90_spill] sm:$0xff] %v17291_v61  ;;  %907 = vst [vmem:[#allocation2 + $0x98] sm:$0xff] %v17291_v61  ;;  %v17309_v49 = vadd.f32 %v16566_v25, %v693_v58  ;;  %v694_v52 = vmul.f32 %v14414_v47, %v16543_v14  ;;  %v17313_v22 = vsel %vm21324_vm13, %v3291_v21, %v3295_v16  ;;  %v6594_v58 = vsel %vm21330_vm3, %v17291_v61, 0 }
 0x142   :  { %21675 = vst [vmem:[#allocation91_spill] sm:$0xff] %v17299_v34  ;;  %21679 = vst [vmem:[#allocation93_spill] sm:$0xff] %v17313_v22  ;;  %v17316_v51 = vsel %vm21324_vm13, %v3299_v15, %v3303_v17  ;;  %v17320_v37 = vadd.f32 %v16566_v25, %v691_v45  ;;  %v692_v48 = vmul.f32 %v16543_v14, %v540_v62  ;;  %vm21329_vm14 = vcmp.ne.s16.totalorder %v16963_v8, 0 }
 0x143   :  { %21678 = vst [vmem:[#allocation92_spill] sm:$0xff] %v17309_v49  ;;  %21680 = vst [vmem:[#allocation94_spill] sm:$0xff] %v17316_v51  ;;  %14488 = vmatmul.mubr.msk.bf16.gmra.mrb[96].mxu0 %vm16585_vm4, %v17299_v34  ;;  %v17329_v21 = vor.u32 %v3313_v18, %v3311_v36  ;;  %v17332_v17 = vadd.f32 %v16566_v25, %v694_v52  ;;  %v17339_v62 = vsel %vm21324_vm13, %v3307_v41, %v3311_v36 }
 0x144   :  { %906 = vst [vmem:[#allocation2 + $0x90] sm:$0xff] %v17299_v34  ;;  %21681 = vst [vmem:[#allocation95_spill] sm:$0xff] %v17320_v37  ;;  %14491 = vmatprep.mubr.msk.bf16.mxu0 %vm16585_vm4, %v17291_v61  ;;  %v17341_v16 = vrot.slane %v3317_v0, 1  ;;  %v17344_v15 = vcombine.low %v2996_v24, %v16244_v2  ;;  %v17350_v18 = vadd.f32 %v16566_v25, %v692_v48  ;;  %v17355_v45 = vsel %vm6559_vm5, %v17226_v4, 0 }
 0x145   :  { %21682 = vst [vmem:[#allocation96_spill] sm:$0xff] %v17332_v17  ;;  %21683 = vst [vmem:[#allocation97_spill] sm:$0xff] %v17339_v62  ;;  %v983_v36 = vadd.s32 480, %v16225_v54  ;;  %v17359_v41 = vadd.s32 104, %v16225_v54  ;;  %v21255_v0 = vmax.f32 %v17309_v49, 0.0  ;;  %v21254_v47 = vmax.f32 %v17332_v17, 0.0 }
 0x146   :  { %vm2934_vm15 = vmpackc.low %vm17303_vm12, %vm17303_vm12  ;;  %21684 = vst [vmem:[#allocation98_spill] sm:$0xff] %v17350_v18  ;;  %v6593_v50 = vsel %vm21280_vm6, %v17299_v34, 0  ;;  %v6767_v48 = vshrl.u32 %v6594_v58, 16  ;;  %v14417_v52 = vpop.f32.mrb[40].mxu0  ;;  %vm21327_vm0 = vcmp.ne.s16.totalorder %v17110_v7, 0  ;;  %v6751_v5 = vshrl.u32 %v17355_v45, 16 }
 0x147   :  { %21685 = vst [vmem:[#allocation99_spill] sm:$0xff] %v17355_v45  ;;  %v6759_v23 = vshrl.u32 %v6593_v50, 16  ;;  %v2998_v3 = vsel %vm2934_vm15, 65537, %v17008_v10  ;;  %v17373_v28 = vpack.c.bf16 %v21254_v47, %v21255_v0  ;;  %v697_v31 = vmul.f32 %v14417_v52, %v16543_v14  ;;  %v553_v61 = vpop.f32.mrb[41].mxu0 }
 0x148   :  { %v3325_v24 = vshll.u32 %v17344_v15, 16  ;;  %v21687_v43 = vmax.f32 %v17320_v37, 0.0  ;;  %v21688_v60 = vmax.f32 %v17350_v18, 0.0  ;;  %v695_v49 = vmul.f32 %v16543_v14, %v553_v61  ;;  %v14418_v17 = vpop.f32.mrb[42].mxu0 }
 0x149   :  { %21686 = vst [vmem:[#allocation100_spill] sm:$0xff] %v17373_v28  ;;  %v6761_v47 = vrot.slane %v6759_v23, 7  ;;  %v1411_v0 = vand.u32 15, %v983_v36  ;;  %909 = vst [vmem:[#allocation2 + $0xa8] sm:$0xff] %v17373_v28  ;;  %v17388_v52 = vadd.f32 %v16566_v25, %v697_v31  ;;  %v698_v45 = vmul.f32 %v14418_v17, %v16543_v14  ;;  %v556_v4 = vpop.f32.mrb[43].mxu0 }
 0x14a   :  { %v17383_v34 = vpack.c.bf16 %v21688_v60, %v21687_v43  ;;  %v6762_v40 = vshll.u32 %v6593_v50, 16  ;;  %v17391_v35 = vrot.slane %v6767_v48, 7  ;;  %v17395_v60 = vadd.f32 %v16566_v25, %v695_v49 }
 0x14b   :  { %21690 = vst [vmem:[#allocation102_spill] sm:$0xff] %v17388_v52  ;;  %v696_v61 = vmul.f32 %v16543_v14, %v556_v4  ;;  %v17402_v23 = vcombine.low %v2998_v3, %v16244_v2  ;;  %v1082_v31 = vand.u32 15, %v17359_v41  ;;  %v17406_v17 = vadd.f32 %v16566_v25, %v698_v45 }
 0x14c   :  { %21689 = vst [vmem:[#allocation101_spill] sm:$0xff] %v17383_v34  ;;  %908 = vst [vmem:[#allocation2 + $0xa0] sm:$0xff] %v17383_v34  ;;  %14492 = vmatmul.mubr.msk.bf16.gmra.mrb[100].mxu0 %vm16585_vm4, %v17383_v34  ;;  %v17408_v36 = vrot.slane %v6751_v5, 7  ;;  %v6764_v50 = vor.u32 %v6762_v40, %v6761_v47  ;;  %v6770_v4 = vshll.u32 %v6594_v58, 16  ;;  %v6595_v3 = vsel %vm21329_vm14, %v17383_v34, 0 }
 0x14d   :  { %21691 = vst [vmem:[#allocation103_spill] sm:$0xff] %v17395_v60  ;;  %21692 = vst [vmem:[#allocation104_spill] sm:$0xff] %v17406_v17  ;;  %14495 = vmatprep.mubr.msk.bf16.mxu0 %vm16585_vm4, %v17373_v28  ;;  %v17414_v49 = vadd.f32 %v16566_v25, %v696_v61  ;;  %v3321_v41 = vshrl.u32 %v17271_v19, 16  ;;  %vm17420_vm5 = vcmp.gt.s32.totalorder %v1411_v0, 0  ;;  %v14421_v18 = vpop.f32.mrb[44].mxu0  ;;  %v15830_v19 = vld [vmem:[%s21153_s2 + $0x108] sm:$0xff]  }
 0x14e   :  { %21693 = vst [vmem:[#allocation105_spill] sm:$0xff] %v17408_v36  ;;  %v6765_v58 = vsel %vm21440_vm9, %v17408_v36, %v6764_v50  ;;  %v6772_v48 = vor.u32 %v6770_v4, %v17391_v35  ;;  %v3329_v0 = vshrl.u32 %v17344_v15, 16  ;;  %v985_v5 = vadd.s32 496, %v16225_v54  ;;  %v569_v43 = vpop.f32.mrb[45].mxu0  ;;  %vm2936_vm8 = vmpackc.low %vm17420_vm5, %vm17420_vm5 }
 0x14f   :  { %21694 = vst [vmem:[#allocation106_spill] sm:$0xff] %v17414_v49  ;;  %14727 = vmatprep.mubr.bf16.mxu1 %v6765_v58  ;;  %v21697_v40 = vmax.f32 %v17388_v52, 0.0  ;;  %v21698_v50 = vmax.f32 %v17406_v17, 0.0  ;;  %v701_v4 = vmul.f32 %v14421_v18, %v16543_v14  ;;  %v6775_v58 = vshrl.u32 %v6595_v3, 16  ;;  %v14422_v54 = vpop.f32.mrb[46].mxu0 }
 0x150   :  { %v6773_v61 = vsel %vm21440_vm9, %v6761_v47, %v6772_v48  ;;  %v21700_v36 = vmax.f32 %v17395_v60, 0.0  ;;  %v21701_v34 = vmax.f32 %v17414_v49, 0.0  ;;  %v699_v15 = vmul.f32 %v16543_v14, %v569_v43  ;;  %v17463_v14 = vld [vmem:[%s21155_s4] ss:$0 sm:$0xff]  ;;  %v572_v47 = vpop.f32.mrb[47].mxu0 }
 0x151   :  { %v17440_v37 = vpack.c.bf16 %v21698_v50, %v21697_v40  ;;  %14728 = vmatmul.mubr.bf16.vlgmr.msra.gmra.mrb[0].mxu1 %v6773_v61  ;;  %vm21325_vm7 = vcmp.ne.s16.totalorder %v17268_v9, 0  ;;  %v3327_v40 = vrot.slane %v3325_v24, 1  ;;  %v3333_v50 = vshll.u32 %v17402_v23, 16  ;;  %v15895_v24 = vld [vmem:[%s21153_s2 + $0x100] sm:$0xff]  }
 0x152   :  { %v17448_v8 = vpack.c.bf16 %v21701_v34, %v21700_v36  ;;  %v17458_v18 = vadd.f32 %v16566_v25, %v701_v4  ;;  %v702_v34 = vmul.f32 %v17463_v14, %v14422_v54  ;;  %vm21326_vm12 = vcmp.ne.s16.totalorder %v17195_v59, 0  ;;  %14760 = vmatpush3.bf16.msra.mxu1 %v15895_v24  ;;  %v17483_v54 = vld [vmem:[%s21156_s5] ss:$0 sm:$0xff] }
 0x153   :  { %21699 = vst [vmem:[#allocation107_spill] sm:$0xff] %v17440_v37  ;;  %911 = vst [vmem:[#allocation2 + $0xb8] sm:$0xff] %v17440_v37  ;;  %v17473_v25 = vsel %vm21324_vm13, %v17329_v21, %v17341_v16  ;;  %vm17475_vm15 = vcmp.lt.s32.totalorder %v1082_v31, 15  ;;  %v17486_v48 = vadd.f32 %v17483_v54, %v699_v15  ;;  %v700_v43 = vmul.f32 %v17463_v14, %v572_v47  ;;  %v15831_v31 = vld [vmem:[%s21153_s2 + $0x110] sm:$0xff]   ;;  %v15836_v36 = vld [vmem:[%s21153_s2 + $0x120] sm:$0xff]  }
 0x154   :  { %21702 = vst [vmem:[#allocation108_spill] sm:$0xff] %v17458_v18  ;;  %21703 = vst [vmem:[#allocation109_spill] sm:$0xff] %v17473_v25  ;;  %v6596_v21 = vsel %vm21327_vm0, %v17373_v28, 0  ;;  %14496 = vmatmul.mubr.msk.bf16.gmra.mrb[104].mxu0 %vm16585_vm4, %v17448_v8  ;;  %14761 = vmatprep.subr.bf16.mxu1 %v15830_v19  ;;  %v1425_v61 = vand.u32 15, %v985_v5  ;;  %v17499_v4 = vadd.f32 %v17483_v54, %v702_v34  ;;  %v6777_v15 = vrot.slane %v6775_v58, 7 }
 0x155   :  { %910 = vst [vmem:[#allocation2 + $0xb0] sm:$0xff] %v17448_v8  ;;  %21706 = vst [vmem:[#allocation110_spill] sm:$0xff] %v17486_v48  ;;  %v6778_v24 = vshll.u32 %v6595_v3, 16  ;;  %14499 = vmatprep.mubr.msk.bf16.mxu0 %vm16585_vm4, %v17440_v37  ;;  %v3000_v47 = vsel %vm2936_vm8, 65537, %v17008_v10  ;;  %v17511_v49 = vadd.f32 %v17483_v54, %v700_v43  ;;  %v3323_v5 = vor.u32 %v3321_v41, %v17341_v16  ;;  %v14425_v7 = vpop.f32.mrb[48].mxu0  ;;  %v15833_v16 = vld [vmem:[%s21153_s2 + $0x118] sm:$0xff]  }
 0x156   :  { %21707 = vst [vmem:[#allocation111_spill] sm:$0xff] %v17499_v4  ;;  %v3331_v34 = vor.u32 %v3329_v0, %v3327_v40  ;;  %v17514_v17 = vrot.slane %v3333_v50, 1  ;;  %v21284_v3 = vmax.f32 %v17458_v18, 0.0  ;;  %v21278_v58 = vmax.f32 %v17499_v4, 0.0  ;;  %14762 = vmatpush3.bf16.msra.mxu1 %v15830_v19  ;;  %vm4820_vm8 = vmpackc.low %vm17475_vm15, %vm17475_vm15  ;;  %v585_v43 = vpop.f32.mrb[49].mxu0 }
 0x157   :  { %21708 = vst [vmem:[#allocation112_spill] sm:$0xff] %v17511_v49  ;;  %v6780_v60 = vor.u32 %v6778_v24, %v6777_v15  ;;  %v6783_v52 = vshrl.u32 %v6596_v21, 16  ;;  %v21283_v28 = vmax.f32 %v17486_v48, 0.0  ;;  %v21282_v45 = vmax.f32 %v17511_v49, 0.0  ;;  %14763 = vmatprep.subr.bf16.mxu1 %v15831_v31  ;;  %v14426_v63 = vpop.f32.mrb[50].mxu0 }
 0x158   :  { %v17524_v41 = vcombine.low %v3000_v47, %v16244_v2  ;;  %vm17526_vm5 = vcmp.gt.s32.totalorder %v1425_v61, 0  ;;  %v17537_v19 = vpack.c.bf16 %v21278_v58, %v21284_v3  ;;  %v705_v50 = vmul.f32 %v17463_v14, %v14425_v7 }
 0x159   :  { %v6781_v24 = vsel %vm21440_vm9, %v17391_v35, %v6780_v60  ;;  %v17542_v61 = vrot.slane %v6783_v52, 7  ;;  %v17548_v47 = vpack.c.bf16 %v21282_v45, %v21283_v28  ;;  %v703_v18 = vmul.f32 %v17463_v14, %v585_v43  ;;  %v588_v60 = vpop.f32.mrb[51].mxu0  ;;  %vm2938_vm6 = vmpackc.low %vm17526_vm5, %vm17526_vm5 }
 0x15a   :  { %14731 = vmatprep.mubr.bf16.mxu1 %v6781_v24  ;;  %v17552_v58 = vsel %vm21324_vm13, %v3323_v5, %v3327_v40  ;;  %v17556_v7 = vsel %vm21324_vm13, %v3331_v34, %v17514_v17  ;;  %vm21305_vm2 = vcmp.ne.s16.totalorder %v16455_v6, 0  ;;  %913 = vst [vmem:[#allocation2 + $0xc8] sm:$0xff] %v17537_v19  ;;  %v17561_v35 = vadd.f32 %v17483_v54, %v705_v50 }
 0x15b   :  { %21711 = vst [vmem:[#allocation113_spill] sm:$0xff] %v17552_v58  ;;  %21712 = vst [vmem:[#allocation114_spill] sm:$0xff] %v17556_v7  ;;  %v706_v52 = vmul.f32 %v17463_v14, %v14426_v63  ;;  %v6786_v43 = vshll.u32 %v6596_v21, 16  ;;  %14764 = vmatpush3.bf16.msra.mxu1 %v15831_v31  ;;  %v4884_v40 = vsel %vm4820_vm8, 65537, %v17008_v10  ;;  %v6597_v63 = vsel %vm21326_vm12, %v17448_v8, 0 }
 0x15c   :  { %21713 = vst [vmem:[#allocation115_spill] sm:$0xff] %v17561_v35  ;;  %912 = vst [vmem:[#allocation2 + $0xc0] sm:$0xff] %v17548_v47  ;;  %v17578_v21 = vadd.f32 %v17483_v54, %v703_v18  ;;  %v704_v31 = vmul.f32 %v17463_v14, %v588_v60  ;;  %vm21307_vm11 = vcmp.ne.s16.totalorder %v17277_v56, 0  ;;  %14500 = vmatmul.mubr.msk.bf16.gmra.mrb[108].mxu0 %vm16585_vm4, %v17548_v47  ;;  %14765 = vmatprep.subr.bf16.mxu1 %v15833_v16 }
 0x15d   :  { %v3337_v5 = vshrl.u32 %v17402_v23, 16  ;;  %v17590_v34 = vadd.f32 %v17483_v54, %v706_v52  ;;  %v17595_v18 = vsel %vm21325_vm7, %v17440_v37, 0  ;;  %v6788_v50 = vor.u32 %v6786_v43, %v17542_v61  ;;  %14503 = vmatprep.mubr.msk.bf16.mxu0 %vm16585_vm4, %v17537_v19  ;;  %v14429_v0 = vpop.f32.mrb[52].mxu0 }
 0x15e   :  { %21714 = vst [vmem:[#allocation116_spill] sm:$0xff] %v17578_v21  ;;  %v3341_v24 = vshll.u32 %v17524_v41, 16  ;;  %v17603_v60 = vadd.f32 %v17483_v54, %v704_v31  ;;  %v3002_v23 = vsel %vm2938_vm6, 65537, %v17008_v10  ;;  %v3345_v52 = vshrl.u32 %v17524_v41, 16 }
 0x15f   :  { %21715 = vst [vmem:[#allocation117_spill] sm:$0xff] %v17590_v34  ;;  %v17613_v43 = vcombine.low %v16244_v2, %v4884_v40  ;;  %v21291_v45 = vmax.f32 %v17561_v35, 0.0  ;;  %v21290_v28 = vmax.f32 %v17590_v34, 0.0  ;;  %v6789_v3 = vsel %vm21440_vm9, %v6777_v15, %v6788_v50  ;;  %14766 = vmatpush3.bf16.msra.mxu1 %v15833_v16  ;;  %v15839_v40 = vld [vmem:[%s21153_s2 + $0x128] sm:$0xff]   ;;  %v601_v50 = vpop.f32.mrb[53].mxu0 }
 0x160   :  { %21716 = vst [vmem:[#allocation118_spill] sm:$0xff] %v17603_v60  ;;  %v6791_v31 = vshrl.u32 %v6597_v63, 16  ;;  %v21292_v49 = vmax.f32 %v17578_v21, 0.0  ;;  %14732 = vmatmul.mubr.bf16.gmra.mrb[4].mxu1 %v6789_v3  ;;  %v6799_v10 = vshrl.u32 %v17595_v18, 16  ;;  %14767 = vmatprep.subr.bf16.mxu1 %v15836_v36  ;;  %v3339_v41 = vor.u32 %v3337_v5, %v17514_v17  ;;  %v14430_v35 = vpop.f32.mrb[54].mxu0  ;;  %v15844_v21 = vld [vmem:[%s21153_s2 + $0x138] sm:$0xff]  }
 0x161   :  { %v17629_v15 = vpack.c.bf16 %v21290_v28, %v21291_v45  ;;  %v709_v16 = vmul.f32 %v17463_v14, %v14429_v0  ;;  %vm21306_vm6 = vcmp.ne.s16.totalorder %v17313_v22, 0  ;;  %v6794_v4 = vshll.u32 %v6597_v63, 16 }
 0x162   :  { %v6793_v3 = vrot.slane %v6791_v31, 7  ;;  %v21717_v17 = vmax.f32 %v17603_v60, 0.0  ;;  %v707_v48 = vmul.f32 %v17463_v14, %v601_v50  ;;  %v3343_v37 = vrot.slane %v3341_v24, 1  ;;  %v604_v31 = vpop.f32.mrb[55].mxu0 }
 0x163   :  { %v17641_v28 = vcombine.low %v3002_v23, %v16244_v2  ;;  %915 = vst [vmem:[#allocation2 + $0xd8] sm:$0xff] %v17629_v15  ;;  %v17645_v0 = vadd.f32 %v17483_v54, %v709_v16  ;;  %v710_v63 = vmul.f32 %v17463_v14, %v14430_v35  ;;  %14768 = vmatpush3.bf16.msra.mxu1 %v15836_v36  ;;  %v17655_v50 = vrot.slane %v6799_v10, 7  ;;  %v15897_v16 = vld [vmem:[#allocation2 + $0x28] sm:$0xff] }
 0x164   :  { %v17637_v5 = vpack.c.bf16 %v21717_v17, %v21292_v49  ;;  %v6796_v45 = vor.u32 %v6794_v4, %v6793_v3  ;;  %v17652_v24 = vadd.f32 %v17483_v54, %v707_v48  ;;  %v708_v23 = vmul.f32 %v17463_v14, %v604_v31  ;;  %14769 = vmatprep.subr.bf16.mxu1 %v15839_v40  ;;  %v15842_v4 = vld [vmem:[%s21153_s2 + $0x130] sm:$0xff]  }
 0x165   :  { %21718 = vst [vmem:[#allocation119_spill] sm:$0xff] %v17645_v0  ;;  %v6599_v35 = vsel %vm21307_vm11, %v17548_v47, 0  ;;  %v17667_v48 = vadd.f32 %v17483_v54, %v710_v63  ;;  %vm21314_vm15 = vcmp.ne.s16.totalorder %v17316_v51, 0  ;;  %v17676_v10 = vsel %vm21324_vm13, %v3339_v41, %v3343_v37 }
 0x166   :  { %914 = vst [vmem:[#allocation2 + $0xd0] sm:$0xff] %v17637_v5  ;;  %21719 = vst [vmem:[#allocation120_spill] sm:$0xff] %v17652_v24  ;;  %14504 = vmatmul.mubr.msk.bf16.gmra.mrb[112].mxu0 %vm16585_vm4, %v17637_v5  ;;  %v6797_v36 = vsel %vm21440_vm9, %v17542_v61, %v6796_v45  ;;  %v17680_v31 = vsel %vm21305_vm2, %v15897_v16, 0  ;;  %v17683_v63 = vadd.f32 %v17483_v54, %v708_v23  ;;  %v6802_v45 = vshll.u32 %v17595_v18, 16 }
 0x167   :  { %21720 = vst [vmem:[#allocation121_spill] sm:$0xff] %v17667_v48  ;;  %14507 = vmatprep.mubr.msk.bf16.mxu0 %vm16585_vm4, %v17629_v15  ;;  %21721 = vst [vmem:[#allocation122_spill] sm:$0xff] %v17676_v10  ;;  %14735 = vmatprep.mubr.bf16.mxu1 %v6797_v36  ;;  %v17686_v61 = vor.u32 %v3345_v52, %v3343_v37  ;;  %v21303_v17 = vmax.f32 %v17645_v0, 0.0  ;;  %v21302_v49 = vmax.f32 %v17667_v48, 0.0  ;;  %v3349_v41 = vshll.u32 %v17641_v28, 16  ;;  %v14433_v36 = vpop.f32.mrb[56].mxu0 }
 0x168   :  { %21722 = vst [vmem:[#allocation123_spill] sm:$0xff] %v17683_v63  ;;  %14770 = vmatpush3.bf16.msra.mxu1 %v15839_v40  ;;  %v21309_v34 = vmax.f32 %v17652_v24, 0.0  ;;  %v6804_v23 = vor.u32 %v6802_v45, %v17655_v50  ;;  %v6807_v6 = vshrl.u32 %v6599_v35, 16  ;;  %v4118_v37 = vshrl.u32 %v17680_v31, 16  ;;  %v617_v40 = vpop.f32.mrb[57].mxu0 }
 0x169   :  { %21723 = vst [vmem:[#allocation124_spill] sm:$0xff] %v17686_v61  ;;  %14771 = vmatprep.subr.bf16.mxu1 %v15842_v4  ;;  %v17700_v18 = vpack.c.bf16 %v21302_v49, %v21303_v17  ;;  %v713_v52 = vmul.f32 %v17463_v14, %v14433_v36  ;;  %v6810_v60 = vshll.u32 %v6599_v35, 16  ;;  %v21724_v45 = vmax.f32 %v17683_v63, 0.0  ;;  %v14434_v49 = vpop.f32.mrb[58].mxu0 }
 0x16a   :  { %v6805_v0 = vsel %vm21440_vm9, %v6793_v3, %v6804_v23  ;;  %v711_v48 = vmul.f32 %v17463_v14, %v617_v40  ;;  %vm21328_vm5 = vcmp.ne.s16.totalorder %v17339_v62, 0  ;;  %v17715_v36 = vrot.slane %v6807_v6, 7  ;;  %v620_v63 = vpop.f32.mrb[59].mxu0 }
 0x16b   :  { %v17710_v2 = vpack.c.bf16 %v21724_v45, %v21309_v34  ;;  %917 = vst [vmem:[#allocation2 + $0xe8] sm:$0xff] %v17700_v18  ;;  %14736 = vmatmul.mubr.bf16.gmra.mrb[8].mxu1 %v6805_v0  ;;  %v17719_v35 = vadd.f32 %v17483_v54, %v713_v52  ;;  %v714_v17 = vmul.f32 %v17463_v14, %v14434_v49  ;;  %v17722_v45 = vrot.slane %v3349_v41, 1  ;;  %v2779_v41 = vld [vmem:[#allocation2] sm:$0x80] }
 0x16c   :  { %vm3356_vm8 = vcmp.ne.s16.totalorder %v16263_v11, 0  ;;  %vm21332_vm2 = vcmp.ne.s16.totalorder %v16458_v12, 0  ;;  %v6600_v6 = vsel %vm21306_vm6, %v17537_v19, 0  ;;  %v17731_v3 = vadd.f32 %v17483_v54, %v711_v48  ;;  %14772 = vmatpush3.bf16.msra.mxu1 %v15842_v4  ;;  %v17758_v48 = vld [vmem:[%s21153_s2 + $0x140] sm:$0xff]  }
 0x16d   :  { %21725 = vst [vmem:[#allocation125_spill] sm:$0xff] %v17719_v35  ;;  %916 = vst [vmem:[#allocation2 + $0xe0] sm:$0xff] %v17710_v2  ;;  %v712_v0 = vmul.f32 %v17463_v14, %v620_v63  ;;  %v6812_v49 = vor.u32 %v6810_v60, %v17715_v36  ;;  %v17740_v23 = vsel %vm21308_vm10, %v15897_v16, 0  ;;  %v17743_v52 = vadd.f32 %v17483_v54, %v714_v17 }
 0x16e   :  { %21726 = vst [vmem:[#allocation126_spill] sm:$0xff] %v17731_v3  ;;  %14508 = vmatmul.mubr.msk.bf16.gmra.mrb[116].mxu0 %vm16585_vm4, %v17710_v2  ;;  %21727 = vst [vmem:[#allocation127_spill] sm:$0xff] %v17740_v23  ;;  %vm21349_vm6 = vcmp.ne.s16.totalorder %v17473_v25, 0  ;;  %vm21333_vm11 = vcmp.ne.s16.totalorder %v17552_v58, 0  ;;  %v21729_v60 = vshll.u32 %v16790_v30, 16  ;;  %14773 = vmatprep.subr.bf16.mxu1 %v15844_v21  ;;  %v21731_v17 = vshrl.u32 %v17613_v43, 16 }
 0x16f   :  { %21728 = vst [vmem:[#allocation128_spill] sm:$0xff] %v17743_v52  ;;  %14511 = vmatprep.mubr.msk.bf16.mxu0 %vm16585_vm4, %v17700_v18  ;;  %21730 = vst [vmem:[#allocation129_spill] sm:$0xff] %v17758_v48  ;;  %v17764_v63 = vrot.slane %v4118_v37, 7  ;;  %vm21342_vm10 = vcmp.ne.s16.totalorder %v16461_v13, 0  ;;  %v6601_v30 = vsel %vm21314_vm15, %v17637_v5, 0  ;;  %v6813_v40 = vsel %vm21440_vm9, %v17655_v50, %v6812_v49  ;;  %v17789_v50 = vld [vmem:[%s21153_s2 + $0x80] sm:$0xff]  }
 0x170   :  { %v17753_v4 = vor.u32 %v21729_v60, %v16854_v20  ;;  %v17762_v16 = vrot.slane %v21731_v17, 7  ;;  %v17771_v20 = vadd.f32 %v17483_v54, %v712_v0  ;;  %v21319_v60 = vmax.f32 %v17719_v35, 0.0  ;;  %14739 = vmatprep.mubr.bf16.mxu1 %v6813_v40  ;;  %14774 = vmatpush3.bf16.msra.mxu1 %v15844_v21  ;;  %v15903_v13 = vld [vmem:[#allocation2 + $0x58] sm:$0xff] }
 0x171   :  { %v21318_v34 = vmax.f32 %v17743_v52, 0.0  ;;  %v6815_v17 = vshrl.u32 %v6600_v6, 16  ;;  %v3389_v37 = vsel %vm3356_vm8, %v2779_v41, 0  ;;  %v21331_v24 = vmax.f32 %v17731_v3, 0.0  ;;  %14839 = vmatprep.subr.bf16.mxu1 %v17758_v48  ;;  %14599 = vmatprep.subr.bf16.mxu0 %v17789_v50 }
 0x172   :  { %21732 = vst [vmem:[#allocation130_spill] sm:$0xff] %v17762_v16  ;;  %21733 = vst [vmem:[#allocation131_spill] sm:$0xff] %v17771_v20  ;;  %v6818_v57 = vshll.u32 %v6600_v6, 16  ;;  %v14437_v16 = vpop.f32.mrb[60].mxu0  ;;  %v17784_v0 = vsel %vm21324_vm13, %v17686_v61, %v17722_v45  ;;  %vm21343_vm15 = vcmp.ne.s16.totalorder %v16517_v39, 0  ;;  %v6823_v23 = vshrl.u32 %v6601_v30, 16 }
 0x173   :  { %21734 = vst [vmem:[#allocation132_spill] sm:$0xff] %v17784_v0  ;;  %v17796_v49 = vpack.c.bf16 %v21318_v34, %v21319_v60  ;;  %v6817_v6 = vrot.slane %v6815_v17, 7  ;;  %v717_v41 = vmul.f32 %v17463_v14, %v14437_v16  ;;  %v633_v40 = vpop.f32.mrb[61].mxu0  ;;  %vm21348_vm8 = vcmp.ne.s16.totalorder %v16511_v44, 0  ;;  %v15902_v39 = vld [vmem:[#allocation2 + $0x50] sm:$0xff] }
 0x174   :  { %v21735_v21 = vmax.f32 %v17771_v20, 0.0  ;;  %v715_v35 = vmul.f32 %v17463_v14, %v633_v40  ;;  %v14438_v52 = vpop.f32.mrb[62].mxu0  ;;  %v6826_v34 = vshll.u32 %v6601_v30, 16  ;;  %v4082_v60 = vshrl.u32 %v3389_v37, 16 }
 0x175   :  { %919 = vst [vmem:[#allocation2 + $0xf8] sm:$0xff] %v17796_v49  ;;  %v6820_v16 = vor.u32 %v6818_v57, %v6817_v6  ;;  %v17811_v17 = vadd.f32 %v17483_v54, %v717_v41  ;;  %v718_v11 = vmul.f32 %v17463_v14, %v14438_v52  ;;  %v636_v3 = vpop.f32.mrb[63].mxu0  ;;  %v17814_v48 = vrot.slane %v6823_v23, 7 }
 0x176   :  { %v17805_v61 = vpack.c.bf16 %v21735_v21, %v21331_v24  ;;  %v17819_v30 = vadd.f32 %v17483_v54, %v715_v35  ;;  %v716_v37 = vmul.f32 %v17463_v14, %v636_v3  ;;  %vm3386_vm13 = vcmp.ne.s16.totalorder %v17676_v10, 0  ;;  %v21793_v10 = vld [vmem:[#allocation129_spill] sm:$0xff] }
 0x177   :  { %21736 = vst [vmem:[#allocation133_spill] sm:$0xff] %v17811_v17  ;;  %v21738_v57 = vshrl.u32 %v17641_v28, 16  ;;  %v6602_v52 = vsel %vm21328_vm5, %v17629_v15, 0  ;;  %v6821_v35 = vsel %vm21440_vm9, %v17715_v36, %v6820_v16  ;;  %v17837_v14 = vadd.f32 %v17483_v54, %v718_v11  ;;  %v15898_v36 = vld [vmem:[#allocation2 + $0x30] sm:$0xff] }
 0x178   :  { %918 = vst [vmem:[#allocation2 + $0xf0] sm:$0xff] %v17805_v61  ;;  %21737 = vst [vmem:[#allocation134_spill] sm:$0xff] %v17819_v30  ;;  %14512 = vmatmul.mubr.msk.bf16.gmra.mrb[120].mxu0 %vm16585_vm4, %v17805_v61  ;;  %v6828_v3 = vor.u32 %v6826_v34, %v17814_v48  ;;  %vm3385_vm7 = vcmp.ne.s16.totalorder %v17556_v7, 0  ;;  %vm3387_vm12 = vcmp.ne.s16.totalorder %v17784_v0, 0  ;;  %vm5287_vm0 = vcmp.ne.s16.totalorder %v16523_v55, 0  ;;  %14740 = vmatmul.mubr.bf16.gmra.mrb[12].mxu1 %v6821_v35  ;;  %v21794_v7 = vld [vmem:[#allocation8_spill] sm:$0xff] }
 0x179   :  { %v17829_v23 = vor.u32 %v21738_v57, %v17722_v45  ;;  %21740 = vst [vmem:[#allocation136_spill] sm:$0xff] %v17837_v14  ;;  %14515 = vmatprep.mubr.msk.bf16.mxu0 %vm16585_vm4, %v17796_v49  ;;  %vm3366_vm5 = vcmp.ne.s16.totalorder %v16569_v27, 0  ;;  %vm3367_vm14 = vcmp.ne.s16.totalorder %v16572_v32, 0  ;;  %v6603_v11 = vsel %vm21349_vm6, %v17710_v2, 0 }
 0x17a   :  { %v17852_v28 = vadd.f32 %v17483_v54, %v716_v37  ;;  %v4084_v34 = vrot.slane %v4082_v60, 7  ;;  %v17856_v45 = vsel %vm21332_vm2, %v15898_v36, 0  ;;  %v21336_v41 = vmax.f32 %v17811_v17, 0.0  ;;  %v15899_v37 = vld [vmem:[#allocation2 + $0x38] sm:$0xff] }
 0x17b   :  { %21739 = vst [vmem:[#allocation135_spill] sm:$0xff] %v17829_v23  ;;  %v21335_v40 = vmax.f32 %v17837_v14, 0.0  ;;  %v6829_v16 = vsel %vm21440_vm9, %v6817_v6, %v6828_v3  ;;  %vm21381_vm3 = vcmp.ne.s16.totalorder %v16576_v33, 0  ;;  %v21341_v57 = vmax.f32 %v17819_v30, 0.0 }
 0x17c   :  { %21741 = vst [vmem:[#allocation137_spill] sm:$0xff] %v17852_v28  ;;  %v21340_v35 = vmax.f32 %v17852_v28, 0.0  ;;  %v6604_v54 = vsel %vm21333_vm11, %v17700_v18, 0  ;;  %14743 = vmatprep.mubr.bf16.mxu1 %v6829_v16  ;;  %v6831_v60 = vshrl.u32 %v6602_v52, 16  ;;  %v17869_v24 = vsel %vm21342_vm10, %v15899_v37, 0 }
 0x17d   :  { %vm3368_vm2 = vcmp.ne.s16.totalorder %v16681_v53, 0  ;;  %v17876_v6 = vpack.c.bf16 %v21335_v40, %v21336_v41  ;;  %v6839_v3 = vshrl.u32 %v6603_v11, 16  ;;  %v17881_v21 = vsel %vm21440_vm9, %v16396_v29, %v17753_v4 }
 0x17e   :  { %vm21510_vm11 = vcmp.ne.s16.totalorder %v16599_v46, 0  ;;  %v17888_v16 = vpack.c.bf16 %v21340_v35, %v21341_v57  ;;  %v6833_v37 = vrot.slane %v6831_v60, 7  ;;  %v6834_v17 = vshll.u32 %v6602_v52, 16  ;;  %v15900_v57 = vld [vmem:[#allocation2 + $0x40] sm:$0xff] }
 0x17f   :  { %v4092_v40 = vsel %vm21440_vm9, %v4084_v34, %v16396_v29  ;;  %v4126_v41 = vshrl.u32 %v17856_v45, 16  ;;  %921 = vst [vmem:[#allocation2 + $0x108] sm:$0xff] %v17876_v6  ;;  %v17894_v14 = vrot.slane %v6839_v3, 7  ;;  %v6842_v4 = vshll.u32 %v6603_v11, 16 }
 0x180   :  { %21742 = vst [vmem:[#allocation138_spill] sm:$0xff] %v17888_v16  ;;  %v6847_v20 = vshrl.u32 %v6604_v54, 16  ;;  %v17898_v30 = vsel %vm21344_vm1, %v15898_v36, 0  ;;  %v4134_v35 = vshrl.u32 %v17869_v24, 16  ;;  %v17903_v52 = vsel %vm21343_vm15, %v15900_v57, 0  ;;  %920 = vst [vmem:[#allocation2 + $0x100] sm:$0xff] %v17888_v16  ;;  %14516 = vmatmul.mubr.msk.bf16.gmra.mrb[124].mxu0 %vm16585_vm4, %v17888_v16 }
 0x181   :  { %21743 = vst [vmem:[#allocation139_spill] sm:$0xff] %v17898_v30  ;;  %v6836_v29 = vor.u32 %v6834_v17, %v6833_v37  ;;  %vm3388_vm10 = vcmp.ne.s16.totalorder %v17829_v23, 0  ;;  %v15901_v36 = vld [vmem:[#allocation2 + $0x48] sm:$0xff]  ;;  %vm21383_vm15 = vcmp.ne.s16.totalorder %v16710_v26, 0  ;;  %vm21382_vm1 = vcmp.ne.s16.totalorder %v16694_v42, 0  ;;  %14535 = vmatprep.mubr.bf16.mxu0 %v4092_v40  ;;  %v17919_v57 = vld [vmem:[#allocation2 + $0x10] sm:$0xff] }
 0x182   :  { %v17914_v60 = vsel %vm21348_vm8, %v15901_v36, 0  ;;  %v6844_v17 = vor.u32 %v6842_v4, %v17894_v14  ;;  %v6605_v3 = vsel %vm3385_vm7, %v17805_v61, 0  ;;  %v6607_v36 = vsel %vm3387_vm12, %v17888_v16, 0  ;;  %v21744_v4 = vld [vmem:[#allocation48_spill] sm:$0xff]  ;;  %v21745_v40 = vld [vmem:[#allocation46_spill] sm:$0xff]  ;;  %v21755_v26 = vld [vmem:[#allocation83_spill] sm:$0xff] }
 0x183   :  { %v6837_v34 = vsel %vm21440_vm9, %v17814_v48, %v6836_v29  ;;  %v6849_v11 = vrot.slane %v6847_v20, 7  ;;  %v17929_v28 = vrot.slane %v4126_v41, 7  ;;  %v4142_v38 = vshrl.u32 %v17903_v52, 16  ;;  %v15904_v16 = vld [vmem:[#allocation2 + $0x60] sm:$0xff] }
 0x184   :  { %vm3372_vm8 = vcmp.ne.s16.totalorder %v21744_v4, 0  ;;  %vm3373_vm6 = vcmp.ne.s16.totalorder %v21745_v40, 0  ;;  %14744 = vmatmul.mubr.bf16.gmra.mrb[16].mxu1 %v6837_v34  ;;  %v6606_v30 = vsel %vm3386_vm13, %v17796_v49, 0  ;;  %v6845_v48 = vsel %vm21440_vm9, %v6833_v37, %v6844_v17  ;;  %v21756_v42 = vld [vmem:[#allocation82_spill] sm:$0xff] }
 0x185   :  { %v17938_v29 = vrot.slane %v4134_v35, 7  ;;  %v4150_v44 = vshrl.u32 %v17914_v60, 16  ;;  %14747 = vmatprep.mubr.bf16.mxu1 %v6845_v48  ;;  %v6850_v20 = vshll.u32 %v6604_v54, 16  ;;  %v17944_v41 = vsel %vm5287_vm0, %v17919_v57, 0 }
 0x186   :  { %21746 = vst [vmem:[#allocation48_spill] sm:$0xff] %v17944_v41  ;;  %v17948_v34 = vsel %vm3366_vm5, %v15902_v39, 0  ;;  %v17952_v37 = vsel %vm3367_vm14, %v15903_v13, 0  ;;  %v6871_v35 = vshrl.u32 %v6607_v36, 16  ;;  %v6855_v17 = vshrl.u32 %v6605_v3, 16  ;;  %v15852_v39 = vld [vmem:[%s21153_s2 + $0x88] sm:$0xff]  }
 0x187   :  { %v6852_v54 = vor.u32 %v6850_v20, %v6849_v11  ;;  %v6863_v12 = vshrl.u32 %v6606_v30, 16  ;;  %v17958_v55 = vsel %vm21381_vm3, %v17919_v57, 0  ;;  %v17963_v27 = vrot.slane %v4142_v38, 7 }
 0x188   :  { %21747 = vst [vmem:[#allocation46_spill] sm:$0xff] %v17958_v55  ;;  %v6857_v32 = vrot.slane %v6855_v17, 7  ;;  %v6858_v1 = vshll.u32 %v6605_v3, 16  ;;  %v17966_v41 = vrot.slane %v4150_v44, 7  ;;  %v4158_v20 = vshrl.u32 %v17948_v34, 16  ;;  %14536 = vmatmul.mubr.bf16.vlgmr.msra.gmra.mrb[64].mxu0 %v17881_v21  ;;  %v15905_v55 = vld [vmem:[#allocation2 + $0x68] sm:$0xff] }
 0x189   :  { %v4166_v48 = vshrl.u32 %v17952_v37, 16  ;;  %v17972_v33 = vsel %vm3368_vm2, %v15904_v16, 0  ;;  %v17977_v38 = vsel %vm21510_vm11, %v15905_v55, 0  ;;  %v17979_v17 = vrot.slane %v6871_v35, 7  ;;  %v21748_v3 = vld [vmem:[#allocation53_spill] sm:$0xff]  ;;  %14600 = vmatpush3.bf16.msra.mxu0 %v17789_v50  ;;  %v21750_v21 = vld [vmem:[#allocation75_spill] sm:$0xff] }
 0x18a   :  { %v6860_v44 = vor.u32 %v6858_v1, %v6857_v32  ;;  %14539 = vmatprep.mubr.bf16.mxu0 %v21748_v3  ;;  %v21749_v13 = vshll.u32 %v17680_v31, 16  ;;  %v6853_v46 = vsel %vm21440_vm9, %v17894_v14, %v6852_v54  ;;  %v6865_v55 = vrot.slane %v6863_v12, 7  ;;  %14601 = vmatprep.subr.bf16.mxu0 %v15852_v39  ;;  %v15853_v1 = vld [vmem:[%s21153_s2 + $0x90] sm:$0xff]   ;;  %v21752_v14 = vld [vmem:[#allocation74_spill] sm:$0xff] }
 0x18b   :  { %v4174_v35 = vshrl.u32 %v17972_v33, 16  ;;  %v6874_v3 = vshll.u32 %v6607_v36, 16  ;;  %v6608_v31 = vsel %vm3388_vm10, %v17876_v6, 0  ;;  %v18002_v12 = vsel %vm21383_vm15, %v21750_v21, 0 }
 0x18c   :  { %v4123_v0 = vor.u32 %v21749_v13, %v17764_v63  ;;  %14748 = vmatmul.mubr.bf16.gmra.mrb[20].mxu1 %v6853_v46  ;;  %v6861_v50 = vsel %vm21440_vm9, %v6849_v11, %v6860_v44  ;;  %v4182_v13 = vshrl.u32 %v17977_v38, 16  ;;  %21751 = vst [vmem:[#allocation53_spill] sm:$0xff] %v18002_v12  ;;  %v18007_v54 = vsel %vm21382_vm1, %v21752_v14, 0  ;;  %v21754_v11 = vld [vmem:[#allocation62_spill] sm:$0xff]  ;;  %v21757_v14 = vld [vmem:[#allocation67_spill] sm:$0xff] }
 0x18d   :  { %21753 = vst [vmem:[#allocation75_spill] sm:$0xff] %v18007_v54  ;;  %14751 = vmatprep.mubr.bf16.mxu1 %v6861_v50  ;;  %v6866_v46 = vshll.u32 %v6606_v30, 16  ;;  %v18009_v36 = vrot.slane %v4158_v20, 7  ;;  %v18011_v16 = vrot.slane %v4166_v48, 7  ;;  %v6876_v6 = vor.u32 %v6874_v3, %v17979_v17  ;;  %14602 = vmatpush3.bf16.msra.mxu0 %v15852_v39  ;;  %v15855_v48 = vld [vmem:[%s21153_s2 + $0x98] sm:$0xff]  }
 0x18e   :  { %v4124_v44 = vsel %vm21440_vm9, %v21754_v11, %v4123_v0  ;;  %v18019_v21 = vsel %vm3372_vm8, %v21755_v26, 0  ;;  %v18024_v50 = vsel %vm3373_vm6, %v21756_v42, 0  ;;  %v6879_v30 = vshrl.u32 %v6608_v31, 16  ;;  %14603 = vmatprep.subr.bf16.mxu0 %v15853_v1 }
 0x18f   :  { %v6868_v20 = vor.u32 %v6866_v46, %v6865_v55  ;;  %v4190_v4 = vshrl.u32 %v18002_v12, 16  ;;  %v4198_v26 = vshrl.u32 %v18007_v54, 16  ;;  %v18033_v3 = vrot.slane %v4174_v35, 7  ;;  %v21759_v35 = vld [vmem:[#allocation91_spill] sm:$0xff]  ;;  %v21767_v54 = vld [vmem:[#allocation101_spill] sm:$0xff] }
 0x190   :  { %v18035_v40 = vrot.slane %v4182_v13, 7  ;;  %14540 = vmatmul.mubr.bf16.gmra.mrb[68].mxu0 %v21757_v14  ;;  %v21758_v46 = vshll.u32 %v17856_v45, 16  ;;  %v4206_v39 = vshrl.u32 %v18019_v21, 16  ;;  %v4214_v53 = vshrl.u32 %v18024_v50, 16  ;;  %v21760_v13 = vld [vmem:[#allocation58_spill] sm:$0xff]  ;;  %v21763_v12 = vld [vmem:[#allocation59_spill] sm:$0xff] }
 0x191   :  { %v6877_v23 = vsel %vm21440_vm9, %v6865_v55, %v6876_v6  ;;  %14543 = vmatprep.mubr.bf16.mxu0 %v4124_v44  ;;  %14604 = vmatpush3.bf16.msra.mxu0 %v15853_v1  ;;  %vm21761_vm0 = vcmp.ne.s16.totalorder %v21760_v13, 0  ;;  %v21762_v14 = vld [vmem:[#allocation90_spill] sm:$0xff]  ;;  %vm21764_vm6 = vcmp.ne.s16.totalorder %v21763_v12, 0  ;;  %v6869_v0 = vsel %vm21440_vm9, %v6857_v32, %v6868_v20  ;;  %v21766_v13 = vld [vmem:[#allocation7_spill] sm:$0xff] }
 0x192   :  { %v4131_v11 = vor.u32 %v21758_v46, %v17929_v28  ;;  %v18049_v42 = vsel %vm21761_vm0, %v21759_v35, 0  ;;  %v18054_v45 = vsel %vm21764_vm6, %v21762_v14, 0  ;;  %v6881_v46 = vrot.slane %v6879_v30, 7  ;;  %14605 = vmatprep.subr.bf16.mxu0 %v15855_v48  ;;  %v15856_v55 = vld [vmem:[%s21153_s2 + $0xa0] sm:$0xff]  }
 0x193   :  { %v18060_v6 = vrot.slane %v4190_v4, 7  ;;  %v18062_v1 = vrot.slane %v4198_v26, 7  ;;  %v21765_v44 = vshll.u32 %v17869_v24, 16  ;;  %v938_v14 = vadd.s32 120, %v21766_v13  ;;  %v21768_v24 = vld [vmem:[#allocation72_spill] sm:$0xff]  ;;  %v15857_v4 = vld [vmem:[%s21153_s2 + $0xa8] sm:$0xff]  }
 0x194   :  { %14752 = vmatmul.mubr.bf16.gmra.mrb[24].mxu1 %v6869_v0  ;;  %v6882_v12 = vshll.u32 %v6608_v31, 16  ;;  %v4132_v32 = vsel %vm21440_vm9, %v17764_v63, %v4131_v11  ;;  %v940_v20 = vadd.s32 136, %v21766_v13  ;;  %v4222_v26 = vshrl.u32 %v18049_v42, 16  ;;  %v21770_v31 = vld [vmem:[#allocation100_spill] sm:$0xff] }
 0x195   :  { %v4139_v35 = vor.u32 %v21765_v44, %v17938_v29  ;;  %14755 = vmatprep.mubr.bf16.mxu1 %v6877_v23  ;;  %v4230_v0 = vshrl.u32 %v18054_v45, 16  ;;  %vm21769_vm8 = vcmp.ne.s16.totalorder %v21768_v24, 0  ;;  %14606 = vmatpush3.bf16.msra.mxu0 %v15855_v48  ;;  %v18080_v30 = vrot.slane %v4206_v39, 7 }
 0x196   :  { %v18078_v44 = vsel %vm21769_vm8, %v21767_v54, 0  ;;  %v18082_v23 = vrot.slane %v4214_v53, 7  ;;  %vm21771_vm0 = vcmp.ne.s16.totalorder %v17195_v59, 0  ;;  %v6884_v11 = vor.u32 %v6882_v12, %v6881_v46  ;;  %14607 = vmatprep.subr.bf16.mxu0 %v15856_v55 }
 0x197   :  { %v18087_v63 = vsel %vm21771_vm0, %v21770_v31, 0  ;;  %vm21772_vm6 = vcmp.ne.s16.totalorder %v17268_v9, 0  ;;  %v4140_v53 = vsel %vm21440_vm9, %v17929_v28, %v4139_v35  ;;  %v1096_v48 = vand.u32 15, %v938_v14  ;;  %v21773_v31 = vld [vmem:[#allocation107_spill] sm:$0xff] }
 0x198   :  { %v18096_v54 = vsel %vm21772_vm6, %v17448_v8, 0  ;;  %v4238_v39 = vshrl.u32 %v18078_v44, 16  ;;  %vm21774_vm8 = vcmp.ne.s16.totalorder %v17277_v56, 0  ;;  %14544 = vmatmul.mubr.bf16.gmra.mrb[72].mxu0 %v4132_v32  ;;  %v1110_v46 = vand.u32 15, %v940_v20 }
 0x199   :  { %v18104_v12 = vsel %vm21774_vm8, %v21773_v31, 0  ;;  %v942_v24 = vadd.s32 152, %v21766_v13  ;;  %v18107_v59 = vrot.slane %v4222_v26, 7  ;;  %v18109_v9 = vrot.slane %v4230_v0, 7  ;;  %14547 = vmatprep.mubr.bf16.mxu0 %v4140_v53  ;;  %14608 = vmatpush3.bf16.msra.mxu0 %v15856_v55  ;;  %v15858_v26 = vld [vmem:[%s21153_s2 + $0xb0] sm:$0xff]   ;;  %v18230_v31 = vld [vmem:[#allocation2 + $0x20] sm:$0xff] }
 0x19a   :  { %v4246_v28 = vshrl.u32 %v18087_v63, 16  ;;  %v4254_v14 = vshrl.u32 %v18096_v54, 16  ;;  %vm21775_vm0 = vcmp.ne.s16.totalorder %v17313_v22, 0  ;;  %v6885_v20 = vsel %vm21440_vm9, %v17979_v17, %v6884_v11  ;;  %14609 = vmatprep.subr.bf16.mxu0 %v15857_v4  ;;  %21791 = vst [vmem:[#allocation82_spill] sm:$0xff] %v18230_v31 }
 0x19b   :  { %v18118_v32 = vsel %vm21775_vm0, %v17548_v47, 0  ;;  %v4262_v0 = vshrl.u32 %v18104_v12, 16  ;;  %vm21776_vm6 = vcmp.ne.s16.totalorder %v17316_v51, 0  ;;  %v21777_v47 = vshll.u32 %v17903_v52, 16  ;;  %v18196_v52 = vld [vmem:[#allocation2 + $0x8] sm:$0xff] }
 0x19c   :  { %v18129_v55 = vsel %vm21776_vm6, %v17537_v19, 0  ;;  %14756 = vmatmul.mubr.bf16.gmra.mrb[28].mxu1 %v6885_v20  ;;  %vm18134_vm8 = vcmp.lt.s32.totalorder %v1096_v48, 15  ;;  %v18138_v17 = vrot.slane %v4238_v39, 7  ;;  %v21780_v11 = vshll.u32 %v17914_v60, 16 }
 0x19d   :  { %v4147_v53 = vor.u32 %v21777_v47, %v17963_v27  ;;  %14775 = vmatprep.mubr.bf16.mxu1 %v17919_v57  ;;  %vm18144_vm0 = vcmp.lt.s32.totalorder %v1110_v46, 15  ;;  %v1124_v20 = vand.u32 15, %v942_v24  ;;  %v18148_v8 = vrot.slane %v4246_v28, 7  ;;  %14610 = vmatpush3.bf16.msra.mxu0 %v15857_v4  ;;  %vm4822_vm1 = vmpackc.low %vm18134_vm8, %vm18134_vm8  ;;  %v15846_v47 = vld [vmem:[%s21153_s2 + $0x148] sm:$0xff]  }
 0x19e   :  { %v4155_v35 = vor.u32 %v21780_v11, %v17966_v41  ;;  %v4270_v48 = vshrl.u32 %v18118_v32, 16  ;;  %vm21783_vm6 = vcmp.ne.s16.totalorder %v17339_v62, 0  ;;  %v18157_v57 = vrot.slane %v4254_v14, 7  ;;  %14611 = vmatprep.subr.bf16.mxu0 %v15858_v26 }
 0x19f   :  { %v18155_v39 = vsel %vm21783_vm6, %v17637_v5, 0  ;;  %v4278_v46 = vshrl.u32 %v18129_v55, 16  ;;  %vm21784_vm3 = vcmp.ne.s16.totalorder %v17473_v25, 0  ;;  %v15860_v5 = vld [vmem:[%s21153_s2 + $0xb8] sm:$0xff]   ;;  %v18172_v4 = vrot.slane %v4262_v0, 7  ;;  %v21799_v25 = vld [vmem:[#allocation130_spill] sm:$0xff] }
 0x1a0   :  { %v18164_v24 = vsel %vm21784_vm3, %v17629_v15, 0  ;;  %v4148_v14 = vsel %vm21440_vm9, %v17938_v29, %v4147_v53  ;;  %vm4824_vm3 = vmpackc.low %vm18144_vm0, %vm18144_vm0  ;;  %v944_v15 = vadd.s32 168, %v21766_v13  ;;  %v4286_v11 = vshrl.u32 %v18155_v39, 16 }
 0x1a1   :  { %14548 = vmatmul.mubr.bf16.gmra.mrb[76].mxu0 %v4148_v14  ;;  %v4156_v0 = vsel %vm21440_vm9, %v17963_v27, %v4155_v35  ;;  %vm18185_vm6 = vcmp.lt.s32.totalorder %v1124_v20, 15  ;;  %v18189_v28 = vrot.slane %v4270_v48, 7  ;;  %v4294_v53 = vshrl.u32 %v18164_v24, 16  ;;  %v18216_v14 = vld [vmem:[#allocation2 + $0x18] sm:$0xff] }
 0x1a2   :  { %14551 = vmatprep.mubr.bf16.mxu0 %v4156_v0  ;;  %v4886_v27 = vsel %vm4822_vm1, 65537, %v18196_v52  ;;  %14612 = vmatpush3.bf16.msra.mxu0 %v15858_v26  ;;  %v18204_v35 = vrot.slane %v4278_v46, 7  ;;  %vm21787_vm15 = vcmp.ne.s16.totalorder %v17552_v58, 0  ;;  %v18214_v48 = vsel %vm3385_vm7, %v17700_v18, 0  ;;  %21789 = vst [vmem:[#allocation62_spill] sm:$0xff] %v18216_v14  ;;  %vm4826_vm1 = vmpackc.low %vm18185_vm6, %vm18185_vm6 }
 0x1a3   :  { %v18209_v20 = vsel %vm21787_vm15, %v17710_v2, 0  ;;  %21788 = vst [vmem:[#allocation74_spill] sm:$0xff] %v18214_v48  ;;  %v4888_v26 = vsel %vm4824_vm3, 65537, %v18196_v52  ;;  %14613 = vmatprep.subr.bf16.mxu0 %v15860_v5  ;;  %v18227_v2 = vsel %vm3386_vm13, %v17805_v61, 0  ;;  %v5082_v18 = vshll.u32 %v17613_v43, 16 }
 0x1a4   :  { %21790 = vst [vmem:[#allocation83_spill] sm:$0xff] %v18227_v2  ;;  %14776 = vmatmul.mubr.bf16.vlgmr.msra.gmra.mrb[32].mxu1 %v18216_v14  ;;  %v21792_v46 = vshll.u32 %v17948_v34, 16  ;;  %v1138_v19 = vand.u32 15, %v944_v15  ;;  %v18239_v29 = vrot.slane %v4286_v11, 7  ;;  %v18245_v58 = vcombine.low %v21794_v7, %v4886_v27 }
 0x1a5   :  { %14840 = vmatpush3.bf16.msra.mxu1 %v21793_v10  ;;  %14779 = vmatprep.mubr.bf16.mxu1 %v18230_v31  ;;  %v21795_v43 = vshll.u32 %v17952_v37, 16  ;;  %v4302_v15 = vshrl.u32 %v18209_v20, 16  ;;  %v18255_v11 = vcombine.low %v21794_v7, %v4888_v26  ;;  %v15847_v10 = vld [vmem:[%s21153_s2 + $0x150] sm:$0xff]   ;;  %v4310_v27 = vshrl.u32 %v18214_v48, 16 }
 0x1a6   :  { %v4163_v0 = vor.u32 %v21792_v46, %v18009_v36  ;;  %v18250_v46 = vrot.slane %v4294_v53, 7  ;;  %14841 = vmatprep.subr.bf16.mxu1 %v15846_v47  ;;  %14614 = vmatpush3.bf16.msra.mxu0 %v15860_v5  ;;  %v4318_v37 = vshrl.u32 %v18227_v2, 16  ;;  %v4890_v26 = vsel %vm4826_vm1, 65537, %v18196_v52  ;;  %v18276_v5 = vld [vmem:[%s21153_s2 + $0xc0] sm:$0xff]  }
 0x1a7   :  { %v4171_v34 = vor.u32 %v21795_v43, %v18011_v16  ;;  %v18265_v43 = vsel %vm3387_vm12, %v17796_v49, 0  ;;  %21798 = vst [vmem:[#allocation91_spill] sm:$0xff] %v18276_v5  ;;  %14679 = vmatprep.subr.bf16.mxu0 %v18276_v5  ;;  %v5084_v61 = vor.u32 %v5082_v18, %v21799_v25  ;;  %vm18282_vm12 = vcmp.lt.s32.totalorder %v1138_v19, 15 }
 0x1a8   :  { %21797 = vst [vmem:[#allocation67_spill] sm:$0xff] %v18265_v43  ;;  %v4164_v49 = vsel %vm21440_vm9, %v17966_v41, %v4163_v0  ;;  %v946_v60 = vadd.s32 184, %v21766_v13  ;;  %v5087_v51 = vshrl.u32 %v18245_v58, 16  ;;  %v948_v18 = vadd.s32 200, %v21766_v13  ;;  %v18308_v41 = vld [vmem:[#allocation2 + $0x28] sm:$0xff]  ;;  %vm4828_vm8 = vmpackc.low %vm18282_vm12, %vm18282_vm12 }
 0x1a9   :  { %14842 = vmatpush3.bf16.msra.mxu1 %v15846_v47  ;;  %14552 = vmatmul.mubr.bf16.gmra.mrb[80].mxu0 %v4164_v49  ;;  %v4172_v5 = vsel %vm21440_vm9, %v18009_v36, %v4171_v34  ;;  %v18292_v22 = vrot.slane %v4302_v15, 7  ;;  %v5095_v0 = vshrl.u32 %v18255_v11, 16  ;;  %v18297_v19 = vcombine.low %v21794_v7, %v4890_v26  ;;  %v15848_v47 = vld [vmem:[%s21153_s2 + $0x158] sm:$0xff]   ;;  %21803 = vst [vmem:[#allocation7_spill] sm:$0xff] %v18308_v41  ;;  %v18315_v26 = vld [vmem:[#allocation2 + $0x30] sm:$0xff] }
 0x1aa   :  { %14555 = vmatprep.mubr.bf16.mxu0 %v4172_v5  ;;  %14843 = vmatprep.subr.bf16.mxu1 %v15847_v10  ;;  %v18302_v49 = vrot.slane %v4310_v27, 7  ;;  %v18304_v36 = vrot.slane %v4318_v37, 7  ;;  %v4326_v15 = vshrl.u32 %v18265_v43, 16  ;;  %v21804_v5 = vld [vmem:[#allocation81_spill] sm:$0xff]  ;;  %v21807_v34 = vshll.u32 %v17972_v33, 16 }
 0x1ab   :  { %vm21414_vm15 = vcmp.ne.s16.totalorder %v21804_v5, 0  ;;  %v21805_v27 = vld [vmem:[#allocation69_spill] sm:$0xff]  ;;  %v21808_v56 = vshll.u32 %v17977_v38, 16  ;;  %v1152_v14 = vand.u32 15, %v946_v60  ;;  %v1166_v48 = vand.u32 15, %v948_v18 }
 0x1ac   :  { %21802 = vst [vmem:[#allocation90_spill] sm:$0xff] %v18304_v36  ;;  %14780 = vmatmul.mubr.bf16.gmra.mrb[36].mxu1 %v18308_v41  ;;  %v18319_v37 = vsel %vm21440_vm9, %v21805_v27, %v5084_v61  ;;  %v4179_v62 = vor.u32 %v21807_v34, %v18033_v3  ;;  %v5089_v41 = vrot.slane %v5087_v51, 7  ;;  %v5090_v36 = vshll.u32 %v18245_v58, 16  ;;  %v15849_v51 = vld [vmem:[%s21153_s2 + $0x160] sm:$0xff]   ;;  %v18362_v38 = vld [vmem:[#allocation2 + $0x38] sm:$0xff] }
 0x1ad   :  { %21806 = vst [vmem:[#allocation101_spill] sm:$0xff] %v18319_v37  ;;  %v4187_v31 = vor.u32 %v21808_v56, %v18035_v40  ;;  %14783 = vmatprep.mubr.bf16.mxu1 %v18315_v26  ;;  %14844 = vmatpush3.bf16.msra.mxu1 %v15847_v10  ;;  %v18330_v61 = vrot.slane %v5095_v0, 7  ;;  %v5098_v27 = vshll.u32 %v18255_v11, 16  ;;  %v5103_v33 = vshrl.u32 %v18297_v19, 16  ;;  %v21809_v58 = vld [vmem:[#allocation138_spill] sm:$0xff]  ;;  %21814 = vst [vmem:[#allocation100_spill] sm:$0xff] %v18362_v38 }
 0x1ae   :  { %v4892_v56 = vsel %vm4828_vm8, 65537, %v18196_v52  ;;  %14845 = vmatprep.subr.bf16.mxu1 %v15848_v47  ;;  %v18346_v10 = vsel %vm3388_vm10, %v21809_v58, 0  ;;  %vm21410_vm0 = vcmp.ne.s16.totalorder %v18319_v37, 0  ;;  %v950_v11 = vadd.s32 216, %v21766_v13 }
 0x1af   :  { %v21811_v60 = vshll.u32 %v18024_v50, 16  ;;  %v4180_v18 = vsel %vm21440_vm9, %v18011_v16, %v4179_v62  ;;  %v4188_v0 = vsel %vm21440_vm9, %v18033_v3, %v4187_v31  ;;  %vm18357_vm3 = vcmp.lt.s32.totalorder %v1152_v14, 15 }
 0x1b0   :  { %v952_v58 = vadd.s32 232, %v21766_v13  ;;  %v5092_v2 = vor.u32 %v5090_v36, %v5089_v41  ;;  %v18365_v43 = vcombine.low %v21794_v7, %v4892_v56  ;;  %vm18367_vm10 = vcmp.lt.s32.totalorder %v1166_v48, 15  ;;  %v15850_v48 = vld [vmem:[%s21153_s2 + $0x168] sm:$0xff]   ;;  %vm4830_vm6 = vmpackc.low %vm18357_vm3, %vm18357_vm3 }
 0x1b1   :  { %v4219_v53 = vor.u32 %v21811_v60, %v18082_v23  ;;  %14556 = vmatmul.mubr.bf16.gmra.mrb[84].mxu0 %v4180_v18  ;;  %14846 = vmatpush3.bf16.msra.mxu1 %v15848_v47  ;;  %v18375_v16 = vrot.slane %v4326_v15, 7  ;;  %v5100_v3 = vor.u32 %v5098_v27, %v18330_v61  ;;  %v18378_v14 = vrot.slane %v5103_v33, 7  ;;  %v21817_v47 = vld [vmem:[#allocation53_spill] sm:$0xff]  ;;  %v18403_v18 = vld [vmem:[#allocation2 + $0x40] sm:$0xff]  ;;  %vm4832_vm1 = vmpackc.low %vm18367_vm10, %vm18367_vm10 }
 0x1b2   :  { %v5106_v31 = vshll.u32 %v18297_v19, 16  ;;  %14559 = vmatprep.mubr.bf16.mxu0 %v4188_v0  ;;  %14847 = vmatprep.subr.bf16.mxu1 %v15849_v51  ;;  %v4334_v36 = vshrl.u32 %v18346_v10, 16  ;;  %v21818_v15 = vshll.u32 %v21817_v47, 16  ;;  %v1180_v33 = vand.u32 15, %v950_v11  ;;  %v21820_v47 = vld [vmem:[#allocation75_spill] sm:$0xff] }
 0x1b3   :  { %v18373_v62 = vsel %vm21440_vm9, %v18080_v30, %v4219_v53  ;;  %v1194_v56 = vand.u32 15, %v952_v58  ;;  %v18395_v60 = vsel %vm21414_vm15, %v18315_v26, 0  ;;  %v18400_v53 = vsel %vm21410_vm0, %v18362_v38, 0 }
 0x1b4   :  { %v4195_v27 = vor.u32 %v21818_v15, %v18060_v6  ;;  %14784 = vmatmul.mubr.bf16.gmra.mrb[40].mxu1 %v18362_v38  ;;  %v954_v11 = vadd.s32 248, %v21766_v13  ;;  %v18411_v0 = vsel %vm21440_vm9, %v21799_v25, %v5092_v2  ;;  %v5111_v58 = vshrl.u32 %v18365_v43, 16 }
 0x1b5   :  { %21819 = vst [vmem:[#allocation107_spill] sm:$0xff] %v18411_v0  ;;  %14787 = vmatprep.mubr.bf16.mxu1 %v18403_v18  ;;  %v21821_v15 = vshll.u32 %v21820_v47, 16  ;;  %v21822_v37 = vshll.u32 %v18049_v42, 16  ;;  %14848 = vmatpush3.bf16.msra.mxu1 %v15849_v51  ;;  %v18422_v5 = vsel %vm21440_vm9, %v5089_v41, %v5100_v3  ;;  %v5108_v38 = vor.u32 %v5106_v31, %v18378_v14  ;;  %v15854_v42 = vld [vmem:[%s21153_s2 + $0x170] sm:$0xff]  }
 0x1b6   :  { %21823 = vst [vmem:[#allocation129_spill] sm:$0xff] %v18422_v5  ;;  %v4894_v25 = vsel %vm4830_vm6, 65537, %v18196_v52  ;;  %v21824_v2 = vshll.u32 %v18054_v45, 16  ;;  %14849 = vmatprep.subr.bf16.mxu1 %v15850_v48  ;;  %v4196_v41 = vsel %vm21440_vm9, %v18035_v40, %v4195_v27  ;;  %vm18440_vm12 = vcmp.lt.s32.totalorder %v1180_v33, 15 }
 0x1b7   :  { %v4203_v19 = vor.u32 %v21821_v15, %v18062_v1  ;;  %v4227_v50 = vor.u32 %v21822_v37, %v18107_v59  ;;  %v4896_v37 = vsel %vm4832_vm1, 65537, %v18196_v52  ;;  %vm18444_vm8 = vcmp.lt.s32.totalorder %v1194_v56, 15  ;;  %vm4834_vm10 = vmpackc.low %vm18440_vm12, %vm18440_vm12 }
 0x1b8   :  { %v4235_v47 = vor.u32 %v21824_v2, %v18109_v9  ;;  %v1208_v45 = vand.u32 15, %v954_v11  ;;  %v21829_v40 = vshll.u32 %v18078_v44, 16  ;;  %v18459_v33 = vrot.slane %v5111_v58, 7  ;;  %vm4836_vm6 = vmpackc.low %vm18444_vm8, %vm18444_vm8 }
 0x1b9   :  { %v18450_v3 = vsel %vm21440_vm9, %v18082_v23, %v4227_v50  ;;  %v5114_v56 = vshll.u32 %v18365_v43, 16  ;;  %v18463_v15 = vcombine.low %v21794_v7, %v4894_v25  ;;  %14560 = vmatmul.mubr.bf16.gmra.mrb[88].mxu0 %v4196_v41  ;;  %v4204_v23 = vsel %vm21440_vm9, %v18060_v6, %v4203_v19  ;;  %14850 = vmatpush3.bf16.msra.mxu1 %v15850_v48  ;;  %v15859_v6 = vld [vmem:[%s21153_s2 + $0x178] sm:$0xff]   ;;  %v18500_v50 = vld [vmem:[#allocation2 + $0x50] sm:$0xff] }
 0x1ba   :  { %v18454_v31 = vsel %vm21440_vm9, %v18107_v59, %v4235_v47  ;;  %v4243_v27 = vor.u32 %v21829_v40, %v18138_v17  ;;  %v18467_v11 = vrot.slane %v4334_v36, 7  ;;  %v5409_v59 = vshll.u32 %v18395_v60, 16  ;;  %14563 = vmatprep.mubr.bf16.mxu0 %v4204_v23  ;;  %14851 = vmatprep.subr.bf16.mxu1 %v15854_v42  ;;  %v18487_v36 = vld [vmem:[#allocation2 + $0x48] sm:$0xff] }
 0x1bb   :  { %vm21407_vm3 = vcmp.ne.s16.totalorder %v18411_v0, 0  ;;  %v5417_v43 = vshll.u32 %v18400_v53, 16  ;;  %v18490_v19 = vcombine.low %v21794_v7, %v4896_v37  ;;  %vm21409_vm1 = vcmp.ne.s16.totalorder %v18422_v5, 0 }
 0x1bc   :  { %v18476_v44 = vsel %vm21440_vm9, %v18109_v9, %v4243_v27  ;;  %v18485_v48 = vsel %vm21407_vm3, %v18403_v18, 0  ;;  %v21830_v9 = vshll.u32 %v18019_v21, 16  ;;  %14788 = vmatmul.mubr.bf16.gmra.mrb[44].mxu1 %v18487_v36  ;;  %v18504_v25 = vsel %vm21440_vm9, %v18330_v61, %v5108_v38 }
 0x1bd   :  { %21831 = vst [vmem:[#allocation8_spill] sm:$0xff] %v18504_v25  ;;  %vm18506_vm3 = vcmp.lt.s32.totalorder %v1208_v45, 15  ;;  %v21834_v21 = vshll.u32 %v18087_v63, 16  ;;  %v21835_v47 = vshll.u32 %v18096_v54, 16  ;;  %14791 = vmatprep.mubr.bf16.mxu1 %v18500_v50  ;;  %v5116_v37 = vor.u32 %v5114_v56, %v18459_v33  ;;  %14852 = vmatpush3.bf16.msra.mxu1 %v15854_v42 }
 0x1be   :  { %v4211_v58 = vor.u32 %v21830_v9, %v18080_v30  ;;  %v5119_v34 = vshrl.u32 %v18463_v15, 16  ;;  %v4898_v61 = vsel %vm4834_vm10, 65537, %v18196_v52  ;;  %v21836_v63 = vshll.u32 %v18104_v12, 16  ;;  %14853 = vmatprep.subr.bf16.mxu1 %v15859_v6  ;;  %v18543_v12 = vld [vmem:[%s21153_s2 + $0x180] sm:$0xff]   ;;  %vm4838_vm12 = vmpackc.low %vm18506_vm3, %vm18506_vm3 }
 0x1bf   :  { %v4251_v30 = vor.u32 %v21834_v21, %v18148_v8  ;;  %v4259_v41 = vor.u32 %v21835_v47, %v18157_v57  ;;  %v4900_v54 = vsel %vm4836_vm6, 65537, %v18196_v52  ;;  %v21837_v51 = vshll.u32 %v18118_v32, 16  ;;  %21838 = vst [vmem:[#allocation132_spill] sm:$0xff] %v18543_v12 }
 0x1c0   :  { %v4267_v38 = vor.u32 %v21836_v63, %v18172_v4  ;;  %v5127_v42 = vshrl.u32 %v18490_v19, 16  ;;  %v21839_v32 = vshll.u32 %v18129_v55, 16  ;;  %v18559_v23 = vcombine.low %v21794_v7, %v4898_v61  ;;  %v21846_v63 = vld [vmem:[#allocation90_spill] sm:$0xff] }
 0x1c1   :  { %v18531_v45 = vsel %vm21440_vm9, %v18138_v17, %v4251_v30  ;;  %v18535_v40 = vsel %vm21440_vm9, %v18148_v8, %v4259_v41  ;;  %v4275_v27 = vor.u32 %v21837_v51, %v18189_v28  ;;  %v4212_v17 = vsel %vm21440_vm9, %v18062_v1, %v4211_v58  ;;  %14854 = vmatpush3.bf16.msra.mxu1 %v15859_v6  ;;  %v18608_v51 = vld [vmem:[#allocation2 + $0x60] sm:$0xff] }
 0x1c2   :  { %v18553_v8 = vsel %vm21440_vm9, %v18157_v57, %v4267_v38  ;;  %v4283_v56 = vor.u32 %v21839_v32, %v18204_v35  ;;  %v21840_v1 = vshll.u32 %v18155_v39, 16  ;;  %v21841_v2 = vshll.u32 %v18164_v24, 16  ;;  %14564 = vmatmul.mubr.bf16.gmra.mrb[92].mxu0 %v4212_v17  ;;  %14919 = vmatprep.subr.bf16.mxu1 %v18543_v12  ;;  %v21847_v38 = vld [vmem:[#allocation83_spill] sm:$0xff] }
 0x1c3   :  { %v18563_v9 = vsel %vm21440_vm9, %v18172_v4, %v4275_v27  ;;  %v5122_v21 = vshll.u32 %v18463_v15, 16  ;;  %v18573_v55 = vcombine.low %v21794_v7, %v4900_v54  ;;  %v21842_v4 = vshll.u32 %v18209_v20, 16  ;;  %14567 = vmatprep.mubr.bf16.mxu0 %v18373_v62  ;;  %v18594_v20 = vld [vmem:[#allocation2 + $0x58] sm:$0xff]  ;;  %v21849_v17 = vld [vmem:[#allocation67_spill] sm:$0xff] }
 0x1c4   :  { %v4291_v58 = vor.u32 %v21840_v1, %v18239_v29  ;;  %v4299_v57 = vor.u32 %v21841_v2, %v18250_v46  ;;  %v18577_v30 = vsel %vm21440_vm9, %v18189_v28, %v4283_v56  ;;  %v5121_v39 = vrot.slane %v5119_v34, 7  ;;  %v21843_v28 = vld [vmem:[#allocation37_spill] sm:$0xff]  ;;  %v21844_v34 = vld [vmem:[#allocation74_spill] sm:$0xff]  ;;  %14792 = vmatmul.mubr.bf16.gmra.mrb[48].mxu1 %v18594_v20 }
 0x1c5   :  { %v4307_v47 = vor.u32 %v21842_v4, %v18292_v22  ;;  %v4902_v24 = vsel %vm4838_vm12, 65537, %v18196_v52  ;;  %vm21504_vm8 = vcmp.ne.s16.totalorder %v21843_v28, 0  ;;  %v5130_v6 = vshll.u32 %v18490_v19, 16  ;;  %14795 = vmatprep.mubr.bf16.mxu1 %v18608_v51  ;;  %v21978_v28 = vld [vmem:[#allocation19_spill] sm:$0xff] }
 0x1c6   :  { %v18586_v15 = vsel %vm21440_vm9, %v18204_v35, %v4291_v58  ;;  %v18590_v41 = vsel %vm21440_vm9, %v18239_v29, %v4299_v57  ;;  %v21845_v35 = vshll.u32 %v21844_v34, 16  ;;  %v21848_v29 = vshll.u32 %v21847_v38, 16 }
 0x1c7   :  { %v18599_v62 = vsel %vm21440_vm9, %v18250_v46, %v4307_v47  ;;  %v18610_v27 = vrot.slane %v5127_v42, 7  ;;  %v5135_v19 = vshrl.u32 %v18559_v23, 16  ;;  %v21850_v46 = vshll.u32 %v21849_v17, 16  ;;  %v21855_v17 = vld [vmem:[#allocation46_spill] sm:$0xff] }
 0x1c8   :  { %v4315_v61 = vor.u32 %v21845_v35, %v18302_v49  ;;  %v4323_v54 = vor.u32 %v21848_v29, %v21846_v63  ;;  %v21851_v56 = vshll.u32 %v18346_v10, 16  ;;  %v5143_v58 = vshrl.u32 %v18573_v55, 16 }
 0x1c9   :  { %v4331_v32 = vor.u32 %v21850_v46, %v18375_v16  ;;  %v13530_v2 = vcombine.low %v21794_v7, %v4902_v24  ;;  %v18632_v4 = vrot.slane %v5409_v59, 1  ;;  %v5419_v10 = vrot.slane %v5417_v43, 1 }
 0x1ca   :  { %v4339_v1 = vor.u32 %v21851_v56, %v18467_v11  ;;  %v18624_v42 = vsel %vm21440_vm9, %v18292_v22, %v4315_v61  ;;  %v18628_v57 = vsel %vm21440_vm9, %v18302_v49, %v4323_v54  ;;  %vm21408_vm3 = vcmp.ne.s16.totalorder %v18504_v25, 0  ;;  %14568 = vmatmul.mubr.bf16.gmra.mrb[96].mxu0 %v18450_v3  ;;  %v21854_v54 = vld [vmem:[#allocation48_spill] sm:$0xff]  ;;  %v21859_v56 = vld [vmem:[#allocation54_spill] sm:$0xff] }
 0x1cb   :  { %v18639_v11 = vsel %vm21440_vm9, %v21846_v63, %v4331_v32  ;;  %v5425_v22 = vshll.u32 %v18485_v48, 16  ;;  %v5327_v49 = vsel %vm21409_vm1, %v18487_v36, 0  ;;  %v18648_v59 = vsel %vm21408_vm3, %v18500_v50, 0  ;;  %14571 = vmatprep.mubr.bf16.mxu0 %v18454_v31  ;;  %v21856_v32 = vld [vmem:[#allocation41_spill] sm:$0xff] }
 0x1cc   :  { %v18652_v43 = vsel %vm21440_vm9, %v18375_v16, %v4339_v1  ;;  %v18656_v47 = vsel %vm21440_vm9, %v18378_v14, %v5116_v37  ;;  %v5124_v24 = vor.u32 %v5122_v21, %v5121_v39  ;;  %v5132_v34 = vor.u32 %v5130_v6, %v18610_v27 }
 0x1cd   :  { %21852 = vst [vmem:[#allocation130_spill] sm:$0xff] %v18656_v47  ;;  %v5138_v35 = vshll.u32 %v18559_v23, 16  ;;  %v5137_v61 = vrot.slane %v5135_v19, 7  ;;  %v18660_v63 = vrot.slane %v5143_v58, 7  ;;  %v5146_v38 = vshll.u32 %v18573_v55, 16  ;;  %v18670_v19 = vld [vmem:[#allocation2 + $0x68] sm:$0xff] }
 0x1ce   :  { %v5151_v29 = vshrl.u32 %v13530_v2, 16  ;;  %v5377_v16 = vshll.u32 %v21854_v54, 16  ;;  %v6631_v46 = vshrl.u32 %v21855_v17, 16  ;;  %v5413_v14 = vshrl.u32 %v18395_v60, 16  ;;  %14796 = vmatmul.mubr.bf16.gmra.mrb[52].mxu1 %v18670_v19 }
 0x1cf   :  { %21853 = vst [vmem:[#allocation69_spill] sm:$0xff] %v18660_v63  ;;  %v5433_v37 = vshll.u32 %v5327_v49, 16  ;;  %v5421_v21 = vshrl.u32 %v18400_v53, 16  ;;  %v5427_v23 = vrot.slane %v5425_v22, 1  ;;  %v5441_v6 = vshll.u32 %v18648_v59, 16  ;;  %v18682_v53 = vld [vmem:[#allocation2 + $0x70] sm:$0xff] }
 0x1d0   :  { %v5154_v55 = vshll.u32 %v13530_v2, 16  ;;  %vm21478_vm10 = vcmp.ne.s16.totalorder %v21856_v32, 0  ;;  %vm21413_vm6 = vcmp.ne.s16.totalorder %v18656_v47, 0  ;;  %v18676_v3 = vsel %vm21440_vm9, %v18459_v33, %v5124_v24  ;;  %14799 = vmatprep.mubr.bf16.mxu1 %v18682_v53  ;;  %v21861_v22 = vld [vmem:[#allocation62_spill] sm:$0xff] }
 0x1d1   :  { %21857 = vst [vmem:[#allocation138_spill] sm:$0xff] %v18676_v3  ;;  %v18679_v60 = vsel %vm21440_vm9, %v5121_v39, %v5132_v34  ;;  %v5415_v31 = vor.u32 %v5413_v14, %v18632_v4  ;;  %vm21441_vm12 = vcmp.ne.s16.totalorder %v21859_v56, 0  ;;  %v5140_v1 = vor.u32 %v5138_v35, %v5137_v61 }
 0x1d2   :  { %21858 = vst [vmem:[#allocation135_spill] sm:$0xff] %v18679_v60  ;;  %v5148_v58 = vor.u32 %v5146_v38, %v18660_v63  ;;  %v18688_v2 = vrot.slane %v5151_v29, 7  ;;  %v5423_v33 = vor.u32 %v5421_v21, %v5419_v10  ;;  %v18693_v39 = vsel %vm21504_vm8, %v21861_v22, 0  ;;  %14572 = vmatmul.mubr.bf16.gmra.mrb[100].mxu0 %v18476_v44 }
 0x1d3   :  { %v5429_v24 = vshrl.u32 %v18485_v48, 16  ;;  %v5435_v34 = vrot.slane %v5433_v37, 1  ;;  %vm21862_vm3 = vsmask.f32 7424  ;;  %v5329_v35 = vsel %vm21413_vm6, %v18594_v20, 0  ;;  %14575 = vmatprep.mubr.bf16.mxu0 %v18531_v45  ;;  %v18741_v45 = vld [vmem:[#allocation2 + $0x80] sm:$0xff] }
 0x1d4   :  { %21860 = vst [vmem:[#allocation53_spill] sm:$0xff] %v18688_v2  ;;  %v18697_v14 = vsel %vm21862_vm3, %v5415_v31, %v5419_v10  ;;  %vm21412_vm1 = vcmp.ne.s16.totalorder %v18676_v3, 0  ;;  %v5156_v38 = vor.u32 %v5154_v55, %v18688_v2  ;;  %vm21864_vm0 = vmmov %vm21862_vm3  ;;  %v5437_v21 = vshrl.u32 %v5327_v49, 16  ;;  %v21881_v2 = vld [vmem:[#allocation15_spill] sm:$0xff] }
 0x1d5   :  { %21863 = vst [vmem:[#allocation75_spill] sm:$0xff] %v18697_v14  ;;  %v18705_v29 = vsel %vm21864_vm0, %v5423_v33, %v5427_v23  ;;  %v5443_v17 = vrot.slane %v5441_v6, 1  ;;  %v18710_v48 = vsel %vm21412_vm1, %v18608_v51, 0  ;;  %vm21415_vm3 = vcmp.ne.s16.totalorder %v18679_v60, 0 }
 0x1d6   :  { %21865 = vst [vmem:[#allocation74_spill] sm:$0xff] %v18705_v29  ;;  %v18713_v10 = vrot.slane %v5377_v16, 1  ;;  %v5381_v37 = vshrl.u32 %v21854_v54, 16  ;;  %v18718_v31 = vsel %vm21440_vm9, %v18610_v27, %v5140_v1  ;;  %v18721_v55 = vsel %vm21440_vm9, %v5137_v61, %v5148_v58  ;;  %v18732_v1 = vld [vmem:[#allocation2 + $0x78] sm:$0xff]  ;;  %v21873_v58 = vld [vmem:[#allocation12_spill] sm:$0xff] }
 0x1d7   :  { %21866 = vst [vmem:[#allocation90_spill] sm:$0xff] %v18718_v31  ;;  %21867 = vst [vmem:[#allocation83_spill] sm:$0xff] %v18721_v55  ;;  %v18724_v49 = vrot.slane %v6631_v46, 7  ;;  %v5449_v6 = vshll.u32 %v5329_v35, 16  ;;  %v5431_v33 = vor.u32 %v5429_v24, %v5427_v23  ;;  %v5439_v12 = vor.u32 %v5437_v21, %v5435_v34  ;;  %14800 = vmatmul.mubr.bf16.gmra.mrb[56].mxu1 %v18732_v1 }
 0x1d8   :  { %v5385_v16 = vshll.u32 %v18693_v39, 16  ;;  %v5457_v54 = vshll.u32 %v18710_v48, 16  ;;  %v5331_v27 = vsel %vm21415_vm3, %v18670_v19, 0  ;;  %v18736_v44 = vsel %vm21440_vm9, %v18660_v63, %v5156_v38  ;;  %v21876_v38 = vld [vmem:[#allocation82_spill] sm:$0xff]  ;;  %14803 = vmatprep.mubr.bf16.mxu1 %v18741_v45 }
 0x1d9   :  { %21868 = vst [vmem:[#allocation67_spill] sm:$0xff] %v18724_v49  ;;  %vm21439_vm0 = vcmp.ne.s16.totalorder %v18718_v31, 0  ;;  %vm21438_vm1 = vcmp.ne.s16.totalorder %v18721_v55, 0  ;;  %vm21869_vm6 = vsmask.f32 7424  ;;  %v18750_v23 = vor.u32 %v5381_v37, %v18713_v10 }
 0x1da   :  { %v18744_v61 = vsel %vm21869_vm6, %v5431_v33, %v5435_v34  ;;  %vm21871_vm15 = vmmov %vm21869_vm6  ;;  %vm21874_vm3 = vcmp.ne.s16.totalorder %v21873_v58, 0  ;;  %v18760_v21 = vsel %vm21478_vm10, %v21876_v38, 0  ;;  %v5332_v34 = vsel %vm21439_vm0, %v18682_v53, 0  ;;  %14576 = vmatmul.mubr.bf16.gmra.mrb[104].mxu0 %v18535_v40 }
 0x1db   :  { %21870 = vst [vmem:[#allocation48_spill] sm:$0xff] %v18744_v61  ;;  %v18747_v46 = vsel %vm21871_vm15, %v5439_v12, %v5443_v17  ;;  %v18755_v24 = vsel %vm21874_vm3, %v21861_v22, 0  ;;  %v21877_v12 = vld [vmem:[#allocation13_spill] sm:$0xff]  ;;  %v5451_v33 = vrot.slane %v5449_v6, 1  ;;  %v5465_v63 = vshll.u32 %v5331_v27, 16  ;;  %v21880_v61 = vld [vmem:[#allocation7_spill] sm:$0xff]  ;;  %14579 = vmatprep.mubr.bf16.mxu0 %v18553_v8 }
 0x1dc   :  { %21872 = vst [vmem:[#allocation62_spill] sm:$0xff] %v18747_v46  ;;  %21875 = vst [vmem:[#allocation140_spill] sm:$0xff] %v18755_v24  ;;  %vm21878_vm15 = vcmp.ne.s16.totalorder %v21877_v12, 0  ;;  %vm5301_vm6 = vcmp.ne.s16.totalorder %v18736_v44, 0  ;;  %v18772_v58 = vrot.slane %v5385_v16, 1  ;;  %v5445_v49 = vshrl.u32 %v18648_v59, 16 }
 0x1dd   :  { %v18769_v37 = vsel %vm21878_vm15, %v21876_v38, 0  ;;  %v5333_v24 = vsel %vm21438_vm1, %v18732_v1, 0  ;;  %v924_v46 = vadd.s32 8, %v21766_v13  ;;  %v18782_v12 = vsel %vm21441_vm12, %v21880_v61, 0 }
 0x1de   :  { %21879 = vst [vmem:[#allocation82_spill] sm:$0xff] %v18769_v37  ;;  %v5453_v29 = vshrl.u32 %v5329_v35, 16  ;;  %v5459_v6 = vrot.slane %v5457_v54, 1  ;;  %v5473_v14 = vshll.u32 %v5332_v34, 16  ;;  %v5393_v31 = vshll.u32 %v18760_v21, 16 }
 0x1df   :  { %v6647_v16 = vshrl.u32 %v18769_v37, 16  ;;  %v18789_v59 = vsel %vm5301_vm6, %v18741_v45, 0  ;;  %v5447_v55 = vor.u32 %v5445_v49, %v5443_v17  ;;  %vm21882_vm3 = vcmp.ne.s16.totalorder %v21881_v2, 0  ;;  %v18804_v2 = vld [vmem:[#allocation2 + $0x88] sm:$0xff] }
 0x1e0   :  { %v18795_v60 = vsel %vm21882_vm3, %v21880_v61, 0  ;;  %v5467_v35 = vrot.slane %v5465_v63, 1  ;;  %v5481_v54 = vshll.u32 %v5333_v24, 16  ;;  %v5455_v3 = vor.u32 %v5453_v29, %v5451_v33  ;;  %21886 = vst [vmem:[#allocation15_spill] sm:$0xff] %v18804_v2  ;;  %14804 = vmatmul.mubr.bf16.gmra.mrb[60].mxu1 %v18804_v2  ;;  %v18816_v61 = vld [vmem:[#allocation2 + $0x90] sm:$0xff] }
 0x1e1   :  { %21883 = vst [vmem:[#allocation13_spill] sm:$0xff] %v18795_v60  ;;  %v5401_v37 = vshll.u32 %v18782_v12, 16  ;;  %v5461_v47 = vshrl.u32 %v18710_v48, 16  ;;  %v998_v25 = vand.u32 15, %v924_v46  ;;  %vm21884_vm15 = vsmask.f32 7424  ;;  %14807 = vmatprep.mubr.bf16.mxu1 %v18816_v61 }
 0x1e2   :  { %v18801_v5 = vsel %vm21884_vm15, %v5447_v55, %v5451_v33  ;;  %v5469_v40 = vshrl.u32 %v5331_v27, 16  ;;  %v5475_v17 = vrot.slane %v5473_v14, 1  ;;  %v5489_v49 = vshll.u32 %v18789_v59, 16  ;;  %vm21887_vm3 = vmmov %vm21884_vm15  ;;  %21890 = vst [vmem:[#allocation143_spill] sm:$0xff] %v18816_v61  ;;  %14580 = vmatmul.mubr.bf16.gmra.mrb[108].mxu0 %v18563_v9  ;;  %v18939_v14 = vld [vmem:[#allocation2 + $0xe8] sm:$0xff] }
 0x1e3   :  { %21885 = vst [vmem:[#allocation7_spill] sm:$0xff] %v18801_v5  ;;  %v18808_v63 = vsel %vm21887_vm3, %v5455_v3, %v5459_v6  ;;  %v18810_v8 = vrot.slane %v5393_v31, 1  ;;  %v18813_v48 = vrot.slane %v6647_v16, 7  ;;  %v6655_v55 = vshrl.u32 %v18795_v60, 16  ;;  %vm21895_vm1 = vmmov %vm21887_vm3  ;;  %14583 = vmatprep.mubr.bf16.mxu0 %v18577_v30  ;;  %v21917_v30 = vld [vmem:[#allocation100_spill] sm:$0xff]  ;;  %v21918_v3 = vld [vmem:[#allocation17_spill] sm:$0xff] }
 0x1e4   :  { %21888 = vst [vmem:[#allocation141_spill] sm:$0xff] %v18808_v63  ;;  %v5483_v46 = vrot.slane %v5481_v54, 1  ;;  %v5463_v33 = vor.u32 %v5461_v47, %v5459_v6  ;;  %v5471_v5 = vor.u32 %v5469_v40, %v5467_v35  ;;  %v18820_v2 = vrot.slane %v5401_v37, 1  ;;  %v18835_v47 = vld [vmem:[#allocation2 + $0xa8] sm:$0xff]  ;;  %v18846_v54 = vld [vmem:[#allocation2 + $0xa0] sm:$0xff]  ;;  %v18853_v40 = vld [vmem:[#allocation2 + $0xb8] sm:$0xff] }
 0x1e5   :  { %21889 = vst [vmem:[#allocation142_spill] sm:$0xff] %v18813_v48  ;;  %v5477_v31 = vshrl.u32 %v5332_v34, 16  ;;  %vm18823_vm15 = vcmp.lt.s32.totalorder %v998_v25, 15  ;;  %v5485_v16 = vshrl.u32 %v5333_v24, 16  ;;  %v18827_v48 = vrot.slane %v5489_v49, 1  ;;  %v21897_v37 = vld [vmem:[#allocation59_spill] sm:$0xff] }
 0x1e6   :  { %v18830_v63 = vsel %vm21887_vm3, %v5463_v33, %v5467_v35  ;;  %v18833_v27 = vsel %vm21895_vm1, %v5471_v5, %v5475_v17  ;;  %vm21898_vm0 = vcmp.ne.s16.totalorder %v21897_v37, 0  ;;  %v18842_v25 = vrot.slane %v6655_v55, 7  ;;  %21901 = vst [vmem:[#allocation147_spill] sm:$0xff] %v18846_v54  ;;  %v21902_v35 = vld [vmem:[#allocation58_spill] sm:$0xff]  ;;  %v21905_v49 = vld [vmem:[#allocation79_spill] sm:$0xff]  ;;  %v21908_v55 = vld [vmem:[#allocation16_spill] sm:$0xff] }
 0x1e7   :  { %21894 = vst [vmem:[#allocation144_spill] sm:$0xff] %v18830_v63  ;;  %21896 = vst [vmem:[#allocation145_spill] sm:$0xff] %v18833_v27  ;;  %v18840_v6 = vsel %vm21898_vm0, %v18835_v47, 0  ;;  %v5479_v24 = vor.u32 %v5477_v31, %v5475_v17  ;;  %vm21903_vm1 = vcmp.ne.s16.totalorder %v21902_v35, 0  ;;  %vm21906_vm0 = vcmp.ne.s16.totalorder %v21905_v49, 0  ;;  %v18869_v17 = vld [vmem:[#allocation2 + $0xb0] sm:$0xff] }
 0x1e8   :  { %21899 = vst [vmem:[#allocation59_spill] sm:$0xff] %v18840_v6  ;;  %21900 = vst [vmem:[#allocation146_spill] sm:$0xff] %v18842_v25  ;;  %v18851_v5 = vsel %vm21903_vm1, %v18846_v54, 0  ;;  %v18858_v33 = vsel %vm21906_vm0, %v18853_v40, 0  ;;  %vm21909_vm3 = vcmp.ne.s16.totalorder %v21908_v55, 0  ;;  %v5487_v9 = vor.u32 %v5485_v16, %v5483_v46  ;;  %v21911_v31 = vld [vmem:[#allocation72_spill] sm:$0xff] }
 0x1e9   :  { %21904 = vst [vmem:[#allocation58_spill] sm:$0xff] %v18851_v5  ;;  %21907 = vst [vmem:[#allocation79_spill] sm:$0xff] %v18858_v33  ;;  %v18863_v37 = vsel %vm21909_vm3, %v18315_v26, 0  ;;  %vm21912_vm1 = vcmp.ne.s16.totalorder %v21911_v31, 0  ;;  %v18876_v49 = vld [vmem:[#allocation2 + $0xc8] sm:$0xff]  ;;  %v21914_v34 = vld [vmem:[#allocation89_spill] sm:$0xff] }
 0x1ea   :  { %21910 = vst [vmem:[#allocation148_spill] sm:$0xff] %v18863_v37  ;;  %vm7771_vm9 = vmpackc.low %vm18823_vm15, %vm18823_vm15  ;;  %v18874_v35 = vsel %vm21912_vm1, %v18869_v17, 0  ;;  %vm21915_vm0 = vcmp.ne.s16.totalorder %v21914_v34, 0  ;;  %vm21919_vm3 = vcmp.ne.s16.totalorder %v21918_v3, 0  ;;  %vm21921_vm12 = vsmask.f32 7424  ;;  %14584 = vmatmul.mubr.bf16.gmra.mrb[112].mxu0 %v18586_v15 }
 0x1eb   :  { %21913 = vst [vmem:[#allocation72_spill] sm:$0xff] %v18874_v35  ;;  %v18881_v26 = vsel %vm21915_vm0, %v18876_v49, 0  ;;  %v18886_v55 = vsel %vm21919_vm3, %v21917_v30, 0  ;;  %v18889_v16 = vsel %vm21921_vm12, %v5479_v24, %v5483_v46  ;;  %v18891_v33 = vld [vmem:[#allocation2 + $0xc0] sm:$0xff]  ;;  %v21923_v31 = vld [vmem:[#allocation87_spill] sm:$0xff]  ;;  %v18898_v6 = vld [vmem:[#allocation2 + $0xd0] sm:$0xff]  ;;  %14587 = vmatprep.mubr.bf16.mxu0 %v18590_v41 }
 0x1ec   :  { %21916 = vst [vmem:[#allocation89_spill] sm:$0xff] %v18881_v26  ;;  %21920 = vst [vmem:[#allocation100_spill] sm:$0xff] %v18886_v55  ;;  %vm21924_vm1 = vcmp.ne.s16.totalorder %v21923_v31, 0  ;;  %v21926_v34 = vld [vmem:[#allocation93_spill] sm:$0xff]  ;;  %v21929_v30 = vld [vmem:[#allocation94_spill] sm:$0xff]  ;;  %v6663_v5 = vshrl.u32 %v18863_v37, 16 }
 0x1ed   :  { %21922 = vst [vmem:[#allocation149_spill] sm:$0xff] %v18889_v16  ;;  %v18896_v35 = vsel %vm21924_vm1, %v18891_v33, 0  ;;  %vm21927_vm0 = vcmp.ne.s16.totalorder %v21926_v34, 0  ;;  %v18905_v3 = vld [vmem:[#allocation2 + $0xd8] sm:$0xff]  ;;  %vm21930_vm12 = vcmp.ne.s16.totalorder %v21929_v30, 0  ;;  %v21938_v30 = vld [vmem:[#allocation18_spill] sm:$0xff] }
 0x1ee   :  { %21925 = vst [vmem:[#allocation87_spill] sm:$0xff] %v18896_v35  ;;  %v18903_v26 = vsel %vm21927_vm0, %v18898_v6, 0  ;;  %v18910_v46 = vsel %vm21930_vm12, %v18905_v3, 0  ;;  %v18912_v24 = vld [vmem:[#allocation2 + $0x98] sm:$0xff]  ;;  %vm21933_vm3 = vsmask.f32 7424 }
 0x1ef   :  { %21928 = vst [vmem:[#allocation93_spill] sm:$0xff] %v18903_v26  ;;  %21931 = vst [vmem:[#allocation94_spill] sm:$0xff] %v18910_v46  ;;  %14808 = vmatmul.mubr.bf16.gmra.mrb[0].mxu1 %v18912_v24  ;;  %v18917_v31 = vsel %vm21933_vm3, %v5487_v9, %v18827_v48  ;;  %v18919_v35 = vld [vmem:[#allocation2 + $0xe0] sm:$0xff]  ;;  %v21935_v34 = vld [vmem:[#allocation97_spill] sm:$0xff]  ;;  %vm21939_vm0 = vcmp.ne.s16.totalorder %v21938_v30, 0  ;;  %v7835_v9 = vsel %vm7771_vm9, 65537, %v18196_v52 }
 0x1f0   :  { %21932 = vst [vmem:[#allocation150_spill] sm:$0xff] %v18912_v24  ;;  %21934 = vst [vmem:[#allocation151_spill] sm:$0xff] %v18917_v31  ;;  %vm21936_vm1 = vcmp.ne.s16.totalorder %v21935_v34, 0  ;;  %v18930_v46 = vsel %vm21939_vm0, %v18403_v18, 0  ;;  %14811 = vmatprep.mubr.bf16.mxu1 %v18846_v54  ;;  %v21941_v34 = vld [vmem:[#allocation109_spill] sm:$0xff]  ;;  %v6671_v30 = vshrl.u32 %v18886_v55, 16  ;;  %v13651_v24 = vcombine.low %v21794_v7, %v7835_v9 }
 0x1f1   :  { %v18924_v26 = vsel %vm21936_vm1, %v18919_v35, 0  ;;  %21940 = vst [vmem:[#allocation152_spill] sm:$0xff] %v18930_v46  ;;  %vm21942_vm12 = vcmp.ne.s16.totalorder %v21941_v34, 0  ;;  %v21944_v18 = vld [vmem:[#allocation22_spill] sm:$0xff]  ;;  %v21947_v25 = vld [vmem:[#allocation21_spill] sm:$0xff]  ;;  %v18957_v31 = vld [vmem:[#allocation2 + $0xf0] sm:$0xff] }
 0x1f2   :  { %21937 = vst [vmem:[#allocation97_spill] sm:$0xff] %v18924_v26  ;;  %v18944_v26 = vsel %vm21942_vm12, %v18939_v14, 0  ;;  %vm21945_vm3 = vcmp.ne.s16.totalorder %v21944_v18, 0  ;;  %vm21948_vm1 = vcmp.ne.s16.totalorder %v21947_v25, 0  ;;  %v21950_v16 = vld [vmem:[#allocation113_spill] sm:$0xff]  ;;  %v6679_v54 = vshrl.u32 %v18930_v46, 16  ;;  %14588 = vmatmul.mubr.bf16.gmra.mrb[116].mxu0 %v18599_v62 }
 0x1f3   :  { %21943 = vst [vmem:[#allocation109_spill] sm:$0xff] %v18944_v26  ;;  %v18950_v60 = vsel %vm21945_vm3, %v18487_v36, 0  ;;  %v18955_v29 = vsel %vm21948_vm1, %v18500_v50, 0  ;;  %vm21951_vm9 = vcmp.ne.s16.totalorder %v21950_v16, 0  ;;  %v18964_v26 = vld [vmem:[#allocation2 + $0xf8] sm:$0xff]  ;;  %v18971_v36 = vld [vmem:[#allocation2 + $0x100] sm:$0xff]  ;;  %14591 = vmatprep.mubr.bf16.mxu0 %v18624_v42 }
 0x1f4   :  { %21946 = vst [vmem:[#allocation153_spill] sm:$0xff] %v18950_v60  ;;  %21949 = vst [vmem:[#allocation154_spill] sm:$0xff] %v18955_v29  ;;  %v18962_v34 = vsel %vm21951_vm9, %v18957_v31, 0  ;;  %v18969_v18 = vsel %vm3385_vm7, %v18964_v26, 0  ;;  %v18976_v50 = vsel %vm3386_vm13, %v18971_v36, 0  ;;  %v18981_v16 = vsel %vm3366_vm5, %v18594_v20, 0 }
 0x1f5   :  { %21952 = vst [vmem:[#allocation113_spill] sm:$0xff] %v18962_v34  ;;  %21954 = vst [vmem:[#allocation114_spill] sm:$0xff] %v18969_v18  ;;  %v18988_v18 = vsel %vm3367_vm14, %v18608_v51, 0  ;;  %v18991_v61 = vrot.slane %v6663_v5, 7  ;;  %v6695_v20 = vshrl.u32 %v18955_v29, 16  ;;  %v18997_v34 = vrot.slane %v6671_v30, 7 }
 0x1f6   :  { %21956 = vst [vmem:[#allocation122_spill] sm:$0xff] %v18976_v50  ;;  %21958 = vst [vmem:[#allocation155_spill] sm:$0xff] %v18981_v16  ;;  %v6687_v50 = vshrl.u32 %v18950_v60, 16  ;;  %v6703_v27 = vshrl.u32 %v18981_v16, 16  ;;  %v19004_v9 = vsel %vm3368_vm2, %v18670_v19, 0  ;;  %v6711_v5 = vshrl.u32 %v18988_v18, 16 }
 0x1f7   :  { %21960 = vst [vmem:[#allocation156_spill] sm:$0xff] %v18997_v34  ;;  %v19011_v55 = vsel %vm21510_vm11, %v18682_v53, 0  ;;  %v21963_v15 = vld [vmem:[#allocation39_spill] sm:$0xff]  ;;  %v21966_v63 = vld [vmem:[#allocation14_spill] sm:$0xff]  ;;  %v19019_v46 = vrot.slane %v6679_v54, 7  ;;  %v21968_v41 = vld [vmem:[#allocation36_spill] sm:$0xff]  ;;  %14812 = vmatmul.mubr.bf16.gmra.mrb[4].mxu1 %v18835_v47 }
 0x1f8   :  { %vm21964_vm13 = vcmp.ne.s16.totalorder %v21963_v15, 0  ;;  %vm5286_vm7 = vcmp.ne.s16.totalorder %v21966_v63, 0  ;;  %vm21969_vm15 = vcmp.ne.s16.totalorder %v21968_v41, 0  ;;  %v7995_v53 = vshrl.u32 %v13651_v24, 16  ;;  %v7752_v54 = vld [vmem:[#allocation2 + $0x88] sm:$0xff]  ;;  %14815 = vmatprep.mubr.bf16.mxu1 %v18869_v17 }
 0x1f9   :  { %v19016_v30 = vsel %vm21964_vm13, %v18732_v1, 0  ;;  %21967 = vst [vmem:[#allocation158_spill] sm:$0xff] %v19019_v46  ;;  %v19025_v51 = vsel %vm21969_vm15, %v18741_v45, 0  ;;  %v19028_v25 = vrot.slane %v6687_v50, 7  ;;  %v19030_v34 = vrot.slane %v6695_v20, 7  ;;  %v15924_v42 = vld [vmem:[#allocation2 + $0x28] sm:$0xff] }
 0x1fa   :  { %21965 = vst [vmem:[#allocation157_spill] sm:$0xff] %v19016_v30  ;;  %21970 = vst [vmem:[#allocation36_spill] sm:$0xff] %v19025_v51  ;;  %v6719_v15 = vshrl.u32 %v19004_v9, 16  ;;  %v6727_v41 = vshrl.u32 %v19011_v55, 16  ;;  %v6735_v45 = vshrl.u32 %v19016_v30, 16  ;;  %v5319_v60 = vsel %vm5286_vm7, %v18196_v52, 0  ;;  %14592 = vmatmul.mubr.bf16.gmra.mrb[120].mxu0 %v18628_v57 }
 0x1fb   :  { %21971 = vst [vmem:[#allocation159_spill] sm:$0xff] %v19028_v25  ;;  %21972 = vst [vmem:[#allocation160_spill] sm:$0xff] %v19030_v34  ;;  %v19039_v46 = vrot.slane %v6703_v27, 7  ;;  %v19041_v50 = vrot.slane %v6711_v5, 7  ;;  %v6743_v1 = vshrl.u32 %v19025_v51, 16  ;;  %v19048_v34 = vsel %vm5301_vm6, %v7752_v54, 0  ;;  %14595 = vmatprep.mubr.bf16.mxu0 %v18639_v11 }
 0x1fc   :  { %v7997_v19 = vrot.slane %v7995_v53, 7  ;;  %v7998_v16 = vshll.u32 %v13651_v24, 16  ;;  %v19050_v25 = vrot.slane %v6719_v15, 7  ;;  %v5372_v27 = vshll.u32 %v5319_v60, 16  ;;  %v15925_v54 = vld [vmem:[#allocation2 + $0x30] sm:$0xff]  ;;  %v21981_v51 = vld [vmem:[#allocation81_spill] sm:$0xff] }
 0x1fd   :  { %v8284_v5 = vsel %vm21504_vm8, %v21876_v38, 0  ;;  %v19057_v20 = vrot.slane %v6727_v41, 7  ;;  %v19059_v29 = vrot.slane %v6735_v45, 7  ;;  %v958_v24 = vadd.s32 280, %v21766_v13 }
 0x1fe   :  { %v19065_v53 = vrot.slane %v6743_v1, 7  ;;  %v19070_v38 = vor.u32 %v7998_v16, %v7997_v19  ;;  %v21976_v41 = vshrl.u32 %v18760_v21, 16  ;;  %v8348_v44 = vshll.u32 %v8284_v5, 16 }
 0x1ff   :  { %21973 = vst [vmem:[#allocation161_spill] sm:$0xff] %v19059_v29  ;;  %14816 = vmatmul.mubr.bf16.gmra.mrb[8].mxu1 %v18853_v40  ;;  %v8285_v37 = vsel %vm21478_vm10, %v15924_v42, 0  ;;  %v5370_v1 = vshrl.u32 %v5319_v60, 16  ;;  %v5374_v15 = vrot.slane %v5372_v27, 1  ;;  %v5389_v62 = vshrl.u32 %v18693_v39, 16  ;;  %v22063_v29 = vld [vmem:[#allocation141_spill] sm:$0xff] }
 0x200   :  { %21974 = vst [vmem:[#allocation162_spill] sm:$0xff] %v19065_v53  ;;  %21975 = vst [vmem:[#allocation163_spill] sm:$0xff] %v19070_v38  ;;  %v5399_v45 = vor.u32 %v21976_v41, %v18810_v8  ;;  %14819 = vmatprep.mubr.bf16.mxu1 %v18891_v33  ;;  %vm21977_vm6 = vcmp.ne.s16.totalorder %v21859_v56, 0  ;;  %vm21979_vm0 = vsmask.f32 256  ;;  %v15926_v41 = vld [vmem:[#allocation2 + $0x38] sm:$0xff] }
 0x201   :  { %v19081_v16 = vsel %vm21977_vm6, %v15925_v54, 0  ;;  %v19085_v21 = vsel %vm21979_vm0, %v7997_v19, %v21978_v28  ;;  %vm21982_vm12 = vcmp.ne.s16.totalorder %v21981_v51, 0  ;;  %v1236_v42 = vand.u32 15, %v958_v24  ;;  %v7737_v19 = vld [vmem:[#allocation2 + $0x10] sm:$0xff] }
 0x202   :  { %21980 = vst [vmem:[#allocation19_spill] sm:$0xff] %v19085_v21  ;;  %v8287_v32 = vsel %vm21982_vm12, %v15926_v41, 0  ;;  %v960_v53 = vadd.s32 296, %v21766_v13  ;;  %vm21983_vm3 = vsmask.f32 7424  ;;  %v5391_v39 = vor.u32 %v5389_v62, %v18772_v58  ;;  %v15927_v62 = vld [vmem:[#allocation2 + $0x40] sm:$0xff]  ;;  %14596 = vmatmul.mubr.bf16.gmra.mrb[124].mxu0 %v18652_v43 }
 0x203   :  { %v19093_v60 = vsel %vm21983_vm3, %v18750_v23, %v18772_v58  ;;  %v21984_v27 = vshrl.u32 %v18782_v12, 16  ;;  %v8356_v28 = vshll.u32 %v8285_v37, 16  ;;  %vm21509_vm1 = vcmp.ne.s16.totalorder %v19070_v38, 0  ;;  %vm21985_vm9 = vmmov %vm21983_vm3  ;;  %v7754_v38 = vld [vmem:[#allocation2 + $0x98] sm:$0xff] }
 0x204   :  { %v19102_v24 = vsel %vm21985_vm9, %v5399_v45, %v18820_v2  ;;  %v19104_v41 = vrot.slane %v8348_v44, 1  ;;  %v8352_v51 = vshrl.u32 %v8284_v5, 16  ;;  %v5375_v23 = vor.u32 %v5374_v15, %v5370_v1  ;;  %vm21990_vm6 = vmmov %vm21983_vm3 }
 0x205   :  { %v5407_v54 = vor.u32 %v21984_v27, %v18820_v2  ;;  %vm21505_vm13 = vcmp.ne.s16.totalorder %v19085_v21, 0  ;;  %v8364_v58 = vshll.u32 %v19081_v16, 16  ;;  %v8372_v12 = vshll.u32 %v8287_v32, 16  ;;  %v21986_v27 = vld [vmem:[#allocation101_spill] sm:$0xff]  ;;  %vm21991_vm0 = vmmov %vm21983_vm3 }
 0x206   :  { %vm21987_vm7 = vcmp.ne.s16.totalorder %v21986_v27, 0  ;;  %vm19112_vm15 = vcmp.lt.s32.totalorder %v1236_v42, 15  ;;  %v1250_v44 = vand.u32 15, %v960_v53  ;;  %v962_v5 = vadd.s32 312, %v21766_v13  ;;  %vm21992_vm12 = vmmov %vm21991_vm0  ;;  %v15928_v27 = vld [vmem:[#allocation2 + $0x48] sm:$0xff] }
 0x207   :  { %v8288_v56 = vsel %vm21987_vm7, %v15927_v62, 0  ;;  %v19119_v57 = vsel %vm21990_vm6, %v5391_v39, %v18810_v8  ;;  %v8282_v15 = vsel %vm21509_vm1, %v7737_v19, 0  ;;  %v8358_v45 = vrot.slane %v8356_v28, 1  ;;  %14820 = vmatmul.mubr.bf16.gmra.mrb[12].mxu1 %v18876_v49  ;;  %vm4842_vm3 = vmpackc.low %vm19112_vm15, %vm19112_vm15 }
 0x208   :  { %v956_v11 = vadd.s32 264, %v21766_v13  ;;  %v8283_v1 = vsel %vm21505_vm13, %v21861_v22, 0  ;;  %v19130_v53 = vsel %vm21991_vm0, %v5407_v54, %v18632_v4  ;;  %v8354_v42 = vor.u32 %v8352_v51, %v19104_v41  ;;  %14823 = vmatprep.mubr.bf16.mxu1 %v18898_v6  ;;  %vm21996_vm6 = vmmov %vm21991_vm0 }
 0x209   :  { %v8360_v8 = vshrl.u32 %v8285_v37, 16  ;;  %v5380_v39 = vsel %vm21992_vm12, %v5375_v23, %v18713_v10  ;;  %v8366_v28 = vrot.slane %v8364_v58, 1  ;;  %v8374_v19 = vrot.slane %v8372_v12, 1  ;;  %vm21997_vm15 = vmmov %vm21991_vm0 }
 0x20a   :  { %v8380_v62 = vshll.u32 %v8288_v56, 16  ;;  %v8335_v22 = vshll.u32 %v8282_v15, 16  ;;  %vm21993_vm9 = vcmp.ne.s16.totalorder %v18411_v0, 0  ;;  %vm19141_vm7 = vcmp.lt.s32.totalorder %v1250_v44, 15  ;;  %v15929_v0 = vld [vmem:[#allocation2 + $0x50] sm:$0xff]  ;;  %14615 = vmatprep.mubr.bf16.mxu0 %v5380_v39 }
 0x20b   :  { %v8289_v4 = vsel %vm21993_vm9, %v15928_v27, 0  ;;  %v1264_v6 = vand.u32 15, %v962_v5  ;;  %v8340_v37 = vshll.u32 %v8283_v1, 16  ;;  %v8362_v54 = vor.u32 %v8360_v8, %v8358_v45  ;;  %v21998_v8 = vld [vmem:[#allocation129_spill] sm:$0xff]  ;;  %vm4844_vm12 = vmpackc.low %vm19141_vm7, %vm19141_vm7  ;;  %14616 = vmatmul.mubr.bf16.vlgmr.msra.gmra.mrb[64].mxu0 %v19093_v60 }
 0x20c   :  { %v8368_v10 = vshrl.u32 %v19081_v16, 16  ;;  %v1222_v23 = vand.u32 15, %v956_v11  ;;  %v19147_v58 = vsel %vm21996_vm6, %v8354_v42, %v8358_v45  ;;  %v8376_v12 = vshrl.u32 %v8287_v32, 16  ;;  %v19194_v42 = vld [vmem:[#allocation2 + $0x8] sm:$0xff]  ;;  %14619 = vmatprep.mubr.bf16.mxu0 %v19119_v57 }
 0x20d   :  { %v4906_v2 = vsel %vm4842_vm3, 65537, %v18196_v52  ;;  %v964_v21 = vadd.s32 328, %v21766_v13  ;;  %v19153_v27 = vsel %vm21997_vm15, %v8362_v54, %v8366_v28  ;;  %v8382_v44 = vrot.slane %v8380_v62, 1 }
 0x20e   :  { %v8388_v5 = vshll.u32 %v8289_v4, 16  ;;  %vm21999_vm0 = vcmp.ne.s16.totalorder %v21998_v8, 0  ;;  %v8337_v32 = vrot.slane %v8335_v22, 1  ;;  %v8370_v45 = vor.u32 %v8368_v10, %v8366_v28  ;;  %v22004_v10 = vld [vmem:[#allocation8_spill] sm:$0xff] }
 0x20f   :  { %v8290_v16 = vsel %vm21999_vm0, %v15929_v0, 0  ;;  %v8378_v11 = vor.u32 %v8376_v12, %v8374_v19  ;;  %vm19160_vm3 = vcmp.lt.s32.totalorder %v1264_v6, 15  ;;  %v8342_v43 = vrot.slane %v8340_v37, 1  ;;  %14824 = vmatmul.mubr.bf16.gmra.mrb[16].mxu1 %v18905_v3  ;;  %vm22006_vm0 = vmmov %vm21997_vm15 }
 0x210   :  { %v8384_v54 = vshrl.u32 %v8288_v56, 16  ;;  %v19165_v62 = vcombine.low %v21794_v7, %v4906_v2  ;;  %vm19167_vm9 = vcmp.lt.s32.totalorder %v1222_v23, 15  ;;  %v8333_v0 = vshrl.u32 %v8282_v15, 16  ;;  %14827 = vmatprep.mubr.bf16.mxu1 %v18919_v35  ;;  %v15930_v56 = vld [vmem:[#allocation2 + $0x58] sm:$0xff]  ;;  %vm4846_vm6 = vmpackc.low %vm19160_vm3, %vm19160_vm3  ;;  %v22007_v35 = vld [vmem:[#allocation130_spill] sm:$0xff] }
 0x211   :  { %v8396_v39 = vshll.u32 %v8290_v16, 16  ;;  %v4908_v28 = vsel %vm4844_vm12, 65537, %v18196_v52  ;;  %v1278_v22 = vand.u32 15, %v964_v21  ;;  %v8344_v51 = vshrl.u32 %v8283_v1, 16  ;;  %v15931_v21 = vld [vmem:[#allocation2 + $0x60] sm:$0xff]  ;;  %vm7803_vm10 = vmpackc.low %vm19167_vm9, %vm19167_vm9 }
 0x212   :  { %v8386_v6 = vor.u32 %v8384_v54, %v8382_v44  ;;  %v8390_v37 = vrot.slane %v8388_v5, 1  ;;  %vm22005_vm7 = vcmp.ne.s16.totalorder %v22004_v10, 0  ;;  %v8338_v23 = vor.u32 %v8337_v32, %v8333_v0  ;;  %vm22011_vm9 = vmmov %vm22006_vm0 }
 0x213   :  { %v8291_v12 = vsel %vm22005_vm7, %v15930_v56, 0  ;;  %v19180_v3 = vsel %vm21997_vm15, %v8370_v45, %v8374_v19  ;;  %v19183_v52 = vsel %vm22006_vm0, %v8378_v11, %v8382_v44  ;;  %vm22008_vm12 = vcmp.ne.s16.totalorder %v22007_v35, 0  ;;  %vm22012_vm7 = vmmov %vm22006_vm0  ;;  %v22014_v56 = vld [vmem:[#allocation138_spill] sm:$0xff]  ;;  %v22017_v35 = vld [vmem:[#allocation135_spill] sm:$0xff]  ;;  %14620 = vmatmul.mubr.bf16.gmra.mrb[68].mxu0 %v19102_v24 }
 0x214   :  { %v8292_v15 = vsel %vm22008_vm12, %v15931_v21, 0  ;;  %v8346_v1 = vor.u32 %v8344_v51, %v8342_v43  ;;  %v8392_v2 = vshrl.u32 %v8289_v4, 16  ;;  %v5167_v5 = vshrl.u32 %v19165_v62, 16  ;;  %v15933_v51 = vld [vmem:[#allocation2 + $0x68] sm:$0xff]  ;;  %14623 = vmatprep.mubr.bf16.mxu0 %v19130_v53  ;;  %v15938_v53 = vld [vmem:[%s21153_s2 + $0xd8] sm:$0xff]  }
 0x215   :  { %v19192_v32 = vcombine.low %v21794_v7, %v4908_v28  ;;  %v8398_v19 = vrot.slane %v8396_v39, 1  ;;  %v8404_v45 = vshll.u32 %v8291_v12, 16  ;;  %v4910_v44 = vsel %vm4846_vm6, 65537, %v19194_v42  ;;  %vm22013_vm6 = vmmov %vm22006_vm0  ;;  %v22024_v24 = vld [vmem:[#allocation11_spill] sm:$0xff] }
 0x216   :  { %vm19197_vm3 = vcmp.lt.s32.totalorder %v1278_v22, 15  ;;  %v19203_v8 = vsel %vm22011_vm9, %v8386_v6, %v8390_v37  ;;  %v8394_v4 = vor.u32 %v8392_v2, %v8390_v37  ;;  %v8412_v54 = vshll.u32 %v8292_v15, 16  ;;  %v22016_v6 = vld [vmem:[#allocation91_spill] sm:$0xff] }
 0x217   :  { %v7867_v0 = vsel %vm7803_vm10, 65537, %v19194_v42  ;;  %v19208_v39 = vsel %vm22012_vm7, %v8338_v23, %v8342_v43  ;;  %v19212_v28 = vsel %vm22013_vm6, %v8346_v1, %v19104_v41  ;;  %v8400_v22 = vshrl.u32 %v8290_v16, 16  ;;  %14680 = vmatpush3.bf16.msra.mxu0 %v22016_v6  ;;  %vm4848_vm10 = vmpackc.low %vm19197_vm3, %vm19197_vm3  ;;  %v15934_v41 = vld [vmem:[%s21153_s2 + $0xc8] sm:$0xff]   ;;  %14828 = vmatmul.mubr.bf16.gmra.mrb[20].mxu1 %v18939_v14 }
 0x218   :  { %vm22015_vm15 = vcmp.ne.s16.totalorder %v22014_v56, 0  ;;  %v19219_v37 = vrot.slane %v5167_v5, 7  ;;  %v5170_v21 = vshll.u32 %v19165_v62, 16  ;;  %v5175_v57 = vshrl.u32 %v19192_v32, 16  ;;  %14681 = vmatprep.subr.bf16.mxu0 %v15934_v41  ;;  %14831 = vmatprep.mubr.bf16.mxu1 %v18957_v31  ;;  %v15935_v56 = vld [vmem:[#allocation2 + $0x70] sm:$0xff]  ;;  %vm22021_vm7 = vmmov %vm22006_vm0 }
 0x219   :  { %v19216_v60 = vsel %vm22015_vm15, %v15933_v51, 0  ;;  %v19224_v43 = vcombine.low %v21794_v7, %v4910_v44  ;;  %v19234_v16 = vsel %vm22006_vm0, %v8394_v4, %v8398_v19  ;;  %v8402_v62 = vor.u32 %v8400_v22, %v8398_v19  ;;  %v22019_v19 = vld [vmem:[#allocation53_spill] sm:$0xff] }
 0x21a   :  { %v8406_v23 = vrot.slane %v8404_v45, 1  ;;  %v19237_v1 = vcombine.low %v21794_v7, %v7867_v0  ;;  %v8408_v2 = vshrl.u32 %v8291_v12, 16  ;;  %v8414_v5 = vrot.slane %v8412_v54, 1  ;;  %v15936_v0 = vld [vmem:[%s21153_s2 + $0xd0] sm:$0xff]  }
 0x21b   :  { %v8416_v44 = vshrl.u32 %v8292_v15, 16  ;;  %v966_v51 = vadd.s32 344, %v21766_v13  ;;  %v8420_v6 = vshll.u32 %v19216_v60, 16  ;;  %vm22018_vm12 = vcmp.ne.s16.totalorder %v22017_v35, 0  ;;  %14682 = vmatpush3.bf16.msra.mxu0 %v15934_v41  ;;  %v15937_v41 = vld [vmem:[#allocation2 + $0x78] sm:$0xff] }
 0x21c   :  { %v19244_v14 = vsel %vm22018_vm12, %v15935_v56, 0  ;;  %vm22020_vm9 = vsmask.f32 256  ;;  %v4912_v31 = vsel %vm4848_vm10, 65537, %v19194_v42  ;;  %v19256_v12 = vor.u32 %v5170_v21, %v19219_v37  ;;  %14683 = vmatprep.subr.bf16.mxu0 %v15936_v0  ;;  %vm22026_vm10 = vmmov %vm22006_vm0 }
 0x21d   :  { %v5165_v45 = vsel %vm22020_vm9, %v22019_v19, %v21966_v63  ;;  %v19258_v15 = vrot.slane %v5175_v57, 7  ;;  %v5178_v4 = vshll.u32 %v19192_v32, 16  ;;  %v5183_v54 = vshrl.u32 %v19224_v43, 16  ;;  %v22022_v32 = vld [vmem:[#allocation90_spill] sm:$0xff]  ;;  %vm22025_vm15 = vmmov %vm22020_vm9 }
 0x21e   :  { %v19266_v22 = vsel %vm22021_vm7, %v8402_v62, %v8406_v23  ;;  %v8410_v11 = vor.u32 %v8408_v2, %v8406_v23  ;;  %v8424_v56 = vshrl.u32 %v19216_v60, 16  ;;  %v8122_v21 = vshrl.u32 %v19237_v1, 16  ;;  %vm22030_vm12 = vmmov %vm22021_vm7 }
 0x21f   :  { %v8418_v57 = vor.u32 %v8416_v44, %v8414_v5  ;;  %vm22023_vm3 = vcmp.ne.s16.totalorder %v22022_v32, 0  ;;  %v19276_v35 = vcombine.low %v21794_v7, %v4912_v31  ;;  %v1292_v10 = vand.u32 15, %v966_v51  ;;  %14684 = vmatpush3.bf16.msra.mxu0 %v15936_v0  ;;  %14832 = vmatmul.mubr.bf16.gmra.mrb[24].mxu1 %v18964_v26  ;;  %vm22032_vm7 = vmmov %vm22025_vm15 }
 0x220   :  { %v19273_v63 = vsel %vm22023_vm3, %v15937_v41, 0  ;;  %v8422_v62 = vrot.slane %v8420_v6, 1  ;;  %v8428_v23 = vshll.u32 %v19244_v14, 16  ;;  %vm5302_vm6 = vcmp.ne.s16.totalorder %v5165_v45, 0  ;;  %14685 = vmatprep.subr.bf16.mxu0 %v15938_v53  ;;  %14835 = vmatprep.mubr.bf16.mxu1 %v18971_v36 }
 0x221   :  { %v968_v60 = vadd.s32 360, %v21766_v13  ;;  %v5173_v2 = vsel %vm22025_vm15, %v22024_v24, %v19256_v12  ;;  %v5180_v44 = vor.u32 %v5178_v4, %v19258_v15  ;;  %v19285_v41 = vrot.slane %v5183_v54, 7  ;;  %v22027_v54 = vld [vmem:[#allocation15_spill] sm:$0xff] }
 0x222   :  { %v5186_v31 = vshll.u32 %v19224_v43, 16  ;;  %v19293_v51 = vsel %vm22026_vm10, %v8410_v11, %v8414_v5  ;;  %v8436_v6 = vshll.u32 %v19273_v63, 16  ;;  %v19296_v0 = vrot.slane %v8122_v21, 7 }
 0x223   :  { %v8125_v4 = vshll.u32 %v19237_v1, 16  ;;  %v8432_v43 = vshrl.u32 %v19244_v14, 16  ;;  %v19303_v24 = vsel %vm5302_vm6, %v22027_v54, 0  ;;  %v5191_v32 = vshrl.u32 %v19276_v35, 16  ;;  %14686 = vmatpush3.bf16.msra.mxu0 %v15938_v53 }
 0x224   :  { %vm19306_vm0 = vcmp.lt.s32.totalorder %v1292_v10, 15  ;;  %v19311_v5 = vsel %vm22030_vm12, %v8418_v57, %v8422_v62  ;;  %v8426_v11 = vor.u32 %v8424_v56, %v8422_v62  ;;  %vm5303_vm9 = vcmp.ne.s16.totalorder %v5173_v2, 0  ;;  %v15939_v57 = vld [vmem:[%s21153_s2 + $0xe0] sm:$0xff]  }
 0x225   :  { %v1306_v1 = vand.u32 15, %v968_v60  ;;  %v8430_v36 = vrot.slane %v8428_v23, 1  ;;  %v22031_v14 = vshrl.u32 %v18789_v59, 16  ;;  %v19320_v21 = vsel %vm22032_vm7, %v19219_v37, %v5180_v44  ;;  %14687 = vmatprep.subr.bf16.mxu0 %v15939_v57  ;;  %v15940_v23 = vld [vmem:[#allocation2 + $0x80] sm:$0xff]  ;;  %v22034_v60 = vld [vmem:[#allocation83_spill] sm:$0xff]  ;;  %vm4850_vm6 = vmpackc.low %vm19306_vm0, %vm19306_vm0 }
 0x226   :  { %22033 = vst [vmem:[#allocation91_spill] sm:$0xff] %v19320_v21  ;;  %v5188_v10 = vor.u32 %v5186_v31, %v19285_v41  ;;  %v8438_v56 = vrot.slane %v8436_v6, 1  ;;  %v5497_v62 = vshll.u32 %v19303_v24, 16  ;;  %vm22035_vm3 = vcmp.ne.s16.totalorder %v22034_v60, 0  ;;  %v22037_v37 = vld [vmem:[#allocation75_spill] sm:$0xff]  ;;  %vm22042_vm0 = vmmov %vm22032_vm7 }
 0x227   :  { %v19316_v45 = vor.u32 %v22031_v14, %v18827_v48  ;;  %v19329_v59 = vsel %vm22035_vm3, %v15940_v23, 0  ;;  %v19332_v48 = vor.u32 %v8125_v4, %v19296_v0  ;;  %14624 = vmatmul.mubr.bf16.gmra.mrb[72].mxu0 %v22037_v37  ;;  %v22038_v44 = vld [vmem:[#allocation143_spill] sm:$0xff]  ;;  %v19342_v53 = vrot.slane %v5191_v32, 7  ;;  %v22039_v14 = vld [vmem:[#allocation74_spill] sm:$0xff] }
 0x228   :  { %v19340_v31 = vsel %vm5303_vm9, %v22038_v44, 0  ;;  %v5194_v6 = vshll.u32 %v19276_v35, 16  ;;  %v970_v54 = vadd.s32 376, %v21766_v13  ;;  %14627 = vmatprep.mubr.bf16.mxu0 %v22039_v14  ;;  %v5501_v4 = vshrl.u32 %v19303_v24, 16  ;;  %14688 = vmatpush3.bf16.msra.mxu0 %v15939_v57  ;;  %v15942_v24 = vld [vmem:[#allocation2 + $0x108] sm:$0xff]  ;;  %vm22044_vm9 = vmmov %vm22042_vm0  ;;  %v22045_v44 = vld [vmem:[#allocation150_spill] sm:$0xff] }
 0x229   :  { %22036 = vst [vmem:[#allocation53_spill] sm:$0xff] %v19332_v48  ;;  %v8440_v26 = vshrl.u32 %v19273_v63, 16  ;;  %vm21492_vm15 = vcmp.ne.s16.totalorder %v19320_v21, 0  ;;  %vm19350_vm10 = vcmp.lt.s32.totalorder %v1306_v1, 15  ;;  %v8434_v2 = vor.u32 %v8432_v43, %v8430_v36  ;;  %v15941_v63 = vld [vmem:[%s21153_s2 + $0xe8] sm:$0xff]   ;;  %14836 = vmatmul.mubr.bf16.gmra.mrb[28].mxu1 %v15942_v24  ;;  %v19964_v21 = vld [vmem:[#allocation2 + $0xf8] sm:$0xff] }
 0x22a   :  { %v8444_v32 = vshll.u32 %v19329_v59, 16  ;;  %v19357_v35 = vsel %vm22042_vm0, %v19258_v15, %v5188_v10  ;;  %v4914_v37 = vsel %vm4850_vm6, 65537, %v19194_v42  ;;  %14689 = vmatprep.subr.bf16.mxu0 %v15941_v63  ;;  %v19364_v1 = vsel %vm22030_vm12, %v8426_v11, %v8430_v36  ;;  %14855 = vmatprep.mubr.bf16.mxu1 %v19208_v39  ;;  %vm4852_vm7 = vmpackc.low %vm19350_vm10, %vm19350_vm10  ;;  %v15862_v23 = vld [vmem:[%s21153_s2 + $0x188] sm:$0xff]  }
 0x22b   :  { %22043 = vst [vmem:[#allocation15_spill] sm:$0xff] %v19357_v35  ;;  %v5505_v43 = vshll.u32 %v19340_v31, 16  ;;  %v8452_v57 = vshll.u32 %v19048_v34, 16  ;;  %v8128_v15 = vsel %vm22044_vm9, %v22019_v19, %v19332_v48  ;;  %v5499_v10 = vrot.slane %v5497_v62, 1  ;;  %vm22046_vm6 = vmmov %vm22030_vm12 }
 0x22c   :  { %v19375_v14 = vsel %vm21492_vm15, %v22045_v44, 0  ;;  %v5196_v24 = vor.u32 %v5194_v6, %v19342_v53  ;;  %v1320_v11 = vand.u32 15, %v970_v54  ;;  %v8442_v36 = vor.u32 %v8440_v26, %v8438_v56  ;;  %14690 = vmatpush3.bf16.msra.mxu0 %v15941_v63  ;;  %v7753_v44 = vld [vmem:[#allocation2 + $0x90] sm:$0xff]  ;;  %vm22047_vm12 = vmmov %vm22044_vm9 }
 0x22d   :  { %v8448_v60 = vshrl.u32 %v19329_v59, 16  ;;  %vm21491_vm3 = vcmp.ne.s16.totalorder %v19357_v35, 0  ;;  %v19384_v39 = vcombine.low %v21794_v7, %v4914_v37  ;;  %v19387_v19 = vsel %vm22046_vm6, %v8434_v2, %v8438_v56  ;;  %v15943_v59 = vld [vmem:[%s21153_s2 + $0xf0] sm:$0xff]  }
 0x22e   :  { %v8446_v62 = vrot.slane %v8444_v32, 1  ;;  %vm8265_vm0 = vcmp.ne.s16.totalorder %v8128_v15, 0  ;;  %v19392_v6 = vsel %vm22047_vm12, %v19296_v0, %v19256_v12  ;;  %14691 = vmatprep.subr.bf16.mxu0 %v15943_v59  ;;  %v5507_v54 = vrot.slane %v5505_v43, 1  ;;  %v22049_v2 = vld [vmem:[#allocation48_spill] sm:$0xff]  ;;  %v22050_v12 = vld [vmem:[#allocation147_spill] sm:$0xff] }
 0x22f   :  { %22048 = vst [vmem:[#allocation75_spill] sm:$0xff] %v19392_v6  ;;  %v8454_v26 = vrot.slane %v8452_v57, 1  ;;  %v5513_v37 = vshll.u32 %v19375_v14, 16  ;;  %v4916_v56 = vsel %vm4852_vm7, 65537, %v19194_v42  ;;  %14628 = vmatmul.mubr.bf16.gmra.mrb[76].mxu0 %v22049_v2  ;;  %v19408_v0 = vsel %vm21491_vm3, %v22050_v12, 0  ;;  %v22054_v57 = vld [vmem:[#allocation62_spill] sm:$0xff] }
 0x230   :  { %v19412_v32 = vsel %vm22044_vm9, %v19285_v41, %v5196_v24  ;;  %vm19414_vm6 = vcmp.lt.s32.totalorder %v1320_v11, 15  ;;  %v972_v43 = vadd.s32 392, %v21766_v13  ;;  %14631 = vmatprep.mubr.bf16.mxu0 %v22054_v57  ;;  %v5509_v2 = vshrl.u32 %v19340_v31, 16  ;;  %14692 = vmatpush3.bf16.msra.mxu0 %v15943_v59  ;;  %v15944_v31 = vld [vmem:[%s21153_s2 + $0xf8] sm:$0xff]  }
 0x231   :  { %22051 = vst [vmem:[#allocation143_spill] sm:$0xff] %v19412_v32  ;;  %v19425_v48 = vsel %vm8265_vm0, %v7753_v44, 0  ;;  %vm21484_vm10 = vcmp.ne.s16.totalorder %v19392_v6, 0  ;;  %v5199_v41 = vshrl.u32 %v19384_v39, 16  ;;  %vm22055_vm7 = vsmask.f32 7424  ;;  %14693 = vmatprep.subr.bf16.mxu0 %v15944_v31  ;;  %14856 = vmatmul.mubr.bf16.vlgmr.msra.gmra.mrb[32].mxu1 %v19212_v28  ;;  %vm4854_vm9 = vmpackc.low %vm19414_vm6, %vm19414_vm6 }
 0x232   :  { %v19431_v24 = vsel %vm22055_vm7, %v19316_v45, %v5499_v10  ;;  %v5503_v11 = vor.u32 %v5501_v4, %v5499_v10  ;;  %vm22056_vm12 = vmmov %vm22055_vm7  ;;  %v19437_v57 = vcombine.low %v21794_v7, %v4916_v56  ;;  %v8450_v15 = vor.u32 %v8448_v60, %v8446_v62  ;;  %v22057_v45 = vld [vmem:[#allocation132_spill] sm:$0xff]  ;;  %14859 = vmatprep.mubr.bf16.mxu1 %v19147_v58 }
 0x233   :  { %v19434_v30 = vsel %vm22056_vm12, %v8442_v36, %v8446_v62  ;;  %v5511_v44 = vor.u32 %v5509_v2, %v5507_v54  ;;  %v5521_v59 = vshll.u32 %v19408_v0, 16  ;;  %vm21486_vm0 = vcmp.ne.s16.totalorder %v19412_v32, 0  ;;  %14920 = vmatpush3.bf16.msra.mxu1 %v22057_v45  ;;  %v15863_v36 = vld [vmem:[%s21153_s2 + $0x190] sm:$0xff]   ;;  %vm22059_vm12 = vmmov %vm22055_vm7 }
 0x234   :  { %v5515_v4 = vrot.slane %v5513_v37, 1  ;;  %v8460_v10 = vshll.u32 %v19425_v48, 16  ;;  %v19453_v28 = vsel %vm21484_vm10, %v7754_v38, 0  ;;  %v1334_v60 = vand.u32 15, %v972_v43  ;;  %14921 = vmatprep.subr.bf16.mxu1 %v15862_v23  ;;  %14694 = vmatpush3.bf16.msra.mxu0 %v15944_v31  ;;  %v22060_v31 = vld [vmem:[#allocation7_spill] sm:$0xff]  ;;  %vm22064_vm6 = vmmov %vm22055_vm7 }
 0x235   :  { %v19459_v62 = vsel %vm22055_vm7, %v8450_v15, %v8454_v26  ;;  %v22058_v56 = vshrl.u32 %v19048_v34, 16  ;;  %v19463_v58 = vrot.slane %v5199_v41, 7  ;;  %v5202_v37 = vshll.u32 %v19384_v39, 16 }
 0x236   :  { %v5517_v38 = vshrl.u32 %v19375_v14, 16  ;;  %v19470_v43 = vsel %vm21486_vm0, %v18835_v47, 0  ;;  %v5207_v45 = vshrl.u32 %v19437_v57, 16  ;;  %v4918_v34 = vsel %vm4854_vm9, 65537, %v19194_v42 }
 0x237   :  { %v8458_v2 = vor.u32 %v22058_v56, %v8454_v26  ;;  %v19480_v26 = vsel %vm22059_vm12, %v5503_v11, %v5507_v54  ;;  %v5523_v39 = vrot.slane %v5521_v59, 1  ;;  %v8468_v14 = vshll.u32 %v19453_v28, 16  ;;  %14922 = vmatpush3.bf16.msra.mxu1 %v15862_v23  ;;  %14632 = vmatmul.mubr.bf16.gmra.mrb[80].mxu0 %v22060_v31  ;;  %v15864_v54 = vld [vmem:[%s21153_s2 + $0x198] sm:$0xff]   ;;  %vm22065_vm12 = vmmov %vm22064_vm6 }
 0x238   :  { %v974_v41 = vadd.s32 408, %v21766_v13  ;;  %v19486_v15 = vsel %vm22055_vm7, %v5511_v44, %v5515_v4  ;;  %v5519_v56 = vor.u32 %v5517_v38, %v5515_v4  ;;  %v8462_v6 = vrot.slane %v8460_v10, 1  ;;  %14635 = vmatprep.mubr.bf16.mxu0 %v22063_v29  ;;  %14923 = vmatprep.subr.bf16.mxu1 %v15863_v36 }
 0x239   :  { %vm19488_vm10 = vcmp.lt.s32.totalorder %v1334_v60, 15  ;;  %v5529_v23 = vshll.u32 %v19470_v43, 16  ;;  %v5204_v11 = vor.u32 %v5202_v37, %v19463_v58  ;;  %v8300_v44 = vsel %vm21492_vm15, %v22050_v12, 0  ;;  %14860 = vmatmul.mubr.bf16.gmra.mrb[36].mxu1 %v19153_v27 }
 0x23a   :  { %v13538_v59 = vcombine.low %v21794_v7, %v4918_v34  ;;  %v5525_v4 = vshrl.u32 %v19408_v0, 16  ;;  %v19503_v10 = vrot.slane %v5207_v45, 7  ;;  %v5210_v29 = vshll.u32 %v19437_v57, 16  ;;  %vm4856_vm9 = vmpackc.low %vm19488_vm10, %vm19488_vm10  ;;  %14863 = vmatprep.mubr.bf16.mxu1 %v19180_v3 }
 0x23b   :  { %v976_v60 = vadd.s32 424, %v21766_v13  ;;  %v19509_v38 = vsel %vm22064_vm6, %v5519_v56, %v5523_v39  ;;  %v8464_v37 = vshrl.u32 %v19425_v48, 16  ;;  %v8470_v31 = vrot.slane %v8468_v14, 1  ;;  %14924 = vmatpush3.bf16.msra.mxu1 %v15863_v36  ;;  %v15865_v48 = vld [vmem:[%s21153_s2 + $0x1a0] sm:$0xff]  }
 0x23c   :  { %v1348_v12 = vand.u32 15, %v974_v41  ;;  %v19517_v0 = vsel %vm22065_vm12, %v8458_v2, %v8462_v6  ;;  %v5527_v57 = vor.u32 %v5525_v4, %v5523_v39  ;;  %v5533_v27 = vshrl.u32 %v19470_v43, 16  ;;  %14925 = vmatprep.subr.bf16.mxu1 %v15864_v54 }
 0x23d   :  { %v8476_v45 = vshll.u32 %v8300_v44, 16  ;;  %v8466_v34 = vor.u32 %v8464_v37, %v8462_v6  ;;  %v5531_v56 = vrot.slane %v5529_v23, 1  ;;  %vm22066_vm7 = vsmask.f32 256  ;;  %v22070_v23 = vld [vmem:[#allocation144_spill] sm:$0xff] }
 0x23e   :  { %v19525_v14 = vsel %vm22066_vm7, %v19342_v53, %v5204_v11  ;;  %v5215_v3 = vshrl.u32 %v13538_v59, 16  ;;  %v8472_v36 = vshrl.u32 %v19453_v28, 16  ;;  %v5212_v2 = vor.u32 %v5210_v29, %v19503_v10 }
 0x23f   :  { %22067 = vst [vmem:[#allocation74_spill] sm:$0xff] %v19525_v14  ;;  %v4920_v6 = vsel %vm4856_vm9, 65537, %v19194_v42  ;;  %v1362_v43 = vand.u32 15, %v976_v60  ;;  %v19538_v39 = vsel %vm21491_vm3, %v18835_v47, 0  ;;  %v8480_v53 = vshrl.u32 %v8300_v44, 16  ;;  %14636 = vmatmul.mubr.bf16.gmra.mrb[84].mxu0 %v22070_v23  ;;  %14926 = vmatpush3.bf16.msra.mxu1 %v15864_v54  ;;  %v22071_v47 = vld [vmem:[#allocation145_spill] sm:$0xff] }
 0x240   :  { %vm19540_vm6 = vcmp.lt.s32.totalorder %v1348_v12, 15  ;;  %v978_v28 = vadd.s32 440, %v21766_v13  ;;  %vm21487_vm12 = vcmp.ne.s16.totalorder %v19525_v14, 0  ;;  %v8474_v63 = vor.u32 %v8472_v36, %v8470_v31  ;;  %14639 = vmatprep.mubr.bf16.mxu0 %v22071_v47  ;;  %14927 = vmatprep.subr.bf16.mxu1 %v15865_v48  ;;  %v15866_v54 = vld [vmem:[%s21153_s2 + $0x1a8] sm:$0xff]   ;;  %v22079_v47 = vld [vmem:[#allocation149_spill] sm:$0xff] }
 0x241   :  { %v8478_v11 = vrot.slane %v8476_v45, 1  ;;  %v8302_v4 = vsel %vm21486_vm0, %v18869_v17, 0  ;;  %vm22072_vm10 = vsmask.f32 7424  ;;  %v19554_v29 = vrot.slane %v5215_v3, 7  ;;  %14864 = vmatmul.mubr.bf16.gmra.mrb[40].mxu1 %v19183_v52 }
 0x242   :  { %v19552_v44 = vsel %vm22072_vm10, %v8466_v34, %v8470_v31  ;;  %v5218_v60 = vshll.u32 %v13538_v59, 16  ;;  %v19557_v37 = vcombine.low %v21794_v7, %v4920_v6  ;;  %vm22073_vm9 = vmmov %vm22072_vm10  ;;  %v8484_v45 = vshll.u32 %v19538_v39, 16  ;;  %14867 = vmatprep.mubr.bf16.mxu1 %v19203_v8  ;;  %v22080_v59 = vld [vmem:[#allocation151_spill] sm:$0xff] }
 0x243   :  { %v19563_v12 = vsel %vm22073_vm9, %v5527_v57, %v5531_v56  ;;  %v19568_v31 = vsel %vm22066_vm7, %v19463_v58, %v5212_v2  ;;  %vm4858_vm10 = vmpackc.low %vm19540_vm6, %vm19540_vm6  ;;  %vm19573_vm0 = vcmp.lt.s32.totalorder %v1362_v43, 15  ;;  %v5340_v57 = vsel %vm21487_vm12, %v18869_v17, 0  ;;  %14928 = vmatpush3.bf16.msra.mxu1 %v15865_v48 }
 0x244   :  { %22074 = vst [vmem:[#allocation150_spill] sm:$0xff] %v19568_v31  ;;  %v5535_v34 = vor.u32 %v5533_v27, %v5531_v56  ;;  %v8492_v3 = vshll.u32 %v8302_v4, 16  ;;  %v1376_v36 = vand.u32 15, %v978_v28  ;;  %v19583_v58 = vsel %vm22073_vm9, %v8474_v63, %v8478_v11  ;;  %14929 = vmatprep.subr.bf16.mxu1 %v15866_v54  ;;  %vm4860_vm9 = vmpackc.low %vm19573_vm0, %vm19573_vm0  ;;  %v15867_v56 = vld [vmem:[%s21153_s2 + $0x1b0] sm:$0xff]  }
 0x245   :  { %v8482_v2 = vor.u32 %v8480_v53, %v8478_v11  ;;  %v19588_v6 = vsel %vm21487_vm12, %v18853_v40, 0  ;;  %v980_v52 = vadd.s32 456, %v21766_v13  ;;  %vm21489_vm7 = vcmp.ne.s16.totalorder %v19568_v31, 0 }
 0x246   :  { %v5220_v17 = vor.u32 %v5218_v60, %v19554_v29  ;;  %v5223_v27 = vshrl.u32 %v19557_v37, 16  ;;  %v4922_v8 = vsel %vm4858_vm10, 65537, %v19194_v42  ;;  %v5537_v48 = vshll.u32 %v5340_v57, 16 }
 0x247   :  { %v8486_v43 = vrot.slane %v8484_v45, 1  ;;  %v5541_v53 = vshrl.u32 %v5340_v57, 16  ;;  %v8488_v28 = vshrl.u32 %v19538_v39, 16  ;;  %v8494_v23 = vrot.slane %v8492_v3, 1  ;;  %14640 = vmatmul.mubr.bf16.gmra.mrb[88].mxu0 %v22079_v47  ;;  %14930 = vmatpush3.bf16.msra.mxu1 %v15866_v54  ;;  %v15868_v54 = vld [vmem:[%s21153_s2 + $0x1b8] sm:$0xff]  }
 0x248   :  { %v8496_v63 = vshrl.u32 %v8302_v4, 16  ;;  %v8500_v11 = vshll.u32 %v19588_v6, 16  ;;  %vm19608_vm12 = vcmp.lt.s32.totalorder %v1376_v36, 15  ;;  %v19616_v60 = vsel %vm21489_vm7, %v18853_v40, 0  ;;  %14643 = vmatprep.mubr.bf16.mxu0 %v22080_v59  ;;  %14931 = vmatprep.subr.bf16.mxu1 %v15867_v56 }
 0x249   :  { %v19619_v45 = vcombine.low %v21794_v7, %v4922_v8  ;;  %v4924_v39 = vsel %vm4860_vm9, 65537, %v19194_v42  ;;  %v1390_v4 = vand.u32 15, %v980_v52  ;;  %vm22081_vm0 = vsmask.f32 256  ;;  %vm4862_vm10 = vmpackc.low %vm19608_vm12, %vm19608_vm12  ;;  %14868 = vmatmul.mubr.bf16.gmra.mrb[44].mxu1 %v19234_v16 }
 0x24a   :  { %v19625_v57 = vsel %vm22081_vm0, %v19503_v10, %v5220_v17  ;;  %v19627_v3 = vrot.slane %v5223_v27, 7  ;;  %v5226_v36 = vshll.u32 %v19557_v37, 16  ;;  %v982_v40 = vadd.s32 472, %v21766_v13  ;;  %14871 = vmatprep.mubr.bf16.mxu1 %v19266_v22  ;;  %v19662_v22 = vld [vmem:[%s21153_s2 + $0x1c0] sm:$0xff]  }
 0x24b   :  { %22082 = vst [vmem:[#allocation48_spill] sm:$0xff] %v19625_v57  ;;  %v5539_v8 = vrot.slane %v5537_v48, 1  ;;  %vm22083_vm6 = vsmask.f32 7424  ;;  %v8490_v47 = vor.u32 %v8488_v28, %v8486_v43  ;;  %v19640_v10 = vsel %vm21489_vm7, %v18891_v33, 0  ;;  %14932 = vmatpush3.bf16.msra.mxu1 %v15867_v56 }
 0x24c   :  { %v19635_v52 = vsel %vm22083_vm6, %v8482_v2, %v8486_v43  ;;  %v8498_v37 = vor.u32 %v8496_v63, %v8494_v23  ;;  %v8502_v17 = vrot.slane %v8500_v11, 1  ;;  %v13541_v27 = vcombine.low %v21794_v7, %v4924_v39  ;;  %14933 = vmatprep.subr.bf16.mxu1 %v15868_v54  ;;  %vm22086_vm12 = vmmov %vm22083_vm6 }
 0x24d   :  { %v984_v48 = vadd.s32 488, %v21766_v13  ;;  %v5545_v2 = vshll.u32 %v19616_v60, 16  ;;  %vm21490_vm9 = vcmp.ne.s16.totalorder %v19625_v57, 0  ;;  %v5231_v43 = vshrl.u32 %v19619_v45, 16 }
 0x24e   :  { %vm19652_vm0 = vcmp.lt.s32.totalorder %v1390_v4, 15  ;;  %v5228_v16 = vor.u32 %v5226_v36, %v19627_v3  ;;  %v8508_v63 = vshll.u32 %v19640_v10, 16  ;;  %v4926_v11 = vsel %vm4862_vm10, 65537, %v19194_v42  ;;  %vm22087_vm10 = vmmov %vm22083_vm6 }
 0x24f   :  { %v1404_v41 = vand.u32 15, %v982_v40  ;;  %v19665_v39 = vsel %vm22086_vm12, %v5535_v34, %v5539_v8  ;;  %v5543_v4 = vor.u32 %v5541_v53, %v5539_v8  ;;  %v19668_v59 = vsel %vm22083_vm6, %v8490_v47, %v8494_v23  ;;  %vm4864_vm7 = vmpackc.low %vm19652_vm0, %vm19652_vm0  ;;  %14644 = vmatmul.mubr.bf16.gmra.mrb[92].mxu0 %v19431_v24  ;;  %14934 = vmatpush3.bf16.msra.mxu1 %v15868_v54 }
 0x250   :  { %v986_v56 = vadd.s32 504, %v21766_v13  ;;  %v5342_v36 = vsel %vm21490_vm9, %v18891_v33, 0  ;;  %v19675_v40 = vsel %vm22087_vm10, %v8498_v37, %v8502_v17  ;;  %v5239_v31 = vshrl.u32 %v13541_v27, 16  ;;  %14647 = vmatprep.mubr.bf16.mxu0 %v19480_v26  ;;  %14999 = vmatprep.subr.bf16.mxu1 %v19662_v22 }
 0x251   :  { %v1418_v34 = vand.u32 15, %v984_v48  ;;  %v5233_v53 = vrot.slane %v5231_v43, 7  ;;  %v5234_v23 = vshll.u32 %v19619_v45, 16  ;;  %v8504_v13 = vshrl.u32 %v19588_v6, 16  ;;  %14872 = vmatmul.mubr.bf16.gmra.mrb[48].mxu1 %v19293_v51 }
 0x252   :  { %v13542_v8 = vcombine.low %v21794_v7, %v4926_v11  ;;  %v5547_v33 = vrot.slane %v5545_v2, 1  ;;  %vm22088_vm12 = vsmask.f32 256  ;;  %v8510_v37 = vrot.slane %v8508_v63, 1  ;;  %14875 = vmatprep.mubr.bf16.mxu1 %v19311_v5 }
 0x253   :  { %v19687_v47 = vsel %vm22088_vm12, %v19554_v29, %v5228_v16  ;;  %vm19689_vm6 = vcmp.lt.s32.totalorder %v1404_v41, 15  ;;  %v5553_v24 = vshll.u32 %v5342_v36, 16  ;;  %v19697_v6 = vsel %vm21490_vm9, %v18876_v49, 0 }
 0x254   :  { %22089 = vst [vmem:[#allocation147_spill] sm:$0xff] %v19687_v47  ;;  %v4928_v26 = vsel %vm4864_vm7, 65537, %v19194_v42  ;;  %v1432_v29 = vand.u32 15, %v986_v56  ;;  %v5549_v45 = vshrl.u32 %v19616_v60, 16  ;;  %v5241_v54 = vrot.slane %v5239_v31, 7  ;;  %vm4866_vm7 = vmpackc.low %vm19689_vm6, %vm19689_vm6 }
 0x255   :  { %v5242_v2 = vshll.u32 %v13541_v27, 16  ;;  %vm19707_vm10 = vcmp.lt.s32.totalorder %v1418_v34, 15  ;;  %vm21498_vm12 = vcmp.ne.s16.totalorder %v19687_v47, 0  ;;  %v5236_v16 = vor.u32 %v5234_v23, %v5233_v53  ;;  %v22120_v47 = vld [vmem:[#allocation139_spill] sm:$0xff] }
 0x256   :  { %v8506_v63 = vor.u32 %v8504_v13, %v8502_v17  ;;  %v5247_v28 = vshrl.u32 %v13542_v8, 16  ;;  %vm22094_vm0 = vsmask.f32 7424  ;;  %v8512_v31 = vshrl.u32 %v19640_v10, 16  ;;  %vm4868_vm3 = vmpackc.low %vm19707_vm10, %vm19707_vm10 }
 0x257   :  { %v19717_v51 = vsel %vm22094_vm0, %v5543_v4, %v5547_v33  ;;  %v8516_v60 = vshll.u32 %v19697_v6, 16  ;;  %v13543_v27 = vcombine.low %v21794_v7, %v4928_v26  ;;  %v5551_v11 = vor.u32 %v5549_v45, %v5547_v33  ;;  %vm22095_vm9 = vmmov %vm22094_vm0  ;;  %14648 = vmatmul.mubr.bf16.gmra.mrb[96].mxu0 %v19486_v15  ;;  %v22103_v45 = vld [vmem:[#allocation146_spill] sm:$0xff] }
 0x258   :  { %v5555_v5 = vrot.slane %v5553_v24, 1  ;;  %v19723_v41 = vsel %vm22095_vm9, %v8506_v63, %v8510_v37  ;;  %vm19728_vm15 = vcmp.lt.s32.totalorder %v1432_v29, 15  ;;  %v19735_v10 = vsel %vm21498_vm12, %v18876_v49, 0  ;;  %14651 = vmatprep.mubr.bf16.mxu0 %v19509_v38  ;;  %vm22100_vm10 = vmmov %vm22094_vm0 }
 0x259   :  { %v8514_v4 = vor.u32 %v8512_v31, %v8510_v37  ;;  %v5244_v56 = vor.u32 %v5242_v2, %v5241_v54  ;;  %v4930_v34 = vsel %vm4866_vm7, 65537, %v19194_v42  ;;  %v5557_v23 = vshrl.u32 %v5342_v36, 16  ;;  %vm4870_vm6 = vmpackc.low %vm19728_vm15, %vm19728_vm15  ;;  %14876 = vmatmul.mubr.bf16.gmra.mrb[52].mxu1 %v19364_v1  ;;  %v22104_v2 = vld [vmem:[#allocation13_spill] sm:$0xff]  ;;  %v22106_v1 = vld [vmem:[#allocation148_spill] sm:$0xff] }
 0x25a   :  { %vm22098_vm9 = vsmask.f32 256  ;;  %v19743_v33 = vrot.slane %v5247_v28, 7  ;;  %v5250_v48 = vshll.u32 %v13542_v8, 16  ;;  %v19746_v24 = vrot.slane %v8516_v60, 1  ;;  %14879 = vmatprep.mubr.bf16.mxu1 %v19387_v19  ;;  %vm22108_vm15 = vmmov %vm22094_vm0 }
 0x25b   :  { %v19741_v13 = vsel %vm22098_vm9, %v19627_v3, %v5236_v16  ;;  %v5255_v37 = vshrl.u32 %v13543_v27, 16  ;;  %v4932_v26 = vsel %vm4868_vm3, 65537, %v19194_v42  ;;  %v19754_v15 = vsel %vm22100_vm10, %v5551_v11, %v5555_v5  ;;  %vm22101_vm3 = vmmov %vm22098_vm9 }
 0x25c   :  { %22099 = vst [vmem:[#allocation62_spill] sm:$0xff] %v19741_v13  ;;  %v19756_v3 = vor.u32 %v5557_v23, %v5555_v5  ;;  %v5561_v36 = vshll.u32 %v19735_v10, 16  ;;  %v13544_v38 = vcombine.low %v21794_v7, %v4930_v34  ;;  %vm21497_vm7 = vcmp.ne.s16.totalorder %v19741_v13, 0  ;;  %vm22110_vm0 = vmmov %vm22101_vm3  ;;  %v15945_v34 = vld [vmem:[#allocation2 + $0xd0] sm:$0xff] }
 0x25d   :  { %v19764_v29 = vsel %vm22101_vm3, %v5233_v53, %v5244_v56  ;;  %v22105_v43 = vshll.u32 %v22104_v2, 16  ;;  %v5252_v63 = vor.u32 %v5250_v48, %v19743_v33  ;;  %v13545_v28 = vcombine.low %v21794_v7, %v4932_v26  ;;  %v22109_v56 = vld [vmem:[#allocation142_spill] sm:$0xff]  ;;  %vm22111_vm9 = vmmov %vm22110_vm0  ;;  %v22113_v26 = vld [vmem:[#allocation100_spill] sm:$0xff] }
 0x25e   :  { %22102 = vst [vmem:[#allocation132_spill] sm:$0xff] %v19764_v29  ;;  %v4934_v31 = vsel %vm4870_vm6, 65537, %v19194_v42  ;;  %v22107_v60 = vshll.u32 %v22106_v1, 16  ;;  %v19778_v53 = vsel %vm22108_vm15, %v8514_v4, %v19746_v24  ;;  %v19780_v5 = vrot.slane %v5255_v37, 7  ;;  %v22112_v37 = vld [vmem:[#allocation156_spill] sm:$0xff]  ;;  %vm22118_vm10 = vmmov %vm22110_vm0 }
 0x25f   :  { %v6660_v16 = vor.u32 %v22105_v43, %v22103_v45  ;;  %v5258_v17 = vshll.u32 %v13543_v27, 16  ;;  %v19788_v23 = vsel %vm21497_vm7, %v15945_v34, 0  ;;  %v19792_v42 = vsel %vm21498_vm12, %v15945_v34, 0  ;;  %v22116_v1 = vld [vmem:[#allocation152_spill] sm:$0xff]  ;;  %14652 = vmatmul.mubr.bf16.gmra.mrb[100].mxu0 %v19563_v12  ;;  %vm22121_vm3 = vmmov %vm22110_vm0 }
 0x260   :  { %v6668_v11 = vor.u32 %v22107_v60, %v18991_v61  ;;  %v5263_v48 = vshrl.u32 %v13544_v38, 16  ;;  %vm21503_vm6 = vcmp.ne.s16.totalorder %v19764_v29, 0  ;;  %v19800_v27 = vcombine.low %v21794_v7, %v4934_v31  ;;  %14655 = vmatprep.mubr.bf16.mxu0 %v19665_v39  ;;  %vm22122_vm15 = vmmov %vm22110_vm0 }
 0x261   :  { %v19784_v19 = vsel %vm22110_vm0, %v22109_v56, %v6660_v16  ;;  %v22114_v2 = vshll.u32 %v22113_v26, 16  ;;  %v22115_v16 = vld [vmem:[#allocation158_spill] sm:$0xff]  ;;  %v22117_v60 = vshll.u32 %v22116_v1, 16  ;;  %v19810_v34 = vsel %vm22118_vm10, %v5241_v54, %v5252_v63  ;;  %v22124_v1 = vld [vmem:[#allocation159_spill] sm:$0xff]  ;;  %14880 = vmatmul.mubr.bf16.gmra.mrb[56].mxu1 %v19434_v30  ;;  %vm22132_vm10 = vmmov %vm22121_vm3 }
 0x262   :  { %v19796_v4 = vsel %vm22111_vm9, %v22103_v45, %v6668_v11  ;;  %v5271_v45 = vshrl.u32 %v13545_v28, 16  ;;  %v22119_v11 = vld [vmem:[#allocation127_spill] sm:$0xff]  ;;  %v9682_v57 = vshrl.u32 %v22120_v47, 16  ;;  %v5260_v7 = vor.u32 %v5258_v17, %v19780_v5  ;;  %v22127_v17 = vld [vmem:[#allocation160_spill] sm:$0xff]  ;;  %14883 = vmatprep.mubr.bf16.mxu1 %v19459_v62  ;;  %vm22131_vm9 = vmmov %vm22121_vm3 }
 0x263   :  { %v6676_v43 = vor.u32 %v22114_v2, %v22112_v37  ;;  %v6684_v49 = vor.u32 %v22117_v60, %v22115_v16  ;;  %v9674_v8 = vshrl.u32 %v22119_v11, 16  ;;  %v5266_v31 = vshll.u32 %v13544_v38, 16  ;;  %v22125_v60 = vld [vmem:[#allocation153_spill] sm:$0xff] }
 0x264   :  { %v5265_v54 = vrot.slane %v5263_v48, 7  ;;  %v19824_v63 = vrot.slane %v9682_v57, 7  ;;  %v9685_v2 = vshll.u32 %v22120_v47, 16  ;;  %v22126_v14 = vshll.u32 %v22125_v60, 16 }
 0x265   :  { %v19818_v26 = vsel %vm22121_vm3, %v18991_v61, %v6676_v43  ;;  %v19822_v12 = vsel %vm22122_vm15, %v22112_v37, %v6684_v49  ;;  %vm5313_vm0 = vcmp.ne.s16.totalorder %v19810_v34, 0  ;;  %v5274_v38 = vshll.u32 %v13545_v28, 16  ;;  %v22128_v43 = vld [vmem:[#allocation154_spill] sm:$0xff]  ;;  %vm22135_vm15 = vmmov %vm22121_vm3 }
 0x266   :  { %22123 = vst [vmem:[#allocation7_spill] sm:$0xff] %v19824_v63  ;;  %v6692_v39 = vor.u32 %v22126_v14, %v22124_v1  ;;  %v5279_v61 = vshrl.u32 %v19800_v27, 16  ;;  %v22129_v49 = vshll.u32 %v22128_v43, 16  ;;  %v19837_v57 = vrot.slane %v5271_v45, 7  ;;  %v22133_v43 = vld [vmem:[#allocation155_spill] sm:$0xff] }
 0x267   :  { %v19839_v47 = vrot.slane %v9674_v8, 7  ;;  %v9687_v48 = vor.u32 %v9685_v2, %v19824_v63  ;;  %v5563_v14 = vrot.slane %v5561_v36, 1  ;;  %v5569_v28 = vshll.u32 %v19788_v23, 16  ;;  %14656 = vmatmul.mubr.bf16.gmra.mrb[104].mxu0 %v19717_v51 }
 0x268   :  { %v6700_v37 = vor.u32 %v22129_v49, %v22127_v17  ;;  %22130 = vst [vmem:[#allocation141_spill] sm:$0xff] %v19837_v57  ;;  %v19844_v30 = vsel %vm22131_vm9, %v22115_v16, %v6692_v39  ;;  %v22134_v62 = vshll.u32 %v22133_v43, 16  ;;  %v19856_v8 = vsel %vm22121_vm3, %v19743_v33, %v5260_v7  ;;  %v15946_v49 = vld [vmem:[#allocation2 + $0xd8] sm:$0xff]  ;;  %vm22137_vm9 = vmmov %vm22121_vm3  ;;  %14659 = vmatprep.mubr.bf16.mxu0 %v19754_v15 }
 0x269   :  { %v5268_v2 = vor.u32 %v5266_v31, %v5265_v54  ;;  %v19860_v16 = vsel %vm22135_vm15, %v19839_v47, %v9687_v48  ;;  %v22136_v36 = vshll.u32 %v18988_v18, 16  ;;  %v8524_v33 = vshll.u32 %v19792_v42, 16  ;;  %14884 = vmatmul.mubr.bf16.gmra.mrb[60].mxu1 %v19517_v0 }
 0x26a   :  { %v19849_v60 = vsel %vm22132_vm10, %v22124_v1, %v6700_v37  ;;  %v6708_v45 = vor.u32 %v22134_v62, %v19039_v46  ;;  %v19867_v1 = vsel %vm21503_vm6, %v15946_v49, 0  ;;  %v15947_v37 = vld [vmem:[#allocation2 + $0xe0] sm:$0xff]  ;;  %v5276_v18 = vor.u32 %v5274_v38, %v19837_v57  ;;  %vm22138_vm10 = vmmov %vm22121_vm3  ;;  %14887 = vmatprep.mubr.bf16.mxu1 %v19552_v44 }
 0x26b   :  { %v6716_v39 = vor.u32 %v22136_v36, %v19041_v50  ;;  %v5346_v43 = vsel %vm5313_vm0, %v15947_v37, 0  ;;  %v19878_v31 = vrot.slane %v5279_v61, 7  ;;  %v5282_v48 = vshll.u32 %v19800_v27, 16  ;;  %v22151_v44 = vld [vmem:[#allocation162_spill] sm:$0xff] }
 0x26c   :  { %v19874_v7 = vsel %vm22137_vm9, %v22127_v17, %v6708_v45  ;;  %vm22139_vm3 = vsmask.f32 7424  ;;  %vm5314_vm15 = vcmp.ne.s16.totalorder %v19856_v8, 0  ;;  %v22140_v51 = vshll.u32 %v19004_v9, 16 }
 0x26d   :  { %v19883_v62 = vsel %vm22138_vm10, %v19039_v46, %v6716_v39  ;;  %v5564_v36 = vsel %vm22139_vm3, %v19756_v3, %v5563_v14  ;;  %v22141_v38 = vshll.u32 %v19011_v55, 16  ;;  %v22142_v27 = vshrl.u32 %v19735_v10, 16  ;;  %vm22143_vm10 = vmmov %vm22137_vm9 }
 0x26e   :  { %v6724_v17 = vor.u32 %v22140_v51, %v19050_v25  ;;  %v5571_v46 = vrot.slane %v5569_v28, 1  ;;  %v5585_v39 = vshll.u32 %v5346_v43, 16  ;;  %v19899_v15 = vsel %vm22137_vm9, %v19780_v5, %v5268_v2  ;;  %vm22145_vm3 = vmmov %vm22137_vm9  ;;  %v19916_v5 = vld [vmem:[#allocation2 + $0xe8] sm:$0xff]  ;;  %v22148_v2 = vld [vmem:[#allocation161_spill] sm:$0xff] }
 0x26f   :  { %v6732_v61 = vor.u32 %v22141_v38, %v19057_v20  ;;  %v5567_v45 = vor.u32 %v22142_v27, %v5563_v14  ;;  %v5577_v3 = vshll.u32 %v19867_v1, 16  ;;  %v19905_v9 = vsel %vm21497_vm7, %v15946_v49, 0  ;;  %vm22147_vm9 = vmmov %vm22145_vm3  ;;  %v22152_v38 = vld [vmem:[#allocation36_spill] sm:$0xff]  ;;  %14660 = vmatmul.mubr.bf16.gmra.mrb[108].mxu0 %v5564_v36 }
 0x270   :  { %v19909_v55 = vsel %vm22143_vm10, %v19041_v50, %v6724_v17  ;;  %v5347_v0 = vsel %vm5314_vm15, %v19916_v5, 0  ;;  %v19922_v14 = vsel %vm22147_vm9, %v5265_v54, %v5276_v18  ;;  %v5284_v28 = vor.u32 %v5282_v48, %v19878_v31  ;;  %v22149_v50 = vld [vmem:[#allocation157_spill] sm:$0xff]  ;;  %vm22156_vm12 = vmmov %vm22147_vm9 }
 0x271   :  { %22144 = vst [vmem:[#allocation144_spill] sm:$0xff] %v19909_v55  ;;  %v19913_v10 = vsel %vm22145_vm3, %v19050_v25, %v6732_v61  ;;  %v22150_v49 = vshll.u32 %v22149_v50, 16  ;;  %v5573_v25 = vshrl.u32 %v19788_v23, 16  ;;  %v19929_v17 = vrot.slane %v8524_v33, 1  ;;  %14888 = vmatmul.mubr.bf16.gmra.mrb[0].mxu1 %v19583_v58 }
 0x272   :  { %22146 = vst [vmem:[#allocation145_spill] sm:$0xff] %v19913_v10  ;;  %vm5315_vm10 = vcmp.ne.s16.totalorder %v19899_v15, 0  ;;  %v22153_v61 = vshll.u32 %v22152_v38, 16  ;;  %vm22154_vm3 = vsmask.f32 7424  ;;  %v5587_v54 = vrot.slane %v5585_v39, 1  ;;  %14891 = vmatprep.mubr.bf16.mxu1 %v19635_v52 }
 0x273   :  { %v6740_v51 = vor.u32 %v22150_v49, %v22148_v2  ;;  %v5572_v13 = vsel %vm22154_vm3, %v5567_v45, %v5571_v46  ;;  %v8532_v18 = vshll.u32 %v19905_v9, 16  ;;  %v5579_v50 = vrot.slane %v5577_v3, 1  ;;  %v19946_v38 = vld [vmem:[#allocation2 + $0xf0] sm:$0xff]  ;;  %vm22158_vm3 = vmmov %vm22147_vm9  ;;  %v6062_v39 = vld [vmem:[#allocation2 + $0x8] sm:$0x80] }
 0x274   :  { %v6748_v27 = vor.u32 %v22153_v61, %v22151_v44  ;;  %v5593_v49 = vshll.u32 %v5347_v0, 16  ;;  %vm5316_vm7 = vcmp.ne.s16.totalorder %v19922_v14, 0  ;;  %v5589_v33 = vshrl.u32 %v5346_v43, 16  ;;  %v22159_v3 = vld [vmem:[#allocation105_spill] sm:$0xff]  ;;  %14663 = vmatprep.mubr.bf16.mxu0 %v5572_v13 }
 0x275   :  { %v19939_v48 = vsel %vm22147_vm9, %v19057_v20, %v6740_v51  ;;  %v5348_v45 = vsel %vm5315_vm10, %v19946_v38, 0  ;;  %v19953_v20 = vsel %vm22158_vm3, %v19837_v57, %v5284_v28  ;;  %v22160_v51 = vld [vmem:[#allocation99_spill] sm:$0xff]  ;;  %v5581_v36 = vshrl.u32 %v19867_v1, 16  ;;  %v22162_v57 = vld [vmem:[#allocation20_spill] sm:$0xff]  ;;  %vm22163_vm9 = vmmov %vm22158_vm3 }
 0x276   :  { %22155 = vst [vmem:[#allocation149_spill] sm:$0xff] %v19939_v48  ;;  %v19944_v23 = vsel %vm22156_vm12, %v22148_v2, %v6748_v27  ;;  %v22161_v61 = vshll.u32 %v22160_v51, 16  ;;  %v5575_v2 = vor.u32 %v5573_v25, %v5571_v46  ;;  %v8528_v43 = vshrl.u32 %v19792_v42, 16  ;;  %v4742_v51 = vld [vmem:[#allocation2 + $0x108] sm:$0x1]  ;;  %v15892_v15 = vld [vmem:[%s21154_s3 + $0x38] sm:$0xff]  }
 0x277   :  { %22157 = vst [vmem:[#allocation151_spill] sm:$0xff] %v19944_v23  ;;  %v19962_v27 = vsel %vm21503_vm6, %v15947_v37, 0  ;;  %v5591_v35 = vor.u32 %v5589_v33, %v5587_v54  ;;  %v5349_v28 = vsel %vm5316_vm7, %v19964_v21, 0  ;;  %vm6543_vm12 = vcmp.ne.s16.totalorder %v22162_v57, 0 }
 0x278   :  { %v6756_v32 = vor.u32 %v22161_v61, %v22159_v3  ;;  %v5595_v42 = vrot.slane %v5593_v49, 1  ;;  %v5601_v1 = vshll.u32 %v5348_v45, 16  ;;  %vm5317_vm3 = vcmp.ne.s16.totalorder %v19953_v20, 0  ;;  %v19995_v61 = vld [vmem:[#allocation2 + $0x100] sm:$0xff]  ;;  %v7769_v20 = vld [vmem:[#allocation2 + $0x110] sm:$0x1] }
 0x279   :  { %v19978_v37 = vsel %vm6543_vm12, %v6062_v39, 0  ;;  %v5583_v46 = vor.u32 %v5581_v36, %v5579_v50  ;;  %v22165_v25 = vshrl.u32 %v19697_v6, 16  ;;  %v19989_v58 = vrot.slane %v8532_v18, 1  ;;  %v22171_v39 = vld [vmem:[#allocation72_spill] sm:$0xff]  ;;  %14892 = vmatmul.mubr.bf16.gmra.mrb[4].mxu1 %v19668_v59  ;;  %v22175_v59 = vld [vmem:[#allocation89_spill] sm:$0xff] }
 0x27a   :  { %v19972_v13 = vsel %vm22163_vm9, %v22151_v44, %v6756_v32  ;;  %v19987_v32 = vor.u32 %v8528_v43, %v19929_v17  ;;  %vm22166_vm9 = vsmask.f32 7424  ;;  %v5597_v49 = vshrl.u32 %v5347_v0, 16  ;;  %14895 = vmatprep.mubr.bf16.mxu1 %v19675_v40 }
 0x27b   :  { %22164 = vst [vmem:[#allocation146_spill] sm:$0xff] %v19972_v13  ;;  %v19984_v33 = vor.u32 %v22165_v25, %v19746_v24  ;;  %v5580_v44 = vsel %vm22166_vm9, %v5575_v2, %v5579_v50  ;;  %v5609_v3 = vshll.u32 %v5349_v28, 16  ;;  %vm5318_vm6 = vcmp.ne.s16.totalorder %v19878_v31, 0  ;;  %vm22167_vm8 = vmmov %vm22166_vm9  ;;  %v22169_v2 = vld [vmem:[#allocation58_spill] sm:$0xff]  ;;  %v22218_v31 = vld [vmem:[#allocation12_spill] sm:$0xff] }
 0x27c   :  { %v5588_v52 = vsel %vm22167_vm8, %v5583_v46, %v5587_v54  ;;  %v20000_v6 = vsel %vm5317_vm3, %v19995_v61, 0  ;;  %vm22168_vm13 = vmmov %vm22167_vm8  ;;  %v5599_v0 = vor.u32 %v5597_v49, %v5595_v42  ;;  %v5603_v50 = vrot.slane %v5601_v1, 1  ;;  %14664 = vmatmul.mubr.bf16.gmra.mrb[112].mxu0 %v5580_v44  ;;  %v22170_v46 = vld [vmem:[#allocation59_spill] sm:$0xff] }
 0x27d   :  { %v5596_v18 = vsel %vm22168_vm13, %v5591_v35, %v5595_v42  ;;  %v9794_v36 = vshrl.u32 %v22169_v2, 16  ;;  %v5605_v43 = vshrl.u32 %v5348_v45, 16  ;;  %v20007_v54 = vsel %vm5318_vm6, %v4742_v51, 0  ;;  %14667 = vmatprep.mubr.bf16.mxu0 %v5588_v52  ;;  %v22173_v49 = vld [vmem:[#allocation79_spill] sm:$0xff] }
 0x27e   :  { %v9802_v25 = vshrl.u32 %v22170_v46, 16  ;;  %v9810_v29 = vshrl.u32 %v22171_v39, 16  ;;  %v20011_v13 = vrot.slane %v5609_v3, 1  ;;  %v5617_v24 = vshll.u32 %v20000_v6, 16 }
 0x27f   :  { %v20014_v35 = vrot.slane %v9794_v36, 7  ;;  %v9805_v42 = vshll.u32 %v22170_v46, 16  ;;  %v9813_v45 = vshll.u32 %v22171_v39, 16  ;;  %v9818_v51 = vshrl.u32 %v22173_v49, 16 }
 0x280   :  { %v9804_v1 = vrot.slane %v9802_v25, 7  ;;  %v9812_v44 = vrot.slane %v9810_v29, 7  ;;  %v5604_v2 = vsel %vm22167_vm8, %v5599_v0, %v5603_v50  ;;  %v5607_v23 = vor.u32 %v5605_v43, %v5603_v50  ;;  %v22174_v25 = vld [vmem:[#allocation87_spill] sm:$0xff] }
 0x281   :  { %22172 = vst [vmem:[#allocation13_spill] sm:$0xff] %v20014_v35  ;;  %v5613_v52 = vshrl.u32 %v5349_v28, 16  ;;  %v9820_v10 = vrot.slane %v9818_v51, 7  ;;  %v9821_v46 = vshll.u32 %v22173_v49, 16  ;;  %v20025_v39 = vrot.slane %v5617_v24, 1  ;;  %v22180_v24 = vld [vmem:[#allocation93_spill] sm:$0xff]  ;;  %14896 = vmatmul.mubr.bf16.gmra.mrb[8].mxu1 %v19723_v41 }
 0x282   :  { %v9807_v36 = vor.u32 %v9805_v42, %v9804_v1  ;;  %v9815_v48 = vor.u32 %v9813_v45, %v9812_v44  ;;  %v9826_v55 = vshrl.u32 %v22174_v25, 16  ;;  %v9834_v63 = vshrl.u32 %v22175_v59, 16  ;;  %14899 = vmatprep.mubr.bf16.mxu1 %v19778_v53 }
 0x283   :  { %v5615_v29 = vor.u32 %v5613_v52, %v20011_v13  ;;  %vm22176_vm13 = vsmask.f32 256  ;;  %v9823_v40 = vor.u32 %v9821_v46, %v9820_v10  ;;  %v9829_v50 = vshll.u32 %v22174_v25, 16 }
 0x284   :  { %v20031_v28 = vsel %vm22176_vm13, %v20014_v35, %v9807_v36  ;;  %vm22178_vm9 = vmmov %vm22176_vm13  ;;  %v9828_v43 = vrot.slane %v9826_v55, 7  ;;  %v9836_v42 = vrot.slane %v9834_v63, 7  ;;  %v9837_v45 = vshll.u32 %v22175_v59, 16  ;;  %14668 = vmatmul.mubr.bf16.gmra.mrb[116].mxu0 %v5596_v18  ;;  %v22182_v36 = vld [vmem:[#allocation94_spill] sm:$0xff]  ;;  %v22184_v18 = vld [vmem:[#allocation109_spill] sm:$0xff] }
 0x285   :  { %22177 = vst [vmem:[#allocation148_spill] sm:$0xff] %v20031_v28  ;;  %v20034_v0 = vsel %vm22178_vm9, %v9804_v1, %v9815_v48  ;;  %v9842_v49 = vshrl.u32 %v22180_v24, 16  ;;  %vm22181_vm8 = vmmov %vm22178_vm9  ;;  %v9845_v52 = vshll.u32 %v22180_v24, 16  ;;  %v9850_v3 = vshrl.u32 %v22182_v36, 16  ;;  %v22183_v28 = vld [vmem:[#allocation97_spill] sm:$0xff]  ;;  %14671 = vmatprep.mubr.bf16.mxu0 %v5604_v2 }
 0x286   :  { %22179 = vst [vmem:[#allocation142_spill] sm:$0xff] %v20034_v0  ;;  %v20040_v51 = vsel %vm22181_vm8, %v9812_v44, %v9823_v40  ;;  %v9858_v48 = vshrl.u32 %v22183_v28, 16  ;;  %v9831_v1 = vor.u32 %v9829_v50, %v9828_v43  ;;  %v9839_v46 = vor.u32 %v9837_v45, %v9836_v42  ;;  %vm22185_vm13 = vmmov %vm22181_vm8  ;;  %v22187_v50 = vld [vmem:[#allocation113_spill] sm:$0xff] }
 0x287   :  { %v9844_v25 = vrot.slane %v9842_v49, 7  ;;  %v9853_v63 = vshll.u32 %v22182_v36, 16  ;;  %v9852_v55 = vrot.slane %v9850_v3, 7  ;;  %v9861_v0 = vshll.u32 %v22183_v28, 16  ;;  %vm22186_vm9 = vmmov %vm22181_vm8 }
 0x288   :  { %v9860_v59 = vrot.slane %v9858_v48, 7  ;;  %v9866_v35 = vshrl.u32 %v22184_v18, 16  ;;  %v20050_v44 = vsel %vm22185_vm13, %v9820_v10, %v9831_v1  ;;  %v20053_v40 = vsel %vm22186_vm9, %v9828_v43, %v9839_v46  ;;  %v22188_v48 = vld [vmem:[#allocation114_spill] sm:$0xff]  ;;  %vm22189_vm13 = vmmov %vm22181_vm8 }
 0x289   :  { %v9847_v2 = vor.u32 %v9845_v52, %v9844_v25  ;;  %v9874_v45 = vshrl.u32 %v22187_v50, 16  ;;  %v9855_v24 = vor.u32 %v9853_v63, %v9852_v55  ;;  %v9869_v28 = vshll.u32 %v22184_v18, 16  ;;  %vm22190_vm9 = vmmov %vm22181_vm8  ;;  %v22191_v46 = vld [vmem:[#allocation122_spill] sm:$0xff] }
 0x28a   :  { %v9863_v3 = vor.u32 %v9861_v0, %v9860_v59  ;;  %v9868_v49 = vrot.slane %v9866_v35, 7  ;;  %v9877_v10 = vshll.u32 %v22187_v50, 16  ;;  %v9882_v1 = vshrl.u32 %v22188_v48, 16  ;;  %vm22194_vm11 = vmmov %vm22190_vm9 }
 0x28b   :  { %v20059_v36 = vsel %vm22181_vm8, %v9836_v42, %v9847_v2  ;;  %v9876_v41 = vrot.slane %v9874_v45, 7  ;;  %v20064_v43 = vsel %vm22189_vm13, %v9844_v25, %v9855_v24  ;;  %v9890_v0 = vshrl.u32 %v22191_v46, 16  ;;  %v22195_v45 = vld [vmem:[#allocation46_spill] sm:$0xff] }
 0x28c   :  { %v20067_v52 = vsel %vm22190_vm9, %v9852_v55, %v9863_v3  ;;  %v9871_v53 = vor.u32 %v9869_v28, %v9868_v49  ;;  %vm22192_vm1 = vsmask.f32 7424  ;;  %v9884_v42 = vrot.slane %v9882_v1, 7  ;;  %v22196_v3 = vld [vmem:[#allocation140_spill] sm:$0xff] }
 0x28d   :  { %v5612_v35 = vsel %vm22192_vm1, %v5607_v23, %v20011_v13  ;;  %v9879_v63 = vor.u32 %v9877_v10, %v9876_v41  ;;  %v9885_v18 = vshll.u32 %v22188_v48, 16  ;;  %vm22193_vm8 = vmmov %vm22192_vm1  ;;  %v20078_v50 = vrot.slane %v9890_v0, 7 }
 0x28e   :  { %14672 = vmatmul.mubr.bf16.gmra.mrb[120].mxu0 %v5612_v35  ;;  %v5620_v2 = vsel %vm22193_vm8, %v5615_v29, %v20025_v39  ;;  %v20076_v25 = vsel %vm22194_vm11, %v9860_v59, %v9871_v53  ;;  %v9893_v55 = vshll.u32 %v22191_v46, 16  ;;  %v6634_v24 = vshll.u32 %v22195_v45, 16  ;;  %vm22197_vm1 = vmmov %vm22190_vm9 }
 0x28f   :  { %v6639_v28 = vshrl.u32 %v22196_v3, 16  ;;  %14675 = vmatprep.mubr.bf16.mxu0 %v5620_v2  ;;  %v20084_v23 = vsel %vm22197_vm1, %v9868_v49, %v9879_v63  ;;  %v9887_v13 = vor.u32 %v9885_v18, %v9884_v42  ;;  %vm22198_vm13 = vmmov %vm22193_vm8  ;;  %v8309_v10 = vsel %vm5313_vm0, %v19916_v5, 0  ;;  %v22204_v63 = vld [vmem:[#allocation67_spill] sm:$0xff] }
 0x290   :  { %v8527_v29 = vsel %vm22198_vm13, %v19984_v33, %v19929_v17  ;;  %vm22199_vm11 = vmmov %vm22193_vm8  ;;  %v9895_v48 = vor.u32 %v9893_v55, %v20078_v50  ;;  %v22200_v1 = vshll.u32 %v19962_v27, 16  ;;  %v5621_v53 = vshrl.u32 %v20000_v6, 16 }
 0x291   :  { %v8535_v59 = vsel %vm22199_vm11, %v19987_v32, %v19989_v58  ;;  %14900 = vmatmul.mubr.bf16.gmra.mrb[12].mxu1 %v8527_v29  ;;  %v22201_v46 = vshll.u32 %v20007_v54, 16  ;;  %vm22202_vm9 = vmmov %vm22197_vm1  ;;  %v8310_v33 = vsel %vm5314_vm15, %v19946_v38, 0  ;;  %v22203_v32 = vshrl.u32 %v19978_v37, 16 }
 0x292   :  { %v8542_v49 = vrot.slane %v22200_v1, 1  ;;  %v20102_v17 = vsel %vm22202_vm9, %v9876_v41, %v9887_v13  ;;  %14903 = vmatprep.mubr.bf16.mxu1 %v8535_v59  ;;  %v6636_v18 = vor.u32 %v6634_v24, %v22204_v63  ;;  %vm22205_vm8 = vmmov %vm22197_vm1  ;;  %v8544_v6 = vshrl.u32 %v19962_v27, 16  ;;  %v22208_v27 = vld [vmem:[#allocation82_spill] sm:$0xff] }
 0x293   :  { %v5627_v0 = vrot.slane %v22201_v46, 1  ;;  %v6629_v35 = vrot.slane %v22203_v32, 7  ;;  %v20111_v2 = vsel %vm22205_vm8, %v9884_v42, %v9895_v48  ;;  %v8548_v54 = vshll.u32 %v8309_v10, 16  ;;  %vm22206_vm1 = vmmov %vm22199_vm11  ;;  %v20127_v32 = vld [vmem:[#allocation2 + $0x108] sm:$0xff] }
 0x294   :  { %v5623_v55 = vor.u32 %v5621_v53, %v20025_v39  ;;  %v8536_v41 = vshrl.u32 %v19905_v9, 16  ;;  %v6641_v45 = vrot.slane %v6639_v28, 7  ;;  %v8546_v13 = vor.u32 %v8544_v6, %v8542_v49  ;;  %vm22207_vm13 = vmmov %vm22205_vm8 }
 0x295   :  { %v8556_v29 = vshll.u32 %v8310_v33, 16  ;;  %v6637_v24 = vsel %vm22207_vm13, %v6629_v35, %v6636_v18  ;;  %v6642_v42 = vshll.u32 %v22196_v3, 16  ;;  %v8550_v48 = vrot.slane %v8548_v54, 1  ;;  %vm22209_vm11 = vmmov %vm22206_vm1 }
 0x296   :  { %v5628_v59 = vsel %vm22206_vm1, %v5623_v55, %v5627_v0  ;;  %v8538_v37 = vor.u32 %v8536_v41, %v19989_v58  ;;  %v6650_v1 = vshll.u32 %v22208_v27, 16  ;;  %v8311_v9 = vsel %vm5315_vm10, %v19964_v21, 0  ;;  %vm22210_vm9 = vmmov %vm22206_vm1 }
 0x297   :  { %14676 = vmatmul.mubr.bf16.gmra.mrb[124].mxu0 %v5628_v59  ;;  %v8551_v28 = vsel %vm22210_vm9, %v8546_v13, %v8550_v48  ;;  %v8558_v53 = vrot.slane %v8556_v29, 1  ;;  %v6644_v58 = vor.u32 %v6642_v42, %v6641_v45  ;;  %v8560_v0 = vshrl.u32 %v8310_v33, 16  ;;  %vm22211_vm1 = vmmov %vm22205_vm8  ;;  %v20140_v59 = vld [vmem:[#allocation2 + $0x18] sm:$0xff]  ;;  %v9025_v42 = vld [vmem:[#allocation2 + $0x10] sm:$0x80] }
 0x298   :  { %14695 = vmatprep.mubr.bf16.mxu0 %v6637_v24  ;;  %v8543_v39 = vsel %vm22209_vm11, %v8538_v37, %v8542_v49  ;;  %v6652_v46 = vor.u32 %v6650_v1, %v22109_v56  ;;  %v8564_v3 = vshll.u32 %v8311_v9, 16  ;;  %v8552_v35 = vshrl.u32 %v8309_v10, 16  ;;  %vm22212_vm13 = vmmov %vm22210_vm9 }
 0x299   :  { %14904 = vmatmul.mubr.bf16.gmra.mrb[16].mxu1 %v8543_v39  ;;  %v8312_v49 = vsel %vm5316_vm7, %v19995_v61, 0  ;;  %v8562_v18 = vor.u32 %v8560_v0, %v8558_v53  ;;  %v6645_v6 = vsel %vm22205_vm8, %v22204_v63, %v6644_v58  ;;  %v8313_v55 = vsel %vm5317_vm3, %v20127_v32, 0  ;;  %vm22213_vm11 = vmmov %vm22210_vm9  ;;  %v22214_v63 = vld [vmem:[#allocation25_spill] sm:$0xff] }
 0x29a   :  { %14907 = vmatprep.mubr.bf16.mxu1 %v8551_v28  ;;  %v8554_v54 = vor.u32 %v8552_v35, %v8550_v48  ;;  %v6653_v56 = vsel %vm22211_vm1, %v6641_v45, %v6652_v46  ;;  %v8566_v33 = vrot.slane %v8564_v3, 1  ;;  %v8572_v41 = vshll.u32 %v8312_v49, 16  ;;  %vm22216_vm3 = vmmov %vm22213_vm11 }
 0x29b   :  { %v8580_v29 = vshll.u32 %v8313_v55, 16  ;;  %vm22215_vm9 = vcmp.ne.s16.totalorder %v22214_v63, 0  ;;  %v8568_v45 = vshrl.u32 %v8311_v9, 16  ;;  %v8576_v27 = vshrl.u32 %v8312_v49, 16  ;;  %vm22217_vm8 = vmmov %vm22216_vm3  ;;  %v20153_v49 = vld [vmem:[#allocation2 + $0x20] sm:$0xff] }
 0x29c   :  { %v8559_v10 = vsel %vm22212_vm13, %v8554_v54, %v8558_v53  ;;  %v8567_v13 = vsel %vm22213_vm11, %v8562_v18, %v8566_v33  ;;  %v9604_v37 = vsel %vm22215_vm9, %v20140_v59, 0  ;;  %v8574_v24 = vrot.slane %v8572_v41, 1  ;;  %vm22223_vm11 = vmmov %vm22211_vm1 }
 0x29d   :  { %v9658_v48 = vshrl.u32 %v9604_v37, 16  ;;  %v8582_v1 = vrot.slane %v8580_v29, 1  ;;  %v8314_v39 = vsel %vm5318_vm6, %v7769_v20, 0  ;;  %v8570_v28 = vor.u32 %v8568_v45, %v8566_v33  ;;  %v20162_v29 = vld [vmem:[#allocation2 + $0x38] sm:$0xff] }
 0x29e   :  { %v9603_v53 = vsel %vm6543_vm12, %v9025_v42, 0  ;;  %v8578_v58 = vor.u32 %v8576_v27, %v8574_v24  ;;  %v8588_v0 = vshll.u32 %v8314_v39, 16  ;;  %vm22219_vm6 = vcmp.ne.s16.totalorder %v22218_v31, 0  ;;  %vm22220_vm12 = vmmov %vm22216_vm3  ;;  %v15870_v42 = vld [vmem:[%s21153_s2 + $0x1c8] sm:$0xff]   ;;  %v22224_v27 = vld [vmem:[#allocation17_spill] sm:$0xff] }
 0x29f   :  { %14696 = vmatmul.mubr.bf16.vlgmr.msra.gmra.mrb[64].mxu0 %v6645_v6  ;;  %v8575_v46 = vsel %vm22216_vm3, %v8570_v28, %v8574_v24  ;;  %v9660_v3 = vrot.slane %v9658_v48, 7  ;;  %v9654_v35 = vshrl.u32 %v9603_v53, 16  ;;  %v9605_v57 = vsel %vm22219_vm6, %v20153_v49, 0  ;;  %v20175_v48 = vld [vmem:[#allocation2 + $0x40] sm:$0xff]  ;;  %vm22226_vm3 = vmmov %vm22211_vm1  ;;  %v20181_v39 = vld [vmem:[#allocation2 + $0x48] sm:$0xff] }
 0x2a0   :  { %14699 = vmatprep.mubr.bf16.mxu0 %v6653_v56  ;;  %v8583_v9 = vsel %vm22217_vm8, %v8578_v58, %v8582_v1  ;;  %v8584_v18 = vshrl.u32 %v8313_v55, 16  ;;  %v8590_v54 = vrot.slane %v8588_v0, 1  ;;  %v22221_v55 = vld [vmem:[#allocation16_spill] sm:$0xff]  ;;  %v9677_v24 = vshll.u32 %v22119_v11, 16 }
 0x2a1   :  { %14908 = vmatmul.mubr.bf16.gmra.mrb[20].mxu1 %v8559_v10  ;;  %v9656_v56 = vrot.slane %v9654_v35, 7  ;;  %vm22222_vm13 = vcmp.ne.s16.totalorder %v22221_v55, 0  ;;  %vm22225_vm9 = vcmp.ne.s16.totalorder %v22224_v27, 0  ;;  %v15871_v53 = vld [vmem:[%s21153_s2 + $0x1d0] sm:$0xff]   ;;  %v22229_v35 = vld [vmem:[#allocation22_spill] sm:$0xff]  ;;  %v22236_v55 = vld [vmem:[#allocation145_spill] sm:$0xff] }
 0x2a2   :  { %14911 = vmatprep.mubr.bf16.mxu1 %v8567_v13  ;;  %v8586_v6 = vor.u32 %v8584_v18, %v8582_v1  ;;  %v9608_v63 = vsel %vm22222_vm13, %v20162_v29, 0  ;;  %v9609_v1 = vsel %vm22225_vm9, %v20175_v48, 0  ;;  %vm22230_vm6 = vcmp.ne.s16.totalorder %v22229_v35, 0  ;;  %vm22237_vm13 = vmmov %vm22226_vm3  ;;  %v20223_v27 = vld [vmem:[#allocation2 + $0x68] sm:$0xff] }
 0x2a3   :  { %v9698_v58 = vshrl.u32 %v9609_v1, 16 }
 0x2a4   :  { %v8591_v41 = vsel %vm22220_vm12, %v8586_v6, %v8590_v54  ;;  %vm22232_vm12 = vmmov %vm22211_vm1  ;;  %v9701_v54 = vshll.u32 %v9609_v1, 16 }
 0x2a7   :  { %14700 = vmatmul.mubr.bf16.gmra.mrb[68].mxu0 %v19784_v19  ;;  %v9661_v19 = vshll.u32 %v9604_v37, 16  ;;  %v9669_v37 = vshll.u32 %v9605_v57, 16 }
 0x2a8   :  { %14703 = vmatprep.mubr.bf16.mxu0 %v19796_v4  ;;  %v9666_v4 = vshrl.u32 %v9605_v57, 16  ;;  %v22231_v57 = vld [vmem:[#allocation7_spill] sm:$0xff] }
 0x2a9   :  { %14912 = vmatmul.mubr.bf16.gmra.mrb[24].mxu1 %v8575_v46  ;;  %v9663_v33 = vor.u32 %v9661_v19, %v9660_v3  ;;  %v20203_v19 = vld [vmem:[#allocation2 + $0x58] sm:$0xff] }
 0x2aa   :  { %14915 = vmatprep.mubr.bf16.mxu1 %v8583_v9  ;;  %v9668_v10 = vrot.slane %v9666_v4, 7  ;;  %v20195_v9 = vld [vmem:[#allocation2 + $0x50] sm:$0xff] }
 0x2ab   :  { %v9664_v13 = vsel %vm22211_vm1, %v9656_v56, %v9663_v33  ;;  %v9611_v31 = vsel %vm22230_vm6, %v20195_v9, 0  ;;  %v15873_v56 = vld [vmem:[%s21153_s2 + $0x1e0] sm:$0xff]  }
 0x2ac   :  { %v9671_v20 = vor.u32 %v9669_v37, %v9668_v10  ;;  %v9714_v33 = vshrl.u32 %v9611_v31, 16 }
 0x2ae   :  { %v9672_v45 = vsel %vm22223_vm11, %v9660_v3, %v9671_v20  ;;  %v9700_v3 = vrot.slane %v9698_v58, 7  ;;  %v9716_v20 = vrot.slane %v9714_v33, 7  ;;  %vm22239_vm11 = vmmov %vm22226_vm3 }
 0x2af   :  { %14704 = vmatmul.mubr.bf16.gmra.mrb[72].mxu0 %v19818_v26  ;;  %v9690_v26 = vshrl.u32 %v9608_v63, 16 }
 0x2b0   :  { %14707 = vmatprep.mubr.bf16.mxu0 %v19822_v12  ;;  %v9679_v12 = vor.u32 %v9677_v24, %v19839_v47  ;;  %v22227_v47 = vld [vmem:[#allocation18_spill] sm:$0xff] }
 0x2b1   :  { %14916 = vmatmul.mubr.bf16.gmra.mrb[28].mxu1 %v8591_v41  ;;  %vm22228_vm8 = vcmp.ne.s16.totalorder %v22227_v47, 0  ;;  %v20217_v24 = vld [vmem:[#allocation2 + $0x60] sm:$0xff]  ;;  %v9717_v47 = vshll.u32 %v9611_v31, 16 }
 0x2b2   :  { %14935 = vmatprep.mubr.bf16.mxu1 %v9664_v13  ;;  %v9680_v11 = vsel %vm22226_vm3, %v9668_v10, %v9679_v12  ;;  %v9610_v28 = vsel %vm22228_vm8, %v20181_v39, 0  ;;  %v22235_v13 = vld [vmem:[#allocation144_spill] sm:$0xff]  ;;  %v9613_v12 = vsel %vm3366_vm5, %v20217_v24, 0  ;;  %vm22245_vm5 = vmmov %vm22226_vm3 }
 0x2b3   :  { %v9706_v0 = vshrl.u32 %v9610_v28, 16  ;;  %v9709_v4 = vshll.u32 %v9610_v28, 16  ;;  %v15875_v28 = vld [vmem:[%s21153_s2 + $0x1f0] sm:$0xff]   ;;  %v9733_v33 = vshll.u32 %v9613_v12, 16  ;;  %vm22252_vm8 = vmmov %vm22245_vm5 }
 0x2b7   :  { %14708 = vmatmul.mubr.bf16.gmra.mrb[76].mxu0 %v19844_v30  ;;  %v9692_v30 = vrot.slane %v9690_v26, 7 }
 0x2b8   :  { %14711 = vmatprep.mubr.bf16.mxu0 %v19849_v60  ;;  %v9693_v60 = vshll.u32 %v9608_v63, 16  ;;  %v15874_v63 = vld [vmem:[%s21153_s2 + $0x1e8] sm:$0xff]  }
 0x2b9   :  { %14936 = vmatmul.mubr.bf16.vlgmr.msra.gmra.mrb[32].mxu1 %v9672_v45 }
 0x2ba   :  { %15000 = vmatpush3.bf16.msra.mxu1 %v19662_v22  ;;  %14939 = vmatprep.mubr.bf16.mxu1 %v9680_v11  ;;  %v9695_v46 = vor.u32 %v9693_v60, %v9692_v30  ;;  %v15872_v22 = vld [vmem:[%s21153_s2 + $0x1d8] sm:$0xff]   ;;  %v9614_v11 = vsel %vm3367_vm14, %v20223_v27, 0  ;;  %v9719_v60 = vor.u32 %v9717_v47, %v9716_v20  ;;  %vm22243_vm14 = vmmov %vm22226_vm3  ;;  %v22253_v47 = vld [vmem:[#allocation39_spill] sm:$0xff] }
 0x2bb   :  { %15001 = vmatprep.subr.bf16.mxu1 %v15870_v42  ;;  %vm22254_vm6 = vcmp.ne.s16.totalorder %v22253_v47, 0 }
 0x2bc   :  { %v9696_v18 = vsel %vm22232_vm12, %v22231_v57, %v9695_v46  ;;  %v9738_v46 = vshrl.u32 %v9614_v11, 16  ;;  %v20237_v57 = vld [vmem:[#allocation2 + $0x70] sm:$0xff]  ;;  %vm22255_vm12 = vmmov %vm22245_vm5 }
 0x2be   :  { %15002 = vmatpush3.bf16.msra.mxu1 %v15870_v42 }
 0x2bf   :  { %14712 = vmatmul.mubr.bf16.gmra.mrb[80].mxu0 %v19874_v7  ;;  %15003 = vmatprep.subr.bf16.mxu1 %v15871_v53  ;;  %v9708_v7 = vrot.slane %v9706_v0, 7  ;;  %v22241_v0 = vld [vmem:[#allocation149_spill] sm:$0xff] }
 0x2c0   :  { %14715 = vmatprep.mubr.bf16.mxu0 %v19883_v62  ;;  %v22233_v62 = vld [vmem:[#allocation21_spill] sm:$0xff] }
 0x2c1   :  { %14940 = vmatmul.mubr.bf16.gmra.mrb[36].mxu1 %v19860_v16  ;;  %vm22234_vm1 = vcmp.ne.s16.totalorder %v22233_v62, 0  ;;  %v9703_v16 = vor.u32 %v9701_v54, %v9700_v3  ;;  %v9711_v41 = vor.u32 %v9709_v4, %v9708_v7  ;;  %v9720_v35 = vsel %vm22243_vm14, %v9708_v7, %v9719_v60  ;;  %v20243_v4 = vld [vmem:[#allocation2 + $0x78] sm:$0xff]  ;;  %vm22260_vm14 = vmmov %vm22245_vm5 }
 0x2c2   :  { %v9612_v6 = vsel %vm22234_vm1, %v20203_v19, 0  ;;  %14943 = vmatprep.mubr.bf16.mxu1 %v9696_v18  ;;  %15004 = vmatpush3.bf16.msra.mxu1 %v15871_v53  ;;  %v9730_v53 = vshrl.u32 %v9613_v12, 16  ;;  %v9615_v62 = vsel %vm3368_vm2, %v20237_v57, 0  ;;  %v9740_v54 = vrot.slane %v9738_v46, 7 }
 0x2c3   :  { %15005 = vmatprep.subr.bf16.mxu1 %v15872_v22  ;;  %v9722_v10 = vshrl.u32 %v9612_v6, 16  ;;  %v9704_v37 = vsel %vm22237_vm13, %v9692_v30, %v9703_v16  ;;  %v9712_v42 = vsel %vm22239_vm11, %v9700_v3, %v9711_v41  ;;  %v9725_v30 = vshll.u32 %v9612_v6, 16  ;;  %v15876_v3 = vld [vmem:[%s21153_s2 + $0x1f8] sm:$0xff]   ;;  %v20251_v41 = vld [vmem:[%s21153_s2 + $0x200] sm:$0xff]   ;;  %vm22259_vm11 = vmmov %vm22245_vm5 }
 0x2c4   :  { %v9732_v31 = vrot.slane %v9730_v53, 7  ;;  %v9741_v7 = vshll.u32 %v9614_v11, 16  ;;  %vm22250_vm2 = vsmask.f32 7424  ;;  %v20259_v11 = vld [vmem:[#allocation2 + $0x80] sm:$0xff]  ;;  %v9749_v53 = vshll.u32 %v9615_v62, 16 }
 0x2c5   :  { %v9724_v45 = vrot.slane %v9722_v10, 7  ;;  %vm22258_vm1 = vmmov %vm22250_vm2 }
 0x2c6   :  { %15006 = vmatpush3.bf16.msra.mxu1 %v15872_v22  ;;  %v22242_v22 = vld [vmem:[#allocation151_spill] sm:$0xff]  ;;  %v9735_v10 = vor.u32 %v9733_v33, %v9732_v31 }
 0x2c7   :  { %14716 = vmatmul.mubr.bf16.gmra.mrb[84].mxu0 %v22235_v13  ;;  %15007 = vmatprep.subr.bf16.mxu1 %v15873_v56  ;;  %v9727_v58 = vor.u32 %v9725_v30, %v9724_v45  ;;  %v9746_v13 = vshrl.u32 %v9615_v62, 16  ;;  %v9617_v30 = vsel %vm22254_vm6, %v20259_v11, 0 }
 0x2c8   :  { %14719 = vmatprep.mubr.bf16.mxu0 %v22236_v55  ;;  %v22248_v55 = vld [vmem:[#allocation9_spill] sm:$0xff]  ;;  %v9736_v12 = vsel %vm22252_vm8, %v9724_v45, %v9735_v10  ;;  %v22257_v45 = vld [vmem:[#allocation10_spill] sm:$0xff]  ;;  %v9762_v18 = vshrl.u32 %v9617_v30, 16  ;;  %v20273_v10 = vld [vmem:[#allocation2 + $0x90] sm:$0xff] }
 0x2c9   :  { %14944 = vmatmul.mubr.bf16.gmra.mrb[40].mxu1 %v9704_v37  ;;  %v9728_v6 = vsel %vm22245_vm5, %v9716_v20, %v9727_v58  ;;  %v9743_v20 = vor.u32 %v9741_v7, %v9740_v54  ;;  %v9748_v1 = vrot.slane %v9746_v13, 7  ;;  %v20265_v58 = vld [vmem:[#allocation2 + $0x88] sm:$0xff]  ;;  %v9765_v13 = vshll.u32 %v9617_v30, 16 }
 0x2ca   :  { %14947 = vmatprep.mubr.bf16.mxu1 %v9712_v42  ;;  %15008 = vmatpush3.bf16.msra.mxu1 %v15873_v56  ;;  %v22246_v56 = vld [vmem:[#allocation27_spill] sm:$0xff]  ;;  %v22251_v42 = vld [vmem:[#allocation146_spill] sm:$0xff] }
 0x2cb   :  { %15009 = vmatprep.subr.bf16.mxu1 %v15874_v63  ;;  %vm22247_vm9 = vcmp.ne.s16.totalorder %v22246_v56, 0 }
 0x2cc   :  { %v9616_v16 = vsel %vm22247_vm9, %v20243_v4, 0  ;;  %vm22263_vm9 = vmmov %vm22252_vm8 }
 0x2cd   :  { %v9754_v26 = vshrl.u32 %v9616_v16, 16 }
 0x2ce   :  { %15010 = vmatpush3.bf16.msra.mxu1 %v15874_v63  ;;  %v22249_v63 = vld [vmem:[#allocation29_spill] sm:$0xff] }
 0x2cf   :  { %14720 = vmatmul.mubr.bf16.gmra.mrb[88].mxu0 %v22241_v0  ;;  %15011 = vmatprep.subr.bf16.mxu1 %v15875_v28  ;;  %v9438_v37 = vsel %vm22250_vm2, %v22249_v63, %v22248_v55  ;;  %v9756_v60 = vrot.slane %v9754_v26, 7  ;;  %v9757_v0 = vshll.u32 %v9616_v16, 16  ;;  %v20276_v63 = vld [vmem:[#allocation2 + $0x98] sm:$0xff]  ;;  %vm22264_vm2 = vmmov %vm22252_vm8 }
 0x2d0   :  { %14723 = vmatprep.mubr.bf16.mxu0 %v22242_v22  ;;  %vm9585_vm3 = vcmp.ne.s16.totalorder %v9438_v37, 0  ;;  %v22256_v22 = vld [vmem:[#allocation42_spill] sm:$0xff]  ;;  %v22261_v37 = vld [vmem:[#allocation61_spill] sm:$0xff]  ;;  %vm22266_vm8 = vmmov %vm22264_vm2 }
 0x2d1   :  { %14948 = vmatmul.mubr.bf16.gmra.mrb[44].mxu1 %v9720_v35  ;;  %v9618_v46 = vsel %vm9585_vm3, %v20265_v58, 0  ;;  %v9751_v35 = vor.u32 %v9749_v53, %v9748_v1  ;;  %vm22262_vm5 = vcmp.ne.s16.totalorder %v22261_v37, 0  ;;  %vm22265_vm3 = vmmov %vm22264_vm2 }
 0x2d2   :  { %14951 = vmatprep.mubr.bf16.mxu1 %v9728_v6  ;;  %15012 = vmatpush3.bf16.msra.mxu1 %v15875_v28  ;;  %v9744_v28 = vsel %vm22255_vm12, %v9732_v31, %v9743_v20  ;;  %v9759_v6 = vor.u32 %v9757_v0, %v9756_v60  ;;  %v9770_v56 = vshrl.u32 %v9618_v46, 16  ;;  %v9764_v31 = vrot.slane %v9762_v18, 7  ;;  %vm22269_vm6 = vmmov %vm22264_vm2 }
 0x2d3   :  { %15013 = vmatprep.subr.bf16.mxu1 %v15876_v3  ;;  %v9752_v33 = vsel %vm22259_vm11, %v9740_v54, %v9751_v35  ;;  %v9620_v20 = vsel %vm22262_vm5, %v20276_v63, 0  ;;  %v9773_v26 = vshll.u32 %v9618_v46, 16  ;;  %vm22273_vm12 = vmmov %vm22258_vm1 }
 0x2d4   :  { %v9760_v62 = vsel %vm22260_vm14, %v9748_v1, %v9759_v6  ;;  %v9772_v7 = vrot.slane %v9770_v56, 7  ;;  %v9786_v47 = vshrl.u32 %v9620_v20, 16  ;;  %v22267_v6 = vld [vmem:[#allocation58_spill] sm:$0xff]  ;;  %vm22274_vm11 = vmmov %vm22264_vm2 }
 0x2d5   :  { %v9797_v56 = vshll.u32 %v22267_v6, 16  ;;  %vm22275_vm14 = vmmov %vm22264_vm2 }
 0x2d6   :  { %15014 = vmatpush3.bf16.msra.mxu1 %v15876_v3  ;;  %v9446_v3 = vsel %vm22258_vm1, %v22257_v45, %v22256_v22  ;;  %v9788_v0 = vrot.slane %v9786_v47, 7  ;;  %v9789_v22 = vshll.u32 %v9620_v20, 16 }
 0x2d7   :  { %14724 = vmatmul.mubr.bf16.gmra.mrb[92].mxu0 %v22251_v42  ;;  %15079 = vmatprep.subr.bf16.mxu1 %v20251_v41  ;;  %vm9586_vm13 = vcmp.ne.s16.totalorder %v9446_v3, 0  ;;  %v9767_v42 = vor.u32 %v9765_v13, %v9764_v31  ;;  %v22271_v13 = vld [vmem:[#allocation142_spill] sm:$0xff] }
 0x2d8   :  { %v9619_v16 = vsel %vm9586_vm13, %v20273_v10, 0  ;;  %v9791_v35 = vor.u32 %v9789_v22, %v9788_v0  ;;  %vm9602_vm13 = vcmp.ne.s16.totalorder %v22257_v45, 0 }
 0x2d9   :  { %14952 = vmatmul.mubr.bf16.gmra.mrb[48].mxu1 %v9736_v12  ;;  %v9778_v54 = vshrl.u32 %v9619_v16, 16  ;;  %v9775_v12 = vor.u32 %v9773_v26, %v9772_v7  ;;  %v9768_v1 = vsel %vm22263_vm9, %v9756_v60, %v9767_v42  ;;  %v9781_v30 = vshll.u32 %v9619_v16, 16 }
 0x2da   :  { %14955 = vmatprep.mubr.bf16.mxu1 %v9744_v28 }
 0x2db   :  { %v9780_v28 = vrot.slane %v9778_v54, 7  ;;  %v9776_v53 = vsel %vm22264_vm2, %v9764_v31, %v9775_v12  ;;  %v22270_v31 = vld [vmem:[#allocation148_spill] sm:$0xff] }
 0x2dd   :  { %v9783_v3 = vor.u32 %v9781_v30, %v9780_v28  ;;  %v9792_v46 = vsel %vm22266_vm8, %v9780_v28, %v9791_v35  ;;  %v15881_v35 = vld [vmem:[%s21153_s2 + $0x220] sm:$0xff]  }
 0x2df   :  { %v9784_v18 = vsel %vm22265_vm3, %v9772_v7, %v9783_v3  ;;  %v22272_v7 = vld [vmem:[#allocation124_spill] sm:$0xff] }
 0x2e0   :  { %v9566_v16 = vsel %vm22273_vm12, %v22272_v7, %v22248_v55 }
 0x2e1   :  { %14956 = vmatmul.mubr.bf16.gmra.mrb[52].mxu1 %v9752_v33  ;;  %v22268_v33 = vld [vmem:[#allocation13_spill] sm:$0xff]  ;;  %vm9601_vm1 = vcmp.ne.s16.totalorder %v9566_v16, 0 }
 0x2e2   :  { %14959 = vmatprep.mubr.bf16.mxu1 %v9760_v62  ;;  %v9799_v60 = vor.u32 %v9797_v56, %v22268_v33  ;;  %v9634_v37 = vsel %vm9601_vm1, %v20127_v32, 0  ;;  %v15883_v33 = vld [vmem:[%s21153_s2 + $0x230] sm:$0xff]  }
 0x2e4   :  { %v9800_v62 = vsel %vm22269_vm6, %v9788_v0, %v9799_v60  ;;  %vm22319_vm6 = vmmov %vm22273_vm12 }
 0x2e9   :  { %14960 = vmatmul.mubr.bf16.gmra.mrb[56].mxu1 %v9768_v1  ;;  %v15968_v1 = vld [vmem:[#allocation2 + $0x28] sm:$0xff] }
 0x2ea   :  { %14963 = vmatprep.mubr.bf16.mxu1 %v9776_v53  ;;  %v15879_v53 = vld [vmem:[%s21153_s2 + $0x210] sm:$0xff]  }
 0x2f1   :  { %14964 = vmatmul.mubr.bf16.gmra.mrb[60].mxu1 %v9784_v18 }
 0x2f2   :  { %14967 = vmatprep.mubr.bf16.mxu1 %v9792_v46  ;;  %v15882_v46 = vld [vmem:[%s21153_s2 + $0x228] sm:$0xff]  }
 0x2f9   :  { %14968 = vmatmul.mubr.bf16.gmra.mrb[0].mxu1 %v9800_v62 }
 0x2fa   :  { %14971 = vmatprep.mubr.bf16.mxu1 %v22270_v31 }
 0x301   :  { %14972 = vmatmul.mubr.bf16.gmra.mrb[4].mxu1 %v22271_v13 }
 0x302   :  { %14975 = vmatprep.mubr.bf16.mxu1 %v20040_v51  ;;  %v9898_v51 = vshrl.u32 %v9634_v37, 16 }
 0x309   :  { %14976 = vmatmul.mubr.bf16.gmra.mrb[8].mxu1 %v20050_v44  ;;  %v9900_v44 = vrot.slane %v9898_v51, 7 }
 0x30a   :  { %14979 = vmatprep.mubr.bf16.mxu1 %v20053_v40  ;;  %v20303_v40 = vld [vmem:[#allocation2 + $0x8] sm:$0xff] }
 0x311   :  { %14980 = vmatmul.mubr.bf16.gmra.mrb[12].mxu1 %v20059_v36  ;;  %v9635_v36 = vsel %vm9602_vm13, %v20303_v40, 0  ;;  %vm22324_vm13 = vmmov %vm22319_vm6 }
 0x312   :  { %14983 = vmatprep.mubr.bf16.mxu1 %v20064_v43  ;;  %v9901_v43 = vshll.u32 %v9634_v37, 16  ;;  %v9906_v55 = vshrl.u32 %v9635_v36, 16  ;;  %v9909_v26 = vshll.u32 %v9635_v36, 16 }
 0x314   :  { %v9903_v20 = vor.u32 %v9901_v43, %v9900_v44  ;;  %v22308_v43 = vld [vmem:[#allocation6_spill] sm:$0xff] }
 0x315   :  { %vm22309_vm5 = vcmp.ne.s16.totalorder %v22308_v43, 0  ;;  %v22320_v43 = vld [vmem:[#allocation54_spill] sm:$0xff] }
 0x316   :  { %vm22321_vm12 = vcmp.ne.s16.totalorder %v22320_v43, 0  ;;  %v22326_v43 = vld [vmem:[#allocation101_spill] sm:$0xff] }
 0x319   :  { %14984 = vmatmul.mubr.bf16.gmra.mrb[16].mxu1 %v20067_v52  ;;  %v9908_v52 = vrot.slane %v9906_v55, 7 }
 0x31a   :  { %14987 = vmatprep.mubr.bf16.mxu1 %v20076_v25  ;;  %v9904_v25 = vsel %vm22274_vm11, %v20078_v50, %v9903_v20  ;;  %v15878_v50 = vld [vmem:[%s21153_s2 + $0x208] sm:$0xff]   ;;  %vm22325_vm11 = vmmov %vm22319_vm6 }
 0x31b   :  { %v9911_v45 = vor.u32 %v9909_v26, %v9908_v52  ;;  %v15970_v52 = vld [vmem:[#allocation2 + $0xa0] sm:$0xff] }
 0x321   :  { %14988 = vmatmul.mubr.bf16.gmra.mrb[20].mxu1 %v20084_v23  ;;  %v9912_v23 = vsel %vm22275_vm14, %v9900_v44, %v9911_v45  ;;  %vm22327_vm14 = vcmp.ne.s16.totalorder %v22326_v43, 0  ;;  %v22332_v43 = vld [vmem:[#allocation129_spill] sm:$0xff] }
 0x322   :  { %14991 = vmatprep.mubr.bf16.mxu1 %v20102_v17 }
 0x329   :  { %14992 = vmatmul.mubr.bf16.gmra.mrb[24].mxu1 %v20111_v2 }
 0x32a   :  { %14995 = vmatprep.mubr.bf16.mxu1 %v9904_v25  ;;  %v20311_v42 = vpop.f32.mrb[96].mxu0  ;;  %v15971_v25 = vld [vmem:[#allocation2 + $0xa8] sm:$0xff] }
 0x32b   :  { %v20316_v17 = vpop.f32.mrb[97].mxu0 }
 0x32c   :  { %22277 = vst [vmem:[#allocation156_spill] sm:$0xff] %v20316_v17  ;;  %v20318_v12 = vpop.f32.mrb[98].mxu0 }
 0x32d   :  { %22278 = vst [vmem:[#allocation100_spill] sm:$0xff] %v20318_v12  ;;  %v20320_v47 = vpop.f32.mrb[99].mxu0 }
 0x32e   :  { %22279 = vst [vmem:[#allocation158_spill] sm:$0xff] %v20320_v47  ;;  %v22356_v47 = vld [vmem:[#allocation11_spill] sm:$0xff] }
 0x331   :  { %14996 = vmatmul.mubr.bf16.gmra.mrb[28].mxu1 %v9912_v23  ;;  %v15972_v23 = vld [vmem:[#allocation2 + $0xb0] sm:$0xff] }
 0x332   :  { %15015 = vmatprep.mubr.msk.bf16.mxu1 %vm16585_vm4, %v20140_v59  ;;  %v20328_v2 = vpop.f32.mrb[100].mxu0 }
 0x333   :  { %22280 = vst [vmem:[#allocation152_spill] sm:$0xff] %v20328_v2  ;;  %v20333_v59 = vpop.f32.mrb[101].mxu0 }
 0x334   :  { %22281 = vst [vmem:[#allocation127_spill] sm:$0xff] %v20333_v59  ;;  %v20335_v28 = vpop.f32.mrb[102].mxu0 }
 0x335   :  { %22282 = vst [vmem:[#allocation139_spill] sm:$0xff] %v20335_v28  ;;  %v20340_v0 = vpop.f32.mrb[103].mxu0 }
 0x336   :  { %22283 = vst [vmem:[#allocation159_spill] sm:$0xff] %v20340_v0  ;;  %v22322_v0 = vld [vmem:[#allocation81_spill] sm:$0xff] }
 0x337   :  { %vm22323_vm1 = vcmp.ne.s16.totalorder %v22322_v0, 0  ;;  %v11059_v0 = vld [vmem:[#allocation2 + $0x50] sm:$0xff] }
 0x339   :  { %15016 = vmatmul.mubr.msk.bf16.vlgmr.msra.gmra.mrb[32].mxu1 %vm16585_vm4, %v20153_v49  ;;  %v15880_v49 = vld [vmem:[%s21153_s2 + $0x218] sm:$0xff]  }
 0x33a   :  { %15080 = vmatpush3.bf16.msra.mxu1 %v20251_v41  ;;  %15019 = vmatprep.mubr.msk.bf16.mxu1 %vm16585_vm4, %v15968_v1  ;;  %v15969_v41 = vld [vmem:[#allocation2 + $0x30] sm:$0xff]  ;;  %v20347_v30 = vpop.f32.mrb[104].mxu0  ;;  %v15973_v1 = vld [vmem:[#allocation2 + $0xb8] sm:$0xff] }
 0x33b   :  { %15081 = vmatprep.subr.bf16.mxu1 %v15878_v50  ;;  %22284 = vst [vmem:[#allocation153_spill] sm:$0xff] %v20347_v30  ;;  %v20352_v22 = vpop.f32.mrb[105].mxu0  ;;  %v15887_v30 = vld [vmem:[%s21154_s3 + $0x10] sm:$0xff]  }
 0x33c   :  { %22285 = vst [vmem:[#allocation160_spill] sm:$0xff] %v20352_v22  ;;  %v20354_v3 = vpop.f32.mrb[106].mxu0 }
 0x33d   :  { %22286 = vst [vmem:[#allocation154_spill] sm:$0xff] %v20354_v3  ;;  %v20359_v18 = vpop.f32.mrb[107].mxu0 }
 0x33e   :  { %15082 = vmatpush3.bf16.msra.mxu1 %v15878_v50  ;;  %22287 = vst [vmem:[#allocation155_spill] sm:$0xff] %v20359_v18 }
 0x33f   :  { %15083 = vmatprep.subr.bf16.mxu1 %v15879_v53 }
 0x341   :  { %15020 = vmatmul.mubr.msk.bf16.gmra.mrb[36].mxu1 %vm16585_vm4, %v15969_v41 }
 0x342   :  { %15023 = vmatprep.mubr.msk.bf16.mxu1 %vm16585_vm4, %v20162_v29  ;;  %15084 = vmatpush3.bf16.msra.mxu1 %v15879_v53  ;;  %v20367_v29 = vpop.f32.mrb[108].mxu0 }
 0x343   :  { %15085 = vmatprep.subr.bf16.mxu1 %v15880_v49  ;;  %22288 = vst [vmem:[#allocation161_spill] sm:$0xff] %v20367_v29  ;;  %v20372_v6 = vpop.f32.mrb[109].mxu0  ;;  %v22316_v29 = vld [vmem:[#allocation41_spill] sm:$0xff] }
 0x344   :  { %22289 = vst [vmem:[#allocation157_spill] sm:$0xff] %v20372_v6  ;;  %v20374_v56 = vpop.f32.mrb[110].mxu0  ;;  %vm22317_vm8 = vcmp.ne.s16.totalorder %v22316_v29, 0 }
 0x345   :  { %22290 = vst [vmem:[#allocation162_spill] sm:$0xff] %v20374_v56  ;;  %v20379_v60 = vpop.f32.mrb[111].mxu0 }
 0x346   :  { %15086 = vmatpush3.bf16.msra.mxu1 %v15880_v49  ;;  %22291 = vst [vmem:[#allocation36_spill] sm:$0xff] %v20379_v60 }
 0x347   :  { %15087 = vmatprep.subr.bf16.mxu1 %v15881_v35 }
 0x349   :  { %15024 = vmatmul.mubr.msk.bf16.gmra.mrb[40].mxu1 %vm16585_vm4, %v20175_v48  ;;  %v15884_v48 = vld [vmem:[%s21153_s2 + $0x238] sm:$0xff]  }
 0x34a   :  { %15027 = vmatprep.mubr.msk.bf16.mxu1 %vm16585_vm4, %v20181_v39  ;;  %15088 = vmatpush3.bf16.msra.mxu1 %v15881_v35  ;;  %v15974_v35 = vld [vmem:[#allocation2 + $0xc0] sm:$0xff] }
 0x34b   :  { %15089 = vmatprep.subr.bf16.mxu1 %v15882_v46 }
 0x34e   :  { %15090 = vmatpush3.bf16.msra.mxu1 %v15882_v46 }
 0x34f   :  { %15091 = vmatprep.subr.bf16.mxu1 %v15883_v33  ;;  %v20387_v39 = vpop.f32.mrb[112].mxu0 }
 0x350   :  { %22292 = vst [vmem:[#allocation105_spill] sm:$0xff] %v20387_v39  ;;  %v20392_v62 = vpop.f32.mrb[113].mxu0  ;;  %v11055_v39 = vld [vmem:[#allocation2 + $0x30] sm:$0xff] }
 0x351   :  { %15028 = vmatmul.mubr.msk.bf16.gmra.mrb[44].mxu1 %vm16585_vm4, %v20195_v9  ;;  %22293 = vst [vmem:[#allocation99_spill] sm:$0xff] %v20392_v62  ;;  %v20394_v31 = vpop.f32.mrb[114].mxu0  ;;  %v11664_v18 = vsel %vm22317_vm8, %v11055_v39, 0 }
 0x352   :  { %15031 = vmatprep.mubr.msk.bf16.mxu1 %vm16585_vm4, %v20203_v19  ;;  %15092 = vmatpush3.bf16.msra.mxu1 %v15883_v33  ;;  %22294 = vst [vmem:[#allocation20_spill] sm:$0xff] %v20394_v31  ;;  %v20396_v13 = vpop.f32.mrb[115].mxu0  ;;  %v15975_v33 = vld [vmem:[#allocation2 + $0xc8] sm:$0xff]  ;;  %v11735_v54 = vshll.u32 %v11664_v18, 16 }
 0x353   :  { %15093 = vmatprep.subr.bf16.mxu1 %v15884_v48  ;;  %22295 = vst [vmem:[#allocation59_spill] sm:$0xff] %v20396_v13 }
 0x356   :  { %15094 = vmatpush3.bf16.msra.mxu1 %v15884_v48 }
 0x357   :  { %v20401_v9 = vpop.f32.mrb[116].mxu0 }
 0x358   :  { %22296 = vst [vmem:[#allocation72_spill] sm:$0xff] %v20401_v9  ;;  %v20406_v19 = vpop.f32.mrb[117].mxu0  ;;  %v22312_v9 = vld [vmem:[#allocation19_spill] sm:$0xff] }
 0x359   :  { %15032 = vmatmul.mubr.msk.bf16.gmra.mrb[48].mxu1 %vm16585_vm4, %v20217_v24  ;;  %22297 = vst [vmem:[#allocation79_spill] sm:$0xff] %v20406_v19  ;;  %v20408_v7 = vpop.f32.mrb[118].mxu0  ;;  %vm22313_vm2 = vcmp.ne.s16.totalorder %v22312_v9, 0  ;;  %v22314_v9 = vld [vmem:[#allocation37_spill] sm:$0xff] }
 0x35a   :  { %15035 = vmatprep.mubr.msk.bf16.mxu1 %vm16585_vm4, %v20223_v27  ;;  %22298 = vst [vmem:[#allocation87_spill] sm:$0xff] %v20408_v7  ;;  %v20410_v16 = vpop.f32.mrb[119].mxu0  ;;  %vm22315_vm3 = vcmp.ne.s16.totalorder %v22314_v9, 0 }
 0x35b   :  { %22299 = vst [vmem:[#allocation89_spill] sm:$0xff] %v20410_v16  ;;  %v22310_v16 = vld [vmem:[#allocation163_spill] sm:$0xff] }
 0x35c   :  { %vm22311_vm9 = vcmp.ne.s16.totalorder %v22310_v16, 0 }
 0x361   :  { %15036 = vmatmul.mubr.msk.bf16.gmra.mrb[52].mxu1 %vm16585_vm4, %v20237_v57  ;;  %v20415_v37 = vpop.f32.mrb[120].mxu0 }
 0x362   :  { %22300 = vst [vmem:[#allocation93_spill] sm:$0xff] %v20415_v37  ;;  %15039 = vmatprep.mubr.msk.bf16.mxu1 %vm16585_vm4, %v20243_v4  ;;  %v20420_v24 = vpop.f32.mrb[121].mxu0 }
 0x363   :  { %22301 = vst [vmem:[#allocation94_spill] sm:$0xff] %v20420_v24  ;;  %v20422_v51 = vpop.f32.mrb[122].mxu0 }
 0x364   :  { %22302 = vst [vmem:[#allocation97_spill] sm:$0xff] %v20422_v51  ;;  %v20424_v27 = vpop.f32.mrb[123].mxu0  ;;  %v11052_v51 = vld [vmem:[#allocation2 + $0x18] sm:$0xff] }
 0x365   :  { %22303 = vst [vmem:[#allocation109_spill] sm:$0xff] %v20424_v27  ;;  %v11661_v7 = vsel %vm22311_vm9, %v11052_v51, 0  ;;  %vm22330_vm9 = vmmov %vm22319_vm6 }
 0x366   :  { %v11714_v13 = vshll.u32 %v11661_v7, 16 }
 0x368   :  { %v11716_v51 = vrot.slane %v11714_v13, 1  ;;  %v11056_v13 = vld [vmem:[#allocation2 + $0x38] sm:$0xff] }
 0x369   :  { %15040 = vmatmul.mubr.msk.bf16.gmra.mrb[56].mxu1 %vm16585_vm4, %v20259_v11  ;;  %v11665_v9 = vsel %vm22321_vm12, %v11056_v13, 0 }
 0x36a   :  { %v20429_v44 = vpop.f32.mrb[124].mxu0  ;;  %15043 = vmatprep.mubr.msk.bf16.mxu1 %vm16585_vm4, %v20265_v58 }
 0x36b   :  { %22304 = vst [vmem:[#allocation113_spill] sm:$0xff] %v20429_v44  ;;  %v20434_v57 = vpop.f32.mrb[125].mxu0 }
 0x36c   :  { %22305 = vst [vmem:[#allocation114_spill] sm:$0xff] %v20434_v57  ;;  %v20436_v36 = vpop.f32.mrb[126].mxu0  ;;  %v15978_v57 = vld [vmem:[#allocation2 + $0xe0] sm:$0xff] }
 0x36d   :  { %22306 = vst [vmem:[#allocation122_spill] sm:$0xff] %v20436_v36  ;;  %v20438_v4 = vpop.f32.mrb[127].mxu0 }
 0x36e   :  { %22307 = vst [vmem:[#allocation46_spill] sm:$0xff] %v20438_v4  ;;  %v15977_v4 = vld [vmem:[#allocation2 + $0xd8] sm:$0xff] }
 0x371   :  { %15044 = vmatmul.mubr.msk.bf16.gmra.mrb[60].mxu1 %vm22309_vm5, %v20273_v10 }
 0x372   :  { %v20443_v55 = vpop.f32.mrb[64].mxu0  ;;  %15047 = vmatprep.mubr.msk.bf16.mxu1 %vm16585_vm4, %v20276_v63 }
 0x373   :  { %v20448_v11 = vpop.f32.mrb[65].mxu0 }
 0x374   :  { %v20450_v20 = vpop.f32.mrb[66].mxu0 }
 0x375   :  { %v20452_v58 = vpop.f32.mrb[67].mxu0 }
 0x379   :  { %15048 = vmatmul.mubr.msk.bf16.gmra.mrb[0].mxu1 %vm16585_vm4, %v15970_v52 }
 0x37a   :  { %v20456_v26 = vpop.f32.mrb[68].mxu0  ;;  %15051 = vmatprep.mubr.msk.bf16.mxu1 %vm16585_vm4, %v15971_v25 }
 0x37b   :  { %v20460_v10 = vpop.f32.mrb[69].mxu0 }
 0x37c   :  { %v20462_v45 = vpop.f32.mrb[70].mxu0 }
 0x37d   :  { %v20464_v63 = vpop.f32.mrb[71].mxu0 }
 0x381   :  { %15052 = vmatmul.mubr.msk.bf16.gmra.mrb[4].mxu1 %vm16585_vm4, %v15972_v23  ;;  %v15976_v23 = vld [vmem:[#allocation2 + $0xd0] sm:$0xff] }
 0x382   :  { %v20468_v50 = vpop.f32.mrb[72].mxu0  ;;  %15055 = vmatprep.mubr.msk.bf16.mxu1 %vm16585_vm4, %v15973_v1 }
 0x383   :  { %v20472_v53 = vpop.f32.mrb[73].mxu0 }
 0x384   :  { %v20474_v49 = vpop.f32.mrb[74].mxu0 }
 0x385   :  { %v20476_v41 = vpop.f32.mrb[75].mxu0 }
 0x389   :  { %15056 = vmatmul.mubr.msk.bf16.gmra.mrb[8].mxu1 %vm16585_vm4, %v15974_v35 }
 0x38a   :  { %v20480_v46 = vpop.f32.mrb[76].mxu0  ;;  %15059 = vmatprep.mubr.msk.bf16.mxu1 %vm16585_vm4, %v15975_v33 }
 0x38b   :  { %v20484_v48 = vpop.f32.mrb[77].mxu0 }
 0x38c   :  { %v20486_v52 = vpop.f32.mrb[78].mxu0 }
 0x38d   :  { %v20488_v25 = vpop.f32.mrb[79].mxu0 }
 0x391   :  { %15060 = vmatmul.mubr.msk.bf16.gmra.mrb[12].mxu1 %vm16585_vm4, %v15976_v23 }
 0x392   :  { %v20492_v1 = vpop.f32.mrb[80].mxu0  ;;  %15063 = vmatprep.mubr.msk.bf16.mxu1 %vm16585_vm4, %v15977_v4 }
 0x393   :  { %v20496_v35 = vpop.f32.mrb[81].mxu0 }
 0x394   :  { %v20498_v36 = vpop.f32.mrb[82].mxu0 }
 0x395   :  { %v20500_v33 = vpop.f32.mrb[83].mxu0 }
 0x399   :  { %15064 = vmatmul.mubr.msk.bf16.gmra.mrb[16].mxu1 %vm16585_vm4, %v15978_v57 }
 0x39a   :  { %v20504_v44 = vpop.f32.mrb[84].mxu0  ;;  %15067 = vmatprep.mubr.msk.bf16.mxu1 %vm16585_vm4, %v19916_v5  ;;  %v11053_v5 = vld [vmem:[#allocation2 + $0x20] sm:$0xff] }
 0x39b   :  { %v20509_v23 = vpop.f32.mrb[85].mxu0 }
 0x39c   :  { %v20511_v27 = vpop.f32.mrb[86].mxu0 }
 0x39d   :  { %v20513_v4 = vpop.f32.mrb[87].mxu0 }
 0x3a1   :  { %15068 = vmatmul.mubr.msk.bf16.gmra.mrb[20].mxu1 %vm16585_vm4, %v19946_v38  ;;  %v11662_v38 = vsel %vm22313_vm2, %v11053_v5, 0  ;;  %vm22331_vm2 = vmmov %vm22319_vm6 }
 0x3a2   :  { %v20518_v24 = vpop.f32.mrb[88].mxu0  ;;  %15071 = vmatprep.mubr.msk.bf16.mxu1 %vm16585_vm4, %v19964_v21  ;;  %v11719_v31 = vshll.u32 %v11662_v38, 16  ;;  %v11054_v21 = vld [vmem:[#allocation2 + $0x28] sm:$0xff]  ;;  %v11723_v29 = vshrl.u32 %v11662_v38, 16 }
 0x3a3   :  { %v20523_v57 = vpop.f32.mrb[89].mxu0  ;;  %v11663_v5 = vsel %vm22315_vm3, %v11054_v21, 0  ;;  %v15885_v21 = vld [vmem:[%s21154_s3] sm:$0xff]   ;;  %vm22333_vm3 = vcmp.ne.s16.totalorder %v22332_v43, 0 }
 0x3a4   :  { %v20525_v37 = vpop.f32.mrb[90].mxu0  ;;  %v11721_v6 = vrot.slane %v11719_v31, 1  ;;  %v11727_v22 = vshll.u32 %v11663_v5, 16  ;;  %v15886_v31 = vld [vmem:[%s21154_s3 + $0x8] sm:$0xff]   ;;  %15159 = vmatprep.subr.bf16.mxu0 %v15885_v21 }
 0x3a5   :  { %v20529_v19 = vpop.f32.mrb[91].mxu0  ;;  %15160 = vmatpush3.bf16.msra.mxu0 %v15885_v21  ;;  %v11058_v21 = vld [vmem:[#allocation2 + $0x48] sm:$0xff] }
 0x3a6   :  { %v11729_v39 = vrot.slane %v11727_v22, 1  ;;  %15161 = vmatprep.subr.bf16.mxu0 %v15886_v31 }
 0x3a9   :  { %15072 = vmatmul.mubr.msk.bf16.gmra.mrb[24].mxu1 %vm16585_vm4, %v19995_v61  ;;  %v11712_v61 = vshrl.u32 %v11661_v7, 16  ;;  %v11057_v7 = vld [vmem:[#allocation2 + $0x40] sm:$0xff]  ;;  %15162 = vmatpush3.bf16.msra.mxu0 %v15886_v31  ;;  %v11747_v31 = vshrl.u32 %v11665_v9, 16 }
 0x3aa   :  { %v20536_v62 = vpop.f32.mrb[92].mxu0  ;;  %15075 = vmatprep.mubr.msk.bf16.mxu1 %vm16585_vm4, %v20127_v32  ;;  %vm22318_vm4 = vmmov %vm22309_vm5  ;;  %v11666_v28 = vsel %vm22323_vm1, %v11057_v7, 0  ;;  %15163 = vmatprep.subr.bf16.mxu0 %v15887_v30 }
 0x3ab   :  { %v20541_v16 = vpop.f32.mrb[93].mxu0  ;;  %v11717_v3 = vor.u32 %v11716_v51, %v11712_v61  ;;  %v11725_v51 = vor.u32 %v11723_v29, %v11721_v6  ;;  %v11737_v61 = vrot.slane %v11735_v54, 1  ;;  %v11751_v13 = vshll.u32 %v11666_v28, 16 }
 0x3ac   :  { %v20543_v60 = vpop.f32.mrb[94].mxu0  ;;  %v11739_v54 = vshrl.u32 %v11664_v18, 16 }
 0x3ad   :  { %v20547_v56 = vpop.f32.mrb[95].mxu0  ;;  %v11722_v32 = vsel %vm22319_vm6, %v11717_v3, %v11721_v6  ;;  %v11731_v3 = vshrl.u32 %v11663_v5, 16  ;;  %v11730_v22 = vsel %vm22324_vm13, %v11725_v51, %v11729_v39  ;;  %v15888_v5 = vld [vmem:[%s21154_s3 + $0x18] sm:$0xff]   ;;  %15164 = vmatpush3.bf16.msra.mxu0 %v15887_v30  ;;  %v15889_v51 = vld [vmem:[%s21154_s3 + $0x20] sm:$0xff]   ;;  %vm22337_vm6 = vmmov %vm22331_vm2 }
 0x3ae   :  { %v11741_v7 = vor.u32 %v11739_v54, %v11737_v61  ;;  %15165 = vmatprep.subr.bf16.mxu0 %v15888_v5  ;;  %v11060_v30 = vld [vmem:[#allocation2 + $0x58] sm:$0xff]  ;;  %v11061_v54 = vld [vmem:[#allocation2 + $0x60] sm:$0xff]  ;;  %vm22342_vm13 = vmmov %vm22331_vm2 }
 0x3af   :  { %v11733_v38 = vor.u32 %v11731_v3, %v11729_v39  ;;  %v11667_v3 = vsel %vm22327_vm14, %v11058_v21, 0  ;;  %v11753_v39 = vrot.slane %v11751_v13, 1  ;;  %v11755_v13 = vshrl.u32 %v11666_v28, 16 }
 0x3b1   :  { %15076 = vmatmul.mubr.msk.bf16.gmra.mrb[28].mxu1 %vm22318_vm4, %v20303_v40  ;;  %v11738_v6 = vsel %vm22325_vm11, %v11733_v38, %v11737_v61  ;;  %v22328_v38 = vld [vmem:[#allocation107_spill] sm:$0xff]  ;;  %15166 = vmatpush3.bf16.msra.mxu0 %v15888_v5  ;;  %v11763_v5 = vshrl.u32 %v11667_v3, 16  ;;  %vm22336_vm4 = vmmov %vm22331_vm2 }
 0x3b2   :  { %15095 = vmatprep.mubr.bf16.mxu1 %v11722_v32  ;;  %v11743_v32 = vshll.u32 %v11665_v9, 16  ;;  %vm22329_vm5 = vcmp.ne.s16.totalorder %v22328_v38, 0  ;;  %15167 = vmatprep.subr.bf16.mxu0 %v15889_v51  ;;  %v15890_v9 = vld [vmem:[%s21154_s3 + $0x28] sm:$0xff]   ;;  %vm22343_vm11 = vmmov %vm22331_vm2 }
 0x3b4   :  { %v11745_v29 = vrot.slane %v11743_v32, 1 }
 0x3b5   :  { %15168 = vmatpush3.bf16.msra.mxu0 %v15889_v51  ;;  %v11063_v51 = vld [vmem:[#allocation2 + $0x70] sm:$0xff] }
 0x3b6   :  { %v11749_v59 = vor.u32 %v11747_v31, %v11745_v29  ;;  %v11746_v18 = vsel %vm22330_vm9, %v11741_v7, %v11745_v29  ;;  %v11669_v31 = vsel %vm22333_vm3, %v11060_v30, 0  ;;  %15169 = vmatprep.subr.bf16.mxu0 %v15890_v9  ;;  %vm22348_vm9 = vmmov %vm22331_vm2 }
 0x3b7   :  { %v11779_v43 = vshrl.u32 %v11669_v31, 16  ;;  %vm22352_vm3 = vmmov %vm22336_vm4 }
 0x3b8   :  { %v11754_v61 = vsel %vm22331_vm2, %v11749_v59, %v11753_v39  ;;  %v22334_v59 = vld [vmem:[#allocation8_spill] sm:$0xff]  ;;  %vm22351_vm2 = vsmask.f32 256 }
 0x3b9   :  { %15096 = vmatmul.mubr.bf16.vlgmr.msra.gmra.mrb[32].mxu1 %v11730_v22  ;;  %v11668_v22 = vsel %vm22329_vm5, %v11059_v0, 0  ;;  %v11757_v0 = vor.u32 %v11755_v13, %v11753_v39  ;;  %vm22335_vm8 = vcmp.ne.s16.totalorder %v22334_v59, 0  ;;  %15170 = vmatpush3.bf16.msra.mxu0 %v15890_v9  ;;  %v11062_v39 = vld [vmem:[#allocation2 + $0x68] sm:$0xff] }
 0x3ba   :  { %15099 = vmatprep.mubr.bf16.mxu1 %v11738_v6  ;;  %v11759_v6 = vshll.u32 %v11667_v3, 16  ;;  %v11767_v32 = vshll.u32 %v11668_v22, 16  ;;  %v11670_v7 = vsel %vm22335_vm8, %v11061_v54, 0 }
 0x3bc   :  { %v11761_v21 = vrot.slane %v11759_v6, 1  ;;  %v11769_v29 = vrot.slane %v11767_v32, 1  ;;  %v11783_v6 = vshll.u32 %v11670_v7, 16  ;;  %v22338_v32 = vld [vmem:[#allocation130_spill] sm:$0xff] }
 0x3bd   :  { %vm22339_vm12 = vcmp.ne.s16.totalorder %v22338_v32, 0 }
 0x3be   :  { %v11765_v38 = vor.u32 %v11763_v5, %v11761_v21  ;;  %v11762_v2 = vsel %vm22336_vm4, %v11757_v0, %v11761_v21  ;;  %v11671_v13 = vsel %vm22339_vm12, %v11062_v39, 0  ;;  %v11785_v54 = vrot.slane %v11783_v6, 1  ;;  %v22340_v5 = vld [vmem:[#allocation138_spill] sm:$0xff]  ;;  %v22344_v39 = vld [vmem:[#allocation135_spill] sm:$0xff]  ;;  %vm22358_vm12 = vmmov %vm22352_vm3 }
 0x3bf   :  { %vm22341_vm1 = vcmp.ne.s16.totalorder %v22340_v5, 0  ;;  %v11791_v9 = vshll.u32 %v11671_v13, 16  ;;  %vm22345_vm14 = vcmp.ne.s16.totalorder %v22344_v39, 0  ;;  %v11795_v6 = vshrl.u32 %v11671_v13, 16 }
 0x3c0   :  { %v11770_v28 = vsel %vm22337_vm6, %v11765_v38, %v11769_v29  ;;  %v11672_v59 = vsel %vm22341_vm1, %v11063_v51, 0  ;;  %v22346_v51 = vld [vmem:[#allocation90_spill] sm:$0xff]  ;;  %vm22357_vm6 = vmmov %vm22351_vm2 }
 0x3c1   :  { %15100 = vmatmul.mubr.bf16.gmra.mrb[36].mxu1 %v11746_v18  ;;  %v11775_v18 = vshll.u32 %v11669_v31, 16  ;;  %v11799_v38 = vshll.u32 %v11672_v59, 16  ;;  %vm22347_vm5 = vcmp.ne.s16.totalorder %v22346_v51, 0  ;;  %v22355_v51 = vld [vmem:[#allocation53_spill] sm:$0xff]  ;;  %vm22359_vm1 = vmmov %vm22352_vm3 }
 0x3c2   :  { %15103 = vmatprep.mubr.bf16.mxu1 %v11754_v61  ;;  %v11771_v61 = vshrl.u32 %v11668_v22, 16  ;;  %v11064_v22 = vld [vmem:[#allocation2 + $0x78] sm:$0xff] }
 0x3c3   :  { %v11777_v30 = vrot.slane %v11775_v18, 1  ;;  %v11787_v18 = vshrl.u32 %v11670_v7, 16  ;;  %v11673_v31 = vsel %vm22345_vm14, %v11064_v22, 0  ;;  %v11801_v32 = vrot.slane %v11799_v38, 1  ;;  %v11067_v38 = vld [vmem:[#allocation2 + $0x90] sm:$0xff]  ;;  %vm22362_vm14 = vmmov %vm22359_vm1 }
 0x3c4   :  { %v11773_v3 = vor.u32 %v11771_v61, %v11769_v29  ;;  %v11793_v29 = vrot.slane %v11791_v9, 1  ;;  %v11066_v9 = vld [vmem:[#allocation2 + $0x88] sm:$0xff]  ;;  %v11803_v22 = vshrl.u32 %v11672_v59, 16 }
 0x3c5   :  { %v11781_v21 = vor.u32 %v11779_v43, %v11777_v30  ;;  %v11789_v61 = vor.u32 %v11787_v18, %v11785_v54 }
 0x3c6   :  { %v11797_v5 = vor.u32 %v11795_v6, %v11793_v29  ;;  %v11805_v18 = vor.u32 %v11803_v22, %v11801_v32  ;;  %v11811_v6 = vshrl.u32 %v11673_v31, 16 }
 0x3c7   :  { %v11786_v0 = vsel %vm22343_vm11, %v11781_v21, %v11785_v54  ;;  %v22349_v21 = vld [vmem:[#allocation14_spill] sm:$0xff] }
 0x3c8   :  { %v11802_v7 = vsel %vm22352_vm3, %v11797_v5, %v11801_v32  ;;  %vm22368_vm3 = vmmov %vm22359_vm1 }
 0x3c9   :  { %15104 = vmatmul.mubr.bf16.gmra.mrb[40].mxu1 %v11762_v2  ;;  %v11778_v2 = vsel %vm22342_vm13, %v11773_v3, %v11777_v30  ;;  %v11807_v30 = vshll.u32 %v11673_v31, 16  ;;  %v11794_v3 = vsel %vm22348_vm9, %v11789_v61, %v11793_v29  ;;  %v11069_v31 = vld [vmem:[#allocation2 + $0xa0] sm:$0xff] }
 0x3ca   :  { %15107 = vmatprep.mubr.bf16.mxu1 %v11770_v28  ;;  %v11065_v28 = vld [vmem:[#allocation2 + $0x80] sm:$0xff] }
 0x3cb   :  { %v11674_v43 = vsel %vm22347_vm5, %v11065_v28, 0  ;;  %v11809_v13 = vrot.slane %v11807_v30, 1  ;;  %v22353_v28 = vld [vmem:[#allocation83_spill] sm:$0xff]  ;;  %vm22363_vm5 = vmmov %vm22359_vm1 }
 0x3cc   :  { %v11815_v54 = vshll.u32 %v11674_v43, 16  ;;  %vm22354_vm4 = vcmp.ne.s16.totalorder %v22353_v28, 0  ;;  %v11819_v32 = vshrl.u32 %v11674_v43, 16  ;;  %v22360_v28 = vld [vmem:[#allocation75_spill] sm:$0xff] }
 0x3cd   :  { %v11675_v39 = vsel %vm22354_vm4, %v11066_v9, 0  ;;  %v11810_v12 = vsel %vm22358_vm12, %v11805_v18, %v11809_v13  ;;  %vm22361_vm11 = vcmp.ne.s16.totalorder %v22360_v28, 0  ;;  %vm22374_vm12 = vmmov %vm22359_vm1 }
 0x3ce   :  { %v11817_v29 = vrot.slane %v11815_v54, 1  ;;  %v11823_v5 = vshll.u32 %v11675_v39, 16  ;;  %v11827_v22 = vshrl.u32 %v11675_v39, 16 }
 0x3d0   :  { %v11821_v54 = vor.u32 %v11819_v32, %v11817_v29  ;;  %v22366_v32 = vld [vmem:[#allocation15_spill] sm:$0xff] }
 0x3d1   :  { %15108 = vmatmul.mubr.bf16.gmra.mrb[44].mxu1 %v11778_v2  ;;  %v22350_v2 = vld [vmem:[#allocation69_spill] sm:$0xff] }
 0x3d2   :  { %15111 = vmatprep.mubr.bf16.mxu1 %v11786_v0  ;;  %v11499_v0 = vsel %vm22351_vm2, %v22350_v2, %v22349_v21  ;;  %v11813_v2 = vor.u32 %v11811_v6, %v11809_v13  ;;  %v11678_v6 = vsel %vm22361_vm11, %v11069_v31, 0  ;;  %vm22367_vm2 = vcmp.ne.s16.totalorder %v22366_v32, 0 }
 0x3d3   :  { %vm11643_vm8 = vcmp.ne.s16.totalorder %v11499_v0, 0  ;;  %v11068_v0 = vld [vmem:[#allocation2 + $0x98] sm:$0xff]  ;;  %v11847_v18 = vshll.u32 %v11678_v6, 16 }
 0x3d4   :  { %v11676_v61 = vsel %vm11643_vm8, %v11067_v38, 0  ;;  %v11818_v59 = vsel %vm22359_vm1, %v11813_v2, %v11817_v29  ;;  %vm22369_vm8 = vmmov %vm22359_vm1 }
 0x3d5   :  { %v11831_v30 = vshll.u32 %v11676_v61, 16  ;;  %v11835_v43 = vshrl.u32 %v11676_v61, 16  ;;  %v11072_v61 = vld [vmem:[#allocation2 + $0xb8] sm:$0xff] }
 0x3d7   :  { %v11833_v38 = vrot.slane %v11831_v30, 1 }
 0x3d9   :  { %15112 = vmatmul.mubr.bf16.gmra.mrb[48].mxu1 %v11794_v3  ;;  %v11507_v3 = vsel %vm22357_vm6, %v22356_v47, %v22355_v51  ;;  %v11837_v29 = vor.u32 %v11835_v43, %v11833_v38 }
 0x3da   :  { %15115 = vmatprep.mubr.bf16.mxu1 %v11802_v7  ;;  %vm11644_vm13 = vcmp.ne.s16.totalorder %v11507_v3, 0  ;;  %v11825_v7 = vrot.slane %v11823_v5, 1  ;;  %v11070_v3 = vld [vmem:[#allocation2 + $0xa8] sm:$0xff]  ;;  %v11071_v5 = vld [vmem:[#allocation2 + $0xb0] sm:$0xff] }
 0x3db   :  { %v11677_v9 = vsel %vm11644_vm13, %v11068_v0, 0  ;;  %v11849_v0 = vrot.slane %v11847_v18, 1  ;;  %v11680_v31 = vsel %vm22367_vm2, %v11071_v5, 0  ;;  %v22372_v5 = vld [vmem:[#allocation74_spill] sm:$0xff] }
 0x3dc   :  { %v11829_v51 = vor.u32 %v11827_v22, %v11825_v7  ;;  %v11839_v17 = vshll.u32 %v11677_v9, 16  ;;  %v11843_v30 = vshrl.u32 %v11677_v9, 16  ;;  %vm22373_vm6 = vcmp.ne.s16.totalorder %v22372_v5, 0 }
 0x3de   :  { %v11834_v13 = vsel %vm22363_vm5, %v11829_v51, %v11833_v38  ;;  %v11841_v2 = vrot.slane %v11839_v17, 1  ;;  %v11863_v51 = vshll.u32 %v11680_v31, 16  ;;  %v11851_v17 = vshrl.u32 %v11678_v6, 16  ;;  %v11074_v6 = vld [vmem:[#allocation2 + $0xc8] sm:$0xff]  ;;  %vm22380_vm5 = vmmov %vm22359_vm1 }
 0x3e0   :  { %v11845_v22 = vor.u32 %v11843_v30, %v11841_v2  ;;  %v11865_v43 = vrot.slane %v11863_v51, 1 }
 0x3e1   :  { %15116 = vmatmul.mubr.bf16.gmra.mrb[52].mxu1 %v11810_v12  ;;  %v11826_v12 = vsel %vm22362_vm14, %v11821_v54, %v11825_v7  ;;  %v11842_v54 = vsel %vm22368_vm3, %v11837_v29, %v11841_v2  ;;  %vm22379_vm14 = vmmov %vm22359_vm1 }
 0x3e2   :  { %15119 = vmatprep.mubr.bf16.mxu1 %v11818_v59  ;;  %v22364_v59 = vld [vmem:[#allocation91_spill] sm:$0xff]  ;;  %v11850_v28 = vsel %vm22369_vm8, %v11845_v22, %v11849_v0  ;;  %vm22385_vm3 = vmmov %vm22359_vm1 }
 0x3e3   :  { %vm22365_vm9 = vcmp.ne.s16.totalorder %v22364_v59, 0  ;;  %vm22386_vm8 = vmmov %vm22359_vm1 }
 0x3e4   :  { %v11679_v39 = vsel %vm22365_vm9, %v11070_v3, 0  ;;  %v22370_v3 = vld [vmem:[#allocation143_spill] sm:$0xff] }
 0x3e5   :  { %v11855_v7 = vshll.u32 %v11679_v39, 16  ;;  %vm22371_vm4 = vcmp.ne.s16.totalorder %v22370_v3, 0  ;;  %v11859_v18 = vshrl.u32 %v11679_v39, 16 }
 0x3e6   :  { %v11681_v9 = vsel %vm22371_vm4, %v11072_v61, 0  ;;  %v22375_v61 = vld [vmem:[#allocation150_spill] sm:$0xff] }
 0x3e7   :  { %v11857_v38 = vrot.slane %v11855_v7, 1  ;;  %v11871_v2 = vshll.u32 %v11681_v9, 16  ;;  %v11867_v7 = vshrl.u32 %v11680_v31, 16  ;;  %vm22376_vm13 = vcmp.ne.s16.totalorder %v22375_v61, 0  ;;  %v11076_v31 = vld [vmem:[#allocation2 + $0xd8] sm:$0xff] }
 0x3e8   :  { %v11683_v39 = vsel %vm22376_vm13, %v11074_v6, 0  ;;  %v11875_v51 = vshrl.u32 %v11681_v9, 16  ;;  %v22381_v6 = vld [vmem:[#allocation147_spill] sm:$0xff] }
 0x3e9   :  { %15120 = vmatmul.mubr.bf16.gmra.mrb[56].mxu1 %v11826_v12  ;;  %v11073_v12 = vld [vmem:[#allocation2 + $0xc0] sm:$0xff]  ;;  %v11861_v30 = vor.u32 %v11859_v18, %v11857_v38  ;;  %vm22382_vm9 = vcmp.ne.s16.totalorder %v22381_v6, 0 }
 0x3ea   :  { %15123 = vmatprep.mubr.bf16.mxu1 %v11834_v13  ;;  %v11853_v13 = vor.u32 %v11851_v17, %v11849_v0  ;;  %v11682_v59 = vsel %vm22373_vm6, %v11073_v12, 0  ;;  %v11873_v0 = vrot.slane %v11871_v2, 1  ;;  %v22377_v12 = vld [vmem:[#allocation48_spill] sm:$0xff]  ;;  %v11685_v9 = vsel %vm22382_vm9, %v11076_v31, 0  ;;  %vm22389_vm6 = vmmov %vm22359_vm1 }
 0x3eb   :  { %v11866_v32 = vsel %vm22359_vm1, %v11861_v30, %v11865_v43  ;;  %v11879_v22 = vshll.u32 %v11682_v59, 16  ;;  %vm22378_vm11 = vcmp.ne.s16.totalorder %v22377_v12, 0  ;;  %v11883_v2 = vshrl.u32 %v11682_v59, 16  ;;  %v11078_v59 = vld [vmem:[#allocation2 + $0xe8] sm:$0xff]  ;;  %v22387_v31 = vld [vmem:[#allocation132_spill] sm:$0xff] }
 0x3ec   :  { %v11858_v29 = vsel %vm22374_vm12, %v11853_v13, %v11857_v38  ;;  %v11877_v18 = vor.u32 %v11875_v51, %v11873_v0  ;;  %v11887_v38 = vshll.u32 %v11683_v39, 16  ;;  %vm22388_vm4 = vcmp.ne.s16.totalorder %v22387_v31, 0  ;;  %vm22390_vm12 = vmmov %vm22359_vm1 }
 0x3ed   :  { %v11881_v17 = vrot.slane %v11879_v22, 1  ;;  %v11891_v22 = vshrl.u32 %v11683_v39, 16  ;;  %v11687_v39 = vsel %vm22388_vm4, %v11078_v59, 0 }
 0x3ef   :  { %v11882_v5 = vsel %vm22380_vm5, %v11877_v18, %v11881_v17 }
 0x3f1   :  { %15124 = vmatmul.mubr.bf16.gmra.mrb[60].mxu1 %v11842_v54  ;;  %v11075_v54 = vld [vmem:[#allocation2 + $0xd0] sm:$0xff] }
 0x3f2   :  { %15127 = vmatprep.mubr.bf16.mxu1 %v11850_v28  ;;  %v11869_v28 = vor.u32 %v11867_v7, %v11865_v43  ;;  %v11684_v3 = vsel %vm22378_vm11, %v11075_v54, 0  ;;  %v11889_v43 = vrot.slane %v11887_v38, 1  ;;  %v22383_v54 = vld [vmem:[#allocation62_spill] sm:$0xff]  ;;  %vm11660_vm11 = vcmp.ne.s16.totalorder %v22356_v47, 0 }
 0x3f3   :  { %v11895_v30 = vshll.u32 %v11684_v3, 16  ;;  %vm22384_vm2 = vcmp.ne.s16.totalorder %v22383_v54, 0  ;;  %v11899_v38 = vshrl.u32 %v11684_v3, 16  ;;  %v11080_v3 = vld [vmem:[#allocation2 + $0xf8] sm:$0xff] }
 0x3f4   :  { %v11874_v13 = vsel %vm22379_vm14, %v11869_v28, %v11873_v0  ;;  %v11893_v51 = vor.u32 %v11891_v22, %v11889_v43  ;;  %v11903_v0 = vshll.u32 %v11685_v9, 16 }
 0x3f5   :  { %v11897_v7 = vrot.slane %v11895_v30, 1  ;;  %v11907_v30 = vshrl.u32 %v11685_v9, 16  ;;  %v11689_v9 = vsel %vm5314_vm15, %v11080_v3, 0 }
 0x3f7   :  { %v11898_v12 = vsel %vm22386_vm8, %v11893_v51, %v11897_v7 }
 0x3f9   :  { %15128 = vmatmul.mubr.bf16.gmra.mrb[0].mxu1 %v11858_v29  ;;  %v11077_v29 = vld [vmem:[#allocation2 + $0xe0] sm:$0xff] }
 0x3fa   :  { %15131 = vmatprep.mubr.bf16.mxu1 %v11866_v32  ;;  %v11885_v32 = vor.u32 %v11883_v2, %v11881_v17  ;;  %v11686_v61 = vsel %vm22384_vm2, %v11077_v29, 0  ;;  %v11905_v17 = vrot.slane %v11903_v0, 1  ;;  %v11081_v0 = vld [vmem:[#allocation2 + $0x100] sm:$0xff] }
 0x3fb   :  { %v11911_v18 = vshll.u32 %v11686_v61, 16  ;;  %v11915_v51 = vshrl.u32 %v11686_v61, 16  ;;  %v11690_v59 = vsel %vm5315_vm10, %v11081_v0, 0 }
 0x3fc   :  { %v11890_v28 = vsel %vm22385_vm3, %v11885_v32, %v11889_v43  ;;  %v11909_v6 = vor.u32 %v11907_v30, %v11905_v17  ;;  %v11919_v43 = vshll.u32 %v11687_v39, 16 }
 0x3fd   :  { %v11913_v2 = vrot.slane %v11911_v18, 1  ;;  %v15891_v18 = vld [vmem:[%s21154_s3 + $0x30] sm:$0xff]  }
 0x3fe   :  { %15171 = vmatprep.subr.bf16.mxu0 %v15891_v18 }
 0x3ff   :  { %v11914_v22 = vsel %vm22390_vm12, %v11909_v6, %v11913_v2  ;;  %15172 = vmatpush3.bf16.msra.mxu0 %v15891_v18 }
 0x400   :  { %15173 = vmatprep.subr.bf16.mxu0 %v15892_v15 }
 0x401   :  { %15132 = vmatmul.mubr.bf16.gmra.mrb[4].mxu1 %v11874_v13  ;;  %v11079_v13 = vld [vmem:[#allocation2 + $0xf0] sm:$0xff] }
 0x402   :  { %15135 = vmatprep.mubr.bf16.mxu1 %v11882_v5  ;;  %v11901_v5 = vor.u32 %v11899_v38, %v11897_v7  ;;  %v11688_v29 = vsel %vm5313_vm0, %v11079_v13, 0  ;;  %v11921_v7 = vrot.slane %v11919_v43, 1  ;;  %v11082_v13 = vld [vmem:[#allocation2 + $0x108] sm:$0xff]  ;;  %vm22391_vm0 = vmmov %vm22359_vm1  ;;  %vm22393_vm1 = vsmask.f32 256 }
 0x403   :  { %v11927_v54 = vshll.u32 %v11688_v29, 16  ;;  %vm22394_vm15 = vmmov %vm22391_vm0  ;;  %v11931_v30 = vshrl.u32 %v11688_v29, 16  ;;  %15174 = vmatpush3.bf16.msra.mxu0 %v15892_v15 }
 0x404   :  { %v11906_v32 = vsel %vm22389_vm6, %v11901_v5, %v11905_v17  ;;  %v11935_v17 = vshll.u32 %v11689_v9, 16  ;;  %v22392_v5 = vld [vmem:[#allocation141_spill] sm:$0xff]  ;;  %vm22395_vm13 = vmmov %vm22391_vm0 }
 0x405   :  { %v11929_v34 = vrot.slane %v11927_v54, 1  ;;  %v11627_v8 = vsel %vm22393_vm1, %v22392_v5, %v22349_v21  ;;  %v11939_v21 = vshrl.u32 %v11689_v9, 16  ;;  %vm22396_vm14 = vmmov %vm22391_vm0 }
 0x406   :  { %v11937_v6 = vrot.slane %v11935_v17, 1  ;;  %vm11659_vm10 = vcmp.ne.s16.totalorder %v11627_v8, 0  ;;  %vm22398_vm5 = vmmov %vm22391_vm0 }
 0x407   :  { %v11933_v43 = vor.u32 %v11931_v30, %v11929_v34  ;;  %v11692_v54 = vsel %vm11659_vm10, %v20303_v40, 0  ;;  %vm22399_vm9 = vmmov %vm22391_vm0  ;;  %v20680_v30 = vld [vmem:[%s21158_s7] ss:$0 sm:$0xff] }
 0x408   :  { %v11941_v3 = vor.u32 %v11939_v21, %v11937_v6  ;;  %v11959_v0 = vshll.u32 %v11692_v54, 16  ;;  %v11963_v17 = vshrl.u32 %v11692_v54, 16 }
 0x409   :  { %15136 = vmatmul.mubr.bf16.gmra.mrb[8].mxu1 %v11890_v28  ;;  %v11917_v28 = vor.u32 %v11915_v51, %v11913_v2  ;;  %v11691_v2 = vsel %vm5316_vm7, %v11082_v13, 0  ;;  %v11938_v51 = vsel %vm22395_vm13, %v11933_v43, %v11937_v6  ;;  %vm22397_vm7 = vmmov %vm22391_vm0 }
 0x40a   :  { %15139 = vmatprep.mubr.bf16.mxu1 %v11898_v12  ;;  %v11923_v12 = vshrl.u32 %v11687_v39, 16  ;;  %v11943_v39 = vshll.u32 %v11690_v59, 16 }
 0x40b   :  { %v11922_v61 = vsel %vm22391_vm0, %v11917_v28, %v11921_v7  ;;  %v11947_v28 = vshrl.u32 %v11690_v59, 16  ;;  %v20674_v59 = vld [vmem:[%s21157_s6] ss:$0 sm:$0xff] }
 0x40c   :  { %v11925_v38 = vor.u32 %v11923_v12, %v11921_v7  ;;  %v11084_v7 = vld [vmem:[#allocation2 + $0x118] sm:$0x1]  ;;  %v11955_v12 = vshrl.u32 %v11691_v2, 16 }
 0x40e   :  { %v11930_v31 = vsel %vm22394_vm15, %v11925_v38, %v11929_v34  ;;  %v11693_v34 = vsel %vm11660_vm11, %v11084_v7, 0  ;;  %v11961_v38 = vrot.slane %v11959_v0, 1 }
 0x40f   :  { %v11967_v40 = vshll.u32 %v11693_v34, 16 }
 0x410   :  { %v11965_v47 = vor.u32 %v11963_v17, %v11961_v38 }
 0x411   :  { %15140 = vmatmul.mubr.bf16.gmra.mrb[12].mxu1 %v11906_v32  ;;  %v11945_v32 = vrot.slane %v11943_v39, 1  ;;  %v11969_v5 = vrot.slane %v11967_v40, 1 }
 0x412   :  { %15143 = vmatprep.mubr.bf16.mxu1 %v11914_v22  ;;  %v11951_v22 = vshll.u32 %v11691_v2, 16 }
 0x413   :  { %v11946_v14 = vsel %vm22396_vm14, %v11941_v3, %v11945_v32  ;;  %v11949_v9 = vor.u32 %v11947_v28, %v11945_v32  ;;  %v11970_v8 = vsel %vm22399_vm9, %v11965_v47, %v11969_v5  ;;  %v22406_v47 = vld [vmem:[#allocation32_spill] sm:$0xff] }
 0x414   :  { %v11953_v29 = vrot.slane %v11951_v22, 1  ;;  %v22407_v5 = vmax.f32 %v22406_v47, 0.0 }
 0x416   :  { %v11957_v18 = vor.u32 %v11955_v12, %v11953_v29  ;;  %v11954_v13 = vsel %vm22397_vm7, %v11949_v9, %v11953_v29  ;;  %v22402_v12 = vld [vmem:[#allocation30_spill] sm:$0xff] }
 0x417   :  { %v22403_v34 = vmax.f32 %v22402_v12, 0.0 }
 0x419   :  { %15144 = vmatmul.mubr.bf16.gmra.mrb[16].mxu1 %v11922_v61  ;;  %v11962_v61 = vsel %vm22398_vm5, %v11957_v18, %v11961_v38 }
 0x41a   :  { %15147 = vmatprep.mubr.bf16.mxu1 %v11930_v31 }
 0x421   :  { %15148 = vmatmul.mubr.bf16.gmra.mrb[20].mxu1 %v11938_v51 }
 0x422   :  { %15151 = vmatprep.mubr.bf16.mxu1 %v11946_v14  ;;  %v22400_v14 = vld [vmem:[#allocation28_spill] sm:$0xff] }
 0x429   :  { %15152 = vmatmul.mubr.bf16.gmra.mrb[24].mxu1 %v11954_v13 }
 0x42a   :  { %15155 = vmatprep.mubr.bf16.mxu1 %v11962_v61 }
 0x431   :  { %15156 = vmatmul.mubr.bf16.gmra.mrb[28].mxu1 %v11970_v8 }
 0x48c   :  { %v15097_v31 = vpop.f32.mrb[32].mxu1 }
 0x48d   :  { %v15255_v39 = vadd.f32 %v15097_v31, %v20443_v55  ;;  %v12085_v15 = vpop.f32.mrb[33].mxu1 }
 0x48e   :  { %v15256_v2 = vadd.f32 %v12085_v15, %v20448_v11  ;;  %v15098_v6 = vpop.f32.mrb[34].mxu1  ;;  %v22401_v11 = vmax.f32 %v22400_v14, 0.0 }
 0x48f   :  { %v12413_v43 = vmul.f32 %v15255_v39, %v20674_v59  ;;  %v15257_v21 = vadd.f32 %v15098_v6, %v20450_v20  ;;  %v12088_v32 = vpop.f32.mrb[35].mxu1 }
 0x490   :  { %v12411_v22 = vmul.f32 %v15256_v2, %v20674_v59  ;;  %v15258_v54 = vadd.f32 %v12088_v32, %v20452_v58  ;;  %v22404_v58 = vld [vmem:[#allocation31_spill] sm:$0xff] }
 0x491   :  { %v12484_v55 = vadd.f32 %v20680_v30, %v12413_v43  ;;  %v12414_v3 = vmul.f32 %v15257_v21, %v20674_v59  ;;  %v22405_v18 = vmax.f32 %v22404_v58, 0.0 }
 0x492   :  { %v12482_v51 = vadd.f32 %v20680_v30, %v12411_v22  ;;  %v12412_v7 = vmul.f32 %v15258_v54, %v20674_v59 }
 0x493   :  { %v12548_v29 = vadd.f32 %v12484_v55, %v22401_v11  ;;  %v12485_v0 = vadd.f32 %v20680_v30, %v12414_v3 }
 0x494   :  { %v12483_v20 = vadd.f32 %v20680_v30, %v12412_v7  ;;  %v15101_v28 = vpop.f32.mrb[36].mxu1  ;;  %v12546_v9 = vadd.f32 %v12482_v51, %v22403_v34 }
 0x495   :  { %v12549_v38 = vadd.f32 %v12485_v0, %v22405_v18  ;;  %v15259_v17 = vadd.f32 %v15101_v28, %v20456_v26  ;;  %v12101_v40 = vpop.f32.mrb[37].mxu1  ;;  %v12612_v31 = vmax.f32 %v12548_v29, 0.0  ;;  %v22410_v0 = vld [vmem:[#allocation35_spill] sm:$0xff] }
 0x496   :  { %v15260_v13 = vadd.f32 %v12101_v40, %v20460_v10  ;;  %v15102_v61 = vpop.f32.mrb[38].mxu1  ;;  %v12547_v8 = vadd.f32 %v12483_v20, %v22407_v5  ;;  %v12610_v32 = vmax.f32 %v12546_v9, 0.0  ;;  %v22411_v20 = vmax.f32 %v22410_v0, 0.0  ;;  %v22412_v9 = vld [vmem:[#allocation38_spill] sm:$0xff]  ;;  %v22414_v40 = vld [vmem:[#allocation40_spill] sm:$0xff] }
 0x497   :  { %v12613_v39 = vmax.f32 %v12549_v38, 0.0  ;;  %v12417_v15 = vmul.f32 %v15259_v17, %v20674_v59  ;;  %v15261_v2 = vadd.f32 %v15102_v61, %v20462_v45  ;;  %v12104_v6 = vpop.f32.mrb[39].mxu1  ;;  %v22408_v45 = vld [vmem:[#allocation33_spill] sm:$0xff]  ;;  %v22413_v58 = vmax.f32 %v22412_v9, 0.0 }
 0x498   :  { %v12415_v43 = vmul.f32 %v15260_v13, %v20674_v59  ;;  %v15262_v21 = vadd.f32 %v12104_v6, %v20464_v63  ;;  %v12611_v26 = vmax.f32 %v12547_v8, 0.0  ;;  %v22409_v14 = vmax.f32 %v22408_v45, 0.0 }
 0x499   :  { %v12675_v22 = vpack.c.bf16 %v12613_v39, %v12612_v31  ;;  %v12488_v10 = vadd.f32 %v20680_v30, %v12417_v15  ;;  %v12418_v54 = vmul.f32 %v15261_v2, %v20674_v59  ;;  %v22415_v13 = vmax.f32 %v22414_v40, 0.0 }
 0x49a   :  { %v12486_v55 = vadd.f32 %v20680_v30, %v12415_v43  ;;  %v12416_v3 = vmul.f32 %v15262_v21, %v20674_v59  ;;  %v12674_v51 = vpack.c.bf16 %v12611_v26, %v12610_v32 }
 0x49b   :  { %v12489_v7 = vadd.f32 %v20680_v30, %v12418_v54  ;;  %v12552_v11 = vadd.f32 %v12488_v10, %v22409_v14  ;;  %v22416_v10 = vld [vmem:[#allocation43_spill] sm:$0xff] }
 0x49c   :  { %v12487_v29 = vadd.f32 %v20680_v30, %v12416_v3  ;;  %v15105_v63 = vpop.f32.mrb[40].mxu1  ;;  %15175 = vmatprep.mubr.bf16.mxu0 %v12674_v51  ;;  %v12550_v28 = vadd.f32 %v12486_v55, %v22411_v20  ;;  %v22417_v54 = vmax.f32 %v22416_v10, 0.0  ;;  %v22418_v51 = vld [vmem:[#allocation44_spill] sm:$0xff] }
 0x49d   :  { %v15263_v12 = vadd.f32 %v15105_v63, %v20468_v50  ;;  %v12117_v34 = vpop.f32.mrb[41].mxu1  ;;  %15176 = vmatmul.mubr.bf16.vlgmr.msra.gmra.mrb[128].mxu0 %v12675_v22  ;;  %v12553_v18 = vadd.f32 %v12489_v7, %v22413_v58  ;;  %v12616_v31 = vmax.f32 %v12552_v11, 0.0  ;;  %v22419_v7 = vmax.f32 %v22418_v51, 0.0 }
 0x49e   :  { %v15264_v38 = vadd.f32 %v12117_v34, %v20472_v53  ;;  %v15106_v17 = vpop.f32.mrb[42].mxu1  ;;  %v12551_v61 = vadd.f32 %v12487_v29, %v22415_v13  ;;  %v12614_v2 = vmax.f32 %v12550_v28, 0.0  ;;  %v22420_v29 = vld [vmem:[#allocation45_spill] sm:$0xff] }
 0x49f   :  { %v12421_v47 = vmul.f32 %v15263_v12, %v20674_v59  ;;  %v15265_v5 = vadd.f32 %v15106_v17, %v20474_v49  ;;  %v12120_v8 = vpop.f32.mrb[43].mxu1  ;;  %v12617_v39 = vmax.f32 %v12553_v18, 0.0  ;;  %v22421_v63 = vmax.f32 %v22420_v29, 0.0  ;;  %v22422_v12 = vld [vmem:[#allocation47_spill] sm:$0xff] }
 0x4a0   :  { %v12419_v50 = vmul.f32 %v15264_v38, %v20674_v59  ;;  %v15266_v15 = vadd.f32 %v12120_v8, %v20476_v41  ;;  %v12615_v6 = vmax.f32 %v12551_v61, 0.0  ;;  %v22423_v34 = vmax.f32 %v22422_v12, 0.0 }
 0x4a1   :  { %v12492_v43 = vadd.f32 %v20680_v30, %v12421_v47  ;;  %v12422_v53 = vmul.f32 %v15265_v5, %v20674_v59  ;;  %v12677_v21 = vpack.c.bf16 %v12617_v39, %v12616_v31 }
 0x4a2   :  { %v12490_v32 = vadd.f32 %v20680_v30, %v12419_v50  ;;  %v12420_v26 = vmul.f32 %v15266_v15, %v20674_v59  ;;  %v12676_v22 = vpack.c.bf16 %v12615_v6, %v12614_v2  ;;  %v22424_v15 = vld [vmem:[#allocation49_spill] sm:$0xff] }
 0x4a3   :  { %v12493_v49 = vadd.f32 %v20680_v30, %v12422_v53  ;;  %v12556_v55 = vadd.f32 %v12492_v43, %v22417_v54  ;;  %v22425_v2 = vmax.f32 %v22424_v15, 0.0  ;;  %v22426_v53 = vld [vmem:[#allocation50_spill] sm:$0xff]  ;;  %v22438_v15 = vld [vmem:[#allocation60_spill] sm:$0xff] }
 0x4a4   :  { %v12491_v3 = vadd.f32 %v20680_v30, %v12420_v26  ;;  %v15109_v41 = vpop.f32.mrb[44].mxu1  ;;  %15179 = vmatprep.mubr.bf16.mxu0 %v12676_v22  ;;  %v12554_v45 = vadd.f32 %v12490_v32, %v22419_v7 }
 0x4a5   :  { %v15267_v14 = vadd.f32 %v15109_v41, %v20480_v46  ;;  %v12133_v11 = vpop.f32.mrb[45].mxu1  ;;  %15180 = vmatmul.mubr.bf16.gmra.mrb[132].mxu0 %v12677_v21  ;;  %v12557_v0 = vadd.f32 %v12493_v49, %v22421_v63  ;;  %v12620_v17 = vmax.f32 %v12556_v55, 0.0  ;;  %v22427_v21 = vmax.f32 %v22426_v53, 0.0  ;;  %v22428_v49 = vld [vmem:[#allocation51_spill] sm:$0xff]  ;;  %v22430_v41 = vld [vmem:[#allocation52_spill] sm:$0xff] }
 0x4a6   :  { %v15268_v20 = vadd.f32 %v12133_v11, %v20484_v48  ;;  %v15110_v28 = vpop.f32.mrb[46].mxu1  ;;  %v12555_v9 = vadd.f32 %v12491_v3, %v22423_v34  ;;  %v12618_v61 = vmax.f32 %v12554_v45, 0.0  ;;  %v22429_v10 = vmax.f32 %v22428_v49, 0.0 }
 0x4a7   :  { %v12425_v58 = vmul.f32 %v15267_v14, %v20674_v59  ;;  %v15269_v18 = vadd.f32 %v15110_v28, %v20486_v52  ;;  %v12136_v38 = vpop.f32.mrb[47].mxu1  ;;  %v12621_v40 = vmax.f32 %v12557_v0, 0.0  ;;  %v22431_v51 = vmax.f32 %v22430_v41, 0.0 }
 0x4a8   :  { %v12423_v46 = vmul.f32 %v15268_v20, %v20674_v59  ;;  %v15270_v13 = vadd.f32 %v12136_v38, %v20488_v25  ;;  %v12619_v47 = vmax.f32 %v12555_v9, 0.0  ;;  %v22432_v38 = vld [vmem:[#allocation55_spill] sm:$0xff] }
 0x4a9   :  { %v12496_v5 = vadd.f32 %v20680_v30, %v12425_v58  ;;  %v12426_v48 = vmul.f32 %v15269_v18, %v20674_v59  ;;  %v12679_v8 = vpack.c.bf16 %v12621_v40, %v12620_v17  ;;  %v22433_v17 = vmax.f32 %v22432_v38, 0.0 }
 0x4aa   :  { %v12494_v31 = vadd.f32 %v20680_v30, %v12423_v46  ;;  %v12424_v39 = vmul.f32 %v15270_v13, %v20674_v59  ;;  %v12678_v50 = vpack.c.bf16 %v12619_v47, %v12618_v61  ;;  %v22434_v13 = vld [vmem:[#allocation56_spill] sm:$0xff] }
 0x4ab   :  { %v12497_v52 = vadd.f32 %v20680_v30, %v12426_v48  ;;  %v12560_v6 = vadd.f32 %v12496_v5, %v22425_v2  ;;  %v22435_v61 = vmax.f32 %v22434_v13, 0.0  ;;  %v22439_v2 = vmax.f32 %v22438_v15, 0.0 }
 0x4ac   :  { %v12495_v43 = vadd.f32 %v20680_v30, %v12424_v39  ;;  %v15113_v25 = vpop.f32.mrb[48].mxu1  ;;  %15183 = vmatprep.mubr.bf16.mxu0 %v12678_v50  ;;  %v12558_v32 = vadd.f32 %v12494_v31, %v22427_v21 }
 0x4ad   :  { %v15271_v26 = vadd.f32 %v15113_v25, %v20492_v1  ;;  %v12149_v22 = vpop.f32.mrb[49].mxu1  ;;  %15184 = vmatmul.mubr.bf16.gmra.mrb[136].mxu0 %v12679_v8  ;;  %v12561_v54 = vadd.f32 %v12497_v52, %v22429_v10  ;;  %v12624_v29 = vmax.f32 %v12560_v6, 0.0  ;;  %v22436_v8 = vld [vmem:[#allocation57_spill] sm:$0xff] }
 0x4ae   :  { %v15272_v55 = vadd.f32 %v12149_v22, %v20496_v35  ;;  %v15114_v3 = vpop.f32.mrb[50].mxu1  ;;  %v12559_v7 = vadd.f32 %v12495_v43, %v22431_v51  ;;  %v12622_v20 = vmax.f32 %v12558_v32, 0.0  ;;  %v22437_v31 = vmax.f32 %v22436_v8, 0.0  ;;  %v22440_v51 = vld [vmem:[#allocation63_spill] sm:$0xff] }
 0x4af   :  { %v12429_v45 = vmul.f32 %v15271_v26, %v20674_v59  ;;  %v15273_v14 = vadd.f32 %v15114_v3, %v20498_v36  ;;  %v12152_v11 = vpop.f32.mrb[51].mxu1  ;;  %v12625_v63 = vmax.f32 %v12561_v54, 0.0 }
 0x4b0   :  { %v12427_v1 = vmul.f32 %v15272_v55, %v20674_v59  ;;  %v15274_v0 = vadd.f32 %v12152_v11, %v20500_v33  ;;  %v12623_v28 = vmax.f32 %v12559_v7, 0.0  ;;  %v22441_v7 = vmax.f32 %v22440_v51, 0.0  ;;  %v22442_v11 = vld [vmem:[#allocation64_spill] sm:$0xff] }
 0x4b1   :  { %v12500_v12 = vadd.f32 %v20680_v30, %v12429_v45  ;;  %v12430_v35 = vmul.f32 %v15273_v14, %v20674_v59  ;;  %v12681_v34 = vpack.c.bf16 %v12625_v63, %v12624_v29  ;;  %v22443_v29 = vmax.f32 %v22442_v11, 0.0 }
 0x4b2   :  { %v12498_v9 = vadd.f32 %v20680_v30, %v12427_v1  ;;  %v12428_v58 = vmul.f32 %v15274_v0, %v20674_v59  ;;  %v12680_v18 = vpack.c.bf16 %v12623_v28, %v12622_v20  ;;  %v22444_v20 = vld [vmem:[#allocation65_spill] sm:$0xff] }
 0x4b3   :  { %v12501_v36 = vadd.f32 %v20680_v30, %v12430_v35  ;;  %v12564_v40 = vadd.f32 %v12500_v12, %v22433_v17  ;;  %v22445_v28 = vmax.f32 %v22444_v20, 0.0 }
 0x4b4   :  { %v12499_v46 = vadd.f32 %v20680_v30, %v12428_v58  ;;  %v15117_v33 = vpop.f32.mrb[52].mxu1  ;;  %15187 = vmatprep.mubr.bf16.mxu0 %v12680_v18  ;;  %v12562_v47 = vadd.f32 %v12498_v9, %v22435_v61  ;;  %v22446_v9 = vld [vmem:[#allocation66_spill] sm:$0xff] }
 0x4b5   :  { %v15275_v5 = vadd.f32 %v15117_v33, %v20504_v44  ;;  %v12165_v48 = vpop.f32.mrb[53].mxu1  ;;  %15188 = vmatmul.mubr.bf16.gmra.mrb[140].mxu0 %v12681_v34  ;;  %v12565_v39 = vadd.f32 %v12501_v36, %v22437_v31  ;;  %v12628_v21 = vmax.f32 %v12564_v40, 0.0  ;;  %v22447_v58 = vmax.f32 %v22446_v9, 0.0 }
 0x4b6   :  { %v15276_v50 = vadd.f32 %v12165_v48, %v20509_v23  ;;  %v15118_v52 = vpop.f32.mrb[54].mxu1  ;;  %v12563_v6 = vadd.f32 %v12499_v46, %v22439_v2  ;;  %v12626_v22 = vmax.f32 %v12562_v47, 0.0  ;;  %v22450_v2 = vld [vmem:[#allocation70_spill] sm:$0xff] }
 0x4b7   :  { %v12433_v43 = vmul.f32 %v15275_v5, %v20674_v59  ;;  %v15277_v25 = vadd.f32 %v15118_v52, %v20511_v27  ;;  %v12168_v53 = vpop.f32.mrb[55].mxu1  ;;  %v12629_v32 = vmax.f32 %v12565_v39, 0.0  ;;  %v22448_v39 = vld [vmem:[#allocation68_spill] sm:$0xff] }
 0x4b8   :  { %v12431_v44 = vmul.f32 %v15276_v50, %v20674_v59  ;;  %v15278_v26 = vadd.f32 %v12168_v53, %v20513_v4  ;;  %v12627_v49 = vmax.f32 %v12563_v6, 0.0  ;;  %v22449_v50 = vmax.f32 %v22448_v39, 0.0 }
 0x4b9   :  { %v12504_v10 = vadd.f32 %v20680_v30, %v12433_v43  ;;  %v12434_v23 = vmul.f32 %v15277_v25, %v20674_v59  ;;  %v12683_v54 = vpack.c.bf16 %v12629_v32, %v12628_v21  ;;  %v22451_v6 = vmax.f32 %v22450_v2, 0.0  ;;  %v22452_v21 = vld [vmem:[#allocation71_spill] sm:$0xff] }
 0x4ba   :  { %v12502_v55 = vadd.f32 %v20680_v30, %v12431_v44  ;;  %v12432_v3 = vmul.f32 %v15278_v26, %v20674_v59  ;;  %v12682_v41 = vpack.c.bf16 %v12627_v49, %v12626_v22  ;;  %v22453_v32 = vmax.f32 %v22452_v21, 0.0  ;;  %v22454_v49 = vld [vmem:[#allocation73_spill] sm:$0xff] }
 0x4bb   :  { %v12505_v27 = vadd.f32 %v20680_v30, %v12434_v23  ;;  %v12568_v45 = vadd.f32 %v12504_v10, %v22441_v7  ;;  %v22455_v10 = vmax.f32 %v22454_v49, 0.0 }
 0x4bc   :  { %v12503_v14 = vadd.f32 %v20680_v30, %v12432_v3  ;;  %v15121_v4 = vpop.f32.mrb[56].mxu1  ;;  %15191 = vmatprep.mubr.bf16.mxu0 %v12682_v41  ;;  %v12566_v63 = vadd.f32 %v12502_v55, %v22443_v29 }
 0x4bd   :  { %v15279_v1 = vadd.f32 %v15121_v4, %v20518_v24  ;;  %v12181_v0 = vpop.f32.mrb[57].mxu1  ;;  %15192 = vmatmul.mubr.bf16.gmra.mrb[144].mxu0 %v12683_v54  ;;  %v12569_v12 = vadd.f32 %v12505_v27, %v22445_v28  ;;  %v12632_v40 = vmax.f32 %v12568_v45, 0.0 }
 0x4be   :  { %v15280_v35 = vadd.f32 %v12181_v0, %v20523_v57  ;;  %v15122_v34 = vpop.f32.mrb[58].mxu1  ;;  %v12567_v18 = vadd.f32 %v12503_v14, %v22447_v58  ;;  %v12630_v13 = vmax.f32 %v12566_v63, 0.0 }
 0x4bf   :  { %v12437_v36 = vmul.f32 %v15279_v1, %v20674_v59  ;;  %v15281_v38 = vadd.f32 %v15122_v34, %v20525_v37  ;;  %v12184_v17 = vpop.f32.mrb[59].mxu1  ;;  %v12633_v46 = vmax.f32 %v12569_v12, 0.0  ;;  %v22456_v1 = vld [vmem:[#allocation76_spill] sm:$0xff]  ;;  %v22458_v12 = vld [vmem:[#allocation77_spill] sm:$0xff] }
 0x4c0   :  { %v12435_v24 = vmul.f32 %v15280_v35, %v20674_v59  ;;  %v15282_v33 = vadd.f32 %v12184_v17, %v20529_v19  ;;  %v12631_v61 = vmax.f32 %v12567_v18, 0.0  ;;  %v22457_v0 = vmax.f32 %v22456_v1, 0.0  ;;  %v22460_v18 = vld [vmem:[#allocation78_spill] sm:$0xff]  ;;  %v22462_v17 = vld [vmem:[#allocation156_spill] sm:$0xff] }
 0x4c1   :  { %v12508_v47 = vadd.f32 %v20680_v30, %v12437_v36  ;;  %v12438_v57 = vmul.f32 %v15281_v38, %v20674_v59  ;;  %v12685_v5 = vpack.c.bf16 %v12633_v46, %v12632_v40  ;;  %v22459_v35 = vmax.f32 %v22458_v12, 0.0 }
 0x4c2   :  { %v12506_v48 = vadd.f32 %v20680_v30, %v12435_v24  ;;  %v12436_v8 = vmul.f32 %v15282_v33, %v20674_v59  ;;  %v12684_v31 = vpack.c.bf16 %v12631_v61, %v12630_v13  ;;  %v22461_v36 = vmax.f32 %v22460_v18, 0.0  ;;  %v22463_v24 = vld [vmem:[#allocation80_spill] sm:$0xff] }
 0x4c3   :  { %v12509_v37 = vadd.f32 %v20680_v30, %v12438_v57  ;;  %v12572_v52 = vadd.f32 %v12508_v47, %v22449_v50  ;;  %v22464_v33 = vmax.f32 %v22463_v24, 0.0  ;;  %v22465_v47 = vld [vmem:[#allocation100_spill] sm:$0xff] }
 0x4c4   :  { %v12507_v15 = vadd.f32 %v20680_v30, %v12436_v8  ;;  %v15125_v19 = vpop.f32.mrb[60].mxu1  ;;  %15195 = vmatprep.mubr.bf16.mxu0 %v12684_v31  ;;  %v12570_v43 = vadd.f32 %v12506_v48, %v22451_v6  ;;  %v22466_v31 = vld [vmem:[#allocation158_spill] sm:$0xff] }
 0x4c5   :  { %v15283_v25 = vadd.f32 %v15125_v19, %v20536_v62  ;;  %v12197_v53 = vpop.f32.mrb[61].mxu1  ;;  %15196 = vmatmul.mubr.bf16.gmra.mrb[148].mxu0 %v12685_v5  ;;  %v12573_v44 = vadd.f32 %v12509_v37, %v22453_v32  ;;  %v12636_v41 = vmax.f32 %v12572_v52, 0.0 }
 0x4c6   :  { %v15284_v26 = vadd.f32 %v12197_v53, %v20541_v16  ;;  %v15126_v22 = vpop.f32.mrb[62].mxu1  ;;  %v12571_v23 = vadd.f32 %v12507_v15, %v22455_v10  ;;  %v12634_v7 = vmax.f32 %v12570_v43, 0.0  ;;  %v22467_v53 = vld [vmem:[#allocation84_spill] sm:$0xff] }
 0x4c7   :  { %v12441_v54 = vmul.f32 %v15283_v25, %v20674_v59  ;;  %v15285_v55 = vadd.f32 %v15126_v22, %v20543_v60  ;;  %v12200_v3 = vpop.f32.mrb[63].mxu1  ;;  %v12637_v27 = vmax.f32 %v12573_v44, 0.0  ;;  %v22468_v21 = vmax.f32 %v22467_v53, 0.0  ;;  %v22469_v22 = vld [vmem:[#allocation85_spill] sm:$0xff] }
 0x4c8   :  { %v12439_v62 = vmul.f32 %v15284_v26, %v20674_v59  ;;  %v15286_v51 = vadd.f32 %v12200_v3, %v20547_v56  ;;  %v12635_v45 = vmax.f32 %v12571_v23, 0.0  ;;  %v22470_v49 = vmax.f32 %v22469_v22, 0.0  ;;  %v22471_v23 = vld [vmem:[#allocation152_spill] sm:$0xff]  ;;  %v22472_v3 = vld [vmem:[#allocation86_spill] sm:$0xff] }
 0x4c9   :  { %v12512_v14 = vadd.f32 %v20680_v30, %v12441_v54  ;;  %v12442_v16 = vmul.f32 %v15285_v55, %v20674_v59  ;;  %v12687_v4 = vpack.c.bf16 %v12637_v27, %v12636_v41  ;;  %v22473_v41 = vmax.f32 %v22472_v3, 0.0 }
 0x4ca   :  { %v12510_v11 = vadd.f32 %v20680_v30, %v12439_v62  ;;  %v12440_v29 = vmul.f32 %v15286_v51, %v20674_v59  ;;  %v12686_v63 = vpack.c.bf16 %v12635_v45, %v12634_v7  ;;  %v22474_v62 = vld [vmem:[#allocation127_spill] sm:$0xff]  ;;  %v22475_v45 = vld [vmem:[#allocation88_spill] sm:$0xff] }
 0x4cb   :  { %v12513_v60 = vadd.f32 %v20680_v30, %v12442_v16  ;;  %v12576_v20 = vadd.f32 %v12512_v14, %v22457_v0  ;;  %v22476_v14 = vmax.f32 %v22475_v45, 0.0 }
 0x4cc   :  { %v12511_v28 = vadd.f32 %v20680_v30, %v12440_v29  ;;  %v15129_v56 = vpop.f32.mrb[0].mxu1  ;;  %15199 = vmatprep.mubr.bf16.mxu0 %v12686_v63  ;;  %v12574_v34 = vadd.f32 %v12510_v11, %v22459_v35  ;;  %v22477_v11 = vld [vmem:[#allocation139_spill] sm:$0xff] }
 0x4cd   :  { %v15287_v9 = vadd.f32 %v15129_v56, %v20311_v42  ;;  %v12213_v58 = vpop.f32.mrb[1].mxu1  ;;  %15200 = vmatmul.mubr.bf16.gmra.mrb[152].mxu0 %v12687_v4  ;;  %v12577_v38 = vadd.f32 %v12513_v60, %v22461_v36  ;;  %v12640_v48 = vmax.f32 %v12576_v20, 0.0  ;;  %v22478_v20 = vld [vmem:[#allocation159_spill] sm:$0xff] }
 0x4ce   :  { %v15288_v40 = vadd.f32 %v12213_v58, %v22462_v17  ;;  %v15130_v46 = vpop.f32.mrb[2].mxu1  ;;  %v12575_v13 = vadd.f32 %v12511_v28, %v22464_v33  ;;  %v12638_v39 = vmax.f32 %v12574_v34, 0.0  ;;  %v22479_v17 = vld [vmem:[#allocation92_spill] sm:$0xff] }
 0x4cf   :  { %v12445_v61 = vmul.f32 %v15287_v9, %v20674_v59  ;;  %v15289_v57 = vadd.f32 %v15130_v46, %v22465_v47  ;;  %v12216_v5 = vpop.f32.mrb[3].mxu1  ;;  %v12641_v8 = vmax.f32 %v12577_v38, 0.0 }
 0x4d0   :  { %v12443_v42 = vmul.f32 %v15288_v40, %v20674_v59  ;;  %v15290_v37 = vadd.f32 %v12216_v5, %v22466_v31  ;;  %v12639_v50 = vmax.f32 %v12575_v13, 0.0  ;;  %v22480_v40 = vmax.f32 %v22479_v17, 0.0  ;;  %v22481_v13 = vld [vmem:[#allocation95_spill] sm:$0xff] }
 0x4d1   :  { %v12516_v52 = vadd.f32 %v20680_v30, %v12445_v61  ;;  %v12446_v15 = vmul.f32 %v15289_v57, %v20674_v59  ;;  %v12689_v19 = vpack.c.bf16 %v12641_v8, %v12640_v48  ;;  %v22482_v61 = vmax.f32 %v22481_v13, 0.0  ;;  %v22483_v57 = vld [vmem:[#allocation153_spill] sm:$0xff]  ;;  %v22484_v8 = vld [vmem:[#allocation96_spill] sm:$0xff] }
 0x4d2   :  { %v12514_v2 = vadd.f32 %v20680_v30, %v12443_v42  ;;  %v12444_v6 = vmul.f32 %v15290_v37, %v20674_v59  ;;  %v12688_v43 = vpack.c.bf16 %v12639_v50, %v12638_v39  ;;  %v22485_v42 = vmax.f32 %v22484_v8, 0.0  ;;  %v22486_v37 = vld [vmem:[#allocation160_spill] sm:$0xff] }
 0x4d3   :  { %v12517_v25 = vadd.f32 %v20680_v30, %v12446_v15  ;;  %v12580_v32 = vadd.f32 %v12516_v52, %v22468_v21  ;;  %v22487_v52 = vld [vmem:[#allocation98_spill] sm:$0xff] }
 0x4d4   :  { %v12515_v44 = vadd.f32 %v20680_v30, %v12444_v6  ;;  %v15133_v26 = vpop.f32.mrb[4].mxu1  ;;  %15203 = vmatprep.mubr.bf16.mxu0 %v12688_v43  ;;  %v12578_v10 = vadd.f32 %v12514_v2, %v22470_v49  ;;  %v22488_v15 = vmax.f32 %v22487_v52, 0.0  ;;  %v22489_v6 = vld [vmem:[#allocation154_spill] sm:$0xff] }
 0x4d5   :  { %v15291_v54 = vadd.f32 %v15133_v26, %v22471_v23  ;;  %v12229_v55 = vpop.f32.mrb[5].mxu1  ;;  %15204 = vmatmul.mubr.bf16.gmra.mrb[156].mxu0 %v12689_v19  ;;  %v12581_v27 = vadd.f32 %v12517_v25, %v22473_v41  ;;  %v12644_v60 = vmax.f32 %v12580_v32, 0.0 }
 0x4d6   :  { %v15292_v51 = vadd.f32 %v12229_v55, %v22474_v62  ;;  %v15134_v7 = vpop.f32.mrb[6].mxu1  ;;  %v12579_v16 = vadd.f32 %v12515_v44, %v22476_v14  ;;  %v12642_v56 = vmax.f32 %v12578_v10, 0.0  ;;  %v22490_v44 = vld [vmem:[#allocation155_spill] sm:$0xff]  ;;  %v22491_v62 = vld [vmem:[#allocation102_spill] sm:$0xff] }
 0x4d7   :  { %v12449_v4 = vmul.f32 %v15291_v54, %v20674_v59  ;;  %v15293_v29 = vadd.f32 %v15134_v7, %v22477_v11  ;;  %v12232_v63 = vpop.f32.mrb[7].mxu1  ;;  %v12645_v1 = vmax.f32 %v12581_v27, 0.0 }
 0x4d8   :  { %v12447_v0 = vmul.f32 %v15292_v51, %v20674_v59  ;;  %v15294_v28 = vadd.f32 %v12232_v63, %v22478_v20  ;;  %v12643_v12 = vmax.f32 %v12579_v16, 0.0  ;;  %v22492_v51 = vmax.f32 %v22491_v62, 0.0  ;;  %v22493_v16 = vld [vmem:[#allocation103_spill] sm:$0xff] }
 0x4d9   :  { %v12520_v35 = vadd.f32 %v20680_v30, %v12449_v4  ;;  %v12450_v34 = vmul.f32 %v15293_v29, %v20674_v59  ;;  %v12691_v9 = vpack.c.bf16 %v12645_v1, %v12644_v60  ;;  %v22494_v4 = vmax.f32 %v22493_v16, 0.0  ;;  %v22495_v29 = vld [vmem:[#allocation161_spill] sm:$0xff]  ;;  %v22496_v1 = vld [vmem:[#allocation104_spill] sm:$0xff] }
 0x4da   :  { %v12518_v58 = vadd.f32 %v20680_v30, %v12447_v0  ;;  %v12448_v18 = vmul.f32 %v15294_v28, %v20674_v59  ;;  %v12690_v36 = vpack.c.bf16 %v12643_v12, %v12642_v56  ;;  %v22497_v0 = vmax.f32 %v22496_v1, 0.0  ;;  %v22498_v28 = vld [vmem:[#allocation157_spill] sm:$0xff] }
 0x4db   :  { %v12521_v38 = vadd.f32 %v20680_v30, %v12450_v34  ;;  %v12584_v46 = vadd.f32 %v12520_v35, %v22480_v40  ;;  %v22499_v35 = vld [vmem:[#allocation106_spill] sm:$0xff] }
 0x4dc   :  { %v12519_v24 = vadd.f32 %v20680_v30, %v12448_v18  ;;  %v15137_v33 = vpop.f32.mrb[8].mxu1  ;;  %15207 = vmatprep.mubr.bf16.mxu0 %v12690_v36  ;;  %v12582_v47 = vadd.f32 %v12518_v58, %v22482_v61  ;;  %v22500_v34 = vmax.f32 %v22499_v35, 0.0  ;;  %v22501_v18 = vld [vmem:[#allocation162_spill] sm:$0xff] }
 0x4dd   :  { %v15295_v5 = vadd.f32 %v15137_v33, %v22483_v57  ;;  %v12245_v48 = vpop.f32.mrb[9].mxu1  ;;  %15208 = vmatmul.mubr.bf16.gmra.mrb[160].mxu0 %v12691_v9  ;;  %v12585_v31 = vadd.f32 %v12521_v38, %v22485_v42  ;;  %v12648_v53 = vmax.f32 %v12584_v46, 0.0 }
 0x4de   :  { %v15296_v39 = vadd.f32 %v12245_v48, %v22486_v37  ;;  %v15138_v50 = vpop.f32.mrb[10].mxu1  ;;  %v12583_v19 = vadd.f32 %v12519_v24, %v22488_v15  ;;  %v12646_v22 = vmax.f32 %v12582_v47, 0.0  ;;  %v22502_v24 = vld [vmem:[#allocation36_spill] sm:$0xff] }
 0x4df   :  { %v12453_v2 = vmul.f32 %v15295_v5, %v20674_v59  ;;  %v15297_v43 = vadd.f32 %v15138_v50, %v22489_v6  ;;  %v12248_v25 = vpop.f32.mrb[11].mxu1  ;;  %v12649_v21 = vmax.f32 %v12585_v31, 0.0  ;;  %v22503_v37 = vld [vmem:[#allocation108_spill] sm:$0xff] }
 0x4e0   :  { %v12451_v32 = vmul.f32 %v15296_v39, %v20674_v59  ;;  %v15298_v26 = vadd.f32 %v12248_v25, %v22490_v44  ;;  %v12647_v49 = vmax.f32 %v12583_v19, 0.0  ;;  %v22504_v39 = vmax.f32 %v22503_v37, 0.0  ;;  %v22505_v19 = vld [vmem:[#allocation110_spill] sm:$0xff] }
 0x4e1   :  { %v12524_v10 = vadd.f32 %v20680_v30, %v12453_v2  ;;  %v12454_v23 = vmul.f32 %v15297_v43, %v20674_v59  ;;  %v12693_v54 = vpack.c.bf16 %v12649_v21, %v12648_v53  ;;  %v22506_v2 = vmax.f32 %v22505_v19, 0.0  ;;  %v22507_v43 = vld [vmem:[#allocation105_spill] sm:$0xff]  ;;  %v22508_v21 = vld [vmem:[#allocation111_spill] sm:$0xff] }
 0x4e2   :  { %v12522_v55 = vadd.f32 %v20680_v30, %v12451_v32  ;;  %v12452_v3 = vmul.f32 %v15298_v26, %v20674_v59  ;;  %v12692_v41 = vpack.c.bf16 %v12647_v49, %v12646_v22  ;;  %v22509_v32 = vmax.f32 %v22508_v21, 0.0  ;;  %v22510_v26 = vld [vmem:[#allocation99_spill] sm:$0xff] }
 0x4e3   :  { %v12525_v27 = vadd.f32 %v20680_v30, %v12454_v23  ;;  %v12588_v7 = vadd.f32 %v12524_v10, %v22492_v51  ;;  %v22511_v10 = vld [vmem:[#allocation112_spill] sm:$0xff] }
 0x4e4   :  { %v12523_v45 = vadd.f32 %v20680_v30, %v12452_v3  ;;  %v15141_v14 = vpop.f32.mrb[12].mxu1  ;;  %15211 = vmatprep.mubr.bf16.mxu0 %v12692_v41  ;;  %v12586_v11 = vadd.f32 %v12522_v55, %v22494_v4  ;;  %v22512_v23 = vmax.f32 %v22511_v10, 0.0  ;;  %v22513_v3 = vld [vmem:[#allocation20_spill] sm:$0xff] }
 0x4e5   :  { %v15299_v63 = vadd.f32 %v15141_v14, %v22495_v29  ;;  %v12261_v60 = vpop.f32.mrb[13].mxu1  ;;  %15212 = vmatmul.mubr.bf16.gmra.mrb[164].mxu0 %v12693_v54  ;;  %v12589_v20 = vadd.f32 %v12525_v27, %v22497_v0  ;;  %v12652_v17 = vmax.f32 %v12588_v7, 0.0 }
 0x4e6   :  { %v15300_v56 = vadd.f32 %v12261_v60, %v22498_v28  ;;  %v15142_v12 = vpop.f32.mrb[14].mxu1  ;;  %v12587_v9 = vadd.f32 %v12523_v45, %v22500_v34  ;;  %v12650_v13 = vmax.f32 %v12586_v11, 0.0  ;;  %v22514_v45 = vld [vmem:[#allocation59_spill] sm:$0xff] }
 0x4e7   :  { %v12457_v58 = vmul.f32 %v15299_v63, %v20674_v59  ;;  %v15301_v36 = vadd.f32 %v15142_v12, %v22501_v18  ;;  %v12264_v38 = vpop.f32.mrb[15].mxu1  ;;  %v12653_v40 = vmax.f32 %v12589_v20, 0.0  ;;  %v22515_v28 = vld [vmem:[#allocation115_spill] sm:$0xff] }
 0x4e8   :  { %v12455_v46 = vmul.f32 %v15300_v56, %v20674_v59  ;;  %v15302_v33 = vadd.f32 %v12264_v38, %v22502_v24  ;;  %v12651_v61 = vmax.f32 %v12587_v9, 0.0  ;;  %v22516_v56 = vmax.f32 %v22515_v28, 0.0  ;;  %v22517_v9 = vld [vmem:[#allocation116_spill] sm:$0xff] }
 0x4e9   :  { %v12528_v47 = vadd.f32 %v20680_v30, %v12457_v58  ;;  %v12458_v57 = vmul.f32 %v15301_v36, %v20674_v59  ;;  %v12695_v5 = vpack.c.bf16 %v12653_v40, %v12652_v17  ;;  %v22518_v58 = vmax.f32 %v22517_v9, 0.0  ;;  %v22519_v36 = vld [vmem:[#allocation72_spill] sm:$0xff]  ;;  %v22520_v40 = vld [vmem:[#allocation117_spill] sm:$0xff] }
 0x4ea   :  { %v12526_v48 = vadd.f32 %v20680_v30, %v12455_v46  ;;  %v12456_v8 = vmul.f32 %v15302_v33, %v20674_v59  ;;  %v12694_v42 = vpack.c.bf16 %v12651_v61, %v12650_v13  ;;  %v22521_v46 = vmax.f32 %v22520_v40, 0.0  ;;  %v22522_v33 = vld [vmem:[#allocation79_spill] sm:$0xff] }
 0x4eb   :  { %v12529_v31 = vadd.f32 %v20680_v30, %v12458_v57  ;;  %v12592_v50 = vadd.f32 %v12528_v47, %v22504_v39  ;;  %v22523_v47 = vld [vmem:[#allocation118_spill] sm:$0xff] }
 0x4ec   :  { %v12527_v52 = vadd.f32 %v20680_v30, %v12456_v8  ;;  %v15145_v15 = vpop.f32.mrb[16].mxu1  ;;  %15215 = vmatprep.mubr.bf16.mxu0 %v12694_v42  ;;  %v12590_v6 = vadd.f32 %v12526_v48, %v22506_v2  ;;  %v22524_v57 = vmax.f32 %v22523_v47, 0.0  ;;  %v22525_v8 = vld [vmem:[#allocation87_spill] sm:$0xff] }
 0x4ed   :  { %v15303_v25 = vadd.f32 %v15145_v15, %v22507_v43  ;;  %v12277_v53 = vpop.f32.mrb[17].mxu1  ;;  %15216 = vmatmul.mubr.bf16.gmra.mrb[168].mxu0 %v12695_v5  ;;  %v12593_v44 = vadd.f32 %v12529_v31, %v22509_v32  ;;  %v12656_v62 = vmax.f32 %v12592_v50, 0.0 }
 0x4ee   :  { %v15304_v22 = vadd.f32 %v12277_v53, %v22510_v26  ;;  %v15146_v49 = vpop.f32.mrb[18].mxu1  ;;  %v12591_v54 = vadd.f32 %v12527_v52, %v22512_v23  ;;  %v12654_v16 = vmax.f32 %v12590_v6, 0.0  ;;  %v22526_v52 = vld [vmem:[#allocation89_spill] sm:$0xff]  ;;  %v22527_v26 = vld [vmem:[#allocation119_spill] sm:$0xff] }
 0x4ef   :  { %v12461_v55 = vmul.f32 %v15303_v25, %v20674_v59  ;;  %v15305_v41 = vadd.f32 %v15146_v49, %v22513_v3  ;;  %v12280_v27 = vpop.f32.mrb[19].mxu1  ;;  %v12657_v51 = vmax.f32 %v12593_v44, 0.0 }
 0x4f0   :  { %v12459_v7 = vmul.f32 %v15304_v22, %v20674_v59  ;;  %v15306_v14 = vadd.f32 %v12280_v27, %v22514_v45  ;;  %v12655_v4 = vmax.f32 %v12591_v54, 0.0  ;;  %v22528_v22 = vmax.f32 %v22527_v26, 0.0  ;;  %v22529_v54 = vld [vmem:[#allocation120_spill] sm:$0xff] }
 0x4f1   :  { %v12532_v11 = vadd.f32 %v20680_v30, %v12461_v55  ;;  %v12462_v29 = vmul.f32 %v15305_v41, %v20674_v59  ;;  %v12697_v63 = vpack.c.bf16 %v12657_v51, %v12656_v62  ;;  %v22530_v55 = vmax.f32 %v22529_v54, 0.0  ;;  %v22531_v41 = vld [vmem:[#allocation93_spill] sm:$0xff] }
 0x4f2   :  { %v12530_v60 = vadd.f32 %v20680_v30, %v12459_v7  ;;  %v12460_v1 = vmul.f32 %v15306_v14, %v20674_v59  ;;  %v12696_v0 = vpack.c.bf16 %v12655_v4, %v12654_v16  ;;  %v22532_v51 = vld [vmem:[#allocation121_spill] sm:$0xff]  ;;  %v22534_v14 = vld [vmem:[#allocation94_spill] sm:$0xff] }
 0x4f3   :  { %v12533_v20 = vadd.f32 %v20680_v30, %v12462_v29  ;;  %v12596_v12 = vadd.f32 %v12532_v11, %v22516_v56  ;;  %v22533_v7 = vmax.f32 %v22532_v51, 0.0  ;;  %v22535_v11 = vld [vmem:[#allocation123_spill] sm:$0xff] }
 0x4f4   :  { %v12531_v35 = vadd.f32 %v20680_v30, %v12460_v1  ;;  %v15149_v34 = vpop.f32.mrb[20].mxu1  ;;  %15219 = vmatprep.mubr.bf16.mxu0 %v12696_v0  ;;  %v12594_v18 = vadd.f32 %v12530_v60, %v22518_v58  ;;  %v22536_v29 = vmax.f32 %v22535_v11, 0.0  ;;  %v22537_v1 = vld [vmem:[#allocation97_spill] sm:$0xff] }
 0x4f5   :  { %v15307_v38 = vadd.f32 %v15149_v34, %v22519_v36  ;;  %v12293_v17 = vpop.f32.mrb[21].mxu1  ;;  %15220 = vmatmul.mubr.bf16.gmra.mrb[172].mxu0 %v12697_v63  ;;  %v12597_v24 = vadd.f32 %v12533_v20, %v22521_v46  ;;  %v12660_v37 = vmax.f32 %v12596_v12, 0.0 }
 0x4f6   :  { %v15308_v13 = vadd.f32 %v12293_v17, %v22522_v33  ;;  %v15150_v61 = vpop.f32.mrb[22].mxu1  ;;  %v12595_v5 = vadd.f32 %v12531_v35, %v22524_v57  ;;  %v12658_v19 = vmax.f32 %v12594_v18, 0.0  ;;  %v22538_v35 = vld [vmem:[#allocation109_spill] sm:$0xff] }
 0x4f7   :  { %v12465_v48 = vmul.f32 %v15307_v38, %v20674_v59  ;;  %v15309_v42 = vadd.f32 %v15150_v61, %v22525_v8  ;;  %v12296_v31 = vpop.f32.mrb[23].mxu1  ;;  %v12661_v39 = vmax.f32 %v12597_v24, 0.0  ;;  %v22539_v33 = vld [vmem:[#allocation125_spill] sm:$0xff] }
 0x4f8   :  { %v12463_v50 = vmul.f32 %v15308_v13, %v20674_v59  ;;  %v15310_v15 = vadd.f32 %v12296_v31, %v22526_v52  ;;  %v12659_v2 = vmax.f32 %v12595_v5, 0.0  ;;  %v22540_v13 = vmax.f32 %v22539_v33, 0.0  ;;  %v22541_v5 = vld [vmem:[#allocation126_spill] sm:$0xff] }
 0x4f9   :  { %v12536_v6 = vadd.f32 %v20680_v30, %v12465_v48  ;;  %v12466_v43 = vmul.f32 %v15309_v42, %v20674_v59  ;;  %v12699_v25 = vpack.c.bf16 %v12661_v39, %v12660_v37  ;;  %v22542_v48 = vmax.f32 %v22541_v5, 0.0  ;;  %v22543_v42 = vld [vmem:[#allocation113_spill] sm:$0xff]  ;;  %v22544_v39 = vld [vmem:[#allocation128_spill] sm:$0xff] }
 0x4fa   :  { %v12534_v53 = vadd.f32 %v20680_v30, %v12463_v50  ;;  %v12464_v21 = vmul.f32 %v15310_v15, %v20674_v59  ;;  %v12698_v32 = vpack.c.bf16 %v12659_v2, %v12658_v19  ;;  %v22545_v50 = vmax.f32 %v22544_v39, 0.0  ;;  %v22546_v15 = vld [vmem:[#allocation114_spill] sm:$0xff] }
 0x4fb   :  { %v12537_v44 = vadd.f32 %v20680_v30, %v12466_v43  ;;  %v12600_v49 = vadd.f32 %v12536_v6, %v22528_v22  ;;  %v22547_v6 = vld [vmem:[#allocation131_spill] sm:$0xff] }
 0x4fc   :  { %v12535_v10 = vadd.f32 %v20680_v30, %v12464_v21  ;;  %v15153_v23 = vpop.f32.mrb[24].mxu1  ;;  %15223 = vmatprep.mubr.bf16.mxu0 %v12698_v32  ;;  %v12598_v3 = vadd.f32 %v12534_v53, %v22530_v55  ;;  %v22548_v43 = vmax.f32 %v22547_v6, 0.0  ;;  %v22549_v21 = vld [vmem:[#allocation122_spill] sm:$0xff] }
 0x4fd   :  { %v15311_v27 = vadd.f32 %v15153_v23, %v22531_v41  ;;  %v12309_v62 = vpop.f32.mrb[25].mxu1  ;;  %15224 = vmatmul.mubr.bf16.gmra.mrb[176].mxu0 %v12699_v25  ;;  %v12601_v45 = vadd.f32 %v12537_v44, %v22533_v7  ;;  %v12664_v28 = vmax.f32 %v12600_v49, 0.0 }
 0x4fe   :  { %v15312_v16 = vadd.f32 %v12309_v62, %v22534_v14  ;;  %v15154_v4 = vpop.f32.mrb[26].mxu1  ;;  %v12599_v63 = vadd.f32 %v12535_v10, %v22536_v29  ;;  %v12662_v9 = vmax.f32 %v12598_v3, 0.0  ;;  %v22550_v10 = vld [vmem:[#allocation46_spill] sm:$0xff]  ;;  %v22551_v14 = vld [vmem:[#allocation133_spill] sm:$0xff] }
 0x4ff   :  { %v12469_v60 = vmul.f32 %v15311_v27, %v20674_v59  ;;  %v15313_v0 = vadd.f32 %v15154_v4, %v22537_v1  ;;  %v12312_v20 = vpop.f32.mrb[27].mxu1  ;;  %v12665_v56 = vmax.f32 %v12601_v45, 0.0  ;;  %v22553_v29 = vld [vmem:[#allocation134_spill] sm:$0xff]  ;;  %v22555_v1 = vld [vmem:[#allocation136_spill] sm:$0xff] }
 0x500   :  { %v12467_v12 = vmul.f32 %v15312_v16, %v20674_v59  ;;  %v15314_v34 = vadd.f32 %v12312_v20, %v22538_v35  ;;  %v12663_v58 = vmax.f32 %v12599_v63, 0.0  ;;  %v22552_v16 = vmax.f32 %v22551_v14, 0.0 }
 0x501   :  { %v12540_v18 = vadd.f32 %v20680_v30, %v12469_v60  ;;  %v12470_v36 = vmul.f32 %v15313_v0, %v20674_v59  ;;  %v12701_v38 = vpack.c.bf16 %v12665_v56, %v12664_v28  ;;  %v22554_v63 = vmax.f32 %v22553_v29, 0.0  ;;  %v22557_v28 = vld [vmem:[#allocation137_spill] sm:$0xff] }
 0x502   :  { %v12538_v17 = vadd.f32 %v20680_v30, %v12467_v12  ;;  %v12468_v40 = vmul.f32 %v15314_v34, %v20674_v59  ;;  %v12700_v46 = vpack.c.bf16 %v12663_v58, %v12662_v9  ;;  %v22556_v0 = vmax.f32 %v22555_v1, 0.0 }
 0x503   :  { %v12541_v24 = vadd.f32 %v20680_v30, %v12470_v36  ;;  %v12604_v61 = vadd.f32 %v12540_v18, %v22540_v13  ;;  %v22558_v56 = vmax.f32 %v22557_v28, 0.0 }
 0x504   :  { %v12539_v47 = vadd.f32 %v20680_v30, %v12468_v40  ;;  %v15157_v57 = vpop.f32.mrb[28].mxu1  ;;  %15227 = vmatprep.mubr.bf16.mxu0 %v12700_v46  ;;  %v12602_v8 = vadd.f32 %v12538_v17, %v22542_v48 }
 0x505   :  { %v15315_v31 = vadd.f32 %v15157_v57, %v22543_v42  ;;  %v12325_v37 = vpop.f32.mrb[29].mxu1  ;;  %15228 = vmatmul.mubr.bf16.gmra.mrb[180].mxu0 %v12701_v38  ;;  %v12605_v52 = vadd.f32 %v12541_v24, %v22545_v50  ;;  %v12668_v26 = vmax.f32 %v12604_v61, 0.0  ;;  %v21009_v38 = vld [vmem:[%s21160_s9] ss:$0 sm:$0xff] }
 0x506   :  { %v15316_v19 = vadd.f32 %v12325_v37, %v22546_v15  ;;  %v15158_v2 = vpop.f32.mrb[30].mxu1  ;;  %v12603_v25 = vadd.f32 %v12539_v47, %v22548_v43  ;;  %v12666_v54 = vmax.f32 %v12602_v8, 0.0 }
 0x507   :  { %v12473_v53 = vmul.f32 %v15315_v31, %v20674_v59  ;;  %v15317_v32 = vadd.f32 %v15158_v2, %v22549_v21  ;;  %v12328_v44 = vpop.f32.mrb[31].mxu1  ;;  %v12669_v22 = vmax.f32 %v12605_v52, 0.0 }
 0x508   :  { %v12471_v49 = vmul.f32 %v15316_v19, %v20674_v59  ;;  %v15318_v23 = vadd.f32 %v12328_v44, %v22550_v10  ;;  %v12667_v55 = vmax.f32 %v12603_v25, 0.0 }
 0x509   :  { %v12544_v3 = vadd.f32 %v20680_v30, %v12473_v53  ;;  %v12474_v41 = vmul.f32 %v15317_v32, %v20674_v59  ;;  %v12703_v27 = vpack.c.bf16 %v12669_v22, %v12668_v26 }
 0x50a   :  { %v12542_v62 = vadd.f32 %v20680_v30, %v12471_v49  ;;  %v12472_v51 = vmul.f32 %v15318_v23, %v20674_v59  ;;  %v12702_v7 = vpack.c.bf16 %v12667_v55, %v12666_v54 }
 0x50b   :  { %v12545_v45 = vadd.f32 %v20680_v30, %v12474_v41  ;;  %v12608_v4 = vadd.f32 %v12544_v3, %v22552_v16 }
 0x50c   :  { %v12543_v11 = vadd.f32 %v20680_v30, %v12472_v51  ;;  %15231 = vmatprep.mubr.bf16.mxu0 %v12702_v7  ;;  %v12606_v60 = vadd.f32 %v12542_v62, %v22554_v63  ;;  %v21004_v30 = vld [vmem:[%s21159_s8] ss:$0 sm:$0xff]  ;;  %s16006_s8 = smov [#allocation3]  }
 0x50d   :  { %15232 = vmatmul.mubr.bf16.gmra.mrb[184].mxu0 %v12703_v27  ;;  %v12609_v20 = vadd.f32 %v12545_v45, %v22556_v0  ;;  %v12672_v59 = vmax.f32 %v12608_v4, 0.0  ;;  %s13334_s9 = sshll.u32 %s16006_s8, 4  ;;  %s13335_s9 = int_to_ptr.vmem [resolvable:$true] %s13334_s9 }
 0x50e   :  { %v12607_v12 = vadd.f32 %v12543_v11, %v22558_v56  ;;  %v12670_v34 = vmax.f32 %v12606_v60, 0.0  ;;  %s15979_s12 = scalar_lea.vmem %s13335_s9, 8192  ;;  %p15984_p1 = scmp.lt.s32.totalorder %s13335_s9, %s13335_s9 }
 0x50f   :  { %v12673_v35 = vmax.f32 %v12609_v20, 0.0  ;;  %p15980_p0 = scmp.ne.s32.totalorder %s13335_s9, %s15979_s12  ;;  %p15985_p2 = scmp.lt.s32.totalorder %s15979_s12, %s15979_s12 }
 0x510   :  { %v12671_v9 = vmax.f32 %v12607_v12, 0.0 }
 0x511   :  { %v12705_v58 = vpack.c.bf16 %v12673_v35, %v12672_v59  ;;  %p15986_p3 = por %p15985_p2, %p15984_p1 }
 0x512   :  { %v12704_v18 = vpack.c.bf16 %v12671_v9, %v12670_v34 }
 0x513   :  { %p15987_p4 = pnand %p15986_p3, %p15980_p0 }
 0x514   :  { %15235 = vmatprep.mubr.bf16.mxu0 %v12704_v18 }
 0x515   :  { %15236 = vmatmul.mubr.bf16.gmra.mrb[188].mxu0 %v12705_v58 }
 0x570   :  { %v15177_v36 = vpop.f32.mrb[128].mxu0 }
 0x571   :  { %v13068_v17 = vmul.f32 %v15177_v36, %v21004_v30  ;;  %v12804_v40 = vpop.f32.mrb[129].mxu0 }
 0x572   :  { %v13066_v46 = vmul.f32 %v21004_v30, %v12804_v40  ;;  %v15178_v24 = vpop.f32.mrb[130].mxu0 }
 0x573   :  { %v13139_v33 = vadd.f32 %v21009_v38, %v13068_v17  ;;  %v13069_v13 = vmul.f32 %v15178_v24, %v21004_v30  ;;  %v12807_v61 = vpop.f32.mrb[131].mxu0 }
 0x574   :  { %v13137_v47 = vadd.f32 %v21009_v38, %v13066_v46  ;;  %v13067_v57 = vmul.f32 %v21004_v30, %v12807_v61 }
 0x575   :  { %v13203_v5 = vmax.f32 %v13139_v33, 0.0  ;;  %v13140_v48 = vadd.f32 %v21009_v38, %v13069_v13 }
 0x576   :  { %v13201_v8 = vmax.f32 %v13137_v47, 0.0  ;;  %v13138_v42 = vadd.f32 %v21009_v38, %v13067_v57 }
 0x577   :  { %13267 = vst [vmem:[#allocation3 + $0x10] sm:$0xff] %v13203_v5  ;;  %v13204_v31 = vmax.f32 %v13140_v48, 0.0 }
 0x578   :  { %13265 = vst [vmem:[#allocation3] sm:$0xff] %v13201_v8  ;;  %v13202_v37 = vmax.f32 %v13138_v42, 0.0  ;;  %v15181_v39 = vpop.f32.mrb[132].mxu0 }
 0x579   :  { %13268 = vst [vmem:[#allocation3 + $0x18] sm:$0xff] %v13204_v31  ;;  %v13072_v50 = vmul.f32 %v15181_v39, %v21004_v30  ;;  %v12820_v52 = vpop.f32.mrb[133].mxu0 }
 0x57a   :  { %13266 = vst [vmem:[#allocation3 + $0x8] sm:$0xff] %v13202_v37  ;;  %v13070_v15 = vmul.f32 %v21004_v30, %v12820_v52  ;;  %v15182_v19 = vpop.f32.mrb[134].mxu0 }
 0x57b   :  { %v13143_v2 = vadd.f32 %v21009_v38, %v13072_v50  ;;  %v13073_v6 = vmul.f32 %v15182_v19, %v21004_v30  ;;  %v12823_v43 = vpop.f32.mrb[135].mxu0 }
 0x57c   :  { %v13141_v25 = vadd.f32 %v21009_v38, %v13070_v15  ;;  %v13071_v53 = vmul.f32 %v21004_v30, %v12823_v43 }
 0x57d   :  { %v13207_v21 = vmax.f32 %v13143_v2, 0.0  ;;  %v13144_v32 = vadd.f32 %v21009_v38, %v13073_v6 }
 0x57e   :  { %v13205_v44 = vmax.f32 %v13141_v25, 0.0  ;;  %v13142_v26 = vadd.f32 %v21009_v38, %v13071_v53 }
 0x57f   :  { %13271 = vst [vmem:[#allocation3 + $0x30] sm:$0xff] %v13207_v21  ;;  %v13208_v22 = vmax.f32 %v13144_v32, 0.0 }
 0x580   :  { %13269 = vst [vmem:[#allocation3 + $0x20] sm:$0xff] %v13205_v44  ;;  %v13206_v49 = vmax.f32 %v13142_v26, 0.0  ;;  %v15185_v10 = vpop.f32.mrb[136].mxu0 }
 0x581   :  { %13272 = vst [vmem:[#allocation3 + $0x38] sm:$0xff] %v13208_v22  ;;  %v13076_v23 = vmul.f32 %v15185_v10, %v21004_v30  ;;  %v12836_v54 = vpop.f32.mrb[137].mxu0 }
 0x582   :  { %13270 = vst [vmem:[#allocation3 + $0x28] sm:$0xff] %v13206_v49  ;;  %v13074_v55 = vmul.f32 %v21004_v30, %v12836_v54  ;;  %v15186_v3 = vpop.f32.mrb[138].mxu0 }
 0x583   :  { %v13147_v41 = vadd.f32 %v21009_v38, %v13076_v23  ;;  %v13077_v27 = vmul.f32 %v15186_v3, %v21004_v30  ;;  %v12839_v62 = vpop.f32.mrb[139].mxu0 }
 0x584   :  { %v13145_v51 = vadd.f32 %v21009_v38, %v13074_v55  ;;  %v13075_v7 = vmul.f32 %v21004_v30, %v12839_v62 }
 0x585   :  { %v13211_v45 = vmax.f32 %v13147_v41, 0.0  ;;  %v13148_v14 = vadd.f32 %v21009_v38, %v13077_v27 }
 0x586   :  { %v13209_v16 = vmax.f32 %v13145_v51, 0.0  ;;  %v13146_v4 = vadd.f32 %v21009_v38, %v13075_v7 }
 0x587   :  { %13275 = vst [vmem:[#allocation3 + $0x50] sm:$0xff] %v13211_v45  ;;  %v13212_v11 = vmax.f32 %v13148_v14, 0.0 }
 0x588   :  { %13273 = vst [vmem:[#allocation3 + $0x40] sm:$0xff] %v13209_v16  ;;  %v13210_v29 = vmax.f32 %v13146_v4, 0.0  ;;  %v15189_v63 = vpop.f32.mrb[140].mxu0 }
 0x589   :  { %13276 = vst [vmem:[#allocation3 + $0x58] sm:$0xff] %v13212_v11  ;;  %v13080_v60 = vmul.f32 %v15189_v63, %v21004_v30  ;;  %v12852_v1 = vpop.f32.mrb[141].mxu0 }
 0x58a   :  { %13274 = vst [vmem:[#allocation3 + $0x48] sm:$0xff] %v13210_v29  ;;  %v13078_v0 = vmul.f32 %v21004_v30, %v12852_v1  ;;  %v15190_v20 = vpop.f32.mrb[142].mxu0 }
 0x58b   :  { %v13151_v28 = vadd.f32 %v21009_v38, %v13080_v60  ;;  %v13081_v56 = vmul.f32 %v15190_v20, %v21004_v30  ;;  %v12855_v12 = vpop.f32.mrb[143].mxu0 }
 0x58c   :  { %v13149_v59 = vadd.f32 %v21009_v38, %v13078_v0  ;;  %v13079_v35 = vmul.f32 %v21004_v30, %v12855_v12 }
 0x58d   :  { %v13215_v34 = vmax.f32 %v13151_v28, 0.0  ;;  %v13152_v9 = vadd.f32 %v21009_v38, %v13081_v56 }
 0x58e   :  { %v13213_v58 = vmax.f32 %v13149_v59, 0.0  ;;  %v13150_v18 = vadd.f32 %v21009_v38, %v13079_v35 }
 0x58f   :  { %13279 = vst [vmem:[#allocation3 + $0x70] sm:$0xff] %v13215_v34  ;;  %v13216_v36 = vmax.f32 %v13152_v9, 0.0 }
 0x590   :  { %13277 = vst [vmem:[#allocation3 + $0x60] sm:$0xff] %v13213_v58  ;;  %v13214_v17 = vmax.f32 %v13150_v18, 0.0  ;;  %v15193_v40 = vpop.f32.mrb[144].mxu0 }
 0x591   :  { %13280 = vst [vmem:[#allocation3 + $0x78] sm:$0xff] %v13216_v36  ;;  %v13084_v46 = vmul.f32 %v15193_v40, %v21004_v30  ;;  %v12868_v24 = vpop.f32.mrb[145].mxu0 }
 0x592   :  { %13278 = vst [vmem:[#allocation3 + $0x68] sm:$0xff] %v13214_v17  ;;  %v13082_v33 = vmul.f32 %v21004_v30, %v12868_v24  ;;  %v15194_v13 = vpop.f32.mrb[146].mxu0 }
 0x593   :  { %v13155_v61 = vadd.f32 %v21009_v38, %v13084_v46  ;;  %v13085_v47 = vmul.f32 %v15194_v13, %v21004_v30  ;;  %v12871_v57 = vpop.f32.mrb[147].mxu0 }
 0x594   :  { %v13153_v5 = vadd.f32 %v21009_v38, %v13082_v33  ;;  %v13083_v48 = vmul.f32 %v21004_v30, %v12871_v57 }
 0x595   :  { %v13219_v8 = vmax.f32 %v13155_v61, 0.0  ;;  %v13156_v42 = vadd.f32 %v21009_v38, %v13085_v47 }
 0x596   :  { %v13217_v31 = vmax.f32 %v13153_v5, 0.0  ;;  %v13154_v37 = vadd.f32 %v21009_v38, %v13083_v48 }
 0x597   :  { %13283 = vst [vmem:[#allocation3 + $0x90] sm:$0xff] %v13219_v8  ;;  %v13220_v39 = vmax.f32 %v13156_v42, 0.0 }
 0x598   :  { %13281 = vst [vmem:[#allocation3 + $0x80] sm:$0xff] %v13217_v31  ;;  %v13218_v50 = vmax.f32 %v13154_v37, 0.0  ;;  %v15197_v52 = vpop.f32.mrb[148].mxu0 }
 0x599   :  { %13284 = vst [vmem:[#allocation3 + $0x98] sm:$0xff] %v13220_v39  ;;  %v13088_v15 = vmul.f32 %v15197_v52, %v21004_v30  ;;  %v12884_v19 = vpop.f32.mrb[149].mxu0 }
 0x59a   :  { %13282 = vst [vmem:[#allocation3 + $0x88] sm:$0xff] %v13218_v50  ;;  %v13086_v2 = vmul.f32 %v21004_v30, %v12884_v19  ;;  %v15198_v6 = vpop.f32.mrb[150].mxu0 }
 0x59b   :  { %v13159_v43 = vadd.f32 %v21009_v38, %v13088_v15  ;;  %v13089_v25 = vmul.f32 %v15198_v6, %v21004_v30  ;;  %v12887_v53 = vpop.f32.mrb[151].mxu0 }
 0x59c   :  { %v13157_v21 = vadd.f32 %v21009_v38, %v13086_v2  ;;  %v13087_v32 = vmul.f32 %v21004_v30, %v12887_v53 }
 0x59d   :  { %v13223_v44 = vmax.f32 %v13159_v43, 0.0  ;;  %v13160_v26 = vadd.f32 %v21009_v38, %v13089_v25 }
 0x59e   :  { %v13221_v22 = vmax.f32 %v13157_v21, 0.0  ;;  %v13158_v49 = vadd.f32 %v21009_v38, %v13087_v32 }
 0x59f   :  { %13287 = vst [vmem:[#allocation3 + $0xb0] sm:$0xff] %v13223_v44  ;;  %v13224_v10 = vmax.f32 %v13160_v26, 0.0 }
 0x5a0   :  { %13285 = vst [vmem:[#allocation3 + $0xa0] sm:$0xff] %v13221_v22  ;;  %v13222_v23 = vmax.f32 %v13158_v49, 0.0  ;;  %v15201_v54 = vpop.f32.mrb[152].mxu0 }
 0x5a1   :  { %13288 = vst [vmem:[#allocation3 + $0xb8] sm:$0xff] %v13224_v10  ;;  %v13092_v55 = vmul.f32 %v15201_v54, %v21004_v30  ;;  %v12900_v3 = vpop.f32.mrb[153].mxu0 }
 0x5a2   :  { %13286 = vst [vmem:[#allocation3 + $0xa8] sm:$0xff] %v13222_v23  ;;  %v13090_v41 = vmul.f32 %v21004_v30, %v12900_v3  ;;  %v15202_v27 = vpop.f32.mrb[154].mxu0 }
 0x5a3   :  { %v13163_v62 = vadd.f32 %v21009_v38, %v13092_v55  ;;  %v13093_v51 = vmul.f32 %v15202_v27, %v21004_v30  ;;  %v12903_v7 = vpop.f32.mrb[155].mxu0 }
 0x5a4   :  { %v13161_v45 = vadd.f32 %v21009_v38, %v13090_v41  ;;  %v13091_v14 = vmul.f32 %v21004_v30, %v12903_v7 }
 0x5a5   :  { %v13227_v16 = vmax.f32 %v13163_v62, 0.0  ;;  %v13164_v4 = vadd.f32 %v21009_v38, %v13093_v51 }
 0x5a6   :  { %v13225_v11 = vmax.f32 %v13161_v45, 0.0  ;;  %v13162_v29 = vadd.f32 %v21009_v38, %v13091_v14 }
 0x5a7   :  { %13291 = vst [vmem:[#allocation3 + $0xd0] sm:$0xff] %v13227_v16  ;;  %v13228_v63 = vmax.f32 %v13164_v4, 0.0 }
 0x5a8   :  { %13289 = vst [vmem:[#allocation3 + $0xc0] sm:$0xff] %v13225_v11  ;;  %v13226_v60 = vmax.f32 %v13162_v29, 0.0  ;;  %v15205_v1 = vpop.f32.mrb[156].mxu0 }
 0x5a9   :  { %13292 = vst [vmem:[#allocation3 + $0xd8] sm:$0xff] %v13228_v63  ;;  %v13096_v0 = vmul.f32 %v15205_v1, %v21004_v30  ;;  %v12916_v20 = vpop.f32.mrb[157].mxu0 }
 0x5aa   :  { %13290 = vst [vmem:[#allocation3 + $0xc8] sm:$0xff] %v13226_v60  ;;  %v13094_v28 = vmul.f32 %v21004_v30, %v12916_v20  ;;  %v15206_v56 = vpop.f32.mrb[158].mxu0 }
 0x5ab   :  { %v13167_v12 = vadd.f32 %v21009_v38, %v13096_v0  ;;  %v13097_v59 = vmul.f32 %v15206_v56, %v21004_v30  ;;  %v12919_v35 = vpop.f32.mrb[159].mxu0 }
 0x5ac   :  { %v13165_v34 = vadd.f32 %v21009_v38, %v13094_v28  ;;  %v13095_v9 = vmul.f32 %v21004_v30, %v12919_v35 }
 0x5ad   :  { %v13231_v58 = vmax.f32 %v13167_v12, 0.0  ;;  %v13168_v18 = vadd.f32 %v21009_v38, %v13097_v59 }
 0x5ae   :  { %v13229_v36 = vmax.f32 %v13165_v34, 0.0  ;;  %v13166_v17 = vadd.f32 %v21009_v38, %v13095_v9 }
 0x5af   :  { %13295 = vst [vmem:[#allocation3 + $0xf0] sm:$0xff] %v13231_v58  ;;  %v13232_v40 = vmax.f32 %v13168_v18, 0.0 }
 0x5b0   :  { %13293 = vst [vmem:[#allocation3 + $0xe0] sm:$0xff] %v13229_v36  ;;  %v13230_v46 = vmax.f32 %v13166_v17, 0.0  ;;  %v15209_v24 = vpop.f32.mrb[160].mxu0 }
 0x5b1   :  { %13296 = vst [vmem:[#allocation3 + $0xf8] sm:$0xff] %v13232_v40  ;;  %v13100_v33 = vmul.f32 %v15209_v24, %v21004_v30  ;;  %v12932_v13 = vpop.f32.mrb[161].mxu0 }
 0x5b2   :  { %13294 = vst [vmem:[#allocation3 + $0xe8] sm:$0xff] %v13230_v46  ;;  %v13098_v61 = vmul.f32 %v21004_v30, %v12932_v13  ;;  %v15210_v47 = vpop.f32.mrb[162].mxu0 }
 0x5b3   :  { %v13171_v57 = vadd.f32 %v21009_v38, %v13100_v33  ;;  %v13101_v5 = vmul.f32 %v15210_v47, %v21004_v30  ;;  %v12935_v48 = vpop.f32.mrb[163].mxu0 }
 0x5b4   :  { %v13169_v8 = vadd.f32 %v21009_v38, %v13098_v61  ;;  %v13099_v42 = vmul.f32 %v21004_v30, %v12935_v48 }
 0x5b5   :  { %v13235_v31 = vmax.f32 %v13171_v57, 0.0  ;;  %v13172_v37 = vadd.f32 %v21009_v38, %v13101_v5 }
 0x5b6   :  { %v13233_v39 = vmax.f32 %v13169_v8, 0.0  ;;  %v13170_v50 = vadd.f32 %v21009_v38, %v13099_v42 }
 0x5b7   :  { %13299 = vst [vmem:[#allocation3 + $0x110] sm:$0xff] %v13235_v31  ;;  %v13236_v52 = vmax.f32 %v13172_v37, 0.0 }
 0x5b8   :  { %13297 = vst [vmem:[#allocation3 + $0x100] sm:$0xff] %v13233_v39  ;;  %v13234_v15 = vmax.f32 %v13170_v50, 0.0  ;;  %v15213_v19 = vpop.f32.mrb[164].mxu0 }
 0x5b9   :  { %13300 = vst [vmem:[#allocation3 + $0x118] sm:$0xff] %v13236_v52  ;;  %v13104_v2 = vmul.f32 %v15213_v19, %v21004_v30  ;;  %v12948_v6 = vpop.f32.mrb[165].mxu0 }
 0x5ba   :  { %13298 = vst [vmem:[#allocation3 + $0x108] sm:$0xff] %v13234_v15  ;;  %v13102_v43 = vmul.f32 %v21004_v30, %v12948_v6  ;;  %v15214_v25 = vpop.f32.mrb[166].mxu0 }
 0x5bb   :  { %v13175_v53 = vadd.f32 %v21009_v38, %v13104_v2  ;;  %v13105_v21 = vmul.f32 %v15214_v25, %v21004_v30  ;;  %v12951_v32 = vpop.f32.mrb[167].mxu0 }
 0x5bc   :  { %v13173_v44 = vadd.f32 %v21009_v38, %v13102_v43  ;;  %v13103_v26 = vmul.f32 %v21004_v30, %v12951_v32 }
 0x5bd   :  { %v13239_v22 = vmax.f32 %v13175_v53, 0.0  ;;  %v13176_v49 = vadd.f32 %v21009_v38, %v13105_v21 }
 0x5be   :  { %v13237_v10 = vmax.f32 %v13173_v44, 0.0  ;;  %v13174_v23 = vadd.f32 %v21009_v38, %v13103_v26 }
 0x5bf   :  { %13303 = vst [vmem:[#allocation3 + $0x130] sm:$0xff] %v13239_v22  ;;  %v13240_v54 = vmax.f32 %v13176_v49, 0.0 }
 0x5c0   :  { %13301 = vst [vmem:[#allocation3 + $0x120] sm:$0xff] %v13237_v10  ;;  %v13238_v55 = vmax.f32 %v13174_v23, 0.0  ;;  %v15217_v3 = vpop.f32.mrb[168].mxu0 }
 0x5c1   :  { %13304 = vst [vmem:[#allocation3 + $0x138] sm:$0xff] %v13240_v54  ;;  %v13108_v41 = vmul.f32 %v15217_v3, %v21004_v30  ;;  %v12964_v27 = vpop.f32.mrb[169].mxu0 }
 0x5c2   :  { %13302 = vst [vmem:[#allocation3 + $0x128] sm:$0xff] %v13238_v55  ;;  %v13106_v62 = vmul.f32 %v21004_v30, %v12964_v27  ;;  %v15218_v51 = vpop.f32.mrb[170].mxu0 }
 0x5c3   :  { %v13179_v7 = vadd.f32 %v21009_v38, %v13108_v41  ;;  %v13109_v45 = vmul.f32 %v15218_v51, %v21004_v30  ;;  %v12967_v14 = vpop.f32.mrb[171].mxu0 }
 0x5c4   :  { %v13177_v16 = vadd.f32 %v21009_v38, %v13106_v62  ;;  %v13107_v4 = vmul.f32 %v21004_v30, %v12967_v14 }
 0x5c5   :  { %v13243_v11 = vmax.f32 %v13179_v7, 0.0  ;;  %v13180_v29 = vadd.f32 %v21009_v38, %v13109_v45 }
 0x5c6   :  { %v13241_v63 = vmax.f32 %v13177_v16, 0.0  ;;  %v13178_v60 = vadd.f32 %v21009_v38, %v13107_v4 }
 0x5c7   :  { %13307 = vst [vmem:[#allocation3 + $0x150] sm:$0xff] %v13243_v11  ;;  %v13244_v1 = vmax.f32 %v13180_v29, 0.0 }
 0x5c8   :  { %13305 = vst [vmem:[#allocation3 + $0x140] sm:$0xff] %v13241_v63  ;;  %v13242_v0 = vmax.f32 %v13178_v60, 0.0  ;;  %v15221_v20 = vpop.f32.mrb[172].mxu0 }
 0x5c9   :  { %13308 = vst [vmem:[#allocation3 + $0x158] sm:$0xff] %v13244_v1  ;;  %v13112_v28 = vmul.f32 %v15221_v20, %v21004_v30  ;;  %v12980_v56 = vpop.f32.mrb[173].mxu0 }
 0x5ca   :  { %13306 = vst [vmem:[#allocation3 + $0x148] sm:$0xff] %v13242_v0  ;;  %v13110_v12 = vmul.f32 %v21004_v30, %v12980_v56  ;;  %v15222_v59 = vpop.f32.mrb[174].mxu0 }
 0x5cb   :  { %v13183_v35 = vadd.f32 %v21009_v38, %v13112_v28  ;;  %v13113_v34 = vmul.f32 %v15222_v59, %v21004_v30  ;;  %v12983_v9 = vpop.f32.mrb[175].mxu0 }
 0x5cc   :  { %v13181_v58 = vadd.f32 %v21009_v38, %v13110_v12  ;;  %v13111_v18 = vmul.f32 %v21004_v30, %v12983_v9 }
 0x5cd   :  { %v13247_v36 = vmax.f32 %v13183_v35, 0.0  ;;  %v13184_v17 = vadd.f32 %v21009_v38, %v13113_v34 }
 0x5ce   :  { %v13245_v40 = vmax.f32 %v13181_v58, 0.0  ;;  %v13182_v46 = vadd.f32 %v21009_v38, %v13111_v18 }
 0x5cf   :  { %13311 = vst [vmem:[#allocation3 + $0x170] sm:$0xff] %v13247_v36  ;;  %v13248_v24 = vmax.f32 %v13184_v17, 0.0 }
 0x5d0   :  { %13309 = vst [vmem:[#allocation3 + $0x160] sm:$0xff] %v13245_v40  ;;  %v13246_v33 = vmax.f32 %v13182_v46, 0.0  ;;  %v15225_v13 = vpop.f32.mrb[176].mxu0 }
 0x5d1   :  { %13312 = vst [vmem:[#allocation3 + $0x178] sm:$0xff] %v13248_v24  ;;  %v13116_v61 = vmul.f32 %v15225_v13, %v21004_v30  ;;  %v12996_v47 = vpop.f32.mrb[177].mxu0 }
 0x5d2   :  { %13310 = vst [vmem:[#allocation3 + $0x168] sm:$0xff] %v13246_v33  ;;  %v13114_v57 = vmul.f32 %v21004_v30, %v12996_v47  ;;  %v15226_v5 = vpop.f32.mrb[178].mxu0 }
 0x5d3   :  { %v13187_v48 = vadd.f32 %v21009_v38, %v13116_v61  ;;  %v13117_v8 = vmul.f32 %v15226_v5, %v21004_v30  ;;  %v12999_v42 = vpop.f32.mrb[179].mxu0 }
 0x5d4   :  { %v13185_v31 = vadd.f32 %v21009_v38, %v13114_v57  ;;  %v13115_v37 = vmul.f32 %v21004_v30, %v12999_v42 }
 0x5d5   :  { %v13251_v39 = vmax.f32 %v13187_v48, 0.0  ;;  %v13188_v50 = vadd.f32 %v21009_v38, %v13117_v8 }
 0x5d6   :  { %v13249_v52 = vmax.f32 %v13185_v31, 0.0  ;;  %v13186_v15 = vadd.f32 %v21009_v38, %v13115_v37 }
 0x5d7   :  { %13315 = vst [vmem:[#allocation3 + $0x190] sm:$0xff] %v13251_v39  ;;  %v13252_v19 = vmax.f32 %v13188_v50, 0.0 }
 0x5d8   :  { %13313 = vst [vmem:[#allocation3 + $0x180] sm:$0xff] %v13249_v52  ;;  %v13250_v2 = vmax.f32 %v13186_v15, 0.0  ;;  %v15229_v6 = vpop.f32.mrb[180].mxu0 }
 0x5d9   :  { %13316 = vst [vmem:[#allocation3 + $0x198] sm:$0xff] %v13252_v19  ;;  %v13120_v43 = vmul.f32 %v15229_v6, %v21004_v30  ;;  %v13012_v25 = vpop.f32.mrb[181].mxu0 }
 0x5da   :  { %13314 = vst [vmem:[#allocation3 + $0x188] sm:$0xff] %v13250_v2  ;;  %v13118_v53 = vmul.f32 %v21004_v30, %v13012_v25  ;;  %v15230_v21 = vpop.f32.mrb[182].mxu0 }
 0x5db   :  { %v13191_v32 = vadd.f32 %v21009_v38, %v13120_v43  ;;  %v13121_v44 = vmul.f32 %v15230_v21, %v21004_v30  ;;  %v13015_v26 = vpop.f32.mrb[183].mxu0 }
 0x5dc   :  { %v13189_v22 = vadd.f32 %v21009_v38, %v13118_v53  ;;  %v13119_v49 = vmul.f32 %v21004_v30, %v13015_v26 }
 0x5dd   :  { %v13255_v10 = vmax.f32 %v13191_v32, 0.0  ;;  %v13192_v23 = vadd.f32 %v21009_v38, %v13121_v44 }
 0x5de   :  { %v13253_v54 = vmax.f32 %v13189_v22, 0.0  ;;  %v13190_v55 = vadd.f32 %v21009_v38, %v13119_v49 }
 0x5df   :  { %13319 = vst [vmem:[#allocation3 + $0x1b0] sm:$0xff] %v13255_v10  ;;  %v13256_v3 = vmax.f32 %v13192_v23, 0.0 }
 0x5e0   :  { %13317 = vst [vmem:[#allocation3 + $0x1a0] sm:$0xff] %v13253_v54  ;;  %v13254_v41 = vmax.f32 %v13190_v55, 0.0  ;;  %v15233_v27 = vpop.f32.mrb[184].mxu0 }
 0x5e1   :  { %13320 = vst [vmem:[#allocation3 + $0x1b8] sm:$0xff] %v13256_v3  ;;  %v13124_v62 = vmul.f32 %v15233_v27, %v21004_v30  ;;  %v13028_v51 = vpop.f32.mrb[185].mxu0 }
 0x5e2   :  { %13318 = vst [vmem:[#allocation3 + $0x1a8] sm:$0xff] %v13254_v41  ;;  %v13122_v7 = vmul.f32 %v21004_v30, %v13028_v51  ;;  %v15234_v45 = vpop.f32.mrb[186].mxu0 }
 0x5e3   :  { %v13195_v14 = vadd.f32 %v21009_v38, %v13124_v62  ;;  %v13125_v16 = vmul.f32 %v15234_v45, %v21004_v30  ;;  %v13031_v4 = vpop.f32.mrb[187].mxu0 }
 0x5e4   :  { %v13193_v11 = vadd.f32 %v21009_v38, %v13122_v7  ;;  %v13123_v29 = vmul.f32 %v21004_v30, %v13031_v4 }
 0x5e5   :  { %v13259_v63 = vmax.f32 %v13195_v14, 0.0  ;;  %v13196_v60 = vadd.f32 %v21009_v38, %v13125_v16 }
 0x5e6   :  { %v13257_v1 = vmax.f32 %v13193_v11, 0.0  ;;  %v13194_v0 = vadd.f32 %v21009_v38, %v13123_v29 }
 0x5e7   :  { %13323 = vst [vmem:[#allocation3 + $0x1d0] sm:$0xff] %v13259_v63  ;;  %v13260_v20 = vmax.f32 %v13196_v60, 0.0 }
 0x5e8   :  { %13321 = vst [vmem:[#allocation3 + $0x1c0] sm:$0xff] %v13257_v1  ;;  %v13258_v28 = vmax.f32 %v13194_v0, 0.0  ;;  %v15237_v56 = vpop.f32.mrb[188].mxu0 }
 0x5e9   :  { %13324 = vst [vmem:[#allocation3 + $0x1d8] sm:$0xff] %v13260_v20  ;;  %v13128_v12 = vmul.f32 %v15237_v56, %v21004_v30  ;;  %v13044_v59 = vpop.f32.mrb[189].mxu0 }
 0x5ea   :  { %13322 = vst [vmem:[#allocation3 + $0x1c8] sm:$0xff] %v13258_v28  ;;  %v13126_v35 = vmul.f32 %v21004_v30, %v13044_v59  ;;  %v15238_v34 = vpop.f32.mrb[190].mxu0 }
 0x5eb   :  { %v13199_v9 = vadd.f32 %v21009_v38, %v13128_v12  ;;  %v13129_v58 = vmul.f32 %v15238_v34, %v21004_v30  ;;  %v13047_v18 = vpop.f32.mrb[191].mxu0 }
 0x5ec   :  { %v13197_v36 = vadd.f32 %v21009_v38, %v13126_v35  ;;  %v13127_v17 = vmul.f32 %v21004_v30, %v13047_v18 }
 0x5ed   :  { %v13263_v40 = vmax.f32 %v13199_v9, 0.0  ;;  %v13200_v46 = vadd.f32 %v21009_v38, %v13129_v58 }
 0x5ee   :  { %v13261_v24 = vmax.f32 %v13197_v36, 0.0  ;;  %v13198_v33 = vadd.f32 %v21009_v38, %v13127_v17 }
 0x5ef   :  { %13327 = vst [vmem:[#allocation3 + $0x1f0] sm:$0xff] %v13263_v40  ;;  %v13264_v13 = vmax.f32 %v13200_v46, 0.0 }
 0x5f0   :  { %13325 = vst [vmem:[#allocation3 + $0x1e0] sm:$0xff] %v13261_v24  ;;  %v13262_v61 = vmax.f32 %v13198_v33, 0.0 }
 0x5f1   :  { %13328 = vst [vmem:[#allocation3 + $0x1f8] sm:$0xff] %v13264_v13 }
 0x5f2   :  { %13326 = vst [vmem:[#allocation3 + $0x1e8] sm:$0xff] %v13262_v61 }
 0x5f3   :  { %15990 = shalt.err (!%p15987_p4)
}
 0x5f4   :  { %s15991_s15 = scalar_lea.hbm %s21161_s10, 8192 }
 0x5f5   :  { %p15992_p5 = scmp.ne.s32.totalorder %s21161_s10, %s15991_s15  ;;  %p15995_p6 = scmp.lt.u32.totalorder %s15991_s15, %s21161_s10 }
 0x5f7   :  { %p15997_p7 = pnand %p15995_p6, %p15992_p5 }
 0x5f9   :  { %16000 = shalt.err (!%p15997_p7)
}
 0x5fa   :  { %s16007_s1 = smov 128   ;;  %s16008_s19 = smov 8  }
 0x5fb   :  { %13340 = dma.vmem_to_hbm [thread:$0]  %s13335_s9, 8192, %s21161_s10, [#allocation4], %s16007_s1, %s16007_s1, %s16008_s19  }
 0x5fc   :  { %16001 = dma.done.wait [#allocation4], 8192  }
 0x5fd   :  { %16002 = vsyncadd [#allocation4], 4294959104 }
 0x5fe   :  { %13344 = vsyncpa [#allocation4], 1 }

</bundles_post_ra>
